<compile_context>
chip_gen: v7x
topology: tpu7x:2x2x1
jax: 0.10.0
libtpu: 0.0.40
codegen_flags: <defaults>
</compile_context>

<pallas_src>
import functools

import numpy as np
import jax
import jax.numpy as jnp
from jax.experimental import pallas as pl
from jax.experimental.pallas import tpu as pltpu


CONV_SPECS = ((32, 8, 4), (64, 4, 2), (64, 3, 1))   # (out_ch, kernel, stride)
S2D = 4                        # space-to-depth factor (= conv1 stride)
LANES = 128                    # small channel dims padded to this lane width
VMEM_LIMIT = 32 * 1024 * 1024  # > v5e's 16 MiB scoped default, < v7x physical


def _round_up(x, m):
    return (x + m - 1) // m * m


def _conv_out_hw(h, w):
    for _, k, s in CONV_SPECS:
        h, w = (h - k) // s + 1, (w - k) // s + 1
    return h, w


def _geometry(input_dim):
    """Static shape bookkeeping for the fused kernel."""
    c, h, w = input_dim
    assert c == 3, "DQNetwork conv stack expects 3 input channels"
    hs, ws = -(-h // S2D), -(-w // S2D)               # space-to-depth grid
    oh1, ow1 = (h - 8) // 4 + 1, (w - 8) // 4 + 1
    oh2, ow2 = (oh1 - 4) // 2 + 1, (ow1 - 4) // 2 + 1
    oh3, ow3 = oh2 - 2, ow2 - 2
    return dict(
        hs=hs, ws=ws, c1k=3 * S2D * S2D,
        oh1=oh1, ow1=ow1, m1=_round_up(oh1 * ow1, 8),
        oh2=oh2, ow2=ow2, m2=_round_up(oh2 * ow2, 8),
        oh3=oh3, ow3=ow3, m3=_round_up(oh3 * ow3, 8),
        p3=oh3 * ow3,
    )


def _select_matrix(oh, ow, in_w, in_cols, k, s, rows_pad):
    """0/1 patch-gather matrix.

    Row t*rows_pad + (a*ow + b) of tap t = i*k + j is a one-hot over the
    previous layer's row (s*a + i)*in_w + (s*b + j).  Padding rows stay zero,
    so downstream layers simply never reference them.
    """
    m = np.zeros((k * k * rows_pad, in_cols), np.float32)
    for i in range(k):
        for j in range(k):
            t = i * k + j
            for a in range(oh):
                for b in range(ow):
                    m[t * rows_pad + a * ow + b,
                      (s * a + i) * in_w + (s * b + j)] = 1.0
    return m


# ------------------------------ parameters --------------------------------- #

def init_params(key, input_dim, output_dim):
    """PyTorch-layout parameters (OIHW conv weights, NCHW-flatten fc1)."""
    c, h, w = input_dim
    assert c == 3
    keys = jax.random.split(key, 10)

    def rnd(k, shape, scale=0.05):
        return jax.random.normal(k, shape, dtype=jnp.float32) * scale

    oh, ow = _conv_out_hw(h, w)
    flat = 64 * oh * ow                  # mirrors _get_conv_output
    return {
        "w1": rnd(keys[0], (32, 3, 8, 8)),   "b1": rnd(keys[1], (32,)),
        "w2": rnd(keys[2], (64, 32, 4, 4)),  "b2": rnd(keys[3], (64,)),
        "w3": rnd(keys[4], (64, 64, 3, 3)),  "b3": rnd(keys[5], (64,)),
        "fc1_w": rnd(keys[6], (flat, 512)),  "fc1_b": rnd(keys[7], (512,)),
        "fc2_w": rnd(keys[8], (512, output_dim)),
        "fc2_b": rnd(keys[9], (output_dim,)),
    }


def prepare_params(params, input_dim, compute_dtype=jnp.bfloat16):
    """One-time layout work: permute conv/fc1 weights into the kernel's
    tap-major, lane-padded layout, build the patch-gather selection matrices,
    cast MXU operands to compute_dtype (biases stay f32)."""
    g = _geometry(input_dim)
    cdt = compute_dtype
    prep = {}

    # conv1 on the space-to-depth input: 2x2 taps over (hs, ws, 48) blocks.
    w1 = params["w1"].reshape(32, 3, 2, S2D, 2, S2D)      # oc,c,dh,hi,dw,wi
    w1 = w1.transpose(2, 4, 1, 3, 5, 0).reshape(4, g["c1k"], 32)
    prep["w1"] = jnp.pad(w1, ((0, 0), (0, 0), (0, LANES - 32))).astype(cdt)
    prep["b1"] = jnp.pad(params["b1"], (0, LANES - 32)
                         ).astype(jnp.float32).reshape(1, LANES)

    # conv2 / conv3: tap-major (k*k, in_ch padded to 128, out_ch padded to 128).
    w2 = params["w2"].transpose(2, 3, 1, 0).reshape(16, 32, 64)
    prep["w2"] = jnp.pad(w2, ((0, 0), (0, LANES - 32), (0, LANES - 64))).astype(cdt)
    prep["b2"] = jnp.pad(params["b2"], (0, LANES - 64)
                         ).astype(jnp.float32).reshape(1, LANES)
    w3 = params["w3"].transpose(2, 3, 1, 0).reshape(9, 64, 64)
    prep["w3"] = jnp.pad(w3, ((0, 0), (0, LANES - 64), (0, LANES - 64))).astype(cdt)
    prep["b3"] = jnp.pad(params["b3"], (0, LANES - 64)
                         ).astype(jnp.float32).reshape(1, LANES)

    # fc1: PyTorch NCHW flatten order (c, oh, ow) folded into a (p, c, hidden)
    # weight stack so the kernel never needs an in-kernel flatten.
    p3, hidden = g["p3"], params["fc1_w"].shape[1]
    fc1 = params["fc1_w"].reshape(64, p3, hidden).transpose(1, 0, 2)
    prep["fc1_w"] = jnp.pad(fc1, ((0, 0), (0, LANES - 64), (0, 0))).astype(cdt)
    prep["fc1_b"] = params["fc1_b"].astype(jnp.float32).reshape(1, hidden)

    out_dim = params["fc2_w"].shape[1]
    npad = _round_up(out_dim, LANES)
    prep["fc2_w"] = jnp.pad(params["fc2_w"],
                            ((0, 0), (0, npad - out_dim))).astype(cdt)
    prep["fc2_b"] = jnp.pad(params["fc2_b"], (0, npad - out_dim)
                            ).astype(jnp.float32).reshape(1, npad)

    # Patch-gather selection matrices (exact 0/1 permutations in any dtype).
    prep["s1"] = jnp.asarray(_select_matrix(
        g["oh1"], g["ow1"], g["ws"], g["hs"] * g["ws"], 2, 1, g["m1"]), cdt)
    prep["s2"] = jnp.asarray(_select_matrix(
        g["oh2"], g["ow2"], g["ow1"], g["m1"], 4, 2, g["m2"]), cdt)
    prep["s3"] = jnp.asarray(_select_matrix(
        g["oh3"], g["ow3"], g["ow2"], g["m2"], 3, 1, g["m3"]), cdt)
    return prep


# ------------------------------ fused kernel ------------------------------- #

def _dqn_kernel(xs_ref, s1_ref, w1_ref, b1_ref, s2_ref, w2_ref, b2_ref,
                s3_ref, w3_ref, b3_ref, fc1w_ref, fc1b_ref, fc2w_ref, fc2b_ref,
                o_ref):
    """Whole DQNetwork forward for one image; everything stays in VMEM."""
    f32 = jnp.float32
    cdt = w1_ref.dtype

    def conv(act, s_ref, w_ref, b_ref):
        taps = w_ref.shape[0]
        rows = s_ref.shape[0] // taps
        # One gather matmul (0/1 selection -> exact), then per-tap MXU matmuls
        # accumulated in f32; bias + ReLU epilogue stays f32 (v5e-safe).
        g = jnp.dot(s_ref[...], act, preferred_element_type=f32).astype(cdt)
        acc = jnp.zeros((rows, w_ref.shape[-1]), f32)
        for t in range(taps):
            acc += jnp.dot(g[t * rows:(t + 1) * rows, :], w_ref[t],
                           preferred_element_type=f32)
        return jnp.maximum(acc + b_ref[...], 0.0).astype(cdt)

    h = xs_ref[0]                          # (Hs*Ws, 48) space-to-depth input
    h = conv(h, s1_ref, w1_ref, b1_ref)    # conv1 -> (m1, 128)
    h = conv(h, s2_ref, w2_ref, b2_ref)    # conv2 -> (m2, 128)
    h = conv(h, s3_ref, w3_ref, b3_ref)    # conv3 -> (m3, 128)

    # fc1: the NCHW flatten is folded into fc1w's (p, c, hidden) layout.
    hid = jnp.zeros((1, fc1w_ref.shape[-1]), f32)
    for p in range(fc1w_ref.shape[0]):
        hid += jnp.dot(h[p:p + 1, :], fc1w_ref[p], preferred_element_type=f32)
    hid = jnp.maximum(hid + fc1b_ref[...], 0.0).astype(cdt)

    q = jnp.dot(hid, fc2w_ref[...], preferred_element_type=f32) + fc2b_ref[...]
    o_ref[0] = q.astype(o_ref.dtype)


# ------------------------------ forward pass ------------------------------- #

def _space_to_depth(x_nchw, hs, ws):
    """(B, 3, H, W) -> (B, hs*ws, 48) with per-row channel order (c, hi, wi).
    Pure relayout (one XLA transpose of the input, no HBM inflation)."""
    b, c, h, w = x_nchw.shape
    hp, wp = hs * S2D, ws * S2D
    if (hp, wp) != (h, w):
        x_nchw = jnp.pad(x_nchw, ((0, 0), (0, 0), (0, hp - h), (0, wp - w)))
    x = x_nchw.reshape(b, c, hs, S2D, ws, S2D)
    x = x.transpose(0, 2, 4, 1, 3, 5)                  # b, hs, ws, c, hi, wi
    return x.reshape(b, hs * ws, c * S2D * S2D)


def dqnetwork_forward(x_nchw, prep, *, output_dim):
    cdt = prep["w1"].dtype
    batch = x_nchw.shape[0]
    g = _geometry(x_nchw.shape[1:])
    xs = _space_to_depth(x_nchw.astype(cdt), g["hs"], g["ws"])

    operands = (xs, prep["s1"], prep["w1"], prep["b1"],
                prep["s2"], prep["w2"], prep["b2"],
                prep["s3"], prep["w3"], prep["b3"],
                prep["fc1_w"], prep["fc1_b"], prep["fc2_w"], prep["fc2_b"])

    def resident(a):
        zeros = (0,) * a.ndim
        return pl.BlockSpec(a.shape, lambda i, _z=zeros: _z)

    in_specs = [pl.BlockSpec((1,) + xs.shape[1:], lambda i: (i, 0, 0))]
    in_specs += [resident(a) for a in operands[1:]]

    hidden = prep["fc1_w"].shape[-1]
    npad = prep["fc2_w"].shape[-1]
    flops_img = 2 * (
        prep["s1"].shape[0] * prep["s1"].shape[1] * g["c1k"]
        + 4 * g["m1"] * g["c1k"] * LANES
        + prep["s2"].shape[0] * prep["s2"].shape[1] * LANES
        + 16 * g["m2"] * LANES * LANES
        + prep["s3"].shape[0] * prep["s3"].shape[1] * LANES
        + 9 * g["m3"] * LANES * LANES
        + g["p3"] * LANES * hidden + hidden * npad)
    weight_bytes = sum(int(np.prod(a.shape)) * a.dtype.itemsize
                       for a in operands[1:])
    cost = pl.CostEstimate(
        flops=batch * flops_img, transcendentals=0,
        bytes_accessed=int(xs.size * xs.dtype.itemsize + weight_bytes
                           + batch * npad * 4))

    q = pl.pallas_call(
        _dqn_kernel,
        out_shape=jax.ShapeDtypeStruct((batch, 1, npad), jnp.float32),
        grid=(batch,),
        in_specs=in_specs,
        out_specs=pl.BlockSpec((1, 1, npad), lambda i: (i, 0, 0)),
        compiler_params=pltpu.CompilerParams(
            dimension_semantics=("parallel",),
            vmem_limit_bytes=VMEM_LIMIT),
        cost_estimate=cost,
    )(*operands)
    return q[:, 0, :output_dim]


# Plain-JAX reference against the original PyTorch-layout parameters.
def _reference_forward(x, params):
    dn = ("NCHW", "OIHW", "NCHW")

    def conv(x, w, b, s):
        y = jax.lax.conv_general_dilated(x, w, (s, s), "VALID",
                                         dimension_numbers=dn)
        return jnp.maximum(y + b[None, :, None, None], 0.0)

    x = conv(x, params["w1"], params["b1"], 4)
    x = conv(x, params["w2"], params["b2"], 2)
    x = conv(x, params["w3"], params["b3"], 1)
    x = x.reshape(x.shape[0], -1)
    x = jnp.maximum(x @ params["fc1_w"] + params["fc1_b"], 0.0)
    return x @ params["fc2_w"] + params["fc2_b"]


if __name__ == "__main__":
    input_dim = (3, 52, 52)    # conv stack -> 3x3 spatial (exercises flatten perm)
    output_dim = 4
    batch = 2

    key = jax.random.PRNGKey(0)
    pkey, xkey = jax.random.split(key)
    params = init_params(pkey, input_dim, output_dim)
    x = jax.random.normal(xkey, (batch,) + input_dim, dtype=jnp.float32)

    fwd = jax.jit(functools.partial(dqnetwork_forward, output_dim=output_dim))
    ref = _reference_forward(x, params)

    # f32 path: tight check against the plain-JAX reference.
    prep_f32 = prepare_params(params, input_dim, compute_dtype=jnp.float32)
    out_f32 = jax.block_until_ready(fwd(x, prep_f32))
    assert out_f32.shape == (batch, output_dim)
    assert jnp.allclose(out_f32, ref, rtol=1e-4, atol=2e-4), "f32 mismatch vs reference"

    # bf16 MXU path (f32 accumulation / epilogues): loose check.
    prep_bf16 = prepare_params(params, input_dim, compute_dtype=jnp.bfloat16)
    out_bf16 = jax.block_until_ready(fwd(x, prep_bf16))
    assert out_bf16.shape == (batch, output_dim)
    assert bool(jnp.all(jnp.isfinite(out_bf16)))
    assert jnp.allclose(out_bf16, ref, rtol=0.0, atol=5e-2), "bf16 mismatch vs reference"

    print("KERNEL_OK")
</pallas_src>

<mosaic_0001>
module attributes {stable_mosaic.version = 11 : i64} {
  func.func @_dqn_kernel(%arg0: i32, %arg1: memref<1x169x48xf32, #tpu.memory_space<vmem>>, %arg2: memref<576x169xf32, #tpu.memory_space<vmem>>, %arg3: memref<4x48x128xf32, #tpu.memory_space<vmem>>, %arg4: memref<1x128xf32, #tpu.memory_space<vmem>>, %arg5: memref<512x144xf32, #tpu.memory_space<vmem>>, %arg6: memref<16x128x128xf32, #tpu.memory_space<vmem>>, %arg7: memref<1x128xf32, #tpu.memory_space<vmem>>, %arg8: memref<144x32xf32, #tpu.memory_space<vmem>>, %arg9: memref<9x128x128xf32, #tpu.memory_space<vmem>>, %arg10: memref<1x128xf32, #tpu.memory_space<vmem>>, %arg11: memref<9x128x512xf32, #tpu.memory_space<vmem>>, %arg12: memref<1x512xf32, #tpu.memory_space<vmem>>, %arg13: memref<512x128xf32, #tpu.memory_space<vmem>>, %arg14: memref<1x128xf32, #tpu.memory_space<vmem>>, %arg15: memref<1x1x128xf32, #tpu.memory_space<vmem>>) attributes {dimension_semantics = [#tpu.dimension_semantics<parallel>], iteration_bounds = array<i64: 2>, scalar_prefetch = 0 : i64, scratch_operands = 0 : i64, tpu.core_type = #tpu.core_type<tc>, window_params = [{transform_indices = @transform_0, window_bounds = array<i64: 1, 169, 48>}, {pipeline_mode = #tpu.pipeline_mode<synchronous>, transform_indices = @transform_1, window_bounds = array<i64: 576, 169>}, {pipeline_mode = #tpu.pipeline_mode<synchronous>, transform_indices = @transform_2, window_bounds = array<i64: 4, 48, 128>}, {pipeline_mode = #tpu.pipeline_mode<synchronous>, transform_indices = @transform_3, window_bounds = array<i64: 1, 128>}, {pipeline_mode = #tpu.pipeline_mode<synchronous>, transform_indices = @transform_4, window_bounds = array<i64: 512, 144>}, {pipeline_mode = #tpu.pipeline_mode<synchronous>, transform_indices = @transform_5, window_bounds = array<i64: 16, 128, 128>}, {pipeline_mode = #tpu.pipeline_mode<synchronous>, transform_indices = @transform_6, window_bounds = array<i64: 1, 128>}, {pipeline_mode = #tpu.pipeline_mode<synchronous>, transform_indices = @transform_7, window_bounds = array<i64: 144, 32>}, {pipeline_mode = #tpu.pipeline_mode<synchronous>, transform_indices = @transform_8, window_bounds = array<i64: 9, 128, 128>}, {pipeline_mode = #tpu.pipeline_mode<synchronous>, transform_indices = @transform_9, window_bounds = array<i64: 1, 128>}, {pipeline_mode = #tpu.pipeline_mode<synchronous>, transform_indices = @transform_10, window_bounds = array<i64: 9, 128, 512>}, {pipeline_mode = #tpu.pipeline_mode<synchronous>, transform_indices = @transform_11, window_bounds = array<i64: 1, 512>}, {pipeline_mode = #tpu.pipeline_mode<synchronous>, transform_indices = @transform_12, window_bounds = array<i64: 512, 128>}, {pipeline_mode = #tpu.pipeline_mode<synchronous>, transform_indices = @transform_13, window_bounds = array<i64: 1, 128>}, {transform_indices = @transform_14, window_bounds = array<i64: 1, 1, 128>}]} {
    %c0 = arith.constant 0 : index
    %c0_0 = arith.constant 0 : index
    %c0_1 = arith.constant 0 : index
    %0 = vector.load %arg1[%c0, %c0_0, %c0_1] : memref<1x169x48xf32, #tpu.memory_space<vmem>>, vector<1x169x48xf32>
    %1 = vector.shape_cast %0 : vector<1x169x48xf32> to vector<169x48xf32>
    %c0_2 = arith.constant 0 : index
    %c0_3 = arith.constant 0 : index
    %2 = vector.load %arg2[%c0_2, %c0_3] : memref<576x169xf32, #tpu.memory_space<vmem>>, vector<576x169xf32>
    %cst = arith.constant dense<0.000000e+00> : vector<576x48xf32>
    %3 = tpu.matmul %2, %1, %cst {dimension_numbers = #tpu.dot_dimension_numbers<[1], [0], [0], [1], [0, 0, 1, 1], [], []>} : vector<576x169xf32>, vector<169x48xf32>, vector<576x48xf32> -> vector<576x48xf32>
    %cst_4 = arith.constant 0.000000e+00 : f32
    %4 = vector.broadcast %cst_4 : f32 to vector<144x128xf32>
    %5 = vector.extract_strided_slice %3 {offsets = [0, 0], sizes = [144, 48], strides = [1, 1]} : vector<576x48xf32> to vector<144x48xf32>
    %c0_5 = arith.constant 0 : index
    %c0_6 = arith.constant 0 : index
    %c0_7 = arith.constant 0 : index
    %6 = vector.load %arg3[%c0_5, %c0_6, %c0_7] : memref<4x48x128xf32, #tpu.memory_space<vmem>>, vector<1x48x128xf32>
    %7 = vector.shape_cast %6 : vector<1x48x128xf32> to vector<48x128xf32>
    %cst_8 = arith.constant dense<0.000000e+00> : vector<144x128xf32>
    %8 = tpu.matmul %5, %7, %cst_8 {dimension_numbers = #tpu.dot_dimension_numbers<[1], [0], [0], [1], [0, 0, 1, 1], [], []>} : vector<144x48xf32>, vector<48x128xf32>, vector<144x128xf32> -> vector<144x128xf32>
    %9 = arith.addf %4, %8 : vector<144x128xf32>
    %10 = vector.extract_strided_slice %3 {offsets = [144, 0], sizes = [144, 48], strides = [1, 1]} : vector<576x48xf32> to vector<144x48xf32>
    %c1 = arith.constant 1 : index
    %c0_9 = arith.constant 0 : index
    %c0_10 = arith.constant 0 : index
    %11 = vector.load %arg3[%c1, %c0_9, %c0_10] : memref<4x48x128xf32, #tpu.memory_space<vmem>>, vector<1x48x128xf32>
    %12 = vector.shape_cast %11 : vector<1x48x128xf32> to vector<48x128xf32>
    %cst_11 = arith.constant dense<0.000000e+00> : vector<144x128xf32>
    %13 = tpu.matmul %10, %12, %cst_11 {dimension_numbers = #tpu.dot_dimension_numbers<[1], [0], [0], [1], [0, 0, 1, 1], [], []>} : vector<144x48xf32>, vector<48x128xf32>, vector<144x128xf32> -> vector<144x128xf32>
    %14 = arith.addf %9, %13 : vector<144x128xf32>
    %15 = vector.extract_strided_slice %3 {offsets = [288, 0], sizes = [144, 48], strides = [1, 1]} : vector<576x48xf32> to vector<144x48xf32>
    %c2 = arith.constant 2 : index
    %c0_12 = arith.constant 0 : index
    %c0_13 = arith.constant 0 : index
    %16 = vector.load %arg3[%c2, %c0_12, %c0_13] : memref<4x48x128xf32, #tpu.memory_space<vmem>>, vector<1x48x128xf32>
    %17 = vector.shape_cast %16 : vector<1x48x128xf32> to vector<48x128xf32>
    %cst_14 = arith.constant dense<0.000000e+00> : vector<144x128xf32>
    %18 = tpu.matmul %15, %17, %cst_14 {dimension_numbers = #tpu.dot_dimension_numbers<[1], [0], [0], [1], [0, 0, 1, 1], [], []>} : vector<144x48xf32>, vector<48x128xf32>, vector<144x128xf32> -> vector<144x128xf32>
    %19 = arith.addf %14, %18 : vector<144x128xf32>
    %20 = vector.extract_strided_slice %3 {offsets = [432, 0], sizes = [144, 48], strides = [1, 1]} : vector<576x48xf32> to vector<144x48xf32>
    %c3 = arith.constant 3 : index
    %c0_15 = arith.constant 0 : index
    %c0_16 = arith.constant 0 : index
    %21 = vector.load %arg3[%c3, %c0_15, %c0_16] : memref<4x48x128xf32, #tpu.memory_space<vmem>>, vector<1x48x128xf32>
    %22 = vector.shape_cast %21 : vector<1x48x128xf32> to vector<48x128xf32>
    %cst_17 = arith.constant dense<0.000000e+00> : vector<144x128xf32>
    %23 = tpu.matmul %20, %22, %cst_17 {dimension_numbers = #tpu.dot_dimension_numbers<[1], [0], [0], [1], [0, 0, 1, 1], [], []>} : vector<144x48xf32>, vector<48x128xf32>, vector<144x128xf32> -> vector<144x128xf32>
    %24 = arith.addf %19, %23 : vector<144x128xf32>
    %c0_18 = arith.constant 0 : index
    %c0_19 = arith.constant 0 : index
    %25 = vector.load %arg4[%c0_18, %c0_19] : memref<1x128xf32, #tpu.memory_space<vmem>>, vector<1x128xf32>
    %26 = vector.broadcast %25 : vector<1x128xf32> to vector<144x128xf32>
    %27 = arith.addf %24, %26 : vector<144x128xf32>
    %cst_20 = arith.constant 0.000000e+00 : f32
    %28 = vector.broadcast %cst_20 : f32 to vector<144x128xf32>
    %29 = arith.maximumf %27, %28 : vector<144x128xf32>
    %c0_21 = arith.constant 0 : index
    %c0_22 = arith.constant 0 : index
    %30 = vector.load %arg5[%c0_21, %c0_22] : memref<512x144xf32, #tpu.memory_space<vmem>>, vector<512x144xf32>
    %cst_23 = arith.constant dense<0.000000e+00> : vector<512x128xf32>
    %31 = tpu.matmul %30, %29, %cst_23 {dimension_numbers = #tpu.dot_dimension_numbers<[1], [0], [0], [1], [0, 0, 1, 1], [], []>} : vector<512x144xf32>, vector<144x128xf32>, vector<512x128xf32> -> vector<512x128xf32>
    %cst_24 = arith.constant 0.000000e+00 : f32
    %32 = vector.broadcast %cst_24 : f32 to vector<32x128xf32>
    %33 = vector.extract_strided_slice %31 {offsets = [0, 0], sizes = [32, 128], strides = [1, 1]} : vector<512x128xf32> to vector<32x128xf32>
    %c0_25 = arith.constant 0 : index
    %c0_26 = arith.constant 0 : index
    %c0_27 = arith.constant 0 : index
    %34 = vector.load %arg6[%c0_25, %c0_26, %c0_27] : memref<16x128x128xf32, #tpu.memory_space<vmem>>, vector<1x128x128xf32>
    %35 = vector.shape_cast %34 : vector<1x128x128xf32> to vector<128x128xf32>
    %cst_28 = arith.constant dense<0.000000e+00> : vector<32x128xf32>
    %36 = tpu.matmul %33, %35, %cst_28 {dimension_numbers = #tpu.dot_dimension_numbers<[1], [0], [0], [1], [0, 0, 1, 1], [], []>} : vector<32x128xf32>, vector<128x128xf32>, vector<32x128xf32> -> vector<32x128xf32>
    %37 = arith.addf %32, %36 : vector<32x128xf32>
    %38 = vector.extract_strided_slice %31 {offsets = [32, 0], sizes = [32, 128], strides = [1, 1]} : vector<512x128xf32> to vector<32x128xf32>
    %c1_29 = arith.constant 1 : index
    %c0_30 = arith.constant 0 : index
    %c0_31 = arith.constant 0 : index
    %39 = vector.load %arg6[%c1_29, %c0_30, %c0_31] : memref<16x128x128xf32, #tpu.memory_space<vmem>>, vector<1x128x128xf32>
    %40 = vector.shape_cast %39 : vector<1x128x128xf32> to vector<128x128xf32>
    %cst_32 = arith.constant dense<0.000000e+00> : vector<32x128xf32>
    %41 = tpu.matmul %38, %40, %cst_32 {dimension_numbers = #tpu.dot_dimension_numbers<[1], [0], [0], [1], [0, 0, 1, 1], [], []>} : vector<32x128xf32>, vector<128x128xf32>, vector<32x128xf32> -> vector<32x128xf32>
    %42 = arith.addf %37, %41 : vector<32x128xf32>
    %43 = vector.extract_strided_slice %31 {offsets = [64, 0], sizes = [32, 128], strides = [1, 1]} : vector<512x128xf32> to vector<32x128xf32>
    %c2_33 = arith.constant 2 : index
    %c0_34 = arith.constant 0 : index
    %c0_35 = arith.constant 0 : index
    %44 = vector.load %arg6[%c2_33, %c0_34, %c0_35] : memref<16x128x128xf32, #tpu.memory_space<vmem>>, vector<1x128x128xf32>
    %45 = vector.shape_cast %44 : vector<1x128x128xf32> to vector<128x128xf32>
    %cst_36 = arith.constant dense<0.000000e+00> : vector<32x128xf32>
    %46 = tpu.matmul %43, %45, %cst_36 {dimension_numbers = #tpu.dot_dimension_numbers<[1], [0], [0], [1], [0, 0, 1, 1], [], []>} : vector<32x128xf32>, vector<128x128xf32>, vector<32x128xf32> -> vector<32x128xf32>
    %47 = arith.addf %42, %46 : vector<32x128xf32>
    %48 = vector.extract_strided_slice %31 {offsets = [96, 0], sizes = [32, 128], strides = [1, 1]} : vector<512x128xf32> to vector<32x128xf32>
    %c3_37 = arith.constant 3 : index
    %c0_38 = arith.constant 0 : index
    %c0_39 = arith.constant 0 : index
    %49 = vector.load %arg6[%c3_37, %c0_38, %c0_39] : memref<16x128x128xf32, #tpu.memory_space<vmem>>, vector<1x128x128xf32>
    %50 = vector.shape_cast %49 : vector<1x128x128xf32> to vector<128x128xf32>
    %cst_40 = arith.constant dense<0.000000e+00> : vector<32x128xf32>
    %51 = tpu.matmul %48, %50, %cst_40 {dimension_numbers = #tpu.dot_dimension_numbers<[1], [0], [0], [1], [0, 0, 1, 1], [], []>} : vector<32x128xf32>, vector<128x128xf32>, vector<32x128xf32> -> vector<32x128xf32>
    %52 = arith.addf %47, %51 : vector<32x128xf32>
    %53 = vector.extract_strided_slice %31 {offsets = [128, 0], sizes = [32, 128], strides = [1, 1]} : vector<512x128xf32> to vector<32x128xf32>
    %c4 = arith.constant 4 : index
    %c0_41 = arith.constant 0 : index
    %c0_42 = arith.constant 0 : index
    %54 = vector.load %arg6[%c4, %c0_41, %c0_42] : memref<16x128x128xf32, #tpu.memory_space<vmem>>, vector<1x128x128xf32>
    %55 = vector.shape_cast %54 : vector<1x128x128xf32> to vector<128x128xf32>
    %cst_43 = arith.constant dense<0.000000e+00> : vector<32x128xf32>
    %56 = tpu.matmul %53, %55, %cst_43 {dimension_numbers = #tpu.dot_dimension_numbers<[1], [0], [0], [1], [0, 0, 1, 1], [], []>} : vector<32x128xf32>, vector<128x128xf32>, vector<32x128xf32> -> vector<32x128xf32>
    %57 = arith.addf %52, %56 : vector<32x128xf32>
    %58 = vector.extract_strided_slice %31 {offsets = [160, 0], sizes = [32, 128], strides = [1, 1]} : vector<512x128xf32> to vector<32x128xf32>
    %c5 = arith.constant 5 : index
    %c0_44 = arith.constant 0 : index
    %c0_45 = arith.constant 0 : index
    %59 = vector.load %arg6[%c5, %c0_44, %c0_45] : memref<16x128x128xf32, #tpu.memory_space<vmem>>, vector<1x128x128xf32>
    %60 = vector.shape_cast %59 : vector<1x128x128xf32> to vector<128x128xf32>
    %cst_46 = arith.constant dense<0.000000e+00> : vector<32x128xf32>
    %61 = tpu.matmul %58, %60, %cst_46 {dimension_numbers = #tpu.dot_dimension_numbers<[1], [0], [0], [1], [0, 0, 1, 1], [], []>} : vector<32x128xf32>, vector<128x128xf32>, vector<32x128xf32> -> vector<32x128xf32>
    %62 = arith.addf %57, %61 : vector<32x128xf32>
    %63 = vector.extract_strided_slice %31 {offsets = [192, 0], sizes = [32, 128], strides = [1, 1]} : vector<512x128xf32> to vector<32x128xf32>
    %c6 = arith.constant 6 : index
    %c0_47 = arith.constant 0 : index
    %c0_48 = arith.constant 0 : index
    %64 = vector.load %arg6[%c6, %c0_47, %c0_48] : memref<16x128x128xf32, #tpu.memory_space<vmem>>, vector<1x128x128xf32>
    %65 = vector.shape_cast %64 : vector<1x128x128xf32> to vector<128x128xf32>
    %cst_49 = arith.constant dense<0.000000e+00> : vector<32x128xf32>
    %66 = tpu.matmul %63, %65, %cst_49 {dimension_numbers = #tpu.dot_dimension_numbers<[1], [0], [0], [1], [0, 0, 1, 1], [], []>} : vector<32x128xf32>, vector<128x128xf32>, vector<32x128xf32> -> vector<32x128xf32>
    %67 = arith.addf %62, %66 : vector<32x128xf32>
    %68 = vector.extract_strided_slice %31 {offsets = [224, 0], sizes = [32, 128], strides = [1, 1]} : vector<512x128xf32> to vector<32x128xf32>
    %c7 = arith.constant 7 : index
    %c0_50 = arith.constant 0 : index
    %c0_51 = arith.constant 0 : index
    %69 = vector.load %arg6[%c7, %c0_50, %c0_51] : memref<16x128x128xf32, #tpu.memory_space<vmem>>, vector<1x128x128xf32>
    %70 = vector.shape_cast %69 : vector<1x128x128xf32> to vector<128x128xf32>
    %cst_52 = arith.constant dense<0.000000e+00> : vector<32x128xf32>
    %71 = tpu.matmul %68, %70, %cst_52 {dimension_numbers = #tpu.dot_dimension_numbers<[1], [0], [0], [1], [0, 0, 1, 1], [], []>} : vector<32x128xf32>, vector<128x128xf32>, vector<32x128xf32> -> vector<32x128xf32>
    %72 = arith.addf %67, %71 : vector<32x128xf32>
    %73 = vector.extract_strided_slice %31 {offsets = [256, 0], sizes = [32, 128], strides = [1, 1]} : vector<512x128xf32> to vector<32x128xf32>
    %c8 = arith.constant 8 : index
    %c0_53 = arith.constant 0 : index
    %c0_54 = arith.constant 0 : index
    %74 = vector.load %arg6[%c8, %c0_53, %c0_54] : memref<16x128x128xf32, #tpu.memory_space<vmem>>, vector<1x128x128xf32>
    %75 = vector.shape_cast %74 : vector<1x128x128xf32> to vector<128x128xf32>
    %cst_55 = arith.constant dense<0.000000e+00> : vector<32x128xf32>
    %76 = tpu.matmul %73, %75, %cst_55 {dimension_numbers = #tpu.dot_dimension_numbers<[1], [0], [0], [1], [0, 0, 1, 1], [], []>} : vector<32x128xf32>, vector<128x128xf32>, vector<32x128xf32> -> vector<32x128xf32>
    %77 = arith.addf %72, %76 : vector<32x128xf32>
    %78 = vector.extract_strided_slice %31 {offsets = [288, 0], sizes = [32, 128], strides = [1, 1]} : vector<512x128xf32> to vector<32x128xf32>
    %c9 = arith.constant 9 : index
    %c0_56 = arith.constant 0 : index
    %c0_57 = arith.constant 0 : index
    %79 = vector.load %arg6[%c9, %c0_56, %c0_57] : memref<16x128x128xf32, #tpu.memory_space<vmem>>, vector<1x128x128xf32>
    %80 = vector.shape_cast %79 : vector<1x128x128xf32> to vector<128x128xf32>
    %cst_58 = arith.constant dense<0.000000e+00> : vector<32x128xf32>
    %81 = tpu.matmul %78, %80, %cst_58 {dimension_numbers = #tpu.dot_dimension_numbers<[1], [0], [0], [1], [0, 0, 1, 1], [], []>} : vector<32x128xf32>, vector<128x128xf32>, vector<32x128xf32> -> vector<32x128xf32>
    %82 = arith.addf %77, %81 : vector<32x128xf32>
    %83 = vector.extract_strided_slice %31 {offsets = [320, 0], sizes = [32, 128], strides = [1, 1]} : vector<512x128xf32> to vector<32x128xf32>
    %c10 = arith.constant 10 : index
    %c0_59 = arith.constant 0 : index
    %c0_60 = arith.constant 0 : index
    %84 = vector.load %arg6[%c10, %c0_59, %c0_60] : memref<16x128x128xf32, #tpu.memory_space<vmem>>, vector<1x128x128xf32>
    %85 = vector.shape_cast %84 : vector<1x128x128xf32> to vector<128x128xf32>
    %cst_61 = arith.constant dense<0.000000e+00> : vector<32x128xf32>
    %86 = tpu.matmul %83, %85, %cst_61 {dimension_numbers = #tpu.dot_dimension_numbers<[1], [0], [0], [1], [0, 0, 1, 1], [], []>} : vector<32x128xf32>, vector<128x128xf32>, vector<32x128xf32> -> vector<32x128xf32>
    %87 = arith.addf %82, %86 : vector<32x128xf32>
    %88 = vector.extract_strided_slice %31 {offsets = [352, 0], sizes = [32, 128], strides = [1, 1]} : vector<512x128xf32> to vector<32x128xf32>
    %c11 = arith.constant 11 : index
    %c0_62 = arith.constant 0 : index
    %c0_63 = arith.constant 0 : index
    %89 = vector.load %arg6[%c11, %c0_62, %c0_63] : memref<16x128x128xf32, #tpu.memory_space<vmem>>, vector<1x128x128xf32>
    %90 = vector.shape_cast %89 : vector<1x128x128xf32> to vector<128x128xf32>
    %cst_64 = arith.constant dense<0.000000e+00> : vector<32x128xf32>
    %91 = tpu.matmul %88, %90, %cst_64 {dimension_numbers = #tpu.dot_dimension_numbers<[1], [0], [0], [1], [0, 0, 1, 1], [], []>} : vector<32x128xf32>, vector<128x128xf32>, vector<32x128xf32> -> vector<32x128xf32>
    %92 = arith.addf %87, %91 : vector<32x128xf32>
    %93 = vector.extract_strided_slice %31 {offsets = [384, 0], sizes = [32, 128], strides = [1, 1]} : vector<512x128xf32> to vector<32x128xf32>
    %c12 = arith.constant 12 : index
    %c0_65 = arith.constant 0 : index
    %c0_66 = arith.constant 0 : index
    %94 = vector.load %arg6[%c12, %c0_65, %c0_66] : memref<16x128x128xf32, #tpu.memory_space<vmem>>, vector<1x128x128xf32>
    %95 = vector.shape_cast %94 : vector<1x128x128xf32> to vector<128x128xf32>
    %cst_67 = arith.constant dense<0.000000e+00> : vector<32x128xf32>
    %96 = tpu.matmul %93, %95, %cst_67 {dimension_numbers = #tpu.dot_dimension_numbers<[1], [0], [0], [1], [0, 0, 1, 1], [], []>} : vector<32x128xf32>, vector<128x128xf32>, vector<32x128xf32> -> vector<32x128xf32>
    %97 = arith.addf %92, %96 : vector<32x128xf32>
    %98 = vector.extract_strided_slice %31 {offsets = [416, 0], sizes = [32, 128], strides = [1, 1]} : vector<512x128xf32> to vector<32x128xf32>
    %c13 = arith.constant 13 : index
    %c0_68 = arith.constant 0 : index
    %c0_69 = arith.constant 0 : index
    %99 = vector.load %arg6[%c13, %c0_68, %c0_69] : memref<16x128x128xf32, #tpu.memory_space<vmem>>, vector<1x128x128xf32>
    %100 = vector.shape_cast %99 : vector<1x128x128xf32> to vector<128x128xf32>
    %cst_70 = arith.constant dense<0.000000e+00> : vector<32x128xf32>
    %101 = tpu.matmul %98, %100, %cst_70 {dimension_numbers = #tpu.dot_dimension_numbers<[1], [0], [0], [1], [0, 0, 1, 1], [], []>} : vector<32x128xf32>, vector<128x128xf32>, vector<32x128xf32> -> vector<32x128xf32>
    %102 = arith.addf %97, %101 : vector<32x128xf32>
    %103 = vector.extract_strided_slice %31 {offsets = [448, 0], sizes = [32, 128], strides = [1, 1]} : vector<512x128xf32> to vector<32x128xf32>
    %c14 = arith.constant 14 : index
    %c0_71 = arith.constant 0 : index
    %c0_72 = arith.constant 0 : index
    %104 = vector.load %arg6[%c14, %c0_71, %c0_72] : memref<16x128x128xf32, #tpu.memory_space<vmem>>, vector<1x128x128xf32>
    %105 = vector.shape_cast %104 : vector<1x128x128xf32> to vector<128x128xf32>
    %cst_73 = arith.constant dense<0.000000e+00> : vector<32x128xf32>
    %106 = tpu.matmul %103, %105, %cst_73 {dimension_numbers = #tpu.dot_dimension_numbers<[1], [0], [0], [1], [0, 0, 1, 1], [], []>} : vector<32x128xf32>, vector<128x128xf32>, vector<32x128xf32> -> vector<32x128xf32>
    %107 = arith.addf %102, %106 : vector<32x128xf32>
    %108 = vector.extract_strided_slice %31 {offsets = [480, 0], sizes = [32, 128], strides = [1, 1]} : vector<512x128xf32> to vector<32x128xf32>
    %c15 = arith.constant 15 : index
    %c0_74 = arith.constant 0 : index
    %c0_75 = arith.constant 0 : index
    %109 = vector.load %arg6[%c15, %c0_74, %c0_75] : memref<16x128x128xf32, #tpu.memory_space<vmem>>, vector<1x128x128xf32>
    %110 = vector.shape_cast %109 : vector<1x128x128xf32> to vector<128x128xf32>
    %cst_76 = arith.constant dense<0.000000e+00> : vector<32x128xf32>
    %111 = tpu.matmul %108, %110, %cst_76 {dimension_numbers = #tpu.dot_dimension_numbers<[1], [0], [0], [1], [0, 0, 1, 1], [], []>} : vector<32x128xf32>, vector<128x128xf32>, vector<32x128xf32> -> vector<32x128xf32>
    %112 = arith.addf %107, %111 : vector<32x128xf32>
    %c0_77 = arith.constant 0 : index
    %c0_78 = arith.constant 0 : index
    %113 = vector.load %arg7[%c0_77, %c0_78] : memref<1x128xf32, #tpu.memory_space<vmem>>, vector<1x128xf32>
    %114 = vector.broadcast %113 : vector<1x128xf32> to vector<32x128xf32>
    %115 = arith.addf %112, %114 : vector<32x128xf32>
    %cst_79 = arith.constant 0.000000e+00 : f32
    %116 = vector.broadcast %cst_79 : f32 to vector<32x128xf32>
    %117 = arith.maximumf %115, %116 : vector<32x128xf32>
    %c0_80 = arith.constant 0 : index
    %c0_81 = arith.constant 0 : index
    %118 = vector.load %arg8[%c0_80, %c0_81] : memref<144x32xf32, #tpu.memory_space<vmem>>, vector<144x32xf32>
    %cst_82 = arith.constant dense<0.000000e+00> : vector<144x128xf32>
    %119 = tpu.matmul %118, %117, %cst_82 {dimension_numbers = #tpu.dot_dimension_numbers<[1], [0], [0], [1], [0, 0, 1, 1], [], []>} : vector<144x32xf32>, vector<32x128xf32>, vector<144x128xf32> -> vector<144x128xf32>
    %cst_83 = arith.constant 0.000000e+00 : f32
    %120 = vector.broadcast %cst_83 : f32 to vector<16x128xf32>
    %121 = vector.extract_strided_slice %119 {offsets = [0, 0], sizes = [16, 128], strides = [1, 1]} : vector<144x128xf32> to vector<16x128xf32>
    %c0_84 = arith.constant 0 : index
    %c0_85 = arith.constant 0 : index
    %c0_86 = arith.constant 0 : index
    %122 = vector.load %arg9[%c0_84, %c0_85, %c0_86] : memref<9x128x128xf32, #tpu.memory_space<vmem>>, vector<1x128x128xf32>
    %123 = vector.shape_cast %122 : vector<1x128x128xf32> to vector<128x128xf32>
    %cst_87 = arith.constant dense<0.000000e+00> : vector<16x128xf32>
    %124 = tpu.matmul %121, %123, %cst_87 {dimension_numbers = #tpu.dot_dimension_numbers<[1], [0], [0], [1], [0, 0, 1, 1], [], []>} : vector<16x128xf32>, vector<128x128xf32>, vector<16x128xf32> -> vector<16x128xf32>
    %125 = arith.addf %120, %124 : vector<16x128xf32>
    %126 = vector.extract_strided_slice %119 {offsets = [16, 0], sizes = [16, 128], strides = [1, 1]} : vector<144x128xf32> to vector<16x128xf32>
    %c1_88 = arith.constant 1 : index
    %c0_89 = arith.constant 0 : index
    %c0_90 = arith.constant 0 : index
    %127 = vector.load %arg9[%c1_88, %c0_89, %c0_90] : memref<9x128x128xf32, #tpu.memory_space<vmem>>, vector<1x128x128xf32>
    %128 = vector.shape_cast %127 : vector<1x128x128xf32> to vector<128x128xf32>
    %cst_91 = arith.constant dense<0.000000e+00> : vector<16x128xf32>
    %129 = tpu.matmul %126, %128, %cst_91 {dimension_numbers = #tpu.dot_dimension_numbers<[1], [0], [0], [1], [0, 0, 1, 1], [], []>} : vector<16x128xf32>, vector<128x128xf32>, vector<16x128xf32> -> vector<16x128xf32>
    %130 = arith.addf %125, %129 : vector<16x128xf32>
    %131 = vector.extract_strided_slice %119 {offsets = [32, 0], sizes = [16, 128], strides = [1, 1]} : vector<144x128xf32> to vector<16x128xf32>
    %c2_92 = arith.constant 2 : index
    %c0_93 = arith.constant 0 : index
    %c0_94 = arith.constant 0 : index
    %132 = vector.load %arg9[%c2_92, %c0_93, %c0_94] : memref<9x128x128xf32, #tpu.memory_space<vmem>>, vector<1x128x128xf32>
    %133 = vector.shape_cast %132 : vector<1x128x128xf32> to vector<128x128xf32>
    %cst_95 = arith.constant dense<0.000000e+00> : vector<16x128xf32>
    %134 = tpu.matmul %131, %133, %cst_95 {dimension_numbers = #tpu.dot_dimension_numbers<[1], [0], [0], [1], [0, 0, 1, 1], [], []>} : vector<16x128xf32>, vector<128x128xf32>, vector<16x128xf32> -> vector<16x128xf32>
    %135 = arith.addf %130, %134 : vector<16x128xf32>
    %136 = vector.extract_strided_slice %119 {offsets = [48, 0], sizes = [16, 128], strides = [1, 1]} : vector<144x128xf32> to vector<16x128xf32>
    %c3_96 = arith.constant 3 : index
    %c0_97 = arith.constant 0 : index
    %c0_98 = arith.constant 0 : index
    %137 = vector.load %arg9[%c3_96, %c0_97, %c0_98] : memref<9x128x128xf32, #tpu.memory_space<vmem>>, vector<1x128x128xf32>
    %138 = vector.shape_cast %137 : vector<1x128x128xf32> to vector<128x128xf32>
    %cst_99 = arith.constant dense<0.000000e+00> : vector<16x128xf32>
    %139 = tpu.matmul %136, %138, %cst_99 {dimension_numbers = #tpu.dot_dimension_numbers<[1], [0], [0], [1], [0, 0, 1, 1], [], []>} : vector<16x128xf32>, vector<128x128xf32>, vector<16x128xf32> -> vector<16x128xf32>
    %140 = arith.addf %135, %139 : vector<16x128xf32>
    %141 = vector.extract_strided_slice %119 {offsets = [64, 0], sizes = [16, 128], strides = [1, 1]} : vector<144x128xf32> to vector<16x128xf32>
    %c4_100 = arith.constant 4 : index
    %c0_101 = arith.constant 0 : index
    %c0_102 = arith.constant 0 : index
    %142 = vector.load %arg9[%c4_100, %c0_101, %c0_102] : memref<9x128x128xf32, #tpu.memory_space<vmem>>, vector<1x128x128xf32>
    %143 = vector.shape_cast %142 : vector<1x128x128xf32> to vector<128x128xf32>
    %cst_103 = arith.constant dense<0.000000e+00> : vector<16x128xf32>
    %144 = tpu.matmul %141, %143, %cst_103 {dimension_numbers = #tpu.dot_dimension_numbers<[1], [0], [0], [1], [0, 0, 1, 1], [], []>} : vector<16x128xf32>, vector<128x128xf32>, vector<16x128xf32> -> vector<16x128xf32>
    %145 = arith.addf %140, %144 : vector<16x128xf32>
    %146 = vector.extract_strided_slice %119 {offsets = [80, 0], sizes = [16, 128], strides = [1, 1]} : vector<144x128xf32> to vector<16x128xf32>
    %c5_104 = arith.constant 5 : index
    %c0_105 = arith.constant 0 : index
    %c0_106 = arith.constant 0 : index
    %147 = vector.load %arg9[%c5_104, %c0_105, %c0_106] : memref<9x128x128xf32, #tpu.memory_space<vmem>>, vector<1x128x128xf32>
    %148 = vector.shape_cast %147 : vector<1x128x128xf32> to vector<128x128xf32>
    %cst_107 = arith.constant dense<0.000000e+00> : vector<16x128xf32>
    %149 = tpu.matmul %146, %148, %cst_107 {dimension_numbers = #tpu.dot_dimension_numbers<[1], [0], [0], [1], [0, 0, 1, 1], [], []>} : vector<16x128xf32>, vector<128x128xf32>, vector<16x128xf32> -> vector<16x128xf32>
    %150 = arith.addf %145, %149 : vector<16x128xf32>
    %151 = vector.extract_strided_slice %119 {offsets = [96, 0], sizes = [16, 128], strides = [1, 1]} : vector<144x128xf32> to vector<16x128xf32>
    %c6_108 = arith.constant 6 : index
    %c0_109 = arith.constant 0 : index
    %c0_110 = arith.constant 0 : index
    %152 = vector.load %arg9[%c6_108, %c0_109, %c0_110] : memref<9x128x128xf32, #tpu.memory_space<vmem>>, vector<1x128x128xf32>
    %153 = vector.shape_cast %152 : vector<1x128x128xf32> to vector<128x128xf32>
    %cst_111 = arith.constant dense<0.000000e+00> : vector<16x128xf32>
    %154 = tpu.matmul %151, %153, %cst_111 {dimension_numbers = #tpu.dot_dimension_numbers<[1], [0], [0], [1], [0, 0, 1, 1], [], []>} : vector<16x128xf32>, vector<128x128xf32>, vector<16x128xf32> -> vector<16x128xf32>
    %155 = arith.addf %150, %154 : vector<16x128xf32>
    %156 = vector.extract_strided_slice %119 {offsets = [112, 0], sizes = [16, 128], strides = [1, 1]} : vector<144x128xf32> to vector<16x128xf32>
    %c7_112 = arith.constant 7 : index
    %c0_113 = arith.constant 0 : index
    %c0_114 = arith.constant 0 : index
    %157 = vector.load %arg9[%c7_112, %c0_113, %c0_114] : memref<9x128x128xf32, #tpu.memory_space<vmem>>, vector<1x128x128xf32>
    %158 = vector.shape_cast %157 : vector<1x128x128xf32> to vector<128x128xf32>
    %cst_115 = arith.constant dense<0.000000e+00> : vector<16x128xf32>
    %159 = tpu.matmul %156, %158, %cst_115 {dimension_numbers = #tpu.dot_dimension_numbers<[1], [0], [0], [1], [0, 0, 1, 1], [], []>} : vector<16x128xf32>, vector<128x128xf32>, vector<16x128xf32> -> vector<16x128xf32>
    %160 = arith.addf %155, %159 : vector<16x128xf32>
    %161 = vector.extract_strided_slice %119 {offsets = [128, 0], sizes = [16, 128], strides = [1, 1]} : vector<144x128xf32> to vector<16x128xf32>
    %c8_116 = arith.constant 8 : index
    %c0_117 = arith.constant 0 : index
    %c0_118 = arith.constant 0 : index
    %162 = vector.load %arg9[%c8_116, %c0_117, %c0_118] : memref<9x128x128xf32, #tpu.memory_space<vmem>>, vector<1x128x128xf32>
    %163 = vector.shape_cast %162 : vector<1x128x128xf32> to vector<128x128xf32>
    %cst_119 = arith.constant dense<0.000000e+00> : vector<16x128xf32>
    %164 = tpu.matmul %161, %163, %cst_119 {dimension_numbers = #tpu.dot_dimension_numbers<[1], [0], [0], [1], [0, 0, 1, 1], [], []>} : vector<16x128xf32>, vector<128x128xf32>, vector<16x128xf32> -> vector<16x128xf32>
    %165 = arith.addf %160, %164 : vector<16x128xf32>
    %c0_120 = arith.constant 0 : index
    %c0_121 = arith.constant 0 : index
    %166 = vector.load %arg10[%c0_120, %c0_121] : memref<1x128xf32, #tpu.memory_space<vmem>>, vector<1x128xf32>
    %167 = vector.broadcast %166 : vector<1x128xf32> to vector<16x128xf32>
    %168 = arith.addf %165, %167 : vector<16x128xf32>
    %cst_122 = arith.constant 0.000000e+00 : f32
    %169 = vector.broadcast %cst_122 : f32 to vector<16x128xf32>
    %170 = arith.maximumf %168, %169 : vector<16x128xf32>
    %cst_123 = arith.constant 0.000000e+00 : f32
    %171 = vector.broadcast %cst_123 : f32 to vector<1x512xf32>
    %172 = vector.extract_strided_slice %170 {offsets = [0, 0], sizes = [1, 128], strides = [1, 1]} : vector<16x128xf32> to vector<1x128xf32>
    %c0_124 = arith.constant 0 : index
    %c0_125 = arith.constant 0 : index
    %c0_126 = arith.constant 0 : index
    %173 = vector.load %arg11[%c0_124, %c0_125, %c0_126] : memref<9x128x512xf32, #tpu.memory_space<vmem>>, vector<1x128x512xf32>
    %174 = vector.shape_cast %173 : vector<1x128x512xf32> to vector<128x512xf32>
    %cst_127 = arith.constant dense<0.000000e+00> : vector<1x512xf32>
    %175 = tpu.matmul %172, %174, %cst_127 {dimension_numbers = #tpu.dot_dimension_numbers<[1], [0], [0], [1], [0, 0, 1, 1], [], []>} : vector<1x128xf32>, vector<128x512xf32>, vector<1x512xf32> -> vector<1x512xf32>
    %176 = arith.addf %171, %175 : vector<1x512xf32>
    %177 = vector.extract_strided_slice %170 {offsets = [1, 0], sizes = [1, 128], strides = [1, 1]} : vector<16x128xf32> to vector<1x128xf32>
    %c1_128 = arith.constant 1 : index
    %c0_129 = arith.constant 0 : index
    %c0_130 = arith.constant 0 : index
    %178 = vector.load %arg11[%c1_128, %c0_129, %c0_130] : memref<9x128x512xf32, #tpu.memory_space<vmem>>, vector<1x128x512xf32>
    %179 = vector.shape_cast %178 : vector<1x128x512xf32> to vector<128x512xf32>
    %cst_131 = arith.constant dense<0.000000e+00> : vector<1x512xf32>
    %180 = tpu.matmul %177, %179, %cst_131 {dimension_numbers = #tpu.dot_dimension_numbers<[1], [0], [0], [1], [0, 0, 1, 1], [], []>} : vector<1x128xf32>, vector<128x512xf32>, vector<1x512xf32> -> vector<1x512xf32>
    %181 = arith.addf %176, %180 : vector<1x512xf32>
    %182 = vector.extract_strided_slice %170 {offsets = [2, 0], sizes = [1, 128], strides = [1, 1]} : vector<16x128xf32> to vector<1x128xf32>
    %c2_132 = arith.constant 2 : index
    %c0_133 = arith.constant 0 : index
    %c0_134 = arith.constant 0 : index
    %183 = vector.load %arg11[%c2_132, %c0_133, %c0_134] : memref<9x128x512xf32, #tpu.memory_space<vmem>>, vector<1x128x512xf32>
    %184 = vector.shape_cast %183 : vector<1x128x512xf32> to vector<128x512xf32>
    %cst_135 = arith.constant dense<0.000000e+00> : vector<1x512xf32>
    %185 = tpu.matmul %182, %184, %cst_135 {dimension_numbers = #tpu.dot_dimension_numbers<[1], [0], [0], [1], [0, 0, 1, 1], [], []>} : vector<1x128xf32>, vector<128x512xf32>, vector<1x512xf32> -> vector<1x512xf32>
    %186 = arith.addf %181, %185 : vector<1x512xf32>
    %187 = vector.extract_strided_slice %170 {offsets = [3, 0], sizes = [1, 128], strides = [1, 1]} : vector<16x128xf32> to vector<1x128xf32>
    %c3_136 = arith.constant 3 : index
    %c0_137 = arith.constant 0 : index
    %c0_138 = arith.constant 0 : index
    %188 = vector.load %arg11[%c3_136, %c0_137, %c0_138] : memref<9x128x512xf32, #tpu.memory_space<vmem>>, vector<1x128x512xf32>
    %189 = vector.shape_cast %188 : vector<1x128x512xf32> to vector<128x512xf32>
    %cst_139 = arith.constant dense<0.000000e+00> : vector<1x512xf32>
    %190 = tpu.matmul %187, %189, %cst_139 {dimension_numbers = #tpu.dot_dimension_numbers<[1], [0], [0], [1], [0, 0, 1, 1], [], []>} : vector<1x128xf32>, vector<128x512xf32>, vector<1x512xf32> -> vector<1x512xf32>
    %191 = arith.addf %186, %190 : vector<1x512xf32>
    %192 = vector.extract_strided_slice %170 {offsets = [4, 0], sizes = [1, 128], strides = [1, 1]} : vector<16x128xf32> to vector<1x128xf32>
    %c4_140 = arith.constant 4 : index
    %c0_141 = arith.constant 0 : index
    %c0_142 = arith.constant 0 : index
    %193 = vector.load %arg11[%c4_140, %c0_141, %c0_142] : memref<9x128x512xf32, #tpu.memory_space<vmem>>, vector<1x128x512xf32>
    %194 = vector.shape_cast %193 : vector<1x128x512xf32> to vector<128x512xf32>
    %cst_143 = arith.constant dense<0.000000e+00> : vector<1x512xf32>
    %195 = tpu.matmul %192, %194, %cst_143 {dimension_numbers = #tpu.dot_dimension_numbers<[1], [0], [0], [1], [0, 0, 1, 1], [], []>} : vector<1x128xf32>, vector<128x512xf32>, vector<1x512xf32> -> vector<1x512xf32>
    %196 = arith.addf %191, %195 : vector<1x512xf32>
    %197 = vector.extract_strided_slice %170 {offsets = [5, 0], sizes = [1, 128], strides = [1, 1]} : vector<16x128xf32> to vector<1x128xf32>
    %c5_144 = arith.constant 5 : index
    %c0_145 = arith.constant 0 : index
    %c0_146 = arith.constant 0 : index
    %198 = vector.load %arg11[%c5_144, %c0_145, %c0_146] : memref<9x128x512xf32, #tpu.memory_space<vmem>>, vector<1x128x512xf32>
    %199 = vector.shape_cast %198 : vector<1x128x512xf32> to vector<128x512xf32>
    %cst_147 = arith.constant dense<0.000000e+00> : vector<1x512xf32>
    %200 = tpu.matmul %197, %199, %cst_147 {dimension_numbers = #tpu.dot_dimension_numbers<[1], [0], [0], [1], [0, 0, 1, 1], [], []>} : vector<1x128xf32>, vector<128x512xf32>, vector<1x512xf32> -> vector<1x512xf32>
    %201 = arith.addf %196, %200 : vector<1x512xf32>
    %202 = vector.extract_strided_slice %170 {offsets = [6, 0], sizes = [1, 128], strides = [1, 1]} : vector<16x128xf32> to vector<1x128xf32>
    %c6_148 = arith.constant 6 : index
    %c0_149 = arith.constant 0 : index
    %c0_150 = arith.constant 0 : index
    %203 = vector.load %arg11[%c6_148, %c0_149, %c0_150] : memref<9x128x512xf32, #tpu.memory_space<vmem>>, vector<1x128x512xf32>
    %204 = vector.shape_cast %203 : vector<1x128x512xf32> to vector<128x512xf32>
    %cst_151 = arith.constant dense<0.000000e+00> : vector<1x512xf32>
    %205 = tpu.matmul %202, %204, %cst_151 {dimension_numbers = #tpu.dot_dimension_numbers<[1], [0], [0], [1], [0, 0, 1, 1], [], []>} : vector<1x128xf32>, vector<128x512xf32>, vector<1x512xf32> -> vector<1x512xf32>
    %206 = arith.addf %201, %205 : vector<1x512xf32>
    %207 = vector.extract_strided_slice %170 {offsets = [7, 0], sizes = [1, 128], strides = [1, 1]} : vector<16x128xf32> to vector<1x128xf32>
    %c7_152 = arith.constant 7 : index
    %c0_153 = arith.constant 0 : index
    %c0_154 = arith.constant 0 : index
    %208 = vector.load %arg11[%c7_152, %c0_153, %c0_154] : memref<9x128x512xf32, #tpu.memory_space<vmem>>, vector<1x128x512xf32>
    %209 = vector.shape_cast %208 : vector<1x128x512xf32> to vector<128x512xf32>
    %cst_155 = arith.constant dense<0.000000e+00> : vector<1x512xf32>
    %210 = tpu.matmul %207, %209, %cst_155 {dimension_numbers = #tpu.dot_dimension_numbers<[1], [0], [0], [1], [0, 0, 1, 1], [], []>} : vector<1x128xf32>, vector<128x512xf32>, vector<1x512xf32> -> vector<1x512xf32>
    %211 = arith.addf %206, %210 : vector<1x512xf32>
    %212 = vector.extract_strided_slice %170 {offsets = [8, 0], sizes = [1, 128], strides = [1, 1]} : vector<16x128xf32> to vector<1x128xf32>
    %c8_156 = arith.constant 8 : index
    %c0_157 = arith.constant 0 : index
    %c0_158 = arith.constant 0 : index
    %213 = vector.load %arg11[%c8_156, %c0_157, %c0_158] : memref<9x128x512xf32, #tpu.memory_space<vmem>>, vector<1x128x512xf32>
    %214 = vector.shape_cast %213 : vector<1x128x512xf32> to vector<128x512xf32>
    %cst_159 = arith.constant dense<0.000000e+00> : vector<1x512xf32>
    %215 = tpu.matmul %212, %214, %cst_159 {dimension_numbers = #tpu.dot_dimension_numbers<[1], [0], [0], [1], [0, 0, 1, 1], [], []>} : vector<1x128xf32>, vector<128x512xf32>, vector<1x512xf32> -> vector<1x512xf32>
    %216 = arith.addf %211, %215 : vector<1x512xf32>
    %c0_160 = arith.constant 0 : index
    %c0_161 = arith.constant 0 : index
    %217 = vector.load %arg12[%c0_160, %c0_161] : memref<1x512xf32, #tpu.memory_space<vmem>>, vector<1x512xf32>
    %218 = arith.addf %216, %217 : vector<1x512xf32>
    %cst_162 = arith.constant 0.000000e+00 : f32
    %219 = vector.broadcast %cst_162 : f32 to vector<1x512xf32>
    %220 = arith.maximumf %218, %219 : vector<1x512xf32>
    %c0_163 = arith.constant 0 : index
    %c0_164 = arith.constant 0 : index
    %221 = vector.load %arg13[%c0_163, %c0_164] : memref<512x128xf32, #tpu.memory_space<vmem>>, vector<512x128xf32>
    %cst_165 = arith.constant dense<0.000000e+00> : vector<1x128xf32>
    %222 = tpu.matmul %220, %221, %cst_165 {dimension_numbers = #tpu.dot_dimension_numbers<[1], [0], [0], [1], [0, 0, 1, 1], [], []>} : vector<1x512xf32>, vector<512x128xf32>, vector<1x128xf32> -> vector<1x128xf32>
    %c0_166 = arith.constant 0 : index
    %c0_167 = arith.constant 0 : index
    %223 = vector.load %arg14[%c0_166, %c0_167] : memref<1x128xf32, #tpu.memory_space<vmem>>, vector<1x128xf32>
    %224 = arith.addf %222, %223 : vector<1x128xf32>
    %c0_168 = arith.constant 0 : index
    %c0_169 = arith.constant 0 : index
    %c0_170 = arith.constant 0 : index
    %225 = vector.load %arg15[%c0_168, %c0_169, %c0_170] : memref<1x1x128xf32, #tpu.memory_space<vmem>>, vector<1x1x128xf32>
    %226 = vector.shape_cast %225 : vector<1x1x128xf32> to vector<1x128xf32>
    %227 = vector.shape_cast %224 : vector<1x128xf32> to vector<1x1x128xf32>
    tpu.vector_store %arg15[%c0_168, %c0_169, %c0_170], %227 {strides = array<i32>} : memref<1x1x128xf32, #tpu.memory_space<vmem>>, vector<1x1x128xf32>,
    return
  }
  func.func @transform_0(%arg0: i32) -> (i32, i32, i32) {
    %c0_i32 = arith.constant 0 : i32
    %c0_i32_0 = arith.constant 0 : i32
    %c0_i32_1 = arith.constant 0 : i32
    return %arg0, %c0_i32, %c0_i32_0 : i32, i32, i32
  }
  func.func @transform_1(%arg0: i32) -> (i32, i32) {
    %c0_i32 = arith.constant 0 : i32
    %c0_i32_0 = arith.constant 0 : i32
    %c0_i32_1 = arith.constant 0 : i32
    return %c0_i32, %c0_i32_0 : i32, i32
  }
  func.func @transform_2(%arg0: i32) -> (i32, i32, i32) {
    %c0_i32 = arith.constant 0 : i32
    %c0_i32_0 = arith.constant 0 : i32
    %c0_i32_1 = arith.constant 0 : i32
    %c0_i32_2 = arith.constant 0 : i32
    return %c0_i32, %c0_i32_0, %c0_i32_1 : i32, i32, i32
  }
  func.func @transform_3(%arg0: i32) -> (i32, i32) {
    %c0_i32 = arith.constant 0 : i32
    %c0_i32_0 = arith.constant 0 : i32
    %c0_i32_1 = arith.constant 0 : i32
    return %c0_i32, %c0_i32_0 : i32, i32
  }
  func.func @transform_4(%arg0: i32) -> (i32, i32) {
    %c0_i32 = arith.constant 0 : i32
    %c0_i32_0 = arith.constant 0 : i32
    %c0_i32_1 = arith.constant 0 : i32
    return %c0_i32, %c0_i32_0 : i32, i32
  }
  func.func @transform_5(%arg0: i32) -> (i32, i32, i32) {
    %c0_i32 = arith.constant 0 : i32
    %c0_i32_0 = arith.constant 0 : i32
    %c0_i32_1 = arith.constant 0 : i32
    %c0_i32_2 = arith.constant 0 : i32
    return %c0_i32, %c0_i32_0, %c0_i32_1 : i32, i32, i32
  }
  func.func @transform_6(%arg0: i32) -> (i32, i32) {
    %c0_i32 = arith.constant 0 : i32
    %c0_i32_0 = arith.constant 0 : i32
    %c0_i32_1 = arith.constant 0 : i32
    return %c0_i32, %c0_i32_0 : i32, i32
  }
  func.func @transform_7(%arg0: i32) -> (i32, i32) {
    %c0_i32 = arith.constant 0 : i32
    %c0_i32_0 = arith.constant 0 : i32
    %c0_i32_1 = arith.constant 0 : i32
    return %c0_i32, %c0_i32_0 : i32, i32
  }
  func.func @transform_8(%arg0: i32) -> (i32, i32, i32) {
    %c0_i32 = arith.constant 0 : i32
    %c0_i32_0 = arith.constant 0 : i32
    %c0_i32_1 = arith.constant 0 : i32
    %c0_i32_2 = arith.constant 0 : i32
    return %c0_i32, %c0_i32_0, %c0_i32_1 : i32, i32, i32
  }
  func.func @transform_9(%arg0: i32) -> (i32, i32) {
    %c0_i32 = arith.constant 0 : i32
    %c0_i32_0 = arith.constant 0 : i32
    %c0_i32_1 = arith.constant 0 : i32
    return %c0_i32, %c0_i32_0 : i32, i32
  }
  func.func @transform_10(%arg0: i32) -> (i32, i32, i32) {
    %c0_i32 = arith.constant 0 : i32
    %c0_i32_0 = arith.constant 0 : i32
    %c0_i32_1 = arith.constant 0 : i32
    %c0_i32_2 = arith.constant 0 : i32
    return %c0_i32, %c0_i32_0, %c0_i32_1 : i32, i32, i32
  }
  func.func @transform_11(%arg0: i32) -> (i32, i32) {
    %c0_i32 = arith.constant 0 : i32
    %c0_i32_0 = arith.constant 0 : i32
    %c0_i32_1 = arith.constant 0 : i32
    return %c0_i32, %c0_i32_0 : i32, i32
  }
  func.func @transform_12(%arg0: i32) -> (i32, i32) {
    %c0_i32 = arith.constant 0 : i32
    %c0_i32_0 = arith.constant 0 : i32
    %c0_i32_1 = arith.constant 0 : i32
    return %c0_i32, %c0_i32_0 : i32, i32
  }
  func.func @transform_13(%arg0: i32) -> (i32, i32) {
    %c0_i32 = arith.constant 0 : i32
    %c0_i32_0 = arith.constant 0 : i32
    %c0_i32_1 = arith.constant 0 : i32
    return %c0_i32, %c0_i32_0 : i32, i32
  }
  func.func @transform_14(%arg0: i32) -> (i32, i32, i32) {
    %c0_i32 = arith.constant 0 : i32
    %c0_i32_0 = arith.constant 0 : i32
    %c0_i32_1 = arith.constant 0 : i32
    return %arg0, %c0_i32, %c0_i32_0 : i32, i32, i32
  }
}

</mosaic_0001>

<bundles_post_ra>
// kernel: dqnetwork_forward.1
= control target key start
LH: loop header
LB: loop body
LE: loop exit
PB: predicated region body
PF: predicated region fallthrough
CT: control target
= control target key end

     0   :  { %s17583_s0 = inlined_call_operand.vmem [shape: f32[2,169,48], index: 0, kind: input, shape index: {}]   ;;  %s17584_s1 = inlined_call_operand.vmem [shape: f32[576,169], index: 1, kind: input, shape index: {}]   ;;  %s17585_s2 = inlined_call_operand.vmem [shape: f32[4,48,128], index: 2, kind: input, shape index: {}]   ;;  %s17586_s3 = inlined_call_operand.vmem [shape: f32[1,128], index: 3, kind: input, shape index: {}]   ;;  %s17587_s4 = inlined_call_operand.vmem [shape: f32[512,144], index: 4, kind: input, shape index: {}]   ;;  %s17588_s5 = inlined_call_operand.vmem [shape: f32[16,128,128], index: 5, kind: input, shape index: {}]   ;;  %s17589_s6 = inlined_call_operand.vmem [shape: f32[1,128], index: 6, kind: input, shape index: {}]   ;;  %s17590_s7 = inlined_call_operand.vmem [shape: f32[144,32], index: 7, kind: input, shape index: {}]   ;;  %s17591_s8 = inlined_call_operand.vmem [shape: f32[9,128,128], index: 8, kind: input, shape index: {}]   ;;  %s17592_s9 = inlined_call_operand.vmem [shape: f32[1,128], index: 9, kind: input, shape index: {}]   ;;  %s17593_s10 = inlined_call_operand.vmem [shape: f32[9,128,512], index: 10, kind: input, shape index: {}]   ;;  %s17594_s11 = inlined_call_operand.vmem [shape: f32[1,512], index: 11, kind: input, shape index: {}]   ;;  %s17595_s12 = inlined_call_operand.vmem [shape: f32[512,128], index: 12, kind: input, shape index: {}]   ;;  %s17596_s13 = inlined_call_operand.vmem [shape: f32[1,128], index: 13, kind: input, shape index: {}]   ;;  %s17597_s14 = inlined_call_operand.hbm [shape: f32[2,1,128], index: 14, kind: output, shape index: {}]  }
   0x1   :  { %17599 = sst [smem:[#allocation7_spill]] %s17583_s0 }
   0x2   :  { %17600 = sst [smem:[#allocation8_spill]] %s17584_s1 }
   0x3   :  { %19 = vsyncpa [#allocation3], 0 }
   0x4   :  { %21 = vsyncpa [#allocation3 + $0x1], 0  ;;  %s12760_s29 = smov 0   ;;  %s12762_s30 = smov 0  }
   0x5   :  { %s12764_s15 = smov 0   ;;  %s12766_s16 = smov 0  }
   0x6 LB: > { %17601 = sst [smem:[#allocation5_spill]] %s12675_s15  ;;  %s12781_s17 = sadd.s32 4294967295, %s12679_s16   ;;  %s12679_s16 = sphi %s12766_s16, %s17611_s16   ;;  %s12675_s15 = sphi %s12764_s15, %s17608_s15   ;;  %s12671_s30 = sphi %s12762_s30, %s17610_s30   ;;  %s12667_s29 = sphi %s12760_s29, %s17609_s29  }
   0x7   : > { %s7917_s18 = sadd.s32 4294967294, %s12679_s16   ;;  %s12785_s19 = sadd.s32 1, %s12679_s16  }
   0x8   : > { %s333_s20 = sadd.s32 1, %s12675_s15  ;;  %s330_s21 = ssub.s32 %s12679_s16, %s12785_s19 }
   0x9   : > { %p343_p0 = scmp.ne.s32.totalorder %s12675_s15, %s12671_s30  ;;  %p331_p1 = scmp.eq.s32.totalorder %s330_s21, 0 }
   0xa   : > { %p344_p2 = scmp.eq.s32.totalorder %s12781_s17, 1  ;;  %p349_p3 = scmp.ne.s32.totalorder %s12671_s30, %s12667_s29 }
   0xb   : > { %p350_p4 = scmp.eq.s32.totalorder %s7917_s18, 1  ;;  %p7920_p7 = scmp.ge.s32.totalorder %s12679_s16, 1 }
   0xc   : > { %s12796_s22 = scalar_select %p331_p1, %s12675_s15, %s333_s20  }
   0xd   : > { %p12798_p5 = por %p344_p2, %p343_p0  ;;  %p12802_p6 = por %p350_p4, %p349_p3 }
   0xe   : > { %17602 = sst [smem:[#allocation6_spill]] %s12796_s22  ;;  %p415_p8 = scmp.lt.s32.totalorder %s12679_s16, 3 }
  0x10   : > { %p416_p9 = pnand %p7920_p7, %p415_p8 }
  0x11   : > { %p460_p10 = scmp.lt.s32.totalorder (!%p416_p9), %s12781_s17, 1  ;;  %s17605_s1 = sld [smem:[#allocation8_spill]] (!%p416_p9)  ;;  %vm631_vm0 = vcmask (!%p416_p9), 334848   ;;  %v12681_v1 = vmov (!%p416_p9), 0.0|0.0   ;;  %vm848_vm1 = vcmask (!%p416_p9), 1040384   ;;  %vm12682_vm2 = vmmov (!%p416_p9), 1  }
  0x12   : > { %419 = sbr.rel (%p416_p9) target bundleno = 3419 (0xd5b), region = 76  ;;  %10837 = vmatprep.subr.bf16.mxu0 (!%p416_p9), %v12681_v1  ;;  %s17606_s0 = sld [smem:[#allocation7_spill]] (!%p416_p9)  ;;  %vm10869_vm3 = vmpackc.low (!%p416_p9), %vm848_vm1, %vm12682_vm2  ;;  %vm1290_vm4 = vcmask (!%p416_p9), 392192   ;;  %vm2348_vm5 = vcmask (!%p416_p9), 130048   ;;  %vm4646_vm6 = vcmask (!%p416_p9), 261120  }
  0x13   : > { %s9050_s26 = sshll.u32 (!%p416_p9), %s12781_s17, 4 }
  0x14   : > { %s17541_s15 = scalar_lea.hbm (!%p416_p9), %s17597_s14, %s9050_s26 }
  0x17   : > { %v488_v0 = vld [vmem:[%s17605_s1 + $0x8] sm:$0xff] (!%p416_p9)  ;;  %v487_v35 = vld [vmem:[%s17605_s1] sm:$0xff] (!%p416_p9)  ;;  %v490_v36 = vld [vmem:[%s17605_s1 + $0x18] sm:$0xff] (!%p416_p9) }
  0x18   : > { %7923 = vmatprep.mubr.msk.f32.mxu0 (!%p416_p9), %vm631_vm0, %v488_v0  ;;  %v489_v37 = vld [vmem:[%s17605_s1 + $0x10] sm:$0xff] (!%p416_p9)  ;;  %v492_v38 = vld [vmem:[%s17605_s1 + $0x28] sm:$0xff] (!%p416_p9)  ;;  %v491_v39 = vld [vmem:[%s17605_s1 + $0x20] sm:$0xff] (!%p416_p9) }
  0x19   : > { %s461_s27 = scalar_select %p460_p10, %s12781_s17, 1  ;;  %v494_v40 = vld [vmem:[%s17605_s1 + $0x38] sm:$0xff]  ;;  %v493_v41 = vld [vmem:[%s17605_s1 + $0x30] sm:$0xff]  ;;  %v496_v42 = vld [vmem:[%s17605_s1 + $0x48] sm:$0xff] }
  0x1a   : > { %v495_v43 = vld [vmem:[%s17605_s1 + $0x40] sm:$0xff]  ;;  %v498_v44 = vld [vmem:[%s17605_s1 + $0x58] sm:$0xff]  ;;  %v497_v45 = vld [vmem:[%s17605_s1 + $0x50] sm:$0xff]  ;;  %s12684_s17 = smov [#allocation2]  }
  0x1b   : > { %s12574_s28 = smul.u32 176, %s461_s27  ;;  %v500_v46 = vld [vmem:[%s17605_s1 + $0x68] sm:$0xff]  ;;  %v499_v47 = vld [vmem:[%s17605_s1 + $0x60] sm:$0xff]  ;;  %v502_v48 = vld [vmem:[%s17605_s1 + $0x78] sm:$0xff] }
  0x1c   : > { %v501_v49 = vld [vmem:[%s17605_s1 + $0x70] sm:$0xff]  ;;  %v504_v50 = vld [vmem:[%s17605_s1 + $0x88] sm:$0xff]  ;;  %v503_v51 = vld [vmem:[%s17605_s1 + $0x80] sm:$0xff] }
  0x1d   : > { %s12818_s21 = scalar_lea.vmem %s17606_s0, %s12574_s28  ;;  %v506_v52 = vld [vmem:[%s17605_s1 + $0x98] sm:$0xff]  ;;  %v505_v53 = vld [vmem:[%s17605_s1 + $0x90] sm:$0xff]  ;;  %v508_v54 = vld [vmem:[%s17605_s1 + $0xa8] sm:$0xff]  ;;  %s458_s0 = sand.u32 1, %s12671_s30  }
  0x1e   : > { %v465_v2 = vld [vmem:[%s12818_s21] sm:$0xff]  ;;  %v466_v3 = vld [vmem:[%s12818_s21 + $0x8] sm:$0xff]  ;;  %v467_v4 = vld [vmem:[%s12818_s21 + $0x10] sm:$0xff]  ;;  %s459_s27 = scalar_lea.vmem [#allocation2], %s458_s0 }
  0x1f   : > { %v10838_v5 = vpack.c.bf16 %v466_v3, %v465_v2  ;;  %v468_v6 = vld [vmem:[%s12818_s21 + $0x18] sm:$0xff]  ;;  %v469_v8 = vld [vmem:[%s12818_s21 + $0x20] sm:$0xff]  ;;  %v470_v9 = vld [vmem:[%s12818_s21 + $0x28] sm:$0xff]  ;;  %s7862_s28 = sshll.u32 %s459_s27, 4  ;;  %s17543_s28 = int_to_ptr.vmem [resolvable:$true] %s7862_s28 }
  0x20   : > { %v10841_v7 = vpack.c.bf16 %v468_v6, %v467_v4  ;;  %v10844_v10 = vpack.c.bf16 %v470_v9, %v469_v8  ;;  %v471_v11 = vld [vmem:[%s12818_s21 + $0x30] sm:$0xff]  ;;  %v472_v12 = vld [vmem:[%s12818_s21 + $0x38] sm:$0xff]  ;;  %v473_v14 = vld [vmem:[%s12818_s21 + $0x40] sm:$0xff]  ;;  %s12617_s22 = scalar_lea.vmem %s17543_s28, 16 }
  0x21   : > { %10839 = vmatpush1.bf16.msra.mxu0 %v10838_v5  ;;  %v10847_v13 = vpack.c.bf16 %v472_v12, %v471_v11  ;;  %v474_v15 = vld [vmem:[%s12818_s21 + $0x48] sm:$0xff]  ;;  %v475_v17 = vld [vmem:[%s12818_s21 + $0x50] sm:$0xff]  ;;  %v476_v18 = vld [vmem:[%s12818_s21 + $0x58] sm:$0xff]  ;;  %p12618_p11 = scmp.ne.s32.totalorder %s17543_s28, %s12617_s22 }
  0x22   : > { %10840 = vmatprep.subr.bf16.mxu0 %v12681_v1  ;;  %v10850_v16 = vpack.c.bf16 %v474_v15, %v473_v14  ;;  %v10853_v19 = vpack.c.bf16 %v476_v18, %v475_v17  ;;  %v477_v20 = vld [vmem:[%s12818_s21 + $0x60] sm:$0xff]  ;;  %v478_v21 = vld [vmem:[%s12818_s21 + $0x68] sm:$0xff]  ;;  %v479_v23 = vld [vmem:[%s12818_s21 + $0x70] sm:$0xff] }
  0x23   : > { %v10856_v22 = vpack.c.bf16 %v478_v21, %v477_v20  ;;  %v480_v24 = vld [vmem:[%s12818_s21 + $0x78] sm:$0xff]  ;;  %v481_v26 = vld [vmem:[%s12818_s21 + $0x80] sm:$0xff]  ;;  %v482_v27 = vld [vmem:[%s12818_s21 + $0x88] sm:$0xff]  ;;  %p12619_p12 = pnand %p12618_p11, %p12798_p5 }
  0x24   : > { %v10859_v25 = vpack.c.bf16 %v480_v24, %v479_v23  ;;  %v10862_v28 = vpack.c.bf16 %v482_v27, %v481_v26  ;;  %v483_v29 = vld [vmem:[%s12818_s21 + $0x90] sm:$0xff]  ;;  %v484_v30 = vld [vmem:[%s12818_s21 + $0x98] sm:$0xff]  ;;  %v485_v32 = vld [vmem:[%s12818_s21 + $0xa0] sm:$0xff] }
  0x25   : > { %10842 = vmatpush1.bf16.msra.mxu0 %v10841_v7  ;;  %v10865_v31 = vpack.c.bf16 %v484_v30, %v483_v29  ;;  %v486_v33 = vld [vmem:[%s12818_s21 + $0xa8] sm:$0x1]  ;;  %v507_v55 = vld [vmem:[%s17605_s1 + $0xa0] sm:$0xff]  ;;  %v510_v56 = vld [vmem:[%s17605_s1 + $0xb8] sm:$0xff]  ;;  %p12620_p13 = pneg %p12619_p12  ;;  %s12621_s21 = sshll.u32 %s12684_s17, 4  ;;  %s12622_s21 = int_to_ptr.vmem [resolvable:$false] %s12621_s21 }
  0x26   : > { %10843 = vmatprep.subr.bf16.mxu0 %v12681_v1  ;;  %v10868_v34 = vpack.c.bf16 %v486_v33, %v485_v32  ;;  %v509_v57 = vld [vmem:[%s17605_s1 + $0xb0] sm:$0xff]  ;;  %v512_v58 = vld [vmem:[%s17605_s1 + $0xc8] sm:$0xff]  ;;  %v511_v59 = vld [vmem:[%s17605_s1 + $0xc0] sm:$0xff]  ;;  %s12623_s25 = scalar_lea.vmem %s12622_s21, 32  ;;  %p12624_p0 = scmp.lt.s32.totalorder %s17543_s28, %s12622_s21 }
  0x27   : > { %v514_v60 = vld [vmem:[%s17605_s1 + $0xd8] sm:$0xff]  ;;  %v513_v61 = vld [vmem:[%s17605_s1 + $0xd0] sm:$0xff]  ;;  %v516_v62 = vld [vmem:[%s17605_s1 + $0xe8] sm:$0xff]  ;;  %p12625_p1 = scmp.lt.s32.totalorder %s12623_s25, %s12617_s22 }
  0x28   : > { %v515_v63 = vld [vmem:[%s17605_s1 + $0xe0] sm:$0xff]  ;;  %v518_v0 = vld [vmem:[%s17605_s1 + $0xf8] sm:$0xff]  ;;  %v517_v2 = vld [vmem:[%s17605_s1 + $0xf0] sm:$0xff] }
  0x29   : > { %10845 = vmatpush1.bf16.msra.mxu0 %v10844_v10  ;;  %v520_v3 = vld [vmem:[%s17605_s1 + $0x108] sm:$0xff]  ;;  %v519_v4 = vld [vmem:[%s17605_s1 + $0x100] sm:$0xff]  ;;  %v522_v5 = vld [vmem:[%s17605_s1 + $0x118] sm:$0xff]  ;;  %p12626_p2 = por %p12625_p1, %p12624_p0 }
  0x2a   : > { %10846 = vmatprep.subr.bf16.mxu0 %v12681_v1  ;;  %v521_v6 = vld [vmem:[%s17605_s1 + $0x110] sm:$0xff]  ;;  %v524_v7 = vld [vmem:[%s17605_s1 + $0x128] sm:$0xff]  ;;  %v523_v8 = vld [vmem:[%s17605_s1 + $0x120] sm:$0xff] }
  0x2b   : > { %v526_v9 = vld [vmem:[%s17605_s1 + $0x138] sm:$0xff]  ;;  %v525_v10 = vld [vmem:[%s17605_s1 + $0x130] sm:$0xff]  ;;  %v528_v11 = vld [vmem:[%s17605_s1 + $0x148] sm:$0xff]  ;;  %p12627_p3 = pnand %p12626_p2, %p12620_p13 }
  0x2c   : > { %v527_v12 = vld [vmem:[%s17605_s1 + $0x140] sm:$0xff]  ;;  %v529_v14 = vld [vmem:[%s17605_s1 + $0x150] sm:$0xff]  ;;  %v532_v15 = vld [vmem:[%s17605_s1 + $0x168] sm:$0xff] }
  0x2d   : > { %10848 = vmatpush1.bf16.msra.mxu0 %v10847_v13  ;;  %v530_v13 = vld [vmem:[%s17605_s1 + $0x158] sm:$0xff]  ;;  %v533_v18 = vld [vmem:[%s17605_s1 + $0x170] sm:$0xff]  ;;  %v535_v20 = vld [vmem:[%s17605_s1 + $0x180] sm:$0xff] }
  0x2e   : > { %10849 = vmatprep.subr.bf16.mxu0 %v12681_v1  ;;  %v534_v17 = vld [vmem:[%s17605_s1 + $0x178] sm:$0xff]  ;;  %v540_v23 = vld [vmem:[%s17605_s1 + $0x1a8] sm:$0xff]  ;;  %v539_v24 = vld [vmem:[%s17605_s1 + $0x1a0] sm:$0xff] }
  0x2f   : > { %v538_v21 = vld [vmem:[%s17605_s1 + $0x198] sm:$0xff]  ;;  %v541_v26 = vld [vmem:[%s17605_s1 + $0x1b0] sm:$0xff]  ;;  %v544_v27 = vld [vmem:[%s17605_s1 + $0x1c8] sm:$0xff] }
  0x30   : > { %v546_v29 = vld [vmem:[%s17605_s1 + $0x1d8] sm:$0xff]  ;;  %v545_v30 = vld [vmem:[%s17605_s1 + $0x1d0] sm:$0xff]  ;;  %v547_v32 = vld [vmem:[%s17605_s1 + $0x1e0] sm:$0xff] }
  0x31   : > { %10851 = vmatpush1.bf16.msra.mxu0 %v10850_v16  ;;  %v531_v16 = vld [vmem:[%s17605_s1 + $0x160] sm:$0xff]  ;;  %v550_v33 = vld [vmem:[%s17605_s1 + $0x1f8] sm:$0xff] }
  0x32   : > { %10852 = vmatprep.subr.bf16.mxu0 %v12681_v1 }
  0x35   : > { %10854 = vmatpush1.bf16.msra.mxu0 %v10853_v19  ;;  %v536_v19 = vld [vmem:[%s17605_s1 + $0x188] sm:$0xff] }
  0x36   : > { %10855 = vmatprep.subr.bf16.mxu0 %v12681_v1 }
  0x39   : > { %10857 = vmatpush1.bf16.msra.mxu0 %v10856_v22  ;;  %v537_v22 = vld [vmem:[%s17605_s1 + $0x190] sm:$0xff] }
  0x3a   : > { %10858 = vmatprep.subr.bf16.mxu0 %v12681_v1 }
  0x3d   : > { %10860 = vmatpush1.bf16.msra.mxu0 %v10859_v25  ;;  %v542_v25 = vld [vmem:[%s17605_s1 + $0x1b8] sm:$0xff] }
  0x3e   : > { %10861 = vmatprep.subr.bf16.mxu0 %v12681_v1 }
  0x41   : > { %10863 = vmatpush1.bf16.msra.mxu0 %v10862_v28  ;;  %v543_v28 = vld [vmem:[%s17605_s1 + $0x1c0] sm:$0xff] }
  0x42   : > { %10864 = vmatprep.subr.bf16.mxu0 %v12681_v1 }
  0x45   : > { %10866 = vmatpush1.bf16.msra.mxu0 %v10865_v31  ;;  %v548_v31 = vld [vmem:[%s17605_s1 + $0x1e8] sm:$0xff] }
  0x46   : > { %10867 = vmatprep.subr.bf16.mxu0 %v12681_v1 }
  0x49   : > { %10870 = vmatpush1.bf16.msk.msra.mxu0 %vm10869_vm3, %v10868_v34  ;;  %v549_v34 = vld [vmem:[%s17605_s1 + $0x1f0] sm:$0xff] }
  0x4a   : > { %10919 = vmatprep.subr.bf16.mxu0 %v12681_v1 }
  0x4c   : > { %917 = vmatmul.mubr.f32.vlgmr.msra.gmra.mrb[0].mxu0 %v487_v35  ;;  %v552_v35 = vld [vmem:[%s17605_s1 + $0x208] sm:$0xff] }
  0x4d   : > { %7924 = vmatprep.mubr.msk.f32.mxu0 %vm631_vm0, %v490_v36  ;;  %v551_v36 = vld [vmem:[%s17605_s1 + $0x200] sm:$0xff] }
  0x50   : > { %922 = vmatmul.mubr.f32.gmra.mrb[2].mxu0 %v489_v37  ;;  %v554_v37 = vld [vmem:[%s17605_s1 + $0x218] sm:$0xff] }
  0x51   : > { %7925 = vmatprep.mubr.msk.f32.mxu0 %vm631_vm0, %v492_v38  ;;  %v553_v38 = vld [vmem:[%s17605_s1 + $0x210] sm:$0xff] }
  0x54   : > { %927 = vmatmul.mubr.f32.gmra.mrb[4].mxu0 %v491_v39  ;;  %v556_v39 = vld [vmem:[%s17605_s1 + $0x228] sm:$0xff] }
  0x55   : > { %7926 = vmatprep.mubr.msk.f32.mxu0 %vm631_vm0, %v494_v40  ;;  %v555_v40 = vld [vmem:[%s17605_s1 + $0x220] sm:$0xff] }
  0x58   : > { %932 = vmatmul.mubr.f32.gmra.mrb[6].mxu0 %v493_v41  ;;  %v558_v41 = vld [vmem:[%s17605_s1 + $0x238] sm:$0xff] }
  0x59   : > { %7927 = vmatprep.mubr.msk.f32.mxu0 %vm631_vm0, %v496_v42  ;;  %v557_v42 = vld [vmem:[%s17605_s1 + $0x230] sm:$0xff] }
  0x5c   : > { %937 = vmatmul.mubr.f32.gmra.mrb[8].mxu0 %v495_v43  ;;  %v560_v43 = vld [vmem:[%s17605_s1 + $0x248] sm:$0xff] }
  0x5d   : > { %7928 = vmatprep.mubr.msk.f32.mxu0 %vm631_vm0, %v498_v44  ;;  %v559_v44 = vld [vmem:[%s17605_s1 + $0x240] sm:$0xff] }
  0x60   : > { %942 = vmatmul.mubr.f32.gmra.mrb[10].mxu0 %v497_v45  ;;  %v562_v45 = vld [vmem:[%s17605_s1 + $0x258] sm:$0xff] }
  0x61   : > { %7929 = vmatprep.mubr.msk.f32.mxu0 %vm631_vm0, %v500_v46  ;;  %v561_v46 = vld [vmem:[%s17605_s1 + $0x250] sm:$0xff] }
  0x64   : > { %947 = vmatmul.mubr.f32.gmra.mrb[12].mxu0 %v499_v47  ;;  %v7995_v47 = vld [vmem:[%s17585_s2 + $0x30] sm:$0xff] }
  0x65   : > { %7930 = vmatprep.mubr.msk.f32.mxu0 %vm631_vm0, %v502_v48  ;;  %v7996_v48 = vld [vmem:[%s17585_s2 + $0x38] sm:$0xff] }
  0x68   : > { %952 = vmatmul.mubr.f32.gmra.mrb[14].mxu0 %v501_v49  ;;  %v564_v49 = vld [vmem:[%s17605_s1 + $0x268] sm:$0xff] }
  0x69   : > { %7931 = vmatprep.mubr.msk.f32.mxu0 %vm631_vm0, %v504_v50  ;;  %v10871_v50 = vpack.c.bf16 %v7996_v48, %v7995_v47  ;;  %v603_v47 = vld [vmem:[%s17605_s1 + $0x3a0] sm:$0xff]  ;;  %v606_v48 = vld [vmem:[%s17605_s1 + $0x3b8] sm:$0xff] }
  0x6b   : > { %10872 = vmatprep.subr.bf16.mxu1 %v10871_v50 }
  0x6c   : > { %957 = vmatmul.mubr.f32.gmra.mrb[16].mxu0 %v503_v51  ;;  %v563_v51 = vld [vmem:[%s17605_s1 + $0x260] sm:$0xff]  ;;  %10874 = vmatpush3.bf16.msra.mxu1 %v10871_v50 }
  0x6d   : > { %7932 = vmatprep.mubr.msk.f32.mxu0 %vm631_vm0, %v506_v52  ;;  %v7997_v52 = vld [vmem:[%s17585_s2 + $0x40] sm:$0xff] }
  0x70   : > { %962 = vmatmul.mubr.f32.gmra.mrb[18].mxu0 %v505_v53  ;;  %v7998_v53 = vld [vmem:[%s17585_s2 + $0x48] sm:$0xff] }
  0x71   : > { %7933 = vmatprep.mubr.msk.f32.mxu0 %vm631_vm0, %v508_v54  ;;  %v566_v54 = vld [vmem:[%s17605_s1 + $0x278] sm:$0xff] }
  0x74   : > { %967 = vmatmul.mubr.f32.gmra.mrb[20].mxu0 %v507_v55  ;;  %v10875_v55 = vpack.c.bf16 %v7998_v53, %v7997_v52  ;;  %v608_v52 = vld [vmem:[%s17605_s1 + $0x3c8] sm:$0xff] }
  0x75   : > { %7934 = vmatprep.mubr.msk.f32.mxu0 %vm631_vm0, %v510_v56  ;;  %v565_v56 = vld [vmem:[%s17605_s1 + $0x270] sm:$0xff] }
  0x76   : > { %10876 = vmatprep.subr.bf16.mxu1 %v10875_v55 }
  0x77   : > { %10878 = vmatpush3.bf16.msra.mxu1 %v10875_v55  ;;  %v607_v55 = vld [vmem:[%s17605_s1 + $0x3c0] sm:$0xff] }
  0x78   : > { %972 = vmatmul.mubr.f32.gmra.mrb[22].mxu0 %v509_v57  ;;  %v7999_v57 = vld [vmem:[%s17585_s2 + $0x50] sm:$0xff] }
  0x79   : > { %7935 = vmatprep.mubr.msk.f32.mxu0 %vm631_vm0, %v512_v58  ;;  %v8000_v58 = vld [vmem:[%s17585_s2 + $0x58] sm:$0xff] }
  0x7c   : > { %977 = vmatmul.mubr.f32.gmra.mrb[24].mxu0 %v511_v59  ;;  %v568_v59 = vld [vmem:[%s17605_s1 + $0x288] sm:$0xff] }
  0x7d   : > { %7936 = vmatprep.mubr.msk.f32.mxu0 %vm631_vm0, %v514_v60  ;;  %v10879_v60 = vpack.c.bf16 %v8000_v58, %v7999_v57 }
  0x7f   : > { %10880 = vmatprep.subr.bf16.mxu1 %v10879_v60 }
  0x80   : > { %982 = vmatmul.mubr.f32.gmra.mrb[26].mxu0 %v513_v61  ;;  %v567_v61 = vld [vmem:[%s17605_s1 + $0x280] sm:$0xff]  ;;  %10882 = vmatpush3.bf16.msra.mxu1 %v10879_v60  ;;  %v612_v60 = vld [vmem:[%s17605_s1 + $0x3e8] sm:$0xff] }
  0x81   : > { %7937 = vmatprep.mubr.msk.f32.mxu0 %vm631_vm0, %v516_v62  ;;  %v570_v62 = vld [vmem:[%s17605_s1 + $0x298] sm:$0xff] }
  0x84   : > { %987 = vmatmul.mubr.f32.gmra.mrb[28].mxu0 %v515_v63  ;;  %v569_v63 = vld [vmem:[%s17605_s1 + $0x290] sm:$0xff] }
  0x85   : > { %7938 = vmatprep.mubr.msk.f32.mxu0 %vm631_vm0, %v518_v0  ;;  %v572_v0 = vld [vmem:[%s17605_s1 + $0x2a8] sm:$0xff] }
  0x88   : > { %992 = vmatmul.mubr.f32.gmra.mrb[30].mxu0 %v517_v2  ;;  %v571_v2 = vld [vmem:[%s17605_s1 + $0x2a0] sm:$0xff] }
  0x89   : > { %7939 = vmatprep.mubr.msk.f32.mxu0 %vm631_vm0, %v520_v3  ;;  %v574_v3 = vld [vmem:[%s17605_s1 + $0x2b8] sm:$0xff] }
  0x8c   : > { %997 = vmatmul.mubr.f32.gmra.mrb[32].mxu0 %v519_v4  ;;  %v573_v4 = vld [vmem:[%s17605_s1 + $0x2b0] sm:$0xff] }
  0x8d   : > { %7940 = vmatprep.mubr.msk.f32.mxu0 %vm631_vm0, %v522_v5  ;;  %v576_v5 = vld [vmem:[%s17605_s1 + $0x2c8] sm:$0xff] }
  0x90   : > { %1002 = vmatmul.mubr.f32.gmra.mrb[34].mxu0 %v521_v6  ;;  %v575_v6 = vld [vmem:[%s17605_s1 + $0x2c0] sm:$0xff] }
  0x91   : > { %7941 = vmatprep.mubr.msk.f32.mxu0 %vm631_vm0, %v524_v7  ;;  %v578_v7 = vld [vmem:[%s17605_s1 + $0x2d8] sm:$0xff] }
  0x94   : > { %1007 = vmatmul.mubr.f32.gmra.mrb[36].mxu0 %v523_v8  ;;  %v577_v8 = vld [vmem:[%s17605_s1 + $0x2d0] sm:$0xff] }
  0x95   : > { %7942 = vmatprep.mubr.msk.f32.mxu0 %vm631_vm0, %v526_v9  ;;  %v580_v9 = vld [vmem:[%s17605_s1 + $0x2e8] sm:$0xff] }
  0x98   : > { %1012 = vmatmul.mubr.f32.gmra.mrb[38].mxu0 %v525_v10  ;;  %v579_v10 = vld [vmem:[%s17605_s1 + $0x2e0] sm:$0xff] }
  0x99   : > { %7943 = vmatprep.mubr.msk.f32.mxu0 %vm631_vm0, %v528_v11  ;;  %v582_v11 = vld [vmem:[%s17605_s1 + $0x2f8] sm:$0xff] }
  0x9c   : > { %1017 = vmatmul.mubr.f32.gmra.mrb[40].mxu0 %v527_v12  ;;  %v581_v12 = vld [vmem:[%s17605_s1 + $0x2f0] sm:$0xff] }
  0x9d   : > { %7944 = vmatprep.mubr.msk.f32.mxu0 %vm631_vm0, %v530_v13  ;;  %v584_v13 = vld [vmem:[%s17605_s1 + $0x308] sm:$0xff] }
  0xa0   : > { %1022 = vmatmul.mubr.f32.gmra.mrb[42].mxu0 %v529_v14  ;;  %v583_v14 = vld [vmem:[%s17605_s1 + $0x300] sm:$0xff] }
  0xa1   : > { %7945 = vmatprep.mubr.msk.f32.mxu0 %vm631_vm0, %v532_v15  ;;  %v586_v15 = vld [vmem:[%s17605_s1 + $0x318] sm:$0xff] }
  0xa4   : > { %1027 = vmatmul.mubr.f32.gmra.mrb[44].mxu0 %v531_v16  ;;  %v585_v16 = vld [vmem:[%s17605_s1 + $0x310] sm:$0xff] }
  0xa5   : > { %7946 = vmatprep.mubr.msk.f32.mxu0 %vm631_vm0, %v534_v17  ;;  %v588_v17 = vld [vmem:[%s17605_s1 + $0x328] sm:$0xff] }
  0xa8   : > { %1032 = vmatmul.mubr.f32.gmra.mrb[46].mxu0 %v533_v18  ;;  %v587_v18 = vld [vmem:[%s17605_s1 + $0x320] sm:$0xff] }
  0xa9   : > { %7947 = vmatprep.mubr.msk.f32.mxu0 %vm631_vm0, %v536_v19  ;;  %v590_v19 = vld [vmem:[%s17605_s1 + $0x338] sm:$0xff] }
  0xac   : > { %1037 = vmatmul.mubr.f32.gmra.mrb[48].mxu0 %v535_v20  ;;  %v589_v20 = vld [vmem:[%s17605_s1 + $0x330] sm:$0xff] }
  0xad   : > { %7948 = vmatprep.mubr.msk.f32.mxu0 %vm631_vm0, %v538_v21  ;;  %v592_v21 = vld [vmem:[%s17605_s1 + $0x348] sm:$0xff] }
  0xb0   : > { %1042 = vmatmul.mubr.f32.gmra.mrb[50].mxu0 %v537_v22  ;;  %v591_v22 = vld [vmem:[%s17605_s1 + $0x340] sm:$0xff] }
  0xb1   : > { %7949 = vmatprep.mubr.msk.f32.mxu0 %vm631_vm0, %v540_v23  ;;  %v594_v23 = vld [vmem:[%s17605_s1 + $0x358] sm:$0xff] }
  0xb4   : > { %1047 = vmatmul.mubr.f32.gmra.mrb[52].mxu0 %v539_v24  ;;  %v593_v24 = vld [vmem:[%s17605_s1 + $0x350] sm:$0xff] }
  0xb5   : > { %7950 = vmatprep.mubr.msk.f32.mxu0 %vm631_vm0, %v542_v25  ;;  %v596_v25 = vld [vmem:[%s17605_s1 + $0x368] sm:$0xff] }
  0xb8   : > { %1052 = vmatmul.mubr.f32.gmra.mrb[54].mxu0 %v541_v26 }
  0xb9   : > { %7951 = vmatprep.mubr.msk.f32.mxu0 %vm631_vm0, %v544_v27 }
  0xbc   : > { %1057 = vmatmul.mubr.f32.gmra.mrb[56].mxu0 %v543_v28  ;;  %v595_v28 = vld [vmem:[%s17605_s1 + $0x360] sm:$0xff] }
  0xbd   : > { %7952 = vmatprep.mubr.msk.f32.mxu0 %vm631_vm0, %v546_v29  ;;  %v1277_v29 = vld [vmem:[%s17585_s2] sm:$0xff] }
  0xc0   : > { %1062 = vmatmul.mubr.f32.gmra.mrb[58].mxu0 %v545_v30  ;;  %v1278_v30 = vld [vmem:[%s17585_s2 + $0x8] sm:$0xff] }
  0xc1   : > { %7953 = vmatprep.mubr.msk.f32.mxu0 %vm631_vm0, %v548_v31  ;;  %v598_v31 = vld [vmem:[%s17605_s1 + $0x378] sm:$0xff] }
  0xc4   : > { %1067 = vmatmul.mubr.f32.gmra.mrb[60].mxu0 %v547_v32  ;;  %v13263_v32 = vpack.c.bf16 %v1278_v30, %v1277_v29  ;;  %v625_v29 = vld [vmem:[%s17605_s1 + $0x450] sm:$0xff]  ;;  %v628_v30 = vld [vmem:[%s17605_s1 + $0x468] sm:$0xff] }
  0xc5   : > { %7954 = vmatprep.mubr.msk.f32.mxu0 %vm631_vm0, %v550_v33 }
  0xc6   : > { %10884 = vmatprep.subr.bf16.mxu1 %v13263_v32 }
  0xc8   : > { %1072 = vmatmul.mubr.f32.gmra.mrb[62].mxu0 %v549_v34 }
  0xc9   : > { %7955 = vmatprep.mubr.msk.f32.mxu0 %vm631_vm0, %v552_v35  ;;  %v597_v35 = vld [vmem:[%s17605_s1 + $0x370] sm:$0xff] }
  0xcc   : > { %1077 = vmatmul.mubr.f32.gmra.mrb[64].mxu0 %v551_v36  ;;  %v600_v36 = vld [vmem:[%s17605_s1 + $0x388] sm:$0xff] }
  0xcd   : > { %7956 = vmatprep.mubr.msk.f32.mxu0 %vm631_vm0, %v554_v37 }
  0xd0   : > { %1082 = vmatmul.mubr.f32.gmra.mrb[66].mxu0 %v553_v38 }
  0xd1   : > { %7957 = vmatprep.mubr.msk.f32.mxu0 %vm631_vm0, %v556_v39  ;;  %v599_v39 = vld [vmem:[%s17605_s1 + $0x380] sm:$0xff] }
  0xd4   : > { %1087 = vmatmul.mubr.f32.gmra.mrb[68].mxu0 %v555_v40  ;;  %v602_v40 = vld [vmem:[%s17605_s1 + $0x398] sm:$0xff] }
  0xd5   : > { %7958 = vmatprep.mubr.msk.f32.mxu0 %vm631_vm0, %v558_v41 }
  0xd8   : > { %1092 = vmatmul.mubr.f32.gmra.mrb[70].mxu0 %v557_v42 }
  0xd9   : > { %7959 = vmatprep.mubr.msk.f32.mxu0 %vm631_vm0, %v560_v43  ;;  %v601_v43 = vld [vmem:[%s17605_s1 + $0x390] sm:$0xff] }
  0xdc   : > { %1097 = vmatmul.mubr.f32.gmra.mrb[72].mxu0 %v559_v44  ;;  %v604_v44 = vld [vmem:[%s17605_s1 + $0x3a8] sm:$0xff] }
  0xdd   : > { %7960 = vmatprep.mubr.msk.f32.mxu0 %vm631_vm0, %v562_v45 }
  0xe0   : > { %1102 = vmatmul.mubr.f32.gmra.mrb[74].mxu0 %v561_v46 }
  0xe1   : > { %7961 = vmatprep.mubr.msk.f32.mxu0 %vm631_vm0, %v564_v49 }
  0xe4   : > { %1107 = vmatmul.mubr.f32.gmra.mrb[76].mxu0 %v563_v51  ;;  %v605_v51 = vld [vmem:[%s17605_s1 + $0x3b0] sm:$0xff] }
  0xe5   : > { %7962 = vmatprep.mubr.msk.f32.mxu0 %vm631_vm0, %v566_v54 }
  0xe8   : > { %1112 = vmatmul.mubr.f32.gmra.mrb[78].mxu0 %v565_v56  ;;  %v610_v56 = vld [vmem:[%s17605_s1 + $0x3d8] sm:$0xff] }
  0xe9   : > { %7963 = vmatprep.mubr.msk.f32.mxu0 %vm631_vm0, %v568_v59  ;;  %v609_v59 = vld [vmem:[%s17605_s1 + $0x3d0] sm:$0xff] }
  0xec   : > { %1117 = vmatmul.mubr.f32.gmra.mrb[80].mxu0 %v567_v61 }
  0xed   : > { %7964 = vmatprep.mubr.msk.f32.mxu0 %vm631_vm0, %v570_v62 }
  0xf0   : > { %1122 = vmatmul.mubr.f32.gmra.mrb[82].mxu0 %v569_v63  ;;  %v611_v63 = vld [vmem:[%s17605_s1 + $0x3e0] sm:$0xff] }
  0xf1   : > { %7965 = vmatprep.mubr.msk.f32.mxu0 %vm631_vm0, %v572_v0  ;;  %v614_v0 = vld [vmem:[%s17605_s1 + $0x3f8] sm:$0xff] }
  0xf4   : > { %1127 = vmatmul.mubr.f32.gmra.mrb[84].mxu0 %v571_v2 }
  0xf5   : > { %7966 = vmatprep.mubr.msk.f32.mxu0 %vm631_vm0, %v574_v3 }
  0xf8   : > { %1132 = vmatmul.mubr.f32.gmra.mrb[86].mxu0 %v573_v4  ;;  %v613_v4 = vld [vmem:[%s17605_s1 + $0x3f0] sm:$0xff] }
  0xf9   : > { %7967 = vmatprep.mubr.msk.f32.mxu0 %vm631_vm0, %v576_v5  ;;  %v616_v5 = vld [vmem:[%s17605_s1 + $0x408] sm:$0xff] }
  0xfc   : > { %1137 = vmatmul.mubr.f32.gmra.mrb[88].mxu0 %v575_v6 }
  0xfd   : > { %7968 = vmatprep.mubr.msk.f32.mxu0 %vm631_vm0, %v578_v7 }
 0x100   : > { %1142 = vmatmul.mubr.f32.gmra.mrb[90].mxu0 %v577_v8  ;;  %v615_v8 = vld [vmem:[%s17605_s1 + $0x400] sm:$0xff] }
 0x101   : > { %7969 = vmatprep.mubr.msk.f32.mxu0 %vm631_vm0, %v580_v9  ;;  %v618_v9 = vld [vmem:[%s17605_s1 + $0x418] sm:$0xff] }
 0x104   : > { %1147 = vmatmul.mubr.f32.gmra.mrb[92].mxu0 %v579_v10 }
 0x105   : > { %7970 = vmatprep.mubr.msk.f32.mxu0 %vm631_vm0, %v582_v11 }
 0x108   : > { %1152 = vmatmul.mubr.f32.gmra.mrb[94].mxu0 %v581_v12  ;;  %v617_v12 = vld [vmem:[%s17605_s1 + $0x410] sm:$0xff] }
 0x109   : > { %7971 = vmatprep.mubr.msk.f32.mxu0 %vm631_vm0, %v584_v13  ;;  %v620_v13 = vld [vmem:[%s17605_s1 + $0x428] sm:$0xff] }
 0x10c   : > { %1157 = vmatmul.mubr.f32.gmra.mrb[96].mxu0 %v583_v14 }
 0x10d   : > { %7972 = vmatprep.mubr.msk.f32.mxu0 %vm631_vm0, %v586_v15 }
 0x110   : > { %1162 = vmatmul.mubr.f32.gmra.mrb[98].mxu0 %v585_v16  ;;  %v619_v16 = vld [vmem:[%s17605_s1 + $0x420] sm:$0xff] }
 0x111   : > { %7973 = vmatprep.mubr.msk.f32.mxu0 %vm631_vm0, %v588_v17  ;;  %v622_v17 = vld [vmem:[%s17605_s1 + $0x438] sm:$0xff] }
 0x114   : > { %1167 = vmatmul.mubr.f32.gmra.mrb[100].mxu0 %v587_v18 }
 0x115   : > { %7974 = vmatprep.mubr.msk.f32.mxu0 %vm631_vm0, %v590_v19 }
 0x118   : > { %1172 = vmatmul.mubr.f32.gmra.mrb[102].mxu0 %v589_v20  ;;  %v621_v20 = vld [vmem:[%s17605_s1 + $0x430] sm:$0xff] }
 0x119   : > { %7975 = vmatprep.mubr.msk.f32.mxu0 %vm631_vm0, %v592_v21  ;;  %v624_v21 = vld [vmem:[%s17605_s1 + $0x448] sm:$0xff] }
 0x11c   : > { %1177 = vmatmul.mubr.f32.gmra.mrb[104].mxu0 %v591_v22 }
 0x11d   : > { %7976 = vmatprep.mubr.msk.f32.mxu0 %vm631_vm0, %v594_v23 }
 0x11f   : > { %v13248_v26 = vpop.f32.mrb[0].mxu0 }
 0x120   : > { %v920_v27 = vpop.f32.mrb[1].mxu0  ;;  %1182 = vmatmul.mubr.f32.gmra.mrb[106].mxu0 %v593_v24  ;;  %v623_v24 = vld [vmem:[%s17605_s1 + $0x440] sm:$0xff] }
 0x121   : > { %7977 = vmatprep.mubr.msk.f32.mxu0 %vm631_vm0, %v596_v25  ;;  %v626_v25 = vld [vmem:[%s17605_s1 + $0x458] sm:$0xff] }
 0x123   : > { %v13265_v33 = vpop.f32.mrb[2].mxu0 }
 0x124   : > { %v925_v34 = vpop.f32.mrb[3].mxu0  ;;  %1187 = vmatmul.mubr.f32.gmra.mrb[108].mxu0 %v595_v28 }
 0x125   : > { %7978 = vmatprep.mubr.msk.f32.mxu0 %vm631_vm0, %v598_v31 }
 0x127   : > { %v13275_v37 = vpop.f32.mrb[4].mxu0 }
 0x128   : > { %v930_v38 = vpop.f32.mrb[5].mxu0  ;;  %1192 = vmatmul.mubr.f32.gmra.mrb[110].mxu0 %v597_v35  ;;  %v627_v35 = vld [vmem:[%s17605_s1 + $0x460] sm:$0xff] }
 0x129   : > { %7979 = vmatprep.mubr.msk.f32.mxu0 %vm631_vm0, %v600_v36  ;;  %v630_v36 = vld [vmem:[%s17605_s1 + $0x478] sm:$0xff] }
 0x12b   : > { %v13284_v41 = vpop.f32.mrb[6].mxu0 }
 0x12c   : > { %v935_v42 = vpop.f32.mrb[7].mxu0  ;;  %1197 = vmatmul.mubr.f32.gmra.mrb[112].mxu0 %v599_v39 }
 0x12d   : > { %7980 = vmatprep.mubr.msk.f32.mxu0 %vm631_vm0, %v602_v40  ;;  %v629_v40 = vld [vmem:[%s17605_s1 + $0x470] sm:$0xff]  ;;  %s7850_s1 = scalar_lea.sflag [#allocation3], %s458_s0 }
 0x12f   : > { %v13293_v45 = vpop.f32.mrb[8].mxu0 }
 0x130   : > { %v940_v46 = vpop.f32.mrb[9].mxu0  ;;  %1202 = vmatmul.mubr.f32.gmra.mrb[114].mxu0 %v601_v43  ;;  %v1279_v43 = vld [vmem:[%s17585_s2 + $0x10] sm:$0xff] }
 0x131   : > { %7981 = vmatprep.mubr.msk.f32.mxu0 %vm631_vm0, %v604_v44  ;;  %v1280_v44 = vld [vmem:[%s17585_s2 + $0x18] sm:$0xff] }
 0x133   : > { %v13302_v49 = vpop.f32.mrb[10].mxu0 }
 0x134   : > { %v945_v50 = vpop.f32.mrb[11].mxu0  ;;  %1207 = vmatmul.mubr.f32.gmra.mrb[116].mxu0 %v603_v47  ;;  %v10887_v47 = vpack.c.bf16 %v1280_v44, %v1279_v43 }
 0x135   : > { %7982 = vmatprep.mubr.msk.f32.mxu0 %vm631_vm0, %v606_v48  ;;  %v1281_v50 = vld [vmem:[%s17585_s2 + $0x20] sm:$0xff] }
 0x137   : > { %v13311_v53 = vpop.f32.mrb[12].mxu0 }
 0x138   : > { %v950_v54 = vpop.f32.mrb[13].mxu0  ;;  %1212 = vmatmul.mubr.f32.gmra.mrb[118].mxu0 %v605_v51  ;;  %v1282_v51 = vld [vmem:[%s17585_s2 + $0x28] sm:$0xff] }
 0x139   : > { %7983 = vmatprep.mubr.msk.f32.mxu0 %vm631_vm0, %v608_v52  ;;  %v10891_v54 = vpack.c.bf16 %v1282_v51, %v1281_v50 }
 0x13b   : > { %v13320_v57 = vpop.f32.mrb[14].mxu0 }
 0x13c   : > { %v955_v58 = vpop.f32.mrb[15].mxu0  ;;  %1217 = vmatmul.mubr.f32.gmra.mrb[120].mxu0 %v607_v55 }
 0x13d   : > { %7984 = vmatprep.mubr.msk.f32.mxu0 %vm631_vm0, %v610_v56  ;;  %v8037_v56 = vld [vmem:[%s17585_s2 + $0x60] sm:$0xff]  ;;  %v8038_v58 = vld [vmem:[%s17585_s2 + $0x68] sm:$0xff] }
 0x13f   : > { %v13329_v61 = vpop.f32.mrb[16].mxu0 }
 0x140   : > { %v960_v62 = vpop.f32.mrb[17].mxu0  ;;  %1222 = vmatmul.mubr.f32.gmra.mrb[122].mxu0 %v609_v59 }
 0x141   : > { %7985 = vmatprep.mubr.msk.f32.mxu0 %vm631_vm0, %v612_v60  ;;  %v10895_v60 = vpack.c.bf16 %v8038_v58, %v8037_v56 }
 0x143   : > { %v13338_v2 = vpop.f32.mrb[18].mxu0 }
 0x144   : > { %v965_v3 = vpop.f32.mrb[19].mxu0  ;;  %1227 = vmatmul.mubr.f32.gmra.mrb[124].mxu0 %v611_v63 }
 0x145   : > { %7986 = vmatprep.mubr.msk.f32.mxu0 %vm631_vm0, %v614_v0 }
 0x147   : > { %v13347_v6 = vpop.f32.mrb[20].mxu0 }
 0x148   : > { %v970_v7 = vpop.f32.mrb[21].mxu0  ;;  %1232 = vmatmul.mubr.f32.gmra.mrb[126].mxu0 %v613_v4 }
 0x149   : > { %7987 = vmatprep.mubr.msk.f32.mxu0 %vm631_vm0, %v616_v5 }
 0x14b   : > { %v13356_v10 = vpop.f32.mrb[22].mxu0 }
 0x14c   : > { %v975_v11 = vpop.f32.mrb[23].mxu0  ;;  %1237 = vmatmul.mubr.f32.gmra.mrb[128].mxu0 %v615_v8 }
 0x14d   : > { %7988 = vmatprep.mubr.msk.f32.mxu0 %vm631_vm0, %v618_v9 }
 0x14f   : > { %v13365_v14 = vpop.f32.mrb[24].mxu0 }
 0x150   : > { %v980_v15 = vpop.f32.mrb[25].mxu0  ;;  %1242 = vmatmul.mubr.f32.gmra.mrb[130].mxu0 %v617_v12 }
 0x151   : > { %7989 = vmatprep.mubr.msk.f32.mxu0 %vm631_vm0, %v620_v13 }
 0x153   : > { %v13374_v18 = vpop.f32.mrb[26].mxu0 }
 0x154   : > { %v985_v19 = vpop.f32.mrb[27].mxu0  ;;  %1247 = vmatmul.mubr.f32.gmra.mrb[132].mxu0 %v619_v16 }
 0x155   : > { %7990 = vmatprep.mubr.msk.f32.mxu0 %vm631_vm0, %v622_v17 }
 0x157   : > { %v13383_v22 = vpop.f32.mrb[28].mxu0 }
 0x158   : > { %v990_v23 = vpop.f32.mrb[29].mxu0  ;;  %1252 = vmatmul.mubr.f32.gmra.mrb[134].mxu0 %v621_v20 }
 0x159   : > { %7991 = vmatprep.mubr.msk.f32.mxu0 %vm631_vm0, %v624_v21 }
 0x15b   : > { %v13392_v27 = vpop.f32.mrb[30].mxu0 }
 0x15c   : > { %v995_v28 = vpop.f32.mrb[31].mxu0  ;;  %1257 = vmatmul.mubr.f32.gmra.mrb[136].mxu0 %v623_v24 }
 0x15d   : > { %7992 = vmatprep.mubr.msk.f32.mxu0 %vm631_vm0, %v626_v25 }
 0x15f   : > { %v13401_v31 = vpop.f32.mrb[32].mxu0 }
 0x160   : > { %v1000_v34 = vpop.f32.mrb[33].mxu0  ;;  %1262 = vmatmul.mubr.f32.gmra.mrb[138].mxu0 %v625_v29 }
 0x161   : > { %7993 = vmatprep.mubr.msk.f32.mxu0 %vm631_vm0, %v628_v30 }
 0x163   : > { %v13410_v38 = vpop.f32.mrb[34].mxu0 }
 0x164   : > { %v1005_v39 = vpop.f32.mrb[35].mxu0  ;;  %1267 = vmatmul.mubr.f32.gmra.mrb[140].mxu0 %v627_v35 }
 0x165   : > { %7994 = vmatprep.mubr.msk.f32.mxu0 %vm631_vm0, %v630_v36 }
 0x167   : > { %v1008_v42 = vpop.f32.mrb[36].mxu0 }
 0x168   : > { %v1010_v46 = vpop.f32.mrb[37].mxu0  ;;  %1272 = vmatmul.mubr.f32.gmra.mrb[142].mxu0 %v629_v40  ;;  %9735 = vmatprep.mubr.msk.f32.mxu1 %vm1290_vm4, %v1008_v42  ;;  %v8039_v40 = vld [vmem:[%s17585_s2 + $0x70] sm:$0xff]  ;;  %v8040_v42 = vld [vmem:[%s17585_s2 + $0x78] sm:$0xff] }
 0x169   : > { %v10899_v44 = vpack.c.bf16 %v8040_v42, %v8039_v40 }
 0x16b   : > { %v1013_v48 = vpop.f32.mrb[38].mxu0 }
 0x16c   : > { %v1015_v52 = vpop.f32.mrb[39].mxu0  ;;  %9736 = vmatmul.mubr.msk.f32.vlgmr.msra.gmra.mrb[0].mxu1 %vm1290_vm4, %v1013_v48  ;;  %v8042_v48 = vld [vmem:[%s17585_s2 + $0x88] sm:$0xff] }
 0x16d   : > { %10886 = vmatpush3.bf16.msra.mxu1 %v13263_v32  ;;  %v8061_v52 = vld [vmem:[%s17585_s2 + $0x90] sm:$0xff] }
 0x16e   : > { %10888 = vmatprep.subr.bf16.mxu1 %v10887_v47 }
 0x16f   : > { %v1018_v55 = vpop.f32.mrb[40].mxu0 }
 0x170   : > { %v1020_v59 = vpop.f32.mrb[41].mxu0  ;;  %9738 = vmatprep.mubr.msk.f32.mxu1 %vm1290_vm4, %v1018_v55 }
 0x171   : > { %10890 = vmatpush3.bf16.msra.mxu1 %v10887_v47  ;;  %v8041_v47 = vld [vmem:[%s17585_s2 + $0x80] sm:$0xff] }
 0x172   : > { %10892 = vmatprep.subr.bf16.mxu1 %v10891_v54 }
 0x173   : > { %v1023_v62 = vpop.f32.mrb[42].mxu0 }
 0x174   : > { %v1025_v63 = vpop.f32.mrb[43].mxu0  ;;  %9739 = vmatmul.mubr.msk.f32.gmra.mrb[2].mxu1 %vm1290_vm4, %v1023_v62  ;;  %v8066_v62 = vld [vmem:[%s17585_s2 + $0xb8] sm:$0xff] }
 0x175   : > { %10894 = vmatpush3.bf16.msra.mxu1 %v10891_v54  ;;  %v8062_v54 = vld [vmem:[%s17585_s2 + $0x98] sm:$0xff] }
 0x176   : > { %10896 = vmatprep.subr.bf16.mxu1 %v10895_v60 }
 0x177   : > { %v1028_v32 = vpop.f32.mrb[44].mxu0 }
 0x178   : > { %v1030_v0 = vpop.f32.mrb[45].mxu0  ;;  %9741 = vmatprep.mubr.msk.f32.mxu1 %vm1290_vm4, %v1028_v32 }
 0x17b   : > { %v1033_v3 = vpop.f32.mrb[46].mxu0 }
 0x17c   : > { %v1035_v4 = vpop.f32.mrb[47].mxu0  ;;  %9742 = vmatmul.mubr.msk.f32.gmra.mrb[4].mxu1 %vm1290_vm4, %v1033_v3 }
 0x17f   : > { %v1038_v5 = vpop.f32.mrb[48].mxu0 }
 0x180   : > { %v1040_v7 = vpop.f32.mrb[49].mxu0  ;;  %9744 = vmatprep.mubr.msk.f32.mxu1 %vm1290_vm4, %v1038_v5 }
 0x183   : > { %v1043_v8 = vpop.f32.mrb[50].mxu0 }
 0x184   : > { %v1045_v9 = vpop.f32.mrb[51].mxu0  ;;  %9745 = vmatmul.mubr.msk.f32.gmra.mrb[6].mxu1 %vm1290_vm4, %v1043_v8 }
 0x187   : > { %v1048_v11 = vpop.f32.mrb[52].mxu0 }
 0x188   : > { %v1050_v12 = vpop.f32.mrb[53].mxu0  ;;  %9747 = vmatprep.mubr.msk.f32.mxu1 %vm1290_vm4, %v1048_v11 }
 0x18b   : > { %v1053_v13 = vpop.f32.mrb[54].mxu0 }
 0x18c   : > { %v1055_v15 = vpop.f32.mrb[55].mxu0  ;;  %9748 = vmatmul.mubr.msk.f32.gmra.mrb[8].mxu1 %vm1290_vm4, %v1053_v13 }
 0x18f   : > { %v1058_v16 = vpop.f32.mrb[56].mxu0 }
 0x190   : > { %v1060_v17 = vpop.f32.mrb[57].mxu0  ;;  %9750 = vmatprep.mubr.msk.f32.mxu1 %vm1290_vm4, %v1058_v16 }
 0x193   : > { %v1063_v19 = vpop.f32.mrb[58].mxu0 }
 0x194   : > { %v1065_v20 = vpop.f32.mrb[59].mxu0  ;;  %9751 = vmatmul.mubr.msk.f32.gmra.mrb[10].mxu1 %vm1290_vm4, %v1063_v19 }
 0x197   : > { %v1068_v21 = vpop.f32.mrb[60].mxu0 }
 0x198   : > { %v1070_v23 = vpop.f32.mrb[61].mxu0  ;;  %9753 = vmatprep.mubr.msk.f32.mxu1 %vm1290_vm4, %v1068_v21 }
 0x19b   : > { %v1073_v24 = vpop.f32.mrb[62].mxu0 }
 0x19c   : > { %v1075_v25 = vpop.f32.mrb[63].mxu0  ;;  %9754 = vmatmul.mubr.msk.f32.gmra.mrb[12].mxu1 %vm1290_vm4, %v1073_v24 }
 0x19f   : > { %v1078_v28 = vpop.f32.mrb[64].mxu0 }
 0x1a0   : > { %v1080_v29 = vpop.f32.mrb[65].mxu0  ;;  %9756 = vmatprep.mubr.msk.f32.mxu1 %vm1290_vm4, %v1078_v28 }
 0x1a3   : > { %v1083_v30 = vpop.f32.mrb[66].mxu0 }
 0x1a4   : > { %v1085_v34 = vpop.f32.mrb[67].mxu0  ;;  %9757 = vmatmul.mubr.msk.f32.gmra.mrb[14].mxu1 %vm1290_vm4, %v1083_v30 }
 0x1a7   : > { %v1088_v35 = vpop.f32.mrb[68].mxu0 }
 0x1a8   : > { %v1090_v36 = vpop.f32.mrb[69].mxu0  ;;  %9759 = vmatprep.mubr.msk.f32.mxu1 %vm1290_vm4, %v1088_v35 }
 0x1ab   : > { %v1093_v39 = vpop.f32.mrb[70].mxu0 }
 0x1ac   : > { %v1095_v43 = vpop.f32.mrb[71].mxu0  ;;  %9760 = vmatmul.mubr.msk.f32.gmra.mrb[16].mxu1 %vm1290_vm4, %v1093_v39 }
 0x1ad   : > { %9774 = vmatprep.mubr.msk.f32.mxu1 %vm1290_vm4, %v13248_v26  ;;  %v10903_v26 = vpack.c.bf16 %v8042_v48, %v8041_v47 }
 0x1af   : > { %v1098_v46 = vpop.f32.mrb[72].mxu0 }
 0x1b0   : > { %v1100_v50 = vpop.f32.mrb[73].mxu0  ;;  %9775 = vmatmul.mubr.msk.f32.vlgmr.msra.gmra.mrb[0].mxu1 %vm1290_vm4, %v13265_v33  ;;  %v10907_v33 = vpack.c.bf16 %v8062_v54, %v8061_v52 }
 0x1b1   : > { %9777 = vmatprep.mubr.msk.f32.mxu1 %vm1290_vm4, %v13275_v37  ;;  %10898 = vmatpush3.bf16.msra.mxu1 %v10895_v60 }
 0x1b2   : > { %10900 = vmatprep.subr.bf16.mxu1 %v10899_v44 }
 0x1b3   : > { %v1103_v51 = vpop.f32.mrb[74].mxu0 }
 0x1b4   : > { %v1105_v55 = vpop.f32.mrb[75].mxu0  ;;  %9778 = vmatmul.mubr.msk.f32.gmra.mrb[2].mxu1 %vm1290_vm4, %v13284_v41 }
 0x1b5   : > { %9780 = vmatprep.mubr.msk.f32.mxu1 %vm1290_vm4, %v13293_v45  ;;  %10902 = vmatpush3.bf16.msra.mxu1 %v10899_v44 }
 0x1b6   : > { %10904 = vmatprep.subr.bf16.mxu1 %v10903_v26 }
 0x1b7   : > { %v1108_v37 = vpop.f32.mrb[76].mxu0 }
 0x1b8   : > { %v1110_v56 = vpop.f32.mrb[77].mxu0  ;;  %9781 = vmatmul.mubr.msk.f32.gmra.mrb[4].mxu1 %vm1290_vm4, %v13302_v49 }
 0x1b9   : > { %9783 = vmatprep.mubr.msk.f32.mxu1 %vm1290_vm4, %v13311_v53  ;;  %10906 = vmatpush3.bf16.msra.mxu1 %v10903_v26 }
 0x1ba   : > { %10908 = vmatprep.subr.bf16.mxu1 %v10907_v33 }
 0x1bb   : > { %v1113_v58 = vpop.f32.mrb[78].mxu0 }
 0x1bc   : > { %v1115_v59 = vpop.f32.mrb[79].mxu0  ;;  %9784 = vmatmul.mubr.msk.f32.gmra.mrb[6].mxu1 %vm1290_vm4, %v13320_v57 }
 0x1bd   : > { %9786 = vmatprep.mubr.msk.f32.mxu1 %vm1290_vm4, %v13329_v61 }
 0x1bf   : > { %v1118_v41 = vpop.f32.mrb[80].mxu0 }
 0x1c0   : > { %v1120_v45 = vpop.f32.mrb[81].mxu0  ;;  %9787 = vmatmul.mubr.msk.f32.gmra.mrb[8].mxu1 %vm1290_vm4, %v13338_v2 }
 0x1c1   : > { %9789 = vmatprep.mubr.msk.f32.mxu1 %vm1290_vm4, %v13347_v6 }
 0x1c3   : > { %v1123_v49 = vpop.f32.mrb[82].mxu0 }
 0x1c4   : > { %v1125_v53 = vpop.f32.mrb[83].mxu0  ;;  %9790 = vmatmul.mubr.msk.f32.gmra.mrb[10].mxu1 %vm1290_vm4, %v13356_v10  ;;  %v8063_v10 = vld [vmem:[%s17585_s2 + $0xa0] sm:$0xff] }
 0x1c5   : > { %9792 = vmatprep.mubr.msk.f32.mxu1 %vm1290_vm4, %v13365_v14  ;;  %v8064_v14 = vld [vmem:[%s17585_s2 + $0xa8] sm:$0xff] }
 0x1c7   : > { %v1128_v57 = vpop.f32.mrb[84].mxu0 }
 0x1c8   : > { %v1130_v60 = vpop.f32.mrb[85].mxu0  ;;  %9793 = vmatmul.mubr.msk.f32.gmra.mrb[12].mxu1 %vm1290_vm4, %v13374_v18 }
 0x1c9   : > { %9795 = vmatprep.mubr.msk.f32.mxu1 %vm1290_vm4, %v13383_v22  ;;  %v10911_v22 = vpack.c.bf16 %v8064_v14, %v8063_v10 }
 0x1cb   : > { %v1133_v61 = vpop.f32.mrb[86].mxu0 }
 0x1cc   : > { %v1135_v2 = vpop.f32.mrb[87].mxu0  ;;  %9796 = vmatmul.mubr.msk.f32.gmra.mrb[14].mxu1 %vm1290_vm4, %v13392_v27 }
 0x1cd   : > { %9798 = vmatprep.mubr.msk.f32.mxu1 %vm1290_vm4, %v13401_v31  ;;  %v8065_v31 = vld [vmem:[%s17585_s2 + $0xb0] sm:$0xff]  ;;  %v2221_v2 = vld [vmem:[%s17587_s4 + $0x8] sm:$0xff] }
 0x1ce   : > { %8086 = vmatprep.mubr.msk.f32.mxu0 %vm2348_vm5, %v2221_v2 }
 0x1cf   : > { %v1138_v6 = vpop.f32.mrb[88].mxu0 }
 0x1d0   : > { %v1140_v18 = vpop.f32.mrb[89].mxu0  ;;  %9799 = vmatmul.mubr.msk.f32.gmra.mrb[16].mxu1 %vm1290_vm4, %v13410_v38  ;;  %v10915_v38 = vpack.c.bf16 %v8066_v62, %v8065_v31 }
 0x1d1   : > { %9813 = vmatprep.mubr.msk.f32.mxu1 %vm1290_vm4, %v1098_v46 }
 0x1d3   : > { %v1143_v27 = vpop.f32.mrb[90].mxu0 }
 0x1d4   : > { %v1145_v63 = vpop.f32.mrb[91].mxu0  ;;  %9814 = vmatmul.mubr.msk.f32.vlgmr.msra.gmra.mrb[0].mxu1 %vm1290_vm4, %v1103_v51 }
 0x1d5   : > { %9816 = vmatprep.mubr.msk.f32.mxu1 %vm1290_vm4, %v1108_v37  ;;  %10910 = vmatpush3.bf16.msra.mxu1 %v10907_v33 }
 0x1d6   : > { %10912 = vmatprep.subr.bf16.mxu1 %v10911_v22 }
 0x1d7   : > { %v1148_v32 = vpop.f32.mrb[92].mxu0 }
 0x1d8   : > { %v1150_v0 = vpop.f32.mrb[93].mxu0  ;;  %9817 = vmatmul.mubr.msk.f32.gmra.mrb[2].mxu1 %vm1290_vm4, %v1113_v58 }
 0x1d9   : > { %9819 = vmatprep.mubr.msk.f32.mxu1 %vm1290_vm4, %v1118_v41  ;;  %10914 = vmatpush3.bf16.msra.mxu1 %v10911_v22 }
 0x1da   : > { %10916 = vmatprep.subr.bf16.mxu1 %v10915_v38 }
 0x1db   : > { %v1153_v3 = vpop.f32.mrb[94].mxu0 }
 0x1dc   : > { %v1155_v4 = vpop.f32.mrb[95].mxu0  ;;  %9820 = vmatmul.mubr.msk.f32.gmra.mrb[4].mxu1 %vm1290_vm4, %v1123_v49 }
 0x1dd   : > { %9822 = vmatprep.mubr.msk.f32.mxu1 %vm1290_vm4, %v1128_v57  ;;  %10918 = vmatpush3.bf16.msra.mxu1 %v10915_v38 }
 0x1de   : > { %12394 = vmatprep.subr.bf16.mxu1 %v12681_v1 }
 0x1df   : > { %v1158_v5 = vpop.f32.mrb[96].mxu0 }
 0x1e0   : > { %v1160_v7 = vpop.f32.mrb[97].mxu0  ;;  %9823 = vmatmul.mubr.msk.f32.gmra.mrb[6].mxu1 %vm1290_vm4, %v1133_v61 }
 0x1e1   : > { %9825 = vmatprep.mubr.msk.f32.mxu1 %vm1290_vm4, %v1138_v6  ;;  %v13563_v6 = vld [vmem:[%s17586_s3] ss:$0 sm:$0xff] }
 0x1e3   : > { %v1163_v8 = vpop.f32.mrb[98].mxu0 }
 0x1e4   : > { %v1165_v9 = vpop.f32.mrb[99].mxu0  ;;  %9826 = vmatmul.mubr.msk.f32.gmra.mrb[8].mxu1 %vm1290_vm4, %v1143_v27 }
 0x1e5   : > { %9828 = vmatprep.mubr.msk.f32.mxu1 %vm1290_vm4, %v1148_v32 }
 0x1e7   : > { %v1168_v11 = vpop.f32.mrb[100].mxu0 }
 0x1e8   : > { %v1170_v12 = vpop.f32.mrb[101].mxu0  ;;  %9829 = vmatmul.mubr.msk.f32.gmra.mrb[10].mxu1 %vm1290_vm4, %v1153_v3 }
 0x1e9   : > { %9831 = vmatprep.mubr.msk.f32.mxu1 %vm1290_vm4, %v1158_v5 }
 0x1eb   : > { %v1173_v13 = vpop.f32.mrb[102].mxu0 }
 0x1ec   : > { %v1175_v15 = vpop.f32.mrb[103].mxu0  ;;  %9832 = vmatmul.mubr.msk.f32.gmra.mrb[12].mxu1 %vm1290_vm4, %v1163_v8 }
 0x1ed   : > { %9834 = vmatprep.mubr.msk.f32.mxu1 %vm1290_vm4, %v1168_v11 }
 0x1ef   : > { %v1178_v16 = vpop.f32.mrb[104].mxu0 }
 0x1f0   : > { %v1180_v17 = vpop.f32.mrb[105].mxu0  ;;  %9835 = vmatmul.mubr.msk.f32.gmra.mrb[14].mxu1 %vm1290_vm4, %v1173_v13 }
 0x1f1   : > { %9837 = vmatprep.mubr.msk.f32.mxu1 %vm1290_vm4, %v1178_v16 }
 0x1f3   : > { %v1183_v19 = vpop.f32.mrb[106].mxu0 }
 0x1f4   : > { %v1185_v20 = vpop.f32.mrb[107].mxu0  ;;  %9838 = vmatmul.mubr.msk.f32.gmra.mrb[16].mxu1 %vm1290_vm4, %v1183_v19 }
 0x1f7   : > { %v1188_v21 = vpop.f32.mrb[108].mxu0 }
 0x1f8   : > { %v1190_v23 = vpop.f32.mrb[109].mxu0  ;;  %9852 = vmatprep.mubr.msk.f32.mxu1 %vm1290_vm4, %v1188_v21 }
 0x1fb   : > { %v1193_v24 = vpop.f32.mrb[110].mxu0 }
 0x1fc   : > { %v1195_v25 = vpop.f32.mrb[111].mxu0  ;;  %9853 = vmatmul.mubr.msk.f32.vlgmr.msra.gmra.mrb[0].mxu1 %vm1290_vm4, %v1193_v24 }
 0x1ff   : > { %v1198_v28 = vpop.f32.mrb[112].mxu0 }
 0x200   : > { %v1200_v29 = vpop.f32.mrb[113].mxu0  ;;  %9855 = vmatprep.mubr.msk.f32.mxu1 %vm1290_vm4, %v1198_v28 }
 0x203   : > { %v1203_v30 = vpop.f32.mrb[114].mxu0 }
 0x204   : > { %9856 = vmatmul.mubr.msk.f32.gmra.mrb[2].mxu1 %vm1290_vm4, %v1203_v30  ;;  %v1205_v34 = vpop.f32.mrb[115].mxu0 }
 0x207   : > { %v1208_v35 = vpop.f32.mrb[116].mxu0 }
 0x208   : > { %v1210_v36 = vpop.f32.mrb[117].mxu0  ;;  %9858 = vmatprep.mubr.msk.f32.mxu1 %vm1290_vm4, %v1208_v35 }
 0x20b   : > { %v1213_v39 = vpop.f32.mrb[118].mxu0 }
 0x20c   : > { %9859 = vmatmul.mubr.msk.f32.gmra.mrb[4].mxu1 %vm1290_vm4, %v1213_v39  ;;  %v1215_v40 = vpop.f32.mrb[119].mxu0 }
 0x20f   : > { %v1218_v42 = vpop.f32.mrb[120].mxu0 }
 0x210   : > { %v1220_v43 = vpop.f32.mrb[121].mxu0  ;;  %9861 = vmatprep.mubr.msk.f32.mxu1 %vm1290_vm4, %v1218_v42 }
 0x213   : > { %v1223_v44 = vpop.f32.mrb[122].mxu0 }
 0x214   : > { %9862 = vmatmul.mubr.msk.f32.gmra.mrb[6].mxu1 %vm1290_vm4, %v1223_v44  ;;  %v1225_v46 = vpop.f32.mrb[123].mxu0 }
 0x217   : > { %v1228_v47 = vpop.f32.mrb[124].mxu0 }
 0x218   : > { %v1230_v48 = vpop.f32.mrb[125].mxu0  ;;  %9864 = vmatprep.mubr.msk.f32.mxu1 %vm1290_vm4, %v1228_v47 }
 0x21b   : > { %v1233_v50 = vpop.f32.mrb[126].mxu0 }
 0x21c   : > { %9865 = vmatmul.mubr.msk.f32.gmra.mrb[8].mxu1 %vm1290_vm4, %v1233_v50  ;;  %v1235_v26 = vpop.f32.mrb[127].mxu0 }
 0x21f   : > { %v1238_v51 = vpop.f32.mrb[128].mxu0 }
 0x220   : > { %v1240_v52 = vpop.f32.mrb[129].mxu0  ;;  %9867 = vmatprep.mubr.msk.f32.mxu1 %vm1290_vm4, %v1238_v51 }
 0x223   : > { %v1243_v54 = vpop.f32.mrb[130].mxu0 }
 0x224   : > { %9868 = vmatmul.mubr.msk.f32.gmra.mrb[10].mxu1 %vm1290_vm4, %v1243_v54  ;;  %v1245_v55 = vpop.f32.mrb[131].mxu0 }
 0x227   : > { %v1248_v33 = vpop.f32.mrb[132].mxu0 }
 0x228   : > { %v1250_v37 = vpop.f32.mrb[133].mxu0  ;;  %9870 = vmatprep.mubr.msk.f32.mxu1 %vm1290_vm4, %v1248_v33 }
 0x22b   : > { %v1253_v56 = vpop.f32.mrb[134].mxu0 }
 0x22c   : > { %9871 = vmatmul.mubr.msk.f32.gmra.mrb[12].mxu1 %vm1290_vm4, %v1253_v56  ;;  %v1255_v58 = vpop.f32.mrb[135].mxu0 }
 0x22f   : > { %v1258_v59 = vpop.f32.mrb[136].mxu0 }
 0x230   : > { %v1260_v41 = vpop.f32.mrb[137].mxu0  ;;  %9873 = vmatprep.mubr.msk.f32.mxu1 %vm1290_vm4, %v1258_v59 }
 0x233   : > { %v1263_v45 = vpop.f32.mrb[138].mxu0 }
 0x234   : > { %9874 = vmatmul.mubr.msk.f32.gmra.mrb[14].mxu1 %vm1290_vm4, %v1263_v45  ;;  %v1265_v49 = vpop.f32.mrb[139].mxu0 }
 0x237   : > { %v1268_v53 = vpop.f32.mrb[140].mxu0 }
 0x238   : > { %v1270_v57 = vpop.f32.mrb[141].mxu0  ;;  %9876 = vmatprep.mubr.msk.f32.mxu1 %vm1290_vm4, %v1268_v53 }
 0x23b   : > { %v1273_v60 = vpop.f32.mrb[142].mxu0 }
 0x23c   : > { %9877 = vmatmul.mubr.msk.f32.gmra.mrb[16].mxu1 %vm1290_vm4, %v1273_v60  ;;  %v1275_v61 = vpop.f32.mrb[143].mxu0 }
 0x2cf   : > { %v9854_v10 = vpop.f32.mrb[0].mxu1 }
 0x2d0   : > { %v2185_v14 = vadd.f32 %v9854_v10, %v13563_v6  ;;  %v2070_v18 = vpop.f32.mrb[1].mxu1 }
 0x2d1   : > { %v2184_v22 = vadd.f32 %v13563_v6, %v2070_v18  ;;  %v2223_v18 = vld [vmem:[%s17587_s4 + $0x18] sm:$0xff] }
 0x2d2   : > { %v2203_v27 = vmax.f32 %v2185_v14, 0.0  ;;  %v2220_v14 = vld [vmem:[%s17587_s4] sm:$0xff] }
 0x2d3   : > { %v2202_v31 = vmax.f32 %v2184_v22, 0.0  ;;  %v2224_v22 = vld [vmem:[%s17587_s4 + $0x20] sm:$0xff] }
 0x2d5   : > { %v10920_v62 = vpack.c.bf16 %v2203_v27, %v2202_v31  ;;  %v2227_v27 = vld [vmem:[%s17587_s4 + $0x38] sm:$0xff]  ;;  %v2226_v31 = vld [vmem:[%s17587_s4 + $0x30] sm:$0xff] }
 0x2d7   : > { %v9857_v63 = vpop.f32.mrb[2].mxu1  ;;  %10921 = vmatpush1.bf16.msra.mxu0 %v10920_v62  ;;  %12403 = vmatpush1.bf16.msra.mxu1 %v10920_v62  ;;  %v2229_v62 = vld [vmem:[%s17587_s4 + $0x48] sm:$0xff] }
 0x2d8   : > { %v2187_v38 = vadd.f32 %v9857_v63, %v13563_v6  ;;  %v2080_v32 = vpop.f32.mrb[3].mxu1  ;;  %10922 = vmatprep.subr.bf16.mxu0 %v12681_v1  ;;  %12395 = vmatprep.subr.bf16.mxu1 %v12681_v1  ;;  %v2228_v63 = vld [vmem:[%s17587_s4 + $0x40] sm:$0xff] }
 0x2d9   : > { %v2186_v0 = vadd.f32 %v13563_v6, %v2080_v32  ;;  %v2230_v32 = vld [vmem:[%s17587_s4 + $0x50] sm:$0xff] }
 0x2da   : > { %v2205_v3 = vmax.f32 %v2187_v38, 0.0  ;;  %v2231_v38 = vld [vmem:[%s17587_s4 + $0x58] sm:$0xff] }
 0x2db   : > { %v2204_v4 = vmax.f32 %v2186_v0, 0.0  ;;  %v2233_v0 = vld [vmem:[%s17587_s4 + $0x68] sm:$0xff] }
 0x2dd   : > { %v10923_v5 = vpack.c.bf16 %v2205_v3, %v2204_v4  ;;  %v2232_v3 = vld [vmem:[%s17587_s4 + $0x60] sm:$0xff]  ;;  %v2235_v4 = vld [vmem:[%s17587_s4 + $0x78] sm:$0xff] }
 0x2df   : > { %v9860_v7 = vpop.f32.mrb[4].mxu1  ;;  %10924 = vmatpush1.bf16.msra.mxu0 %v10923_v5  ;;  %12404 = vmatpush1.bf16.msra.mxu1 %v10923_v5  ;;  %v2234_v5 = vld [vmem:[%s17587_s4 + $0x70] sm:$0xff] }
 0x2e0   : > { %v2189_v8 = vadd.f32 %v9860_v7, %v13563_v6  ;;  %v2090_v9 = vpop.f32.mrb[5].mxu1  ;;  %10925 = vmatprep.subr.bf16.mxu0 %v12681_v1  ;;  %12396 = vmatprep.subr.bf16.mxu1 %v12681_v1  ;;  %v2237_v7 = vld [vmem:[%s17587_s4 + $0x88] sm:$0xff] }
 0x2e1   : > { %v2188_v11 = vadd.f32 %v13563_v6, %v2090_v9  ;;  %v2239_v9 = vld [vmem:[%s17587_s4 + $0x98] sm:$0xff] }
 0x2e2   : > { %v2207_v12 = vmax.f32 %v2189_v8, 0.0  ;;  %v2236_v8 = vld [vmem:[%s17587_s4 + $0x80] sm:$0xff] }
 0x2e3   : > { %v2206_v13 = vmax.f32 %v2188_v11, 0.0  ;;  %v2238_v11 = vld [vmem:[%s17587_s4 + $0x90] sm:$0xff] }
 0x2e5   : > { %v10926_v15 = vpack.c.bf16 %v2207_v12, %v2206_v13  ;;  %v2241_v12 = vld [vmem:[%s17587_s4 + $0xa8] sm:$0xff]  ;;  %v2240_v13 = vld [vmem:[%s17587_s4 + $0xa0] sm:$0xff] }
 0x2e7   : > { %v9863_v16 = vpop.f32.mrb[6].mxu1  ;;  %10927 = vmatpush1.bf16.msra.mxu0 %v10926_v15  ;;  %12405 = vmatpush1.bf16.msra.mxu1 %v10926_v15  ;;  %v8150_v15 = vld [vmem:[%s17588_s5 + $0x80] sm:$0xff] }
 0x2e8   : > { %v2191_v17 = vadd.f32 %v9863_v16, %v13563_v6  ;;  %v2100_v19 = vpop.f32.mrb[7].mxu1  ;;  %10928 = vmatprep.subr.bf16.mxu0 %v12681_v1  ;;  %12397 = vmatprep.subr.bf16.mxu1 %v12681_v1  ;;  %v8151_v16 = vld [vmem:[%s17588_s5 + $0x88] sm:$0xff] }
 0x2e9   : > { %v2190_v20 = vadd.f32 %v13563_v6, %v2100_v19  ;;  %v10946_v19 = vpack.c.bf16 %v8151_v16, %v8150_v15  ;;  %v2278_v15 = vld [vmem:[%s17587_s4 + $0x1d0] sm:$0xff]  ;;  %v2281_v16 = vld [vmem:[%s17587_s4 + $0x1e8] sm:$0xff] }
 0x2ea   : > { %v2209_v21 = vmax.f32 %v2191_v17, 0.0  ;;  %v2243_v17 = vld [vmem:[%s17587_s4 + $0xb8] sm:$0xff] }
 0x2eb   : > { %v2208_v23 = vmax.f32 %v2190_v20, 0.0  ;;  %v2242_v20 = vld [vmem:[%s17587_s4 + $0xb0] sm:$0xff] }
 0x2ed   : > { %v10929_v24 = vpack.c.bf16 %v2209_v21, %v2208_v23  ;;  %v8152_v21 = vld [vmem:[%s17588_s5 + $0x90] sm:$0xff]  ;;  %v8153_v23 = vld [vmem:[%s17588_s5 + $0x98] sm:$0xff] }
 0x2ef   : > { %v9866_v25 = vpop.f32.mrb[8].mxu1  ;;  %10930 = vmatpush1.bf16.msra.mxu0 %v10929_v24  ;;  %12406 = vmatpush1.bf16.msra.mxu1 %v10929_v24  ;;  %v2245_v24 = vld [vmem:[%s17587_s4 + $0xc8] sm:$0xff] }
 0x2f0   : > { %v2193_v28 = vadd.f32 %v9866_v25, %v13563_v6  ;;  %v2110_v29 = vpop.f32.mrb[9].mxu1  ;;  %10931 = vmatprep.subr.bf16.mxu0 %v12681_v1  ;;  %12398 = vmatprep.subr.bf16.mxu1 %v12681_v1  ;;  %v10950_v25 = vpack.c.bf16 %v8153_v23, %v8152_v21  ;;  %v2285_v21 = vld [vmem:[%s17587_s4 + $0x208] sm:$0xff]  ;;  %v2284_v23 = vld [vmem:[%s17587_s4 + $0x200] sm:$0xff] }
 0x2f1   : > { %v2192_v30 = vadd.f32 %v13563_v6, %v2110_v29  ;;  %v8154_v29 = vld [vmem:[%s17588_s5 + $0xa0] sm:$0xff] }
 0x2f2   : > { %v2211_v34 = vmax.f32 %v2193_v28, 0.0  ;;  %v2244_v28 = vld [vmem:[%s17587_s4 + $0xc0] sm:$0xff] }
 0x2f3   : > { %v2210_v35 = vmax.f32 %v2192_v30, 0.0  ;;  %v8155_v30 = vld [vmem:[%s17588_s5 + $0xa8] sm:$0xff] }
 0x2f5   : > { %v10932_v36 = vpack.c.bf16 %v2211_v34, %v2210_v35  ;;  %v2247_v34 = vld [vmem:[%s17587_s4 + $0xd8] sm:$0xff]  ;;  %v10954_v35 = vpack.c.bf16 %v8155_v30, %v8154_v29  ;;  %v2288_v29 = vld [vmem:[%s17587_s4 + $0x220] sm:$0xff] }
 0x2f6   : > { %v2291_v30 = vld [vmem:[%s17587_s4 + $0x238] sm:$0xff] }
 0x2f7   : > { %v9869_v39 = vpop.f32.mrb[10].mxu1  ;;  %10933 = vmatpush1.bf16.msra.mxu0 %v10932_v36  ;;  %12407 = vmatpush1.bf16.msra.mxu1 %v10932_v36  ;;  %v2246_v36 = vld [vmem:[%s17587_s4 + $0xd0] sm:$0xff] }
 0x2f8   : > { %v2195_v40 = vadd.f32 %v9869_v39, %v13563_v6  ;;  %v2120_v42 = vpop.f32.mrb[11].mxu1  ;;  %10934 = vmatprep.subr.bf16.mxu0 %v12681_v1  ;;  %12399 = vmatprep.subr.bf16.mxu1 %v12681_v1  ;;  %v8156_v39 = vld [vmem:[%s17588_s5 + $0xb0] sm:$0xff] }
 0x2f9   : > { %v2194_v43 = vadd.f32 %v13563_v6, %v2120_v42  ;;  %v2249_v42 = vld [vmem:[%s17587_s4 + $0xe8] sm:$0xff] }
 0x2fa   : > { %v2213_v44 = vmax.f32 %v2195_v40, 0.0  ;;  %v8157_v40 = vld [vmem:[%s17588_s5 + $0xb8] sm:$0xff] }
 0x2fb   : > { %v2212_v46 = vmax.f32 %v2194_v43, 0.0  ;;  %v10958_v43 = vpack.c.bf16 %v8157_v40, %v8156_v39  ;;  %v2295_v39 = vld [vmem:[%s17587_s4 + $0x258] sm:$0xff]  ;;  %v2294_v40 = vld [vmem:[%s17587_s4 + $0x250] sm:$0xff] }
 0x2fd   : > { %v10935_v47 = vpack.c.bf16 %v2213_v44, %v2212_v46  ;;  %v2248_v44 = vld [vmem:[%s17587_s4 + $0xe0] sm:$0xff] }
 0x2fe   : > { %v8158_v46 = vld [vmem:[%s17588_s5 + $0xc0] sm:$0xff] }
 0x2ff   : > { %v9872_v48 = vpop.f32.mrb[12].mxu1  ;;  %10936 = vmatpush1.bf16.msra.mxu0 %v10935_v47  ;;  %12408 = vmatpush1.bf16.msra.mxu1 %v10935_v47  ;;  %v8159_v47 = vld [vmem:[%s17588_s5 + $0xc8] sm:$0xff] }
 0x300   : > { %v2197_v50 = vadd.f32 %v9872_v48, %v13563_v6  ;;  %v2130_v26 = vpop.f32.mrb[13].mxu1  ;;  %10937 = vmatprep.subr.bf16.mxu0 %v12681_v1  ;;  %12400 = vmatprep.subr.bf16.mxu1 %v12681_v1  ;;  %v2251_v48 = vld [vmem:[%s17587_s4 + $0xf8] sm:$0xff] }
 0x301   : > { %v2196_v51 = vadd.f32 %v13563_v6, %v2130_v26  ;;  %v2250_v26 = vld [vmem:[%s17587_s4 + $0xf0] sm:$0xff] }
 0x302   : > { %v2215_v52 = vmax.f32 %v2197_v50, 0.0  ;;  %v10962_v50 = vpack.c.bf16 %v8159_v47, %v8158_v46  ;;  %v2298_v46 = vld [vmem:[%s17587_s4 + $0x270] sm:$0xff]  ;;  %v2301_v47 = vld [vmem:[%s17587_s4 + $0x288] sm:$0xff] }
 0x303   : > { %v2214_v54 = vmax.f32 %v2196_v51, 0.0  ;;  %v8160_v51 = vld [vmem:[%s17588_s5 + $0xd0] sm:$0xff] }
 0x305   : > { %v10938_v55 = vpack.c.bf16 %v2215_v52, %v2214_v54  ;;  %v8161_v52 = vld [vmem:[%s17588_s5 + $0xd8] sm:$0xff]  ;;  %v2253_v54 = vld [vmem:[%s17587_s4 + $0x108] sm:$0xff] }
 0x307   : > { %v9875_v33 = vpop.f32.mrb[14].mxu1  ;;  %10939 = vmatpush1.bf16.msra.mxu0 %v10938_v55  ;;  %12409 = vmatpush1.bf16.msra.mxu1 %v10938_v55  ;;  %v10966_v55 = vpack.c.bf16 %v8161_v52, %v8160_v51  ;;  %v2305_v51 = vld [vmem:[%s17587_s4 + $0x2a8] sm:$0xff]  ;;  %v2304_v52 = vld [vmem:[%s17587_s4 + $0x2a0] sm:$0xff] }
 0x308   : > { %v2199_v37 = vadd.f32 %v9875_v33, %v13563_v6  ;;  %v2140_v56 = vpop.f32.mrb[15].mxu1  ;;  %10940 = vmatprep.subr.bf16.mxu0 %v12681_v1  ;;  %12401 = vmatprep.subr.bf16.mxu1 %v12681_v1  ;;  %v2252_v33 = vld [vmem:[%s17587_s4 + $0x100] sm:$0xff] }
 0x309   : > { %v2198_v58 = vadd.f32 %v13563_v6, %v2140_v56  ;;  %v2254_v56 = vld [vmem:[%s17587_s4 + $0x110] sm:$0xff] }
 0x30a   : > { %v2217_v59 = vmax.f32 %v2199_v37, 0.0  ;;  %v2255_v37 = vld [vmem:[%s17587_s4 + $0x118] sm:$0xff] }
 0x30b   : > { %v2216_v41 = vmax.f32 %v2198_v58, 0.0  ;;  %v2257_v58 = vld [vmem:[%s17587_s4 + $0x128] sm:$0xff] }
 0x30d   : > { %v10941_v45 = vpack.c.bf16 %v2217_v59, %v2216_v41  ;;  %v2256_v59 = vld [vmem:[%s17587_s4 + $0x120] sm:$0xff]  ;;  %v2259_v41 = vld [vmem:[%s17587_s4 + $0x138] sm:$0xff] }
 0x30f   : > { %v9878_v49 = vpop.f32.mrb[16].mxu1  ;;  %10942 = vmatpush1.bf16.msra.mxu0 %v10941_v45  ;;  %12410 = vmatpush1.bf16.msra.mxu1 %v10941_v45  ;;  %v2258_v45 = vld [vmem:[%s17587_s4 + $0x130] sm:$0xff] }
 0x310   : > { %v2201_v53 = vadd.f32 %v9878_v49, %v13563_v6  ;;  %v2150_v57 = vpop.f32.mrb[17].mxu1  ;;  %10943 = vmatprep.subr.bf16.mxu0 %v12681_v1  ;;  %12402 = vmatprep.subr.bf16.mxu1 %v12681_v1  ;;  %v2222_v1 = vld [vmem:[%s17587_s4 + $0x10] sm:$0xff]  ;;  %v2261_v49 = vld [vmem:[%s17587_s4 + $0x148] sm:$0xff] }
 0x311   : > { %v2200_v60 = vadd.f32 %v13563_v6, %v2150_v57  ;;  %v2225_v6 = vld [vmem:[%s17587_s4 + $0x28] sm:$0xff]  ;;  %v2263_v57 = vld [vmem:[%s17587_s4 + $0x158] sm:$0xff] }
 0x312   : > { %v2219_v61 = vmax.f32 %v2201_v53, 0.0  ;;  %v2260_v53 = vld [vmem:[%s17587_s4 + $0x140] sm:$0xff] }
 0x313   : > { %v2218_v2 = vmax.f32 %v2200_v60, 0.0  ;;  %v2262_v60 = vld [vmem:[%s17587_s4 + $0x150] sm:$0xff] }
 0x315   : > { %v10944_v10 = vpack.c.bf16 %v2219_v61, %v2218_v2  ;;  %v2265_v61 = vld [vmem:[%s17587_s4 + $0x168] sm:$0xff]  ;;  %v2264_v2 = vld [vmem:[%s17587_s4 + $0x160] sm:$0xff] }
 0x317   : > { %10945 = vmatpush1.bf16.msra.mxu0 %v10944_v10  ;;  %12411 = vmatpush1.bf16.msra.mxu1 %v10944_v10  ;;  %v2267_v10 = vld [vmem:[%s17587_s4 + $0x178] sm:$0xff] }
 0x318   : > { %10947 = vmatprep.subr.bf16.mxu0 %v10946_v19 }
 0x31a   : > { %2606 = vmatmul.mubr.f32.vlgmr.msra.gmra.mrb[144].mxu0 %v2220_v14  ;;  %v8162_v14 = vld [vmem:[%s17588_s5 + $0xe0] sm:$0xff] }
 0x31b   : > { %8087 = vmatprep.mubr.msk.f32.mxu0 %vm2348_vm5, %v2223_v18  ;;  %10949 = vmatpush3.bf16.msra.mxu0 %v10946_v19  ;;  %v8163_v18 = vld [vmem:[%s17588_s5 + $0xe8] sm:$0xff]  ;;  %v2283_v19 = vld [vmem:[%s17587_s4 + $0x1f8] sm:$0xff] }
 0x31c   : > { %10951 = vmatprep.subr.bf16.mxu0 %v10950_v25 }
 0x31e   : > { %2611 = vmatmul.mubr.f32.gmra.mrb[146].mxu0 %v2222_v1  ;;  %v10970_v1 = vpack.c.bf16 %v8163_v18, %v8162_v14 }
 0x31f   : > { %8088 = vmatprep.mubr.msk.f32.mxu0 %vm2348_vm5, %v2225_v6  ;;  %10953 = vmatpush3.bf16.msra.mxu0 %v10950_v25  ;;  %v2266_v6 = vld [vmem:[%s17587_s4 + $0x170] sm:$0xff] }
 0x320   : > { %10955 = vmatprep.subr.bf16.mxu0 %v10954_v35  ;;  %v2286_v25 = vld [vmem:[%s17587_s4 + $0x210] sm:$0xff] }
 0x322   : > { %2616 = vmatmul.mubr.f32.gmra.mrb[148].mxu0 %v2224_v22  ;;  %v2269_v22 = vld [vmem:[%s17587_s4 + $0x188] sm:$0xff] }
 0x323   : > { %8089 = vmatprep.mubr.msk.f32.mxu0 %vm2348_vm5, %v2227_v27  ;;  %10957 = vmatpush3.bf16.msra.mxu0 %v10954_v35  ;;  %v2268_v27 = vld [vmem:[%s17587_s4 + $0x180] sm:$0xff]  ;;  %v2293_v35 = vld [vmem:[%s17587_s4 + $0x248] sm:$0xff] }
 0x324   : > { %10959 = vmatprep.subr.bf16.mxu0 %v10958_v43 }
 0x326   : > { %2621 = vmatmul.mubr.f32.gmra.mrb[150].mxu0 %v2226_v31  ;;  %v2271_v31 = vld [vmem:[%s17587_s4 + $0x198] sm:$0xff] }
 0x327   : > { %8090 = vmatprep.mubr.msk.f32.mxu0 %vm2348_vm5, %v2229_v62  ;;  %10961 = vmatpush3.bf16.msra.mxu0 %v10958_v43  ;;  %v8164_v62 = vld [vmem:[%s17588_s5 + $0xf0] sm:$0xff]  ;;  %v2296_v43 = vld [vmem:[%s17587_s4 + $0x260] sm:$0xff] }
 0x328   : > { %10963 = vmatprep.subr.bf16.mxu0 %v10962_v50 }
 0x32a   : > { %2626 = vmatmul.mubr.f32.gmra.mrb[152].mxu0 %v2228_v63  ;;  %v8165_v63 = vld [vmem:[%s17588_s5 + $0xf8] sm:$0xff] }
 0x32b   : > { %8091 = vmatprep.mubr.msk.f32.mxu0 %vm2348_vm5, %v2231_v38  ;;  %10965 = vmatpush3.bf16.msra.mxu0 %v10962_v50  ;;  %v10974_v38 = vpack.c.bf16 %v8165_v63, %v8164_v62  ;;  %v2303_v50 = vld [vmem:[%s17587_s4 + $0x298] sm:$0xff]  ;;  %v2928_v62 = vld [vmem:[%s17588_s5 + $0x10] sm:$0xff] }
 0x32c   : > { %10967 = vmatprep.subr.bf16.mxu0 %v10966_v55  ;;  %v2929_v63 = vld [vmem:[%s17588_s5 + $0x18] sm:$0xff] }
 0x32e   : > { %2631 = vmatmul.mubr.f32.gmra.mrb[154].mxu0 %v2230_v32  ;;  %v2270_v32 = vld [vmem:[%s17587_s4 + $0x190] sm:$0xff] }
 0x32f   : > { %8092 = vmatprep.mubr.msk.f32.mxu0 %vm2348_vm5, %v2233_v0  ;;  %10969 = vmatpush3.bf16.msra.mxu0 %v10966_v55  ;;  %v2273_v0 = vld [vmem:[%s17587_s4 + $0x1a8] sm:$0xff]  ;;  %v2306_v55 = vld [vmem:[%s17587_s4 + $0x2b0] sm:$0xff] }
 0x330   : > { %10971 = vmatprep.subr.bf16.mxu0 %v10970_v1 }
 0x332   : > { %2636 = vmatmul.mubr.f32.gmra.mrb[156].mxu0 %v2232_v3  ;;  %v2926_v3 = vld [vmem:[%s17588_s5] sm:$0xff] }
 0x333   : > { %8093 = vmatprep.mubr.msk.f32.mxu0 %vm2348_vm5, %v2235_v4  ;;  %10973 = vmatpush3.bf16.msra.mxu0 %v10970_v1  ;;  %v2927_v4 = vld [vmem:[%s17588_s5 + $0x8] sm:$0xff] }
 0x334   : > { %10975 = vmatprep.subr.bf16.mxu0 %v10974_v38 }
 0x336   : > { %2641 = vmatmul.mubr.f32.gmra.mrb[158].mxu0 %v2234_v5  ;;  %v2272_v5 = vld [vmem:[%s17587_s4 + $0x1a0] sm:$0xff] }
 0x337   : > { %8094 = vmatprep.mubr.msk.f32.mxu0 %vm2348_vm5, %v2237_v7  ;;  %10977 = vmatpush3.bf16.msra.mxu0 %v10974_v38  ;;  %v13838_v7 = vpack.c.bf16 %v2927_v4, %v2926_v3  ;;  %v2930_v3 = vld [vmem:[%s17588_s5 + $0x20] sm:$0xff]  ;;  %v2931_v4 = vld [vmem:[%s17588_s5 + $0x28] sm:$0xff] }
 0x339   : > { %10979 = vmatprep.subr.bf16.mxu0 %v13838_v7 }
 0x33a   : > { %2646 = vmatmul.mubr.f32.gmra.mrb[160].mxu0 %v2236_v8  ;;  %v2275_v8 = vld [vmem:[%s17587_s4 + $0x1b8] sm:$0xff] }
 0x33b   : > { %8095 = vmatprep.mubr.msk.f32.mxu0 %vm2348_vm5, %v2239_v9  ;;  %v2274_v9 = vld [vmem:[%s17587_s4 + $0x1b0] sm:$0xff] }
 0x33e   : > { %2651 = vmatmul.mubr.f32.gmra.mrb[162].mxu0 %v2238_v11  ;;  %v2277_v11 = vld [vmem:[%s17587_s4 + $0x1c8] sm:$0xff] }
 0x33f   : > { %8096 = vmatprep.mubr.msk.f32.mxu0 %vm2348_vm5, %v2241_v12  ;;  %v2276_v12 = vld [vmem:[%s17587_s4 + $0x1c0] sm:$0xff] }
 0x342   : > { %2656 = vmatmul.mubr.f32.gmra.mrb[164].mxu0 %v2240_v13  ;;  %v2279_v13 = vld [vmem:[%s17587_s4 + $0x1d8] sm:$0xff] }
 0x343   : > { %8097 = vmatprep.mubr.msk.f32.mxu0 %vm2348_vm5, %v2243_v17  ;;  %v2280_v17 = vld [vmem:[%s17587_s4 + $0x1e0] sm:$0xff] }
 0x346   : > { %2661 = vmatmul.mubr.f32.gmra.mrb[166].mxu0 %v2242_v20  ;;  %v2282_v20 = vld [vmem:[%s17587_s4 + $0x1f0] sm:$0xff] }
 0x347   : > { %8098 = vmatprep.mubr.msk.f32.mxu0 %vm2348_vm5, %v2245_v24  ;;  %v2287_v24 = vld [vmem:[%s17587_s4 + $0x218] sm:$0xff] }
 0x34a   : > { %2666 = vmatmul.mubr.f32.gmra.mrb[168].mxu0 %v2244_v28  ;;  %v2289_v28 = vld [vmem:[%s17587_s4 + $0x228] sm:$0xff] }
 0x34b   : > { %8099 = vmatprep.mubr.msk.f32.mxu0 %vm2348_vm5, %v2247_v34  ;;  %v2290_v34 = vld [vmem:[%s17587_s4 + $0x230] sm:$0xff] }
 0x34e   : > { %2671 = vmatmul.mubr.f32.gmra.mrb[170].mxu0 %v2246_v36  ;;  %v2292_v36 = vld [vmem:[%s17587_s4 + $0x240] sm:$0xff] }
 0x34f   : > { %8100 = vmatprep.mubr.msk.f32.mxu0 %vm2348_vm5, %v2249_v42  ;;  %v2297_v42 = vld [vmem:[%s17587_s4 + $0x268] sm:$0xff] }
 0x352   : > { %2676 = vmatmul.mubr.f32.gmra.mrb[172].mxu0 %v2248_v44  ;;  %v2299_v44 = vld [vmem:[%s17587_s4 + $0x278] sm:$0xff] }
 0x353   : > { %8101 = vmatprep.mubr.msk.f32.mxu0 %vm2348_vm5, %v2251_v48  ;;  %v2300_v48 = vld [vmem:[%s17587_s4 + $0x280] sm:$0xff] }
 0x356   : > { %2681 = vmatmul.mubr.f32.gmra.mrb[174].mxu0 %v2250_v26  ;;  %v2302_v26 = vld [vmem:[%s17587_s4 + $0x290] sm:$0xff] }
 0x357   : > { %8102 = vmatprep.mubr.msk.f32.mxu0 %vm2348_vm5, %v2253_v54  ;;  %v2307_v54 = vld [vmem:[%s17587_s4 + $0x2b8] sm:$0xff] }
 0x35a   : > { %2686 = vmatmul.mubr.f32.gmra.mrb[176].mxu0 %v2252_v33  ;;  %v2309_v33 = vld [vmem:[%s17587_s4 + $0x2c8] sm:$0xff] }
 0x35b   : > { %8103 = vmatprep.mubr.msk.f32.mxu0 %vm2348_vm5, %v2255_v37  ;;  %v2308_v37 = vld [vmem:[%s17587_s4 + $0x2c0] sm:$0xff] }
 0x35e   : > { %2691 = vmatmul.mubr.f32.gmra.mrb[178].mxu0 %v2254_v56  ;;  %v2311_v56 = vld [vmem:[%s17587_s4 + $0x2d8] sm:$0xff] }
 0x35f   : > { %8104 = vmatprep.mubr.msk.f32.mxu0 %vm2348_vm5, %v2257_v58  ;;  %v2310_v58 = vld [vmem:[%s17587_s4 + $0x2d0] sm:$0xff] }
 0x362   : > { %2696 = vmatmul.mubr.f32.gmra.mrb[180].mxu0 %v2256_v59  ;;  %v2313_v59 = vld [vmem:[%s17587_s4 + $0x2e8] sm:$0xff] }
 0x363   : > { %8105 = vmatprep.mubr.msk.f32.mxu0 %vm2348_vm5, %v2259_v41  ;;  %v2312_v41 = vld [vmem:[%s17587_s4 + $0x2e0] sm:$0xff] }
 0x366   : > { %2701 = vmatmul.mubr.f32.gmra.mrb[182].mxu0 %v2258_v45  ;;  %v2315_v45 = vld [vmem:[%s17587_s4 + $0x2f8] sm:$0xff] }
 0x367   : > { %8106 = vmatprep.mubr.msk.f32.mxu0 %vm2348_vm5, %v2261_v49  ;;  %v2314_v49 = vld [vmem:[%s17587_s4 + $0x2f0] sm:$0xff] }
 0x36a   : > { %2706 = vmatmul.mubr.f32.gmra.mrb[184].mxu0 %v2260_v53  ;;  %v2317_v53 = vld [vmem:[%s17587_s4 + $0x308] sm:$0xff] }
 0x36b   : > { %8107 = vmatprep.mubr.msk.f32.mxu0 %vm2348_vm5, %v2263_v57  ;;  %v2316_v57 = vld [vmem:[%s17587_s4 + $0x300] sm:$0xff] }
 0x36e   : > { %2711 = vmatmul.mubr.f32.gmra.mrb[186].mxu0 %v2262_v60  ;;  %v2319_v60 = vld [vmem:[%s17587_s4 + $0x318] sm:$0xff] }
 0x36f   : > { %8108 = vmatprep.mubr.msk.f32.mxu0 %vm2348_vm5, %v2265_v61  ;;  %v2318_v61 = vld [vmem:[%s17587_s4 + $0x310] sm:$0xff] }
 0x372   : > { %2716 = vmatmul.mubr.f32.gmra.mrb[188].mxu0 %v2264_v2 }
 0x373   : > { %8109 = vmatprep.mubr.msk.f32.mxu0 %vm2348_vm5, %v2267_v10 }
 0x376   : > { %2721 = vmatmul.mubr.f32.gmra.mrb[190].mxu0 %v2266_v6 }
 0x377   : > { %8110 = vmatprep.mubr.msk.f32.mxu0 %vm2348_vm5, %v2269_v22 }
 0x37a   : > { %2726 = vmatmul.mubr.f32.gmra.mrb[192].mxu0 %v2268_v27 }
 0x37b   : > { %8111 = vmatprep.mubr.msk.f32.mxu0 %vm2348_vm5, %v2271_v31 }
 0x37e   : > { %2731 = vmatmul.mubr.f32.gmra.mrb[194].mxu0 %v2270_v32  ;;  %v10982_v32 = vpack.c.bf16 %v2929_v63, %v2928_v62  ;;  %v8178_v62 = vld [vmem:[%s17588_s5 + $0x160] sm:$0xff]  ;;  %v8179_v63 = vld [vmem:[%s17588_s5 + $0x168] sm:$0xff] }
 0x37f   : > { %8112 = vmatprep.mubr.msk.f32.mxu0 %vm2348_vm5, %v2273_v0 }
 0x382   : > { %2736 = vmatmul.mubr.f32.gmra.mrb[196].mxu0 %v2272_v5 }
 0x383   : > { %8113 = vmatprep.mubr.msk.f32.mxu0 %vm2348_vm5, %v2275_v8  ;;  %v10986_v8 = vpack.c.bf16 %v2931_v4, %v2930_v3  ;;  %v8180_v3 = vld [vmem:[%s17588_s5 + $0x170] sm:$0xff]  ;;  %v8181_v4 = vld [vmem:[%s17588_s5 + $0x178] sm:$0xff] }
 0x386   : > { %2741 = vmatmul.mubr.f32.gmra.mrb[198].mxu0 %v2274_v9  ;;  %v2932_v9 = vld [vmem:[%s17588_s5 + $0x30] sm:$0xff] }
 0x387   : > { %8114 = vmatprep.mubr.msk.f32.mxu0 %vm2348_vm5, %v2277_v11  ;;  %v2933_v11 = vld [vmem:[%s17588_s5 + $0x38] sm:$0xff] }
 0x38a   : > { %2746 = vmatmul.mubr.f32.gmra.mrb[200].mxu0 %v2276_v12 }
 0x38b   : > { %8115 = vmatprep.mubr.msk.f32.mxu0 %vm2348_vm5, %v2279_v13 }
 0x38e   : > { %2751 = vmatmul.mubr.f32.gmra.mrb[202].mxu0 %v2278_v15  ;;  %v10990_v15 = vpack.c.bf16 %v2933_v11, %v2932_v9  ;;  %v11038_v9 = vpack.c.bf16 %v8181_v4, %v8180_v3  ;;  %v8182_v11 = vld [vmem:[%s17588_s5 + $0x180] sm:$0xff]  ;;  %v8201_v3 = vld [vmem:[%s17588_s5 + $0x218] sm:$0xff] }
 0x38f   : > { %8116 = vmatprep.mubr.msk.f32.mxu0 %vm2348_vm5, %v2281_v16  ;;  %v2935_v16 = vld [vmem:[%s17588_s5 + $0x48] sm:$0xff] }
 0x392   : > { %2756 = vmatmul.mubr.f32.gmra.mrb[204].mxu0 %v2280_v17 }
 0x393   : > { %8117 = vmatprep.mubr.msk.f32.mxu0 %vm2348_vm5, %v2283_v19 }
 0x396   : > { %2761 = vmatmul.mubr.f32.gmra.mrb[206].mxu0 %v2282_v20 }
 0x397   : > { %8118 = vmatprep.mubr.msk.f32.mxu0 %vm2348_vm5, %v2285_v21  ;;  %v2936_v21 = vld [vmem:[%s17588_s5 + $0x50] sm:$0xff] }
 0x39a   : > { %2766 = vmatmul.mubr.f32.gmra.mrb[208].mxu0 %v2284_v23  ;;  %v2937_v23 = vld [vmem:[%s17588_s5 + $0x58] sm:$0xff] }
 0x39b   : > { %8119 = vmatprep.mubr.msk.f32.mxu0 %vm2348_vm5, %v2287_v24 }
 0x39e   : > { %2771 = vmatmul.mubr.f32.gmra.mrb[210].mxu0 %v2286_v25 }
 0x39f   : > { %8120 = vmatprep.mubr.msk.f32.mxu0 %vm2348_vm5, %v2289_v28  ;;  %v10998_v28 = vpack.c.bf16 %v2937_v23, %v2936_v21  ;;  %v2321_v21 = vld [vmem:[%s17587_s4 + $0x328] sm:$0xff] }
 0x3a0   : > { %8136 = vmatprep.mubr.msk.f32.mxu1 %vm2348_vm5, %v2321_v21 }
 0x3a2   : > { %2776 = vmatmul.mubr.f32.gmra.mrb[212].mxu0 %v2288_v29  ;;  %v2938_v29 = vld [vmem:[%s17588_s5 + $0x60] sm:$0xff] }
 0x3a3   : > { %8121 = vmatprep.mubr.msk.f32.mxu0 %vm2348_vm5, %v2291_v30  ;;  %v2939_v30 = vld [vmem:[%s17588_s5 + $0x68] sm:$0xff] }
 0x3a6   : > { %2781 = vmatmul.mubr.f32.gmra.mrb[214].mxu0 %v2290_v34 }
 0x3a7   : > { %8122 = vmatprep.mubr.msk.f32.mxu0 %vm2348_vm5, %v2293_v35 }
 0x3aa   : > { %2786 = vmatmul.mubr.f32.gmra.mrb[216].mxu0 %v2292_v36  ;;  %v11002_v36 = vpack.c.bf16 %v2939_v30, %v2938_v29 }
 0x3ab   : > { %8123 = vmatprep.mubr.msk.f32.mxu0 %vm2348_vm5, %v2295_v39  ;;  %v2940_v39 = vld [vmem:[%s17588_s5 + $0x70] sm:$0xff] }
 0x3ae   : > { %2791 = vmatmul.mubr.f32.gmra.mrb[218].mxu0 %v2294_v40  ;;  %v2941_v40 = vld [vmem:[%s17588_s5 + $0x78] sm:$0xff] }
 0x3af   : > { %8124 = vmatprep.mubr.msk.f32.mxu0 %vm2348_vm5, %v2297_v42 }
 0x3b2   : > { %2796 = vmatmul.mubr.f32.gmra.mrb[220].mxu0 %v2296_v43 }
 0x3b3   : > { %8125 = vmatprep.mubr.msk.f32.mxu0 %vm2348_vm5, %v2299_v44  ;;  %v11006_v44 = vpack.c.bf16 %v2941_v40, %v2940_v39  ;;  %v2322_v39 = vld [vmem:[%s17587_s4 + $0x330] sm:$0xff]  ;;  %v8189_v40 = vld [vmem:[%s17588_s5 + $0x1b8] sm:$0xff] }
 0x3b6   : > { %2801 = vmatmul.mubr.f32.gmra.mrb[222].mxu0 %v2298_v46  ;;  %v8166_v46 = vld [vmem:[%s17588_s5 + $0x100] sm:$0xff] }
 0x3b7   : > { %8126 = vmatprep.mubr.msk.f32.mxu0 %vm2348_vm5, %v2301_v47  ;;  %v8167_v47 = vld [vmem:[%s17588_s5 + $0x108] sm:$0xff] }
 0x3ba   : > { %2806 = vmatmul.mubr.f32.gmra.mrb[224].mxu0 %v2300_v48 }
 0x3bb   : > { %8127 = vmatprep.mubr.msk.f32.mxu0 %vm2348_vm5, %v2303_v50 }
 0x3be   : > { %2811 = vmatmul.mubr.f32.gmra.mrb[226].mxu0 %v2302_v26  ;;  %v11010_v26 = vpack.c.bf16 %v8167_v47, %v8166_v46  ;;  %v2324_v47 = vld [vmem:[%s17587_s4 + $0x340] sm:$0xff] }
 0x3bf   : > { %8128 = vmatprep.mubr.msk.f32.mxu0 %vm2348_vm5, %v2305_v51  ;;  %v8168_v51 = vld [vmem:[%s17588_s5 + $0x110] sm:$0xff] }
 0x3c2   : > { %2816 = vmatmul.mubr.f32.gmra.mrb[228].mxu0 %v2304_v52  ;;  %v8169_v52 = vld [vmem:[%s17588_s5 + $0x118] sm:$0xff] }
 0x3c3   : > { %8129 = vmatprep.mubr.msk.f32.mxu0 %vm2348_vm5, %v2307_v54 }
 0x3c6   : > { %2821 = vmatmul.mubr.f32.gmra.mrb[230].mxu0 %v2306_v55 }
 0x3c7   : > { %8130 = vmatprep.mubr.msk.f32.mxu0 %vm2348_vm5, %v2309_v33  ;;  %v11014_v33 = vpack.c.bf16 %v8169_v52, %v8168_v51  ;;  %v2327_v52 = vld [vmem:[%s17587_s4 + $0x358] sm:$0xff] }
 0x3ca   : > { %2826 = vmatmul.mubr.f32.gmra.mrb[232].mxu0 %v2308_v37  ;;  %v8170_v37 = vld [vmem:[%s17588_s5 + $0x120] sm:$0xff] }
 0x3cb   : > { %8131 = vmatprep.mubr.msk.f32.mxu0 %vm2348_vm5, %v2311_v56  ;;  %v8171_v56 = vld [vmem:[%s17588_s5 + $0x128] sm:$0xff] }
 0x3ce   : > { %2831 = vmatmul.mubr.f32.gmra.mrb[234].mxu0 %v2310_v58 }
 0x3cf   : > { %8132 = vmatprep.mubr.msk.f32.mxu0 %vm2348_vm5, %v2313_v59 }
 0x3d2   : > { %2836 = vmatmul.mubr.f32.gmra.mrb[236].mxu0 %v2312_v41  ;;  %v11018_v41 = vpack.c.bf16 %v8171_v56, %v8170_v37  ;;  %v8193_v37 = vld [vmem:[%s17588_s5 + $0x1d8] sm:$0xff] }
 0x3d3   : > { %8133 = vmatprep.mubr.msk.f32.mxu0 %vm2348_vm5, %v2315_v45  ;;  %v8172_v45 = vld [vmem:[%s17588_s5 + $0x130] sm:$0xff] }
 0x3d6   : > { %2841 = vmatmul.mubr.f32.gmra.mrb[238].mxu0 %v2314_v49  ;;  %v8173_v49 = vld [vmem:[%s17588_s5 + $0x138] sm:$0xff] }
 0x3d7   : > { %8134 = vmatprep.mubr.msk.f32.mxu0 %vm2348_vm5, %v2317_v53 }
 0x3da   : > { %2846 = vmatmul.mubr.f32.gmra.mrb[240].mxu0 %v2316_v57 }
 0x3db   : > { %8135 = vmatprep.mubr.msk.f32.mxu0 %vm2348_vm5, %v2319_v60  ;;  %v11022_v60 = vpack.c.bf16 %v8173_v49, %v8172_v45  ;;  %v8194_v45 = vld [vmem:[%s17588_s5 + $0x1e0] sm:$0xff]  ;;  %v8195_v49 = vld [vmem:[%s17588_s5 + $0x1e8] sm:$0xff] }
 0x3de   : > { %2851 = vmatmul.mubr.f32.gmra.mrb[242].mxu0 %v2318_v61  ;;  %v8174_v61 = vld [vmem:[%s17588_s5 + $0x140] sm:$0xff] }
 0x3ed   : > { %v2607_v2 = vpop.f32.mrb[144].mxu0 }
 0x3ee   : > { %v2609_v10 = vpop.f32.mrb[145].mxu0 }
 0x3f1   : > { %v14002_v14 = vpop.f32.mrb[146].mxu0 }
 0x3f2   : > { %v2614_v18 = vpop.f32.mrb[147].mxu0 }
 0x3f5   : > { %v14004_v1 = vpop.f32.mrb[148].mxu0 }
 0x3f6   : > { %v2619_v6 = vpop.f32.mrb[149].mxu0 }
 0x3f7   : > { %v8177_v6 = vld [vmem:[%s17588_s5 + $0x158] sm:$0xff] }
 0x3f9   : > { %v14006_v22 = vpop.f32.mrb[150].mxu0 }
 0x3fa   : > { %v2624_v27 = vpop.f32.mrb[151].mxu0 }
 0x3fd   : > { %v2627_v31 = vpop.f32.mrb[152].mxu0 }
 0x3fe   : > { %v2629_v38 = vpop.f32.mrb[153].mxu0  ;;  %9911 = vmatprep.mubr.f32.mxu0 %v2627_v31 }
 0x401   : > { %v2632_v0 = vpop.f32.mrb[154].mxu0 }
 0x402   : > { %9912 = vmatmul.mubr.f32.vlgmr.msra.gmra.mrb[244].mxu0 %v2632_v0  ;;  %v2634_v5 = vpop.f32.mrb[155].mxu0  ;;  %v11034_v0 = vpack.c.bf16 %v8179_v63, %v8178_v62 }
 0x403   : > { %10981 = vmatpush3.bf16.msra.mxu0 %v13838_v7  ;;  %v2934_v7 = vld [vmem:[%s17588_s5 + $0x40] sm:$0xff] }
 0x404   : > { %10983 = vmatprep.subr.bf16.mxu0 %v10982_v32  ;;  %v10994_v20 = vpack.c.bf16 %v2935_v16, %v2934_v7  ;;  %v8184_v16 = vld [vmem:[%s17588_s5 + $0x190] sm:$0xff] }
 0x405   : > { %v2637_v12 = vpop.f32.mrb[156].mxu0 }
 0x406   : > { %v2639_v13 = vpop.f32.mrb[157].mxu0  ;;  %9914 = vmatprep.mubr.f32.mxu0 %v2637_v12  ;;  %v8183_v12 = vld [vmem:[%s17588_s5 + $0x188] sm:$0xff] }
 0x407   : > { %10985 = vmatpush3.bf16.msra.mxu0 %v10982_v32  ;;  %v11042_v7 = vpack.c.bf16 %v8183_v12, %v8182_v11  ;;  %v2328_v12 = vld [vmem:[%s17587_s4 + $0x360] sm:$0xff] }
 0x408   : > { %10987 = vmatprep.subr.bf16.mxu0 %v10986_v8 }
 0x409   : > { %v2642_v17 = vpop.f32.mrb[158].mxu0 }
 0x40a   : > { %9915 = vmatmul.mubr.f32.gmra.mrb[246].mxu0 %v2642_v17  ;;  %v2644_v19 = vpop.f32.mrb[159].mxu0  ;;  %v8185_v17 = vld [vmem:[%s17588_s5 + $0x198] sm:$0xff] }
 0x40b   : > { %10989 = vmatpush3.bf16.msra.mxu0 %v10986_v8  ;;  %9949 = vmatprep.mubr.f32.mxu0 %v2607_v2  ;;  %v8175_v2 = vld [vmem:[%s17588_s5 + $0x148] sm:$0xff]  ;;  %v11046_v23 = vpack.c.bf16 %v8185_v17, %v8184_v16 }
 0x40c   : > { %10991 = vmatprep.subr.bf16.mxu0 %v10990_v15  ;;  %v11026_v18 = vpack.c.bf16 %v8175_v2, %v8174_v61  ;;  %v11066_v61 = vpack.c.bf16 %v8195_v49, %v8194_v45  ;;  %v8196_v2 = vld [vmem:[%s17588_s5 + $0x1f0] sm:$0xff] }
 0x40d   : > { %v2647_v24 = vpop.f32.mrb[160].mxu0 }
 0x40e   : > { %v2649_v25 = vpop.f32.mrb[161].mxu0 }
 0x40f   : > { %10993 = vmatpush3.bf16.msra.mxu0 %v10990_v15  ;;  %v8186_v25 = vld [vmem:[%s17588_s5 + $0x1a0] sm:$0xff] }
 0x410   : > { %10995 = vmatprep.subr.bf16.mxu0 %v10994_v20 }
 0x411   : > { %v14045_v34 = vpop.f32.mrb[162].mxu0 }
 0x412   : > { %v2654_v35 = vpop.f32.mrb[163].mxu0 }
 0x413   : > { %10997 = vmatpush3.bf16.msra.mxu0 %v10994_v20  ;;  %v2323_v35 = vld [vmem:[%s17587_s4 + $0x338] sm:$0xff] }
 0x414   : > { %10999 = vmatprep.subr.bf16.mxu0 %v10998_v28 }
 0x415   : > { %v14053_v42 = vpop.f32.mrb[164].mxu0 }
 0x416   : > { %v2659_v43 = vpop.f32.mrb[165].mxu0 }
 0x417   : > { %11001 = vmatpush3.bf16.msra.mxu0 %v10998_v28  ;;  %v8187_v28 = vld [vmem:[%s17588_s5 + $0x1a8] sm:$0xff] }
 0x418   : > { %11003 = vmatprep.subr.bf16.mxu0 %v11002_v36 }
 0x419   : > { %v14061_v48 = vpop.f32.mrb[166].mxu0 }
 0x41a   : > { %v2664_v50 = vpop.f32.mrb[167].mxu0 }
 0x41b   : > { %11005 = vmatpush3.bf16.msra.mxu0 %v11002_v36  ;;  %v11050_v36 = vpack.c.bf16 %v8187_v28, %v8186_v25  ;;  %v8191_v50 = vld [vmem:[%s17588_s5 + $0x1c8] sm:$0xff] }
 0x41c   : > { %11007 = vmatprep.subr.bf16.mxu0 %v11006_v44  ;;  %v2333_v28 = vld [vmem:[%s17587_s4 + $0x388] sm:$0xff] }
 0x41d   : > { %v14069_v54 = vpop.f32.mrb[168].mxu0 }
 0x41e   : > { %v2669_v55 = vpop.f32.mrb[169].mxu0 }
 0x41f   : > { %11009 = vmatpush3.bf16.msra.mxu0 %v11006_v44  ;;  %v2325_v44 = vld [vmem:[%s17587_s4 + $0x348] sm:$0xff]  ;;  %v2326_v55 = vld [vmem:[%s17587_s4 + $0x350] sm:$0xff] }
 0x420   : > { %11011 = vmatprep.subr.bf16.mxu0 %v11010_v26 }
 0x421   : > { %v14077_v58 = vpop.f32.mrb[170].mxu0 }
 0x422   : > { %9950 = vmatmul.mubr.f32.vlgmr.msra.gmra.mrb[244].mxu0 %v14002_v14  ;;  %v2674_v59 = vpop.f32.mrb[171].mxu0 }
 0x423   : > { %11013 = vmatpush3.bf16.msra.mxu0 %v11010_v26  ;;  %9952 = vmatprep.mubr.f32.mxu0 %v14004_v1  ;;  %v8176_v1 = vld [vmem:[%s17588_s5 + $0x150] sm:$0xff] }
 0x424   : > { %11015 = vmatprep.subr.bf16.mxu0 %v11014_v33  ;;  %v11030_v31 = vpack.c.bf16 %v8177_v6, %v8176_v1 }
 0x425   : > { %v14087_v53 = vpop.f32.mrb[172].mxu0 }
 0x426   : > { %9953 = vmatmul.mubr.f32.gmra.mrb[246].mxu0 %v14006_v22  ;;  %v2679_v57 = vpop.f32.mrb[173].mxu0 }
 0x427   : > { %11017 = vmatpush3.bf16.msra.mxu0 %v11014_v33  ;;  %9987 = vmatprep.mubr.f32.mxu0 %v2647_v24  ;;  %v2320_v24 = vld [vmem:[%s17587_s4 + $0x320] sm:$0xff]  ;;  %v8192_v33 = vld [vmem:[%s17588_s5 + $0x1d0] sm:$0xff] }
 0x428   : > { %11019 = vmatprep.subr.bf16.mxu0 %v11018_v41  ;;  %2856 = vmatmul.mubr.f32.vlgmr.msra.gmra.mrb[18].mxu1 %v2320_v24 }
 0x429   : > { %v14096_v10 = vpop.f32.mrb[174].mxu0  ;;  %8137 = vmatprep.mubr.msk.f32.mxu1 %vm2348_vm5, %v2323_v35  ;;  %v2332_v35 = vld [vmem:[%s17587_s4 + $0x380] sm:$0xff] }
 0x42a   : > { %v2684_v14 = vpop.f32.mrb[175].mxu0 }
 0x42b   : > { %11021 = vmatpush3.bf16.msra.mxu0 %v11018_v41  ;;  %v11062_v41 = vpack.c.bf16 %v8193_v37, %v8192_v33  ;;  %v8197_v14 = vld [vmem:[%s17588_s5 + $0x1f8] sm:$0xff]  ;;  %v8212_v37 = vld [vmem:[%s17588_s5 + $0x270] sm:$0xff] }
 0x42c   : > { %11023 = vmatprep.subr.bf16.mxu0 %v11022_v60  ;;  %2861 = vmatmul.mubr.f32.gmra.mrb[20].mxu1 %v2322_v39  ;;  %v11070_v6 = vpack.c.bf16 %v8197_v14, %v8196_v2 }
 0x42d   : > { %v14104_v22 = vpop.f32.mrb[176].mxu0  ;;  %8138 = vmatprep.mubr.msk.f32.mxu1 %vm2348_vm5, %v2325_v44  ;;  %v8208_v44 = vld [vmem:[%s17588_s5 + $0x250] sm:$0xff] }
 0x42e   : > { %v2689_v27 = vpop.f32.mrb[177].mxu0 }
 0x42f   : > { %11025 = vmatpush3.bf16.msra.mxu0 %v11022_v60  ;;  %v8198_v27 = vld [vmem:[%s17588_s5 + $0x200] sm:$0xff] }
 0x430   : > { %11027 = vmatprep.subr.bf16.mxu0 %v11026_v18  ;;  %2866 = vmatmul.mubr.f32.gmra.mrb[22].mxu1 %v2324_v47 }
 0x431   : > { %v14112_v38 = vpop.f32.mrb[178].mxu0  ;;  %8139 = vmatprep.mubr.msk.f32.mxu1 %vm2348_vm5, %v2327_v52  ;;  %v8211_v52 = vld [vmem:[%s17588_s5 + $0x268] sm:$0xff] }
 0x432   : > { %v2694_v32 = vpop.f32.mrb[179].mxu0 }
 0x433   : > { %11029 = vmatpush3.bf16.msra.mxu0 %v11026_v18 }
 0x434   : > { %11031 = vmatprep.subr.bf16.mxu0 %v11030_v31  ;;  %2871 = vmatmul.mubr.f32.gmra.mrb[24].mxu1 %v2326_v55 }
 0x435   : > { %v14120_v5 = vpop.f32.mrb[180].mxu0 }
 0x436   : > { %v2699_v8 = vpop.f32.mrb[181].mxu0 }
 0x437   : > { %11033 = vmatpush3.bf16.msra.mxu0 %v11030_v31  ;;  %v8199_v31 = vld [vmem:[%s17588_s5 + $0x208] sm:$0xff] }
 0x438   : > { %11035 = vmatprep.subr.bf16.mxu0 %v11034_v0  ;;  %v11074_v32 = vpack.c.bf16 %v8199_v31, %v8198_v27  ;;  %v8216_v31 = vld [vmem:[%s17588_s5 + $0x290] sm:$0xff] }
 0x439   : > { %v14128_v13 = vpop.f32.mrb[182].mxu0 }
 0x43a   : > { %v2704_v15 = vpop.f32.mrb[183].mxu0 }
 0x43b   : > { %11037 = vmatpush3.bf16.msra.mxu0 %v11034_v0  ;;  %v8200_v0 = vld [vmem:[%s17588_s5 + $0x210] sm:$0xff]  ;;  %v8202_v15 = vld [vmem:[%s17588_s5 + $0x220] sm:$0xff] }
 0x43c   : > { %11039 = vmatprep.subr.bf16.mxu0 %v11038_v9  ;;  %v11078_v11 = vpack.c.bf16 %v8201_v3, %v8200_v0  ;;  %v2339_v3 = vld [vmem:[%s17587_s4 + $0x3b8] sm:$0xff] }
 0x43d   : > { %v14136_v19 = vpop.f32.mrb[184].mxu0 }
 0x43e   : > { %v2709_v20 = vpop.f32.mrb[185].mxu0 }
 0x43f   : > { %11041 = vmatpush3.bf16.msra.mxu0 %v11038_v9  ;;  %v2329_v9 = vld [vmem:[%s17587_s4 + $0x368] sm:$0xff]  ;;  %v2331_v20 = vld [vmem:[%s17587_s4 + $0x378] sm:$0xff] }
 0x440   : > { %11043 = vmatprep.subr.bf16.mxu0 %v11042_v7  ;;  %8140 = vmatprep.mubr.msk.f32.mxu1 %vm2348_vm5, %v2329_v9 }
 0x441   : > { %v14151_v29 = vpop.f32.mrb[186].mxu0  ;;  %2876 = vmatmul.mubr.f32.gmra.mrb[26].mxu1 %v2328_v12  ;;  %v8219_v12 = vld [vmem:[%s17588_s5 + $0x2a8] sm:$0xff] }
 0x442   : > { %9988 = vmatmul.mubr.f32.vlgmr.msra.gmra.mrb[244].mxu0 %v14045_v34  ;;  %v2714_v30 = vpop.f32.mrb[187].mxu0  ;;  %v8188_v34 = vld [vmem:[%s17588_s5 + $0x1b0] sm:$0xff]  ;;  %8141 = vmatprep.mubr.msk.f32.mxu1 %vm2348_vm5, %v2331_v20  ;;  %v2340_v20 = vld [vmem:[%s17587_s4 + $0x3c0] sm:$0xff] }
 0x443   : > { %11045 = vmatpush3.bf16.msra.mxu0 %v11042_v7  ;;  %9990 = vmatprep.mubr.f32.mxu0 %v14053_v42  ;;  %v11054_v46 = vpack.c.bf16 %v8189_v40, %v8188_v34  ;;  %v8203_v7 = vld [vmem:[%s17588_s5 + $0x228] sm:$0xff]  ;;  %v2335_v34 = vld [vmem:[%s17587_s4 + $0x398] sm:$0xff] }
 0x444   : > { %11047 = vmatprep.subr.bf16.mxu0 %v11046_v23  ;;  %v11082_v21 = vpack.c.bf16 %v8203_v7, %v8202_v15 }
 0x445   : > { %v14168_v42 = vpop.f32.mrb[188].mxu0 }
 0x446   : > { %9991 = vmatmul.mubr.f32.gmra.mrb[246].mxu0 %v14061_v48  ;;  %v2719_v43 = vpop.f32.mrb[189].mxu0  ;;  %v8190_v48 = vld [vmem:[%s17588_s5 + $0x1c0] sm:$0xff] }
 0x447   : > { %11049 = vmatpush3.bf16.msra.mxu0 %v11046_v23  ;;  %10025 = vmatprep.mubr.f32.mxu0 %v14069_v54  ;;  %v11058_v54 = vpack.c.bf16 %v8191_v50, %v8190_v48  ;;  %v2330_v23 = vld [vmem:[%s17587_s4 + $0x370] sm:$0xff] }
 0x448   : > { %11051 = vmatprep.subr.bf16.mxu0 %v11050_v36  ;;  %2881 = vmatmul.mubr.f32.gmra.mrb[28].mxu1 %v2330_v23  ;;  %v2334_v43 = vld [vmem:[%s17587_s4 + $0x390] sm:$0xff] }
 0x449   : > { %v14185_v26 = vpop.f32.mrb[190].mxu0  ;;  %8142 = vmatprep.mubr.msk.f32.mxu1 %vm2348_vm5, %v2333_v28 }
 0x44a   : > { %v2724_v51 = vpop.f32.mrb[191].mxu0 }
 0x44b   : > { %11053 = vmatpush3.bf16.msra.mxu0 %v11050_v36  ;;  %v8210_v51 = vld [vmem:[%s17588_s5 + $0x260] sm:$0xff] }
 0x44c   : > { %11055 = vmatprep.subr.bf16.mxu0 %v11054_v46  ;;  %2886 = vmatmul.mubr.f32.gmra.mrb[30].mxu1 %v2332_v35  ;;  %v11098_v33 = vpack.c.bf16 %v8211_v52, %v8210_v51  ;;  %v8226_v51 = vld [vmem:[%s17588_s5 + $0x2e0] sm:$0xff]  ;;  %v8227_v52 = vld [vmem:[%s17588_s5 + $0x2e8] sm:$0xff] }
 0x44d   : > { %v14200_v56 = vpop.f32.mrb[192].mxu0  ;;  %8143 = vmatprep.mubr.msk.f32.mxu1 %vm2348_vm5, %v2335_v34  ;;  %v8224_v34 = vld [vmem:[%s17588_s5 + $0x2d0] sm:$0xff] }
 0x44e   : > { %v2729_v59 = vpop.f32.mrb[193].mxu0 }
 0x44f   : > { %11057 = vmatpush3.bf16.msra.mxu0 %v11054_v46  ;;  %v8209_v46 = vld [vmem:[%s17588_s5 + $0x258] sm:$0xff] }
 0x450   : > { %11059 = vmatprep.subr.bf16.mxu0 %v11058_v54  ;;  %2891 = vmatmul.mubr.f32.gmra.mrb[32].mxu1 %v2334_v43  ;;  %v11094_v50 = vpack.c.bf16 %v8209_v46, %v8208_v44  ;;  %v8213_v59 = vld [vmem:[%s17588_s5 + $0x278] sm:$0xff] }
 0x451   : > { %v14208_v57 = vpop.f32.mrb[194].mxu0  ;;  %v11102_v49 = vpack.c.bf16 %v8213_v59, %v8212_v37  ;;  %v2347_v46 = vld [vmem:[%s17587_s4 + $0x3f8] sm:$0xff]  ;;  %v11130_v37 = vpack.c.bf16 %v8227_v52, %v8226_v51  ;;  %v8228_v59 = vld [vmem:[%s17588_s5 + $0x2f0] sm:$0xff]  ;;  %v8246_v51 = vld [vmem:[%s17588_s5 + $0x380] sm:$0xff] }
 0x452   : > { %v2734_v60 = vpop.f32.mrb[195].mxu0  ;;  %v8247_v52 = vld [vmem:[%s17588_s5 + $0x388] sm:$0xff] }
 0x453   : > { %11061 = vmatpush3.bf16.msra.mxu0 %v11058_v54  ;;  %v8214_v60 = vld [vmem:[%s17588_s5 + $0x280] sm:$0xff] }
 0x454   : > { %11063 = vmatprep.subr.bf16.mxu0 %v11062_v41 }
 0x455   : > { %v14216_v18 = vpop.f32.mrb[196].mxu0 }
 0x456   : > { %v2739_v1 = vpop.f32.mrb[197].mxu0 }
 0x457   : > { %11065 = vmatpush3.bf16.msra.mxu0 %v11062_v41  ;;  %v2337_v1 = vld [vmem:[%s17587_s4 + $0x3a8] sm:$0xff] }
 0x458   : > { %11067 = vmatprep.subr.bf16.mxu0 %v11066_v61  ;;  %8144 = vmatprep.mubr.msk.f32.mxu1 %vm2348_vm5, %v2337_v1  ;;  %v8231_v1 = vld [vmem:[%s17588_s5 + $0x308] sm:$0xff] }
 0x459   : > { %v14224_v62 = vpop.f32.mrb[198].mxu0 }
 0x45a   : > { %v2744_v63 = vpop.f32.mrb[199].mxu0 }
 0x45b   : > { %11069 = vmatpush3.bf16.msra.mxu0 %v11066_v61  ;;  %v8215_v61 = vld [vmem:[%s17588_s5 + $0x288] sm:$0xff]  ;;  %v8217_v63 = vld [vmem:[%s17588_s5 + $0x298] sm:$0xff] }
 0x45c   : > { %11071 = vmatprep.subr.bf16.mxu0 %v11070_v6  ;;  %v11106_v27 = vpack.c.bf16 %v8215_v61, %v8214_v60  ;;  %v11110_v9 = vpack.c.bf16 %v8217_v63, %v8216_v31  ;;  %v8232_v63 = vld [vmem:[%s17588_s5 + $0x310] sm:$0xff] }
 0x45d   : > { %v14232_v4 = vpop.f32.mrb[200].mxu0 }
 0x45e   : > { %v2749_v8 = vpop.f32.mrb[201].mxu0 }
 0x45f   : > { %11073 = vmatpush3.bf16.msra.mxu0 %v11070_v6  ;;  %v2336_v6 = vld [vmem:[%s17587_s4 + $0x3a0] sm:$0xff]  ;;  %v2338_v8 = vld [vmem:[%s17587_s4 + $0x3b0] sm:$0xff] }
 0x460   : > { %11075 = vmatprep.subr.bf16.mxu0 %v11074_v32  ;;  %2896 = vmatmul.mubr.f32.gmra.mrb[34].mxu1 %v2336_v6 }
 0x461   : > { %v14247_v16 = vpop.f32.mrb[202].mxu0  ;;  %8145 = vmatprep.mubr.msk.f32.mxu1 %vm2348_vm5, %v2339_v3 }
 0x462   : > { %10026 = vmatmul.mubr.f32.vlgmr.msra.gmra.mrb[244].mxu0 %v14077_v58  ;;  %v2754_v17 = vpop.f32.mrb[203].mxu0  ;;  %v8204_v58 = vld [vmem:[%s17588_s5 + $0x230] sm:$0xff] }
 0x463   : > { %11077 = vmatpush3.bf16.msra.mxu0 %v11074_v32  ;;  %10028 = vmatprep.mubr.f32.mxu0 %v14087_v53  ;;  %v8205_v53 = vld [vmem:[%s17588_s5 + $0x238] sm:$0xff]  ;;  %v2341_v17 = vld [vmem:[%s17587_s4 + $0x3c8] sm:$0xff] }
 0x464   : > { %11079 = vmatprep.subr.bf16.mxu0 %v11078_v11  ;;  %v11086_v30 = vpack.c.bf16 %v8205_v53, %v8204_v58  ;;  %2901 = vmatmul.mubr.f32.gmra.mrb[36].mxu1 %v2338_v8  ;;  %v2343_v53 = vld [vmem:[%s17587_s4 + $0x3d8] sm:$0xff] }
 0x465   : > { %v14264_v24 = vpop.f32.mrb[204].mxu0  ;;  %8146 = vmatprep.mubr.msk.f32.mxu1 %vm2348_vm5, %v2341_v17 }
 0x466   : > { %10029 = vmatmul.mubr.f32.gmra.mrb[246].mxu0 %v14096_v10  ;;  %v2759_v25 = vpop.f32.mrb[205].mxu0  ;;  %v8206_v10 = vld [vmem:[%s17588_s5 + $0x240] sm:$0xff] }
 0x467   : > { %11081 = vmatpush3.bf16.msra.mxu0 %v11078_v11  ;;  %10063 = vmatprep.mubr.f32.mxu0 %v14104_v22  ;;  %v8207_v22 = vld [vmem:[%s17588_s5 + $0x248] sm:$0xff]  ;;  %v8218_v11 = vld [vmem:[%s17588_s5 + $0x2a0] sm:$0xff]  ;;  %v2342_v25 = vld [vmem:[%s17587_s4 + $0x3d0] sm:$0xff] }
 0x468   : > { %11083 = vmatprep.subr.bf16.mxu0 %v11082_v21  ;;  %v11090_v40 = vpack.c.bf16 %v8207_v22, %v8206_v10  ;;  %2906 = vmatmul.mubr.f32.gmra.mrb[38].mxu1 %v2340_v20  ;;  %v2345_v10 = vld [vmem:[%s17587_s4 + $0x3e8] sm:$0xff]  ;;  %v2344_v22 = vld [vmem:[%s17587_s4 + $0x3e0] sm:$0xff] }
 0x469   : > { %v14281_v36 = vpop.f32.mrb[206].mxu0  ;;  %8147 = vmatprep.mubr.msk.f32.mxu1 %vm2348_vm5, %v2343_v53  ;;  %v8239_v53 = vld [vmem:[%s17588_s5 + $0x348] sm:$0xff] }
 0x46a   : > { %v2764_v39 = vpop.f32.mrb[207].mxu0 }
 0x46b   : > { %11085 = vmatpush3.bf16.msra.mxu0 %v11082_v21  ;;  %v11114_v21 = vpack.c.bf16 %v8219_v12, %v8218_v11  ;;  %v8234_v11 = vld [vmem:[%s17588_s5 + $0x320] sm:$0xff]  ;;  %v8235_v12 = vld [vmem:[%s17588_s5 + $0x328] sm:$0xff] }
 0x46c   : > { %11087 = vmatprep.subr.bf16.mxu0 %v11086_v30  ;;  %2911 = vmatmul.mubr.f32.gmra.mrb[40].mxu1 %v2342_v25  ;;  %v11146_v20 = vpack.c.bf16 %v8235_v12, %v8234_v11  ;;  %v8260_v12 = vld [vmem:[%s17588_s5 + $0x3f0] sm:$0xff] }
 0x46d   : > { %v14296_v47 = vpop.f32.mrb[208].mxu0  ;;  %8148 = vmatprep.mubr.msk.f32.mxu1 %vm2348_vm5, %v2345_v10 }
 0x46e   : > { %v2769_v48 = vpop.f32.mrb[209].mxu0 }
 0x46f   : > { %11089 = vmatpush3.bf16.msra.mxu0 %v11086_v30  ;;  %v2346_v48 = vld [vmem:[%s17587_s4 + $0x3f0] sm:$0xff] }
 0x470   : > { %11091 = vmatprep.subr.bf16.mxu0 %v11090_v40  ;;  %2916 = vmatmul.mubr.f32.gmra.mrb[42].mxu1 %v2344_v22  ;;  %v8242_v22 = vld [vmem:[%s17588_s5 + $0x360] sm:$0xff] }
 0x471   : > { %v14304_v54 = vpop.f32.mrb[210].mxu0  ;;  %8149 = vmatprep.mubr.msk.f32.mxu1 %vm2348_vm5, %v2347_v46  ;;  %v8244_v46 = vld [vmem:[%s17588_s5 + $0x370] sm:$0xff] }
 0x472   : > { %v2774_v55 = vpop.f32.mrb[211].mxu0 }
 0x473   : > { %11093 = vmatpush3.bf16.msra.mxu0 %v11090_v40  ;;  %v8225_v40 = vld [vmem:[%s17588_s5 + $0x2d8] sm:$0xff] }
 0x474   : > { %11095 = vmatprep.subr.bf16.mxu0 %v11094_v50  ;;  %2921 = vmatmul.mubr.f32.gmra.mrb[44].mxu1 %v2346_v48  ;;  %v8245_v48 = vld [vmem:[%s17588_s5 + $0x378] sm:$0xff] }
 0x475   : > { %v14312_v41 = vpop.f32.mrb[212].mxu0 }
 0x476   : > { %v2779_v45 = vpop.f32.mrb[213].mxu0 }
 0x477   : > { %11097 = vmatpush3.bf16.msra.mxu0 %v11094_v50  ;;  %v11126_v50 = vpack.c.bf16 %v8225_v40, %v8224_v34  ;;  %v8229_v45 = vld [vmem:[%s17588_s5 + $0x2f8] sm:$0xff] }
 0x478   : > { %11099 = vmatprep.subr.bf16.mxu0 %v11098_v33  ;;  %v11134_v61 = vpack.c.bf16 %v8229_v45, %v8228_v59  ;;  %v8249_v59 = vld [vmem:[%s17588_s5 + $0x398] sm:$0xff] }
 0x479   : > { %v14320_v2 = vpop.f32.mrb[214].mxu0 }
 0x47a   : > { %v2784_v14 = vpop.f32.mrb[215].mxu0 }
 0x47b   : > { %11101 = vmatpush3.bf16.msra.mxu0 %v11098_v33  ;;  %v8230_v14 = vld [vmem:[%s17588_s5 + $0x300] sm:$0xff] }
 0x47c   : > { %11103 = vmatprep.subr.bf16.mxu0 %v11102_v49  ;;  %v11138_v31 = vpack.c.bf16 %v8231_v1, %v8230_v14  ;;  %v8252_v1 = vld [vmem:[%s17588_s5 + $0x3b0] sm:$0xff] }
 0x47d   : > { %v14335_v32 = vpop.f32.mrb[216].mxu0 }
 0x47e   : > { %v2789_v0 = vpop.f32.mrb[217].mxu0 }
 0x47f   : > { %11105 = vmatpush3.bf16.msra.mxu0 %v11102_v49  ;;  %v8233_v0 = vld [vmem:[%s17588_s5 + $0x318] sm:$0xff] }
 0x480   : > { %11107 = vmatprep.subr.bf16.mxu0 %v11106_v27 }
 0x481   : > { %v14350_v15 = vpop.f32.mrb[218].mxu0 }
 0x482   : > { %10064 = vmatmul.mubr.f32.vlgmr.msra.gmra.mrb[244].mxu0 %v14112_v38  ;;  %v2794_v7 = vpop.f32.mrb[219].mxu0  ;;  %v8220_v38 = vld [vmem:[%s17588_s5 + $0x2b0] sm:$0xff] }
 0x483   : > { %11109 = vmatpush3.bf16.msra.mxu0 %v11106_v27  ;;  %10066 = vmatprep.mubr.f32.mxu0 %v14120_v5  ;;  %v8221_v5 = vld [vmem:[%s17588_s5 + $0x2b8] sm:$0xff] }
 0x484   : > { %11111 = vmatprep.subr.bf16.mxu0 %v11110_v9  ;;  %v11118_v28 = vpack.c.bf16 %v8221_v5, %v8220_v38  ;;  %v8237_v38 = vld [vmem:[%s17588_s5 + $0x338] sm:$0xff] }
 0x485   : > { %v14367_v23 = vpop.f32.mrb[220].mxu0 }
 0x486   : > { %10067 = vmatmul.mubr.f32.gmra.mrb[246].mxu0 %v14128_v13  ;;  %v2799_v58 = vpop.f32.mrb[221].mxu0  ;;  %v8222_v13 = vld [vmem:[%s17588_s5 + $0x2c0] sm:$0xff] }
 0x487   : > { %11113 = vmatpush3.bf16.msra.mxu0 %v11110_v9  ;;  %10101 = vmatprep.mubr.f32.mxu0 %v14136_v19  ;;  %v8223_v19 = vld [vmem:[%s17588_s5 + $0x2c8] sm:$0xff]  ;;  %v11142_v9 = vpack.c.bf16 %v8233_v0, %v8232_v63 }
 0x488   : > { %11115 = vmatprep.subr.bf16.mxu0 %v11114_v21  ;;  %v11122_v39 = vpack.c.bf16 %v8223_v19, %v8222_v13  ;;  %v8241_v13 = vld [vmem:[%s17588_s5 + $0x358] sm:$0xff] }
 0x489   : > { %v14384_v30 = vpop.f32.mrb[222].mxu0 }
 0x48a   : > { %v2804_v35 = vpop.f32.mrb[223].mxu0 }
 0x48b   : > { %11117 = vmatpush3.bf16.msra.mxu0 %v11114_v21  ;;  %v8236_v21 = vld [vmem:[%s17588_s5 + $0x330] sm:$0xff] }
 0x48c   : > { %11119 = vmatprep.subr.bf16.mxu0 %v11118_v28 }
 0x48d   : > { %v14399_v43 = vpop.f32.mrb[224].mxu0 }
 0x48e   : > { %v2809_v44 = vpop.f32.mrb[225].mxu0 }
 0x48f   : > { %11121 = vmatpush3.bf16.msra.mxu0 %v11118_v28 }
 0x490   : > { %11123 = vmatprep.subr.bf16.mxu0 %v11122_v39 }
 0x491   : > { %v14414_v55 = vpop.f32.mrb[226].mxu0 }
 0x492   : > { %v2814_v33 = vpop.f32.mrb[227].mxu0 }
 0x493   : > { %11125 = vmatpush3.bf16.msra.mxu0 %v11122_v39  ;;  %v8243_v39 = vld [vmem:[%s17588_s5 + $0x368] sm:$0xff]  ;;  %v11170_v33 = vpack.c.bf16 %v8247_v52, %v8246_v51  ;;  %v8278_v52 = vld [vmem:[%s17588_s5 + $0x480] sm:$0xff] }
 0x494   : > { %11127 = vmatprep.subr.bf16.mxu0 %v11126_v50  ;;  %v11162_v44 = vpack.c.bf16 %v8243_v39, %v8242_v22 }
 0x495   : > { %v14422_v49 = vpop.f32.mrb[228].mxu0 }
 0x496   : > { %v2819_v60 = vpop.f32.mrb[229].mxu0 }
 0x497   : > { %11129 = vmatpush3.bf16.msra.mxu0 %v11126_v50  ;;  %v11166_v50 = vpack.c.bf16 %v8245_v48, %v8244_v46  ;;  %v8250_v60 = vld [vmem:[%s17588_s5 + $0x3a0] sm:$0xff]  ;;  %v8276_v48 = vld [vmem:[%s17588_s5 + $0x470] sm:$0xff] }
 0x498   : > { %11131 = vmatprep.subr.bf16.mxu0 %v11130_v37 }
 0x499   : > { %v14430_v6 = vpop.f32.mrb[230].mxu0 }
 0x49a   : > { %v2824_v27 = vpop.f32.mrb[231].mxu0 }
 0x49b   : > { %11133 = vmatpush3.bf16.msra.mxu0 %v11130_v37  ;;  %v8248_v37 = vld [vmem:[%s17588_s5 + $0x390] sm:$0xff]  ;;  %v8253_v27 = vld [vmem:[%s17588_s5 + $0x3b8] sm:$0xff] }
 0x49c   : > { %11135 = vmatprep.subr.bf16.mxu0 %v11134_v61  ;;  %v11174_v45 = vpack.c.bf16 %v8249_v59, %v8248_v37  ;;  %v8280_v59 = vld [vmem:[%s17588_s5 + $0x490] sm:$0xff] }
 0x49d   : > { %v14438_v3 = vpop.f32.mrb[232].mxu0 }
 0x49e   : > { %v2829_v8 = vpop.f32.mrb[233].mxu0 }
 0x49f   : > { %11137 = vmatpush3.bf16.msra.mxu0 %v11134_v61  ;;  %v8251_v61 = vld [vmem:[%s17588_s5 + $0x3a8] sm:$0xff]  ;;  %v8258_v8 = vld [vmem:[%s17588_s5 + $0x3e0] sm:$0xff] }
 0x4a0   : > { %11139 = vmatprep.subr.bf16.mxu0 %v11138_v31  ;;  %v11178_v14 = vpack.c.bf16 %v8251_v61, %v8250_v60  ;;  %v8282_v61 = vld [vmem:[%s17588_s5 + $0x4a0] sm:$0xff] }
 0x4a1   : > { %v14446_v7 = vpop.f32.mrb[234].mxu0 }
 0x4a2   : > { %10102 = vmatmul.mubr.f32.vlgmr.msra.gmra.mrb[244].mxu0 %v14151_v29  ;;  %v2834_v17 = vpop.f32.mrb[235].mxu0  ;;  %v11150_v29 = vpack.c.bf16 %v8237_v38, %v8236_v21  ;;  %v8262_v21 = vld [vmem:[%s17588_s5 + $0x400] sm:$0xff]  ;;  %v8263_v38 = vld [vmem:[%s17588_s5 + $0x408] sm:$0xff] }
 0x4a3   : > { %11141 = vmatpush3.bf16.msra.mxu0 %v11138_v31  ;;  %10104 = vmatprep.mubr.f32.mxu0 %v14168_v42  ;;  %v8238_v42 = vld [vmem:[%s17588_s5 + $0x340] sm:$0xff]  ;;  %v8255_v31 = vld [vmem:[%s17588_s5 + $0x3c8] sm:$0xff]  ;;  %v8261_v17 = vld [vmem:[%s17588_s5 + $0x3f8] sm:$0xff] }
 0x4a4   : > { %11143 = vmatprep.subr.bf16.mxu0 %v11142_v9 }
 0x4a5   : > { %v14456_v5 = vpop.f32.mrb[236].mxu0 }
 0x4a6   : > { %10105 = vmatmul.mubr.f32.gmra.mrb[246].mxu0 %v14185_v26  ;;  %v2839_v58 = vpop.f32.mrb[237].mxu0  ;;  %v11154_v26 = vpack.c.bf16 %v8239_v53, %v8238_v42  ;;  %v8265_v42 = vld [vmem:[%s17588_s5 + $0x418] sm:$0xff] }
 0x4a7   : > { %11145 = vmatpush3.bf16.msra.mxu0 %v11142_v9  ;;  %10139 = vmatprep.mubr.f32.mxu0 %v14200_v56  ;;  %v8240_v56 = vld [vmem:[%s17588_s5 + $0x350] sm:$0xff]  ;;  %v8259_v9 = vld [vmem:[%s17588_s5 + $0x3e8] sm:$0xff]  ;;  %v11202_v58 = vpack.c.bf16 %v8263_v38, %v8262_v21 }
 0x4a8   : > { %11147 = vmatprep.subr.bf16.mxu0 %v11146_v20  ;;  %v11158_v10 = vpack.c.bf16 %v8241_v13, %v8240_v56  ;;  %v11194_v11 = vpack.c.bf16 %v8259_v9, %v8258_v8  ;;  %v8268_v13 = vld [vmem:[%s17588_s5 + $0x430] sm:$0xff]  ;;  %v8293_v9 = vld [vmem:[%s17588_s5 + $0x4f8] sm:$0xff]  ;;  %v8295_v21 = vld [vmem:[%s17588_s5 + $0x508] sm:$0xff] }
 0x4a9   : > { %v14466_v25 = vpop.f32.mrb[238].mxu0  ;;  %v8292_v8 = vld [vmem:[%s17588_s5 + $0x4f0] sm:$0xff] }
 0x4aa   : > { %v2844_v28 = vpop.f32.mrb[239].mxu0 }
 0x4ab   : > { %11149 = vmatpush3.bf16.msra.mxu0 %v11146_v20  ;;  %v11198_v20 = vpack.c.bf16 %v8261_v17, %v8260_v12  ;;  %v8266_v28 = vld [vmem:[%s17588_s5 + $0x420] sm:$0xff]  ;;  %v11262_v17 = vpack.c.bf16 %v8293_v9, %v8292_v8 }
 0x4ac   : > { %11151 = vmatprep.subr.bf16.mxu0 %v11150_v29 }
 0x4ad   : > { %v14474_v19 = vpop.f32.mrb[240].mxu0 }
 0x4ae   : > { %v2849_v35 = vpop.f32.mrb[241].mxu0 }
 0x4af   : > { %11153 = vmatpush3.bf16.msra.mxu0 %v11150_v29  ;;  %v8264_v29 = vld [vmem:[%s17588_s5 + $0x410] sm:$0xff]  ;;  %v8269_v35 = vld [vmem:[%s17588_s5 + $0x438] sm:$0xff] }
 0x4b0   : > { %11155 = vmatprep.subr.bf16.mxu0 %v11154_v26  ;;  %v11206_v53 = vpack.c.bf16 %v8265_v42, %v8264_v29  ;;  %v8296_v42 = vld [vmem:[%s17588_s5 + $0x510] sm:$0xff] }
 0x4b1   : > { %v14482_v34 = vpop.f32.mrb[242].mxu0 }
 0x4b2   : > { %v2854_v40 = vpop.f32.mrb[243].mxu0 }
 0x4b3   : > { %11157 = vmatpush3.bf16.msra.mxu0 %v11154_v26  ;;  %v8267_v26 = vld [vmem:[%s17588_s5 + $0x428] sm:$0xff]  ;;  %v8274_v40 = vld [vmem:[%s17588_s5 + $0x460] sm:$0xff] }
 0x4b4   : > { %11159 = vmatprep.subr.bf16.mxu0 %v11158_v10  ;;  %v11210_v56 = vpack.c.bf16 %v8267_v26, %v8266_v28 }
 0x4b7   : > { %11161 = vmatpush3.bf16.msra.mxu0 %v11158_v10  ;;  %v8271_v10 = vld [vmem:[%s17588_s5 + $0x448] sm:$0xff] }
 0x4b8   : > { %11163 = vmatprep.subr.bf16.mxu0 %v11162_v44 }
 0x4bb   : > { %11165 = vmatpush3.bf16.msra.mxu0 %v11162_v44  ;;  %v8275_v44 = vld [vmem:[%s17588_s5 + $0x468] sm:$0xff] }
 0x4bc   : > { %11167 = vmatprep.subr.bf16.mxu0 %v11166_v50  ;;  %v11226_v46 = vpack.c.bf16 %v8275_v44, %v8274_v40  ;;  %v8306_v44 = vld [vmem:[%s17588_s5 + $0x560] sm:$0xff] }
 0x4bf   : > { %11169 = vmatpush3.bf16.msra.mxu0 %v11166_v50  ;;  %v8277_v50 = vld [vmem:[%s17588_s5 + $0x478] sm:$0xff] }
 0x4c0   : > { %11171 = vmatprep.subr.bf16.mxu0 %v11170_v33  ;;  %v11230_v51 = vpack.c.bf16 %v8277_v50, %v8276_v48  ;;  %v8308_v50 = vld [vmem:[%s17588_s5 + $0x570] sm:$0xff] }
 0x4c2   : > { %10140 = vmatmul.mubr.f32.vlgmr.msra.gmra.mrb[244].mxu0 %v14208_v57  ;;  %v11182_v57 = vpack.c.bf16 %v8253_v27, %v8252_v1  ;;  %v8284_v27 = vld [vmem:[%s17588_s5 + $0x4b0] sm:$0xff] }
 0x4c3   : > { %11173 = vmatpush3.bf16.msra.mxu0 %v11170_v33  ;;  %10142 = vmatprep.mubr.f32.mxu0 %v14216_v18  ;;  %v8254_v18 = vld [vmem:[%s17588_s5 + $0x3c0] sm:$0xff]  ;;  %v8279_v33 = vld [vmem:[%s17588_s5 + $0x488] sm:$0xff] }
 0x4c4   : > { %11175 = vmatprep.subr.bf16.mxu0 %v11174_v45  ;;  %v11186_v63 = vpack.c.bf16 %v8255_v31, %v8254_v18  ;;  %v11234_v37 = vpack.c.bf16 %v8279_v33, %v8278_v52  ;;  %v8287_v18 = vld [vmem:[%s17588_s5 + $0x4c8] sm:$0xff] }
 0x4c6   : > { %10143 = vmatmul.mubr.f32.gmra.mrb[246].mxu0 %v14224_v62  ;;  %v8256_v62 = vld [vmem:[%s17588_s5 + $0x3d0] sm:$0xff] }
 0x4c7   : > { %11177 = vmatpush3.bf16.msra.mxu0 %v11174_v45  ;;  %10177 = vmatprep.mubr.f32.mxu0 %v14232_v4  ;;  %v8257_v4 = vld [vmem:[%s17588_s5 + $0x3d8] sm:$0xff] }
 0x4c8   : > { %11179 = vmatprep.subr.bf16.mxu0 %v11178_v14  ;;  %v11190_v0 = vpack.c.bf16 %v8257_v4, %v8256_v62  ;;  %v8281_v45 = vld [vmem:[%s17588_s5 + $0x498] sm:$0xff]  ;;  %v8290_v62 = vld [vmem:[%s17588_s5 + $0x4e0] sm:$0xff]  ;;  %v8291_v4 = vld [vmem:[%s17588_s5 + $0x4e8] sm:$0xff] }
 0x4c9   : > { %v11238_v60 = vpack.c.bf16 %v8281_v45, %v8280_v59  ;;  %v8310_v59 = vld [vmem:[%s17588_s5 + $0x580] sm:$0xff]  ;;  %v8311_v45 = vld [vmem:[%s17588_s5 + $0x588] sm:$0xff] }
 0x4cb   : > { %11181 = vmatpush3.bf16.msra.mxu0 %v11178_v14  ;;  %v8283_v14 = vld [vmem:[%s17588_s5 + $0x4a8] sm:$0xff] }
 0x4cc   : > { %11183 = vmatprep.subr.bf16.mxu0 %v11182_v57  ;;  %v11242_v1 = vpack.c.bf16 %v8283_v14, %v8282_v61  ;;  %v11298_v14 = vpack.c.bf16 %v8311_v45, %v8310_v59 }
 0x4cf   : > { %11185 = vmatpush3.bf16.msra.mxu0 %v11182_v57  ;;  %v8285_v57 = vld [vmem:[%s17588_s5 + $0x4b8] sm:$0xff] }
 0x4d0   : > { %11187 = vmatprep.subr.bf16.mxu0 %v11186_v63 }
 0x4d3   : > { %11189 = vmatpush3.bf16.msra.mxu0 %v11186_v63 }
 0x4d4   : > { %11191 = vmatprep.subr.bf16.mxu0 %v11190_v0 }
 0x4d7   : > { %11193 = vmatpush3.bf16.msra.mxu0 %v11190_v0  ;;  %v11258_v0 = vpack.c.bf16 %v8291_v4, %v8290_v62  ;;  %v8316_v62 = vld [vmem:[%s17588_s5 + $0x5b0] sm:$0xff]  ;;  %v8317_v4 = vld [vmem:[%s17588_s5 + $0x5b8] sm:$0xff] }
 0x4d8   : > { %11195 = vmatprep.subr.bf16.mxu0 %v11194_v11 }
 0x4db   : > { %11197 = vmatpush3.bf16.msra.mxu0 %v11194_v11 }
 0x4dc   : > { %11199 = vmatprep.subr.bf16.mxu0 %v11198_v20 }
 0x4df   : > { %11201 = vmatpush3.bf16.msra.mxu0 %v11198_v20  ;;  %v8294_v20 = vld [vmem:[%s17588_s5 + $0x500] sm:$0xff] }
 0x4e0   : > { %11203 = vmatprep.subr.bf16.mxu0 %v11202_v58  ;;  %v11266_v29 = vpack.c.bf16 %v8295_v21, %v8294_v20  ;;  %v8323_v20 = vld [vmem:[%s17588_s5 + $0x5e8] sm:$0xff] }
 0x4e2   : > { %10178 = vmatmul.mubr.f32.vlgmr.msra.gmra.mrb[244].mxu0 %v14247_v16  ;;  %v11214_v16 = vpack.c.bf16 %v8269_v35, %v8268_v13  ;;  %v8298_v35 = vld [vmem:[%s17588_s5 + $0x520] sm:$0xff] }
 0x4e3   : > { %11205 = vmatpush3.bf16.msra.mxu0 %v11202_v58  ;;  %10180 = vmatprep.mubr.f32.mxu0 %v14264_v24  ;;  %v8270_v24 = vld [vmem:[%s17588_s5 + $0x440] sm:$0xff] }
 0x4e4   : > { %11207 = vmatprep.subr.bf16.mxu0 %v11206_v53  ;;  %v11218_v22 = vpack.c.bf16 %v8271_v10, %v8270_v24 }
 0x4e6   : > { %10181 = vmatmul.mubr.f32.gmra.mrb[246].mxu0 %v14281_v36  ;;  %v8272_v36 = vld [vmem:[%s17588_s5 + $0x450] sm:$0xff] }
 0x4e7   : > { %11209 = vmatpush3.bf16.msra.mxu0 %v11206_v53  ;;  %10215 = vmatprep.mubr.f32.mxu0 %v14296_v47  ;;  %v8273_v47 = vld [vmem:[%s17588_s5 + $0x458] sm:$0xff] }
 0x4e8   : > { %11211 = vmatprep.subr.bf16.mxu0 %v11210_v56  ;;  %v11222_v39 = vpack.c.bf16 %v8273_v47, %v8272_v36  ;;  %v8297_v53 = vld [vmem:[%s17588_s5 + $0x518] sm:$0xff]  ;;  %v8303_v47 = vld [vmem:[%s17588_s5 + $0x548] sm:$0xff] }
 0x4e9   : > { %v8301_v36 = vld [vmem:[%s17588_s5 + $0x538] sm:$0xff] }
 0x4eb   : > { %11213 = vmatpush3.bf16.msra.mxu0 %v11210_v56  ;;  %v11270_v56 = vpack.c.bf16 %v8297_v53, %v8296_v42  ;;  %v8324_v42 = vld [vmem:[%s17588_s5 + $0x5f0] sm:$0xff]  ;;  %v8325_v53 = vld [vmem:[%s17588_s5 + $0x5f8] sm:$0xff] }
 0x4ec   : > { %11215 = vmatprep.subr.bf16.mxu0 %v11214_v16 }
 0x4ef   : > { %11217 = vmatpush3.bf16.msra.mxu0 %v11214_v16  ;;  %v8299_v16 = vld [vmem:[%s17588_s5 + $0x528] sm:$0xff] }
 0x4f0   : > { %11219 = vmatprep.subr.bf16.mxu0 %v11218_v22  ;;  %v11274_v10 = vpack.c.bf16 %v8299_v16, %v8298_v35  ;;  %v8326_v16 = vld [vmem:[%s17588_s5 + $0x600] sm:$0xff] }
 0x4f3   : > { %11221 = vmatpush3.bf16.msra.mxu0 %v11218_v22  ;;  %v8300_v22 = vld [vmem:[%s17588_s5 + $0x530] sm:$0xff] }
 0x4f4   : > { %11223 = vmatprep.subr.bf16.mxu0 %v11222_v39 }
 0x4f7   : > { %11225 = vmatpush3.bf16.msra.mxu0 %v11222_v39 }
 0x4f8   : > { %11227 = vmatprep.subr.bf16.mxu0 %v11226_v46 }
 0x4fb   : > { %11229 = vmatpush3.bf16.msra.mxu0 %v11226_v46  ;;  %v14646_v11 = vpop.f32.mrb[18].mxu1  ;;  %v8307_v46 = vld [vmem:[%s17588_s5 + $0x568] sm:$0xff] }
 0x4fc   : > { %11231 = vmatprep.subr.bf16.mxu0 %v11230_v51  ;;  %v2859_v12 = vpop.f32.mrb[19].mxu1  ;;  %v11290_v48 = vpack.c.bf16 %v8307_v46, %v8306_v44 }
 0x4ff   : > { %11233 = vmatpush3.bf16.msra.mxu0 %v11230_v51  ;;  %v14654_v38 = vpop.f32.mrb[20].mxu1  ;;  %v8309_v51 = vld [vmem:[%s17588_s5 + $0x578] sm:$0xff] }
 0x500   : > { %11235 = vmatprep.subr.bf16.mxu0 %v11234_v37  ;;  %v2864_v58 = vpop.f32.mrb[21].mxu1 }
 0x502   : > { %10216 = vmatmul.mubr.f32.vlgmr.msra.gmra.mrb[244].mxu0 %v14304_v54  ;;  %v11246_v54 = vpack.c.bf16 %v8285_v57, %v8284_v27  ;;  %v8313_v27 = vld [vmem:[%s17588_s5 + $0x598] sm:$0xff] }
 0x503   : > { %11237 = vmatpush3.bf16.msra.mxu0 %v11234_v37  ;;  %10218 = vmatprep.mubr.f32.mxu0 %v14312_v41  ;;  %v8286_v41 = vld [vmem:[%s17588_s5 + $0x4c0] sm:$0xff]  ;;  %v14662_v28 = vpop.f32.mrb[22].mxu1  ;;  %v11294_v37 = vpack.c.bf16 %v8309_v51, %v8308_v50  ;;  %v8332_v50 = vld [vmem:[%s17588_s5 + $0x630] sm:$0xff]  ;;  %v8333_v51 = vld [vmem:[%s17588_s5 + $0x638] sm:$0xff] }
 0x504   : > { %11239 = vmatprep.subr.bf16.mxu0 %v11238_v60  ;;  %v11250_v31 = vpack.c.bf16 %v8287_v18, %v8286_v41  ;;  %v2869_v26 = vpop.f32.mrb[23].mxu1 }
 0x506   : > { %10219 = vmatmul.mubr.f32.gmra.mrb[246].mxu0 %v14320_v2  ;;  %v8288_v2 = vld [vmem:[%s17588_s5 + $0x4d0] sm:$0xff] }
 0x507   : > { %11241 = vmatpush3.bf16.msra.mxu0 %v11238_v60  ;;  %10253 = vmatprep.mubr.f32.mxu0 %v14335_v32  ;;  %v8289_v32 = vld [vmem:[%s17588_s5 + $0x4d8] sm:$0xff]  ;;  %v14664_v13 = vpop.f32.mrb[24].mxu1 }
 0x508   : > { %11243 = vmatprep.subr.bf16.mxu0 %v11242_v1  ;;  %v11254_v63 = vpack.c.bf16 %v8289_v32, %v8288_v2  ;;  %v2874_v24 = vpop.f32.mrb[25].mxu1  ;;  %v8315_v2 = vld [vmem:[%s17588_s5 + $0x5a8] sm:$0xff] }
 0x509   : > { %v8327_v24 = vld [vmem:[%s17588_s5 + $0x608] sm:$0xff] }
 0x50b   : > { %11245 = vmatpush3.bf16.msra.mxu0 %v11242_v1  ;;  %v8312_v1 = vld [vmem:[%s17588_s5 + $0x590] sm:$0xff] }
 0x50c   : > { %11247 = vmatprep.subr.bf16.mxu0 %v11246_v54  ;;  %v11302_v41 = vpack.c.bf16 %v8313_v27, %v8312_v1  ;;  %v8340_v27 = vld [vmem:[%s17588_s5 + $0x670] sm:$0xff] }
 0x50f   : > { %11249 = vmatpush3.bf16.msra.mxu0 %v11246_v54 }
 0x510   : > { %11251 = vmatprep.subr.bf16.mxu0 %v11250_v31 }
 0x513   : > { %11253 = vmatpush3.bf16.msra.mxu0 %v11250_v31  ;;  %v8314_v31 = vld [vmem:[%s17588_s5 + $0x5a0] sm:$0xff] }
 0x514   : > { %11255 = vmatprep.subr.bf16.mxu0 %v11254_v63  ;;  %v14706_v52 = vpop.f32.mrb[26].mxu1 }
 0x515   : > { %v2879_v33 = vpop.f32.mrb[27].mxu1 }
 0x517   : > { %11257 = vmatpush3.bf16.msra.mxu0 %v11254_v63  ;;  %v11306_v63 = vpack.c.bf16 %v8315_v2, %v8314_v31  ;;  %v8342_v31 = vld [vmem:[%s17588_s5 + $0x680] sm:$0xff]  ;;  %v8343_v2 = vld [vmem:[%s17588_s5 + $0x688] sm:$0xff] }
 0x518   : > { %11259 = vmatprep.subr.bf16.mxu0 %v11258_v0 }
 0x51b   : > { %11261 = vmatpush3.bf16.msra.mxu0 %v11258_v0  ;;  %v14714_v60 = vpop.f32.mrb[28].mxu1  ;;  %v8319_v0 = vld [vmem:[%s17588_s5 + $0x5c8] sm:$0xff] }
 0x51c   : > { %11263 = vmatprep.subr.bf16.mxu0 %v11262_v17  ;;  %v2884_v61 = vpop.f32.mrb[29].mxu1 }
 0x51d   : > { %v8338_v61 = vld [vmem:[%s17588_s5 + $0x660] sm:$0xff] }
 0x51f   : > { %11265 = vmatpush3.bf16.msra.mxu0 %v11262_v17  ;;  %v14722_v57 = vpop.f32.mrb[30].mxu1  ;;  %v8322_v17 = vld [vmem:[%s17588_s5 + $0x5e0] sm:$0xff] }
 0x520   : > { %11267 = vmatprep.subr.bf16.mxu0 %v11266_v29  ;;  %v2889_v54 = vpop.f32.mrb[31].mxu1  ;;  %v11322_v58 = vpack.c.bf16 %v8323_v20, %v8322_v17  ;;  %v8354_v20 = vld [vmem:[%s17588_s5 + $0x6e0] sm:$0xff] }
 0x521   : > { %v8341_v54 = vld [vmem:[%s17588_s5 + $0x678] sm:$0xff] }
 0x522   : > { %10254 = vmatmul.mubr.f32.vlgmr.msra.gmra.mrb[244].mxu0 %v14350_v15  ;;  %v11278_v15 = vpack.c.bf16 %v8301_v36, %v8300_v22  ;;  %v11330_v22 = vpack.c.bf16 %v8327_v24, %v8326_v16  ;;  %v8359_v16 = vld [vmem:[%s17588_s5 + $0x708] sm:$0xff] }
 0x523   : > { %11269 = vmatpush3.bf16.msra.mxu0 %v11266_v29  ;;  %10256 = vmatprep.mubr.f32.mxu0 %v14367_v23  ;;  %v8302_v23 = vld [vmem:[%s17588_s5 + $0x540] sm:$0xff]  ;;  %v14724_v18 = vpop.f32.mrb[32].mxu1 }
 0x524   : > { %11271 = vmatprep.subr.bf16.mxu0 %v11270_v56  ;;  %v11282_v39 = vpack.c.bf16 %v8303_v47, %v8302_v23  ;;  %v2894_v32 = vpop.f32.mrb[33].mxu1  ;;  %v8329_v23 = vld [vmem:[%s17588_s5 + $0x618] sm:$0xff] }
 0x525   : > { %v11362_v32 = vpack.c.bf16 %v8343_v2, %v8342_v31  ;;  %v8380_v31 = vld [vmem:[%s17588_s5 + $0x7b0] sm:$0xff]  ;;  %v8381_v2 = vld [vmem:[%s17588_s5 + $0x7b8] sm:$0xff] }
 0x526   : > { %10257 = vmatmul.mubr.f32.gmra.mrb[246].mxu0 %v14384_v30  ;;  %v8304_v30 = vld [vmem:[%s17588_s5 + $0x550] sm:$0xff] }
 0x527   : > { %11273 = vmatpush3.bf16.msra.mxu0 %v11270_v56  ;;  %10291 = vmatprep.mubr.f32.mxu0 %v14399_v43  ;;  %v8305_v43 = vld [vmem:[%s17588_s5 + $0x558] sm:$0xff]  ;;  %v11326_v56 = vpack.c.bf16 %v8325_v53, %v8324_v42  ;;  %v8356_v42 = vld [vmem:[%s17588_s5 + $0x6f0] sm:$0xff] }
 0x528   : > { %11275 = vmatprep.subr.bf16.mxu0 %v11274_v10  ;;  %v11286_v40 = vpack.c.bf16 %v8305_v43, %v8304_v30  ;;  %v8330_v43 = vld [vmem:[%s17588_s5 + $0x620] sm:$0xff]  ;;  %v8357_v53 = vld [vmem:[%s17588_s5 + $0x6f8] sm:$0xff] }
 0x52b   : > { %11277 = vmatpush3.bf16.msra.mxu0 %v11274_v10 }
 0x52c   : > { %11279 = vmatprep.subr.bf16.mxu0 %v11278_v15 }
 0x52f   : > { %11281 = vmatpush3.bf16.msra.mxu0 %v11278_v15  ;;  %v8328_v15 = vld [vmem:[%s17588_s5 + $0x610] sm:$0xff] }
 0x530   : > { %11283 = vmatprep.subr.bf16.mxu0 %v11282_v39 }
 0x533   : > { %11285 = vmatpush3.bf16.msra.mxu0 %v11282_v39  ;;  %v14754_v12 = vpop.f32.mrb[34].mxu1  ;;  %v11334_v39 = vpack.c.bf16 %v8329_v23, %v8328_v15  ;;  %v8362_v23 = vld [vmem:[%s17588_s5 + $0x720] sm:$0xff] }
 0x534   : > { %11287 = vmatprep.subr.bf16.mxu0 %v11286_v40  ;;  %v2899_v21 = vpop.f32.mrb[35].mxu1 }
 0x535   : > { %v8355_v21 = vld [vmem:[%s17588_s5 + $0x6e8] sm:$0xff] }
 0x537   : > { %11289 = vmatpush3.bf16.msra.mxu0 %v11286_v40  ;;  %v14762_v29 = vpop.f32.mrb[36].mxu1  ;;  %v8331_v40 = vld [vmem:[%s17588_s5 + $0x628] sm:$0xff] }
 0x538   : > { %11291 = vmatprep.subr.bf16.mxu0 %v11290_v48  ;;  %v2904_v26 = vpop.f32.mrb[37].mxu1  ;;  %v11338_v46 = vpack.c.bf16 %v8331_v40, %v8330_v43  ;;  %v8364_v43 = vld [vmem:[%s17588_s5 + $0x730] sm:$0xff]  ;;  %v8365_v40 = vld [vmem:[%s17588_s5 + $0x738] sm:$0xff] }
 0x539   : > { %v11390_v26 = vpack.c.bf16 %v8357_v53, %v8356_v42  ;;  %v8409_v53 = vld [vmem:[%s17591_s8 + $0x80] sm:$0xff] }
 0x53b   : > { %11293 = vmatpush3.bf16.msra.mxu0 %v11290_v48  ;;  %v14770_v35 = vpop.f32.mrb[38].mxu1 }
 0x53c   : > { %11295 = vmatprep.subr.bf16.mxu0 %v11294_v37  ;;  %v2909_v10 = vpop.f32.mrb[39].mxu1 }
 0x53d   : > { %v8360_v10 = vld [vmem:[%s17588_s5 + $0x710] sm:$0xff] }
 0x53f   : > { %11297 = vmatpush3.bf16.msra.mxu0 %v11294_v37  ;;  %v14778_v36 = vpop.f32.mrb[40].mxu1  ;;  %v8335_v37 = vld [vmem:[%s17588_s5 + $0x648] sm:$0xff] }
 0x540   : > { %11299 = vmatprep.subr.bf16.mxu0 %v11298_v14  ;;  %v2914_v47 = vpop.f32.mrb[41].mxu1 }
 0x541   : > { %v8363_v47 = vld [vmem:[%s17588_s5 + $0x728] sm:$0xff] }
 0x542   : > { %10292 = vmatmul.mubr.f32.vlgmr.msra.gmra.mrb[244].mxu0 %v14414_v55  ;;  %v11310_v55 = vpack.c.bf16 %v8317_v4, %v8316_v62  ;;  %v8345_v62 = vld [vmem:[%s17588_s5 + $0x698] sm:$0xff] }
 0x543   : > { %11301 = vmatpush3.bf16.msra.mxu0 %v11298_v14  ;;  %10294 = vmatprep.mubr.f32.mxu0 %v14422_v49  ;;  %v8318_v49 = vld [vmem:[%s17588_s5 + $0x5c0] sm:$0xff]  ;;  %v14786_v30 = vpop.f32.mrb[42].mxu1  ;;  %v8339_v14 = vld [vmem:[%s17588_s5 + $0x668] sm:$0xff] }
 0x544   : > { %11303 = vmatprep.subr.bf16.mxu0 %v11302_v41  ;;  %v11314_v8 = vpack.c.bf16 %v8319_v0, %v8318_v49  ;;  %v2919_v44 = vpop.f32.mrb[43].mxu1  ;;  %v11354_v1 = vpack.c.bf16 %v8339_v14, %v8338_v61  ;;  %v8347_v49 = vld [vmem:[%s17588_s5 + $0x6a8] sm:$0xff]  ;;  %v8376_v61 = vld [vmem:[%s17588_s5 + $0x790] sm:$0xff]  ;;  %v8377_v14 = vld [vmem:[%s17588_s5 + $0x798] sm:$0xff] }
 0x545   : > { %v8367_v44 = vld [vmem:[%s17588_s5 + $0x748] sm:$0xff] }
 0x546   : > { %10295 = vmatmul.mubr.f32.gmra.mrb[246].mxu0 %v14430_v6  ;;  %v8320_v6 = vld [vmem:[%s17588_s5 + $0x5d0] sm:$0xff] }
 0x547   : > { %11305 = vmatpush3.bf16.msra.mxu0 %v11302_v41  ;;  %10329 = vmatprep.mubr.f32.mxu0 %v14438_v3  ;;  %v8321_v3 = vld [vmem:[%s17588_s5 + $0x5d8] sm:$0xff]  ;;  %v14796_v48 = vpop.f32.mrb[44].mxu1  ;;  %v11358_v41 = vpack.c.bf16 %v8341_v54, %v8340_v27  ;;  %v8378_v27 = vld [vmem:[%s17588_s5 + $0x7a0] sm:$0xff]  ;;  %v8379_v54 = vld [vmem:[%s17588_s5 + $0x7a8] sm:$0xff] }
 0x548   : > { %11307 = vmatprep.subr.bf16.mxu0 %v11306_v63  ;;  %v11318_v9 = vpack.c.bf16 %v8321_v3, %v8320_v6  ;;  %v2924_v33 = vpop.f32.mrb[45].mxu1  ;;  %v8349_v6 = vld [vmem:[%s17588_s5 + $0x6b8] sm:$0xff]  ;;  %v8351_v3 = vld [vmem:[%s17588_s5 + $0x6c8] sm:$0xff] }
 0x549   : > { %v8371_v33 = vld [vmem:[%s17588_s5 + $0x768] sm:$0xff] }
 0x54b   : > { %11309 = vmatpush3.bf16.msra.mxu0 %v11306_v63  ;;  %v8344_v63 = vld [vmem:[%s17588_s5 + $0x690] sm:$0xff] }
 0x54c   : > { %11311 = vmatprep.subr.bf16.mxu0 %v11310_v55  ;;  %v11366_v4 = vpack.c.bf16 %v8345_v62, %v8344_v63 }
 0x54f   : > { %11313 = vmatpush3.bf16.msra.mxu0 %v11310_v55  ;;  %v8346_v55 = vld [vmem:[%s17588_s5 + $0x6a0] sm:$0xff] }
 0x550   : > { %11315 = vmatprep.subr.bf16.mxu0 %v11314_v8  ;;  %v11370_v0 = vpack.c.bf16 %v8347_v49, %v8346_v55  ;;  %v8387_v55 = vld [vmem:[%s17588_s5 + $0x7e8] sm:$0xff] }
 0x553   : > { %11317 = vmatpush3.bf16.msra.mxu0 %v11314_v8  ;;  %v8348_v8 = vld [vmem:[%s17588_s5 + $0x6b0] sm:$0xff] }
 0x554   : > { %11319 = vmatprep.subr.bf16.mxu0 %v11318_v9 }
 0x557   : > { %11321 = vmatpush3.bf16.msra.mxu0 %v11318_v9 }
 0x558   : > { %11323 = vmatprep.subr.bf16.mxu0 %v11322_v58 }
 0x55b   : > { %11325 = vmatpush3.bf16.msra.mxu0 %v11322_v58  ;;  %v11386_v58 = vpack.c.bf16 %v8355_v21, %v8354_v20 }
 0x55c   : > { %11327 = vmatprep.subr.bf16.mxu0 %v11326_v56 }
 0x55f   : > { %11329 = vmatpush3.bf16.msra.mxu0 %v11326_v56  ;;  %v8358_v56 = vld [vmem:[%s17588_s5 + $0x700] sm:$0xff] }
 0x560   : > { %11331 = vmatprep.subr.bf16.mxu0 %v11330_v22  ;;  %v11394_v24 = vpack.c.bf16 %v8359_v16, %v8358_v56 }
 0x562   : > { %10330 = vmatmul.mubr.f32.vlgmr.msra.gmra.mrb[244].mxu0 %v14446_v7  ;;  %v11342_v7 = vpack.c.bf16 %v8333_v51, %v8332_v50  ;;  %v8370_v51 = vld [vmem:[%s17588_s5 + $0x760] sm:$0xff] }
 0x563   : > { %11333 = vmatpush3.bf16.msra.mxu0 %v11330_v22  ;;  %10332 = vmatprep.mubr.f32.mxu0 %v14456_v5  ;;  %v8334_v5 = vld [vmem:[%s17588_s5 + $0x640] sm:$0xff]  ;;  %v8361_v22 = vld [vmem:[%s17588_s5 + $0x718] sm:$0xff] }
 0x564   : > { %11335 = vmatprep.subr.bf16.mxu0 %v11334_v39  ;;  %v11346_v59 = vpack.c.bf16 %v8335_v37, %v8334_v5  ;;  %v11398_v15 = vpack.c.bf16 %v8361_v22, %v8360_v10  ;;  %v8372_v5 = vld [vmem:[%s17588_s5 + $0x770] sm:$0xff]  ;;  %v8373_v37 = vld [vmem:[%s17588_s5 + $0x778] sm:$0xff] }
 0x565   : > { %v8411_v10 = vld [vmem:[%s17591_s8 + $0x90] sm:$0xff]  ;;  %v8412_v22 = vld [vmem:[%s17591_s8 + $0x98] sm:$0xff] }
 0x566   : > { %10333 = vmatmul.mubr.f32.gmra.mrb[246].mxu0 %v14466_v25  ;;  %v8336_v25 = vld [vmem:[%s17588_s5 + $0x650] sm:$0xff] }
 0x567   : > { %11337 = vmatpush3.bf16.msra.mxu0 %v11334_v39  ;;  %10367 = vmatprep.mubr.f32.mxu0 %v14474_v19  ;;  %v8337_v19 = vld [vmem:[%s17588_s5 + $0x658] sm:$0xff]  ;;  %v11402_v39 = vpack.c.bf16 %v8363_v47, %v8362_v23  ;;  %v4630_v23 = vld [vmem:[%s17590_s7 + $0x10] sm:$0xff]  ;;  %v11470_v47 = vpack.c.bf16 %v8412_v22, %v8411_v10 }
 0x568   : > { %11339 = vmatprep.subr.bf16.mxu0 %v11338_v46  ;;  %v11350_v45 = vpack.c.bf16 %v8337_v19, %v8336_v25  ;;  %v8374_v25 = vld [vmem:[%s17588_s5 + $0x780] sm:$0xff]  ;;  %v8375_v19 = vld [vmem:[%s17588_s5 + $0x788] sm:$0xff]  ;;  %v4867_v10 = vld [vmem:[%s17591_s8 + $0x58] sm:$0xff] }
 0x56b   : > { %11341 = vmatpush3.bf16.msra.mxu0 %v11338_v46 }
 0x56c   : > { %11343 = vmatprep.subr.bf16.mxu0 %v11342_v7 }
 0x56f   : > { %11345 = vmatpush3.bf16.msra.mxu0 %v11342_v7  ;;  %v11418_v7 = vpack.c.bf16 %v8371_v33, %v8370_v51  ;;  %v8417_v51 = vld [vmem:[%s17591_s8 + $0xc0] sm:$0xff]  ;;  %v8418_v33 = vld [vmem:[%s17591_s8 + $0xc8] sm:$0xff] }
 0x570   : > { %11347 = vmatprep.subr.bf16.mxu0 %v11346_v59 }
 0x573   : > { %11349 = vmatpush3.bf16.msra.mxu0 %v11346_v59  ;;  %v11422_v59 = vpack.c.bf16 %v8373_v37, %v8372_v5  ;;  %v4636_v5 = vld [vmem:[%s17590_s7 + $0x40] sm:$0xff]  ;;  %v11482_v37 = vpack.c.bf16 %v8418_v33, %v8417_v51 }
 0x574   : > { %11351 = vmatprep.subr.bf16.mxu0 %v11350_v45  ;;  %v8429_v33 = vld [vmem:[%s17591_s8 + $0x120] sm:$0xff] }
 0x577   : > { %11353 = vmatpush3.bf16.msra.mxu0 %v11350_v45  ;;  %v11426_v45 = vpack.c.bf16 %v8375_v19, %v8374_v25  ;;  %v8420_v25 = vld [vmem:[%s17591_s8 + $0xd8] sm:$0xff]  ;;  %v4637_v19 = vld [vmem:[%s17590_s7 + $0x48] sm:$0xff] }
 0x578   : > { %11355 = vmatprep.subr.bf16.mxu0 %v11354_v1 }
 0x57b   : > { %11357 = vmatpush3.bf16.msra.mxu0 %v11354_v1  ;;  %v11430_v1 = vpack.c.bf16 %v8377_v14, %v8376_v61  ;;  %v8421_v14 = vld [vmem:[%s17591_s8 + $0xe0] sm:$0xff] }
 0x57c   : > { %11359 = vmatprep.subr.bf16.mxu0 %v11358_v41 }
 0x57f   : > { %11361 = vmatpush3.bf16.msra.mxu0 %v11358_v41  ;;  %v11434_v41 = vpack.c.bf16 %v8379_v54, %v8378_v27  ;;  %v4639_v27 = vld [vmem:[%s17590_s7 + $0x58] sm:$0xff]  ;;  %v4640_v54 = vld [vmem:[%s17590_s7 + $0x60] sm:$0xff] }
 0x580   : > { %11363 = vmatprep.subr.bf16.mxu0 %v11362_v32 }
 0x582   : > { %10368 = vmatmul.mubr.f32.vlgmr.msra.gmra.mrb[244].mxu0 %v14482_v34  ;;  %v11374_v34 = vpack.c.bf16 %v8349_v6, %v8348_v8  ;;  %v8389_v8 = vld [vmem:[%s17588_s5 + $0x7f8] sm:$0xff] }
 0x583   : > { %11365 = vmatpush3.bf16.msra.mxu0 %v11362_v32  ;;  %10370 = vmatprep.mubr.f32.mxu0 %v14646_v11  ;;  %v8350_v11 = vld [vmem:[%s17588_s5 + $0x6c0] sm:$0xff]  ;;  %v8383_v32 = vld [vmem:[%s17588_s5 + $0x7c8] sm:$0xff] }
 0x584   : > { %11367 = vmatprep.subr.bf16.mxu0 %v11366_v4  ;;  %v11378_v9 = vpack.c.bf16 %v8351_v3, %v8350_v11  ;;  %v8390_v11 = vld [vmem:[%s17589_s6] ss:$0 sm:$0xff] }
 0x586   : > { %10371 = vmatmul.mubr.f32.gmra.mrb[246].mxu0 %v14654_v38  ;;  %v8352_v38 = vld [vmem:[%s17588_s5 + $0x6d0] sm:$0xff] }
 0x587   : > { %11369 = vmatpush3.bf16.msra.mxu0 %v11366_v4  ;;  %10405 = vmatprep.mubr.f32.mxu0 %v14662_v28  ;;  %v8353_v28 = vld [vmem:[%s17588_s5 + $0x6d8] sm:$0xff]  ;;  %v8386_v4 = vld [vmem:[%s17588_s5 + $0x7e0] sm:$0xff] }
 0x588   : > { %11371 = vmatprep.subr.bf16.mxu0 %v11370_v0  ;;  %v11382_v17 = vpack.c.bf16 %v8353_v28, %v8352_v38  ;;  %v11450_v49 = vpack.c.bf16 %v8387_v55, %v8386_v4  ;;  %v4857_v4 = vld [vmem:[%s17591_s8 + $0x8] sm:$0xff] }
 0x58b   : > { %11373 = vmatpush3.bf16.msra.mxu0 %v11370_v0  ;;  %v8388_v0 = vld [vmem:[%s17588_s5 + $0x7f0] sm:$0xff] }
 0x58c   : > { %11375 = vmatprep.subr.bf16.mxu0 %v11374_v34  ;;  %v11454_v6 = vpack.c.bf16 %v8389_v8, %v8388_v0  ;;  %v4858_v8 = vld [vmem:[%s17591_s8 + $0x10] sm:$0xff] }
 0x58f   : > { %11377 = vmatpush3.bf16.msra.mxu0 %v11374_v34  ;;  %v4628_v34 = vld [vmem:[%s17590_s7] sm:$0xff] }
 0x590   : > { %11379 = vmatprep.subr.bf16.mxu0 %v11378_v9  ;;  %10495 = vmatprep.mubr.msk.f32.mxu1 %vm4646_vm6, %v4628_v34 }
 0x593   : > { %11381 = vmatpush3.bf16.msra.mxu0 %v11378_v9 }
 0x594   : > { %11383 = vmatprep.subr.bf16.mxu0 %v11382_v17 }
 0x597   : > { %11385 = vmatpush3.bf16.msra.mxu0 %v11382_v17 }
 0x598   : > { %11387 = vmatprep.subr.bf16.mxu0 %v11386_v58 }
 0x59b   : > { %11389 = vmatpush3.bf16.msra.mxu0 %v11386_v58 }
 0x59c   : > { %11391 = vmatprep.subr.bf16.mxu0 %v11390_v26 }
 0x59f   : > { %11393 = vmatpush3.bf16.msra.mxu0 %v11390_v26  ;;  %v8410_v26 = vld [vmem:[%s17591_s8 + $0x88] sm:$0xff] }
 0x5a0   : > { %11395 = vmatprep.subr.bf16.mxu0 %v11394_v24 }
 0x5a2   : > { %10406 = vmatmul.mubr.f32.vlgmr.msra.gmra.mrb[244].mxu0 %v14664_v13  ;;  %v11406_v13 = vpack.c.bf16 %v8365_v40, %v8364_v43  ;;  %v8414_v43 = vld [vmem:[%s17591_s8 + $0xa8] sm:$0xff]  ;;  %v4631_v40 = vld [vmem:[%s17590_s7 + $0x18] sm:$0xff] }
 0x5a3   : > { %11397 = vmatpush3.bf16.msra.mxu0 %v11394_v24  ;;  %10408 = vmatprep.mubr.f32.mxu0 %v14706_v52  ;;  %v8366_v52 = vld [vmem:[%s17588_s5 + $0x740] sm:$0xff]  ;;  %v11466_v24 = vpack.c.bf16 %v8410_v26, %v8409_v53  ;;  %v4865_v53 = vld [vmem:[%s17591_s8 + $0x48] sm:$0xff] }
 0x5a4   : > { %11399 = vmatprep.subr.bf16.mxu0 %v11398_v15  ;;  %v11410_v46 = vpack.c.bf16 %v8367_v44, %v8366_v52  ;;  %v8415_v44 = vld [vmem:[%s17591_s8 + $0xb0] sm:$0xff] }
 0x5a6   : > { %10409 = vmatmul.mubr.f32.gmra.mrb[246].mxu0 %v14714_v60  ;;  %v8368_v60 = vld [vmem:[%s17588_s5 + $0x750] sm:$0xff] }
 0x5a7   : > { %11401 = vmatpush3.bf16.msra.mxu0 %v11398_v15  ;;  %10443 = vmatprep.mubr.f32.mxu0 %v14722_v57  ;;  %v8369_v57 = vld [vmem:[%s17588_s5 + $0x758] sm:$0xff]  ;;  %v4629_v15 = vld [vmem:[%s17590_s7 + $0x8] sm:$0xff] }
 0x5a8   : > { %11403 = vmatprep.subr.bf16.mxu0 %v11402_v39  ;;  %v11414_v50 = vpack.c.bf16 %v8369_v57, %v8368_v60  ;;  %v4633_v60 = vld [vmem:[%s17590_s7 + $0x28] sm:$0xff]  ;;  %v4634_v57 = vld [vmem:[%s17590_s7 + $0x30] sm:$0xff] }
 0x5ab   : > { %11405 = vmatpush3.bf16.msra.mxu0 %v11402_v39  ;;  %v8413_v39 = vld [vmem:[%s17591_s8 + $0xa0] sm:$0xff] }
 0x5ac   : > { %11407 = vmatprep.subr.bf16.mxu0 %v11406_v13  ;;  %v11474_v52 = vpack.c.bf16 %v8414_v43, %v8413_v39  ;;  %v4870_v39 = vld [vmem:[%s17591_s8 + $0x70] sm:$0xff]  ;;  %v4871_v43 = vld [vmem:[%s17591_s8 + $0x78] sm:$0xff] }
 0x5af   : > { %11409 = vmatpush3.bf16.msra.mxu0 %v11406_v13  ;;  %v4632_v13 = vld [vmem:[%s17590_s7 + $0x20] sm:$0xff] }
 0x5b0   : > { %11411 = vmatprep.subr.bf16.mxu0 %v11410_v46 }
 0x5b3   : > { %11413 = vmatpush3.bf16.msra.mxu0 %v11410_v46  ;;  %v8416_v46 = vld [vmem:[%s17591_s8 + $0xb8] sm:$0xff] }
 0x5b4   : > { %11415 = vmatprep.subr.bf16.mxu0 %v11414_v50 }
 0x5b7   : > { %11417 = vmatpush3.bf16.msra.mxu0 %v11414_v50  ;;  %v11478_v50 = vpack.c.bf16 %v8416_v46, %v8415_v44  ;;  %v8427_v46 = vld [vmem:[%s17591_s8 + $0x110] sm:$0xff] }
 0x5b8   : > { %11419 = vmatprep.subr.bf16.mxu0 %v11418_v7 }
 0x5bb   : > { %11421 = vmatpush3.bf16.msra.mxu0 %v11418_v7  ;;  %v4635_v7 = vld [vmem:[%s17590_s7 + $0x38] sm:$0xff] }
 0x5bc   : > { %11423 = vmatprep.subr.bf16.mxu0 %v11422_v59 }
 0x5bf   : > { %11425 = vmatpush3.bf16.msra.mxu0 %v11422_v59  ;;  %v8419_v59 = vld [vmem:[%s17591_s8 + $0xd0] sm:$0xff] }
 0x5c0   : > { %11427 = vmatprep.subr.bf16.mxu0 %v11426_v45  ;;  %v11486_v61 = vpack.c.bf16 %v8420_v25, %v8419_v59  ;;  %v8432_v59 = vld [vmem:[%s17591_s8 + $0x138] sm:$0xff] }
 0x5c2   : > { %10444 = vmatmul.mubr.f32.vlgmr.msra.gmra.mrb[244].mxu0 %v14724_v18  ;;  %v11438_v18 = vpack.c.bf16 %v8381_v2, %v8380_v31  ;;  %v4641_v31 = vld [vmem:[%s17590_s7 + $0x68] sm:$0xff]  ;;  %v4642_v2 = vld [vmem:[%s17590_s7 + $0x70] sm:$0xff] }
 0x5c3   : > { %11429 = vmatpush3.bf16.msra.mxu0 %v11426_v45  ;;  %10446 = vmatprep.mubr.f32.mxu0 %v14754_v12  ;;  %v8382_v12 = vld [vmem:[%s17588_s5 + $0x7c0] sm:$0xff]  ;;  %v4638_v45 = vld [vmem:[%s17590_s7 + $0x50] sm:$0xff] }
 0x5c4   : > { %11431 = vmatprep.subr.bf16.mxu0 %v11430_v1  ;;  %v11442_v63 = vpack.c.bf16 %v8383_v32, %v8382_v12  ;;  %v8423_v12 = vld [vmem:[%s17591_s8 + $0xf0] sm:$0xff]  ;;  %v8424_v32 = vld [vmem:[%s17591_s8 + $0xf8] sm:$0xff] }
 0x5c6   : > { %10447 = vmatmul.mubr.f32.gmra.mrb[246].mxu0 %v14762_v29  ;;  %v8384_v29 = vld [vmem:[%s17588_s5 + $0x7d0] sm:$0xff] }
 0x5c7   : > { %11433 = vmatpush3.bf16.msra.mxu0 %v11430_v1  ;;  %10481 = vmatprep.mubr.f32.mxu0 %v14770_v35  ;;  %v8385_v35 = vld [vmem:[%s17588_s5 + $0x7d8] sm:$0xff]  ;;  %v8422_v1 = vld [vmem:[%s17591_s8 + $0xe8] sm:$0xff] }
 0x5c8   : > { %11435 = vmatprep.subr.bf16.mxu0 %v11434_v41  ;;  %v11446_v62 = vpack.c.bf16 %v8385_v35, %v8384_v29  ;;  %v11494_v29 = vpack.c.bf16 %v8424_v32, %v8423_v12  ;;  %v4645_v35 = vld [vmem:[%s17590_s7 + $0x88] sm:$0xff]  ;;  %v8441_v32 = vld [vmem:[%s17591_s8 + $0x180] sm:$0xff] }
 0x5cb   : > { %11437 = vmatpush3.bf16.msra.mxu0 %v11434_v41  ;;  %v11490_v41 = vpack.c.bf16 %v8422_v1, %v8421_v14  ;;  %v8435_v14 = vld [vmem:[%s17591_s8 + $0x150] sm:$0xff]  ;;  %v8436_v1 = vld [vmem:[%s17591_s8 + $0x158] sm:$0xff] }
 0x5cc   : > { %11439 = vmatprep.subr.bf16.mxu0 %v11438_v18 }
 0x5cf   : > { %11441 = vmatpush3.bf16.msra.mxu0 %v11438_v18  ;;  %v4643_v18 = vld [vmem:[%s17590_s7 + $0x78] sm:$0xff] }
 0x5d0   : > { %11443 = vmatprep.subr.bf16.mxu0 %v11442_v63 }
 0x5d3   : > { %11445 = vmatpush3.bf16.msra.mxu0 %v11442_v63  ;;  %v4644_v63 = vld [vmem:[%s17590_s7 + $0x80] sm:$0xff] }
 0x5d4   : > { %11447 = vmatprep.subr.bf16.mxu0 %v11446_v62 }
 0x5d7   : > { %11449 = vmatpush3.bf16.msra.mxu0 %v11446_v62  ;;  %v4856_v62 = vld [vmem:[%s17591_s8] sm:$0xff] }
 0x5d8   : > { %11451 = vmatprep.subr.bf16.mxu0 %v11450_v49  ;;  %v11498_v55 = vpack.c.bf16 %v4857_v4, %v4856_v62  ;;  %v8444_v62 = vld [vmem:[%s17591_s8 + $0x198] sm:$0xff] }
 0x5db   : > { %11453 = vmatpush3.bf16.msra.mxu0 %v11450_v49 }
 0x5dc   : > { %11455 = vmatprep.subr.bf16.mxu0 %v11454_v6 }
 0x5df   : > { %11457 = vmatpush3.bf16.msra.mxu0 %v11454_v6  ;;  %v4859_v6 = vld [vmem:[%s17591_s8 + $0x18] sm:$0xff] }
 0x5e2   : > { %10482 = vmatmul.mubr.f32.vlgmr.msra.gmra.mrb[244].mxu0 %v14778_v36 }
 0x5e3   : > { %10484 = vmatprep.mubr.f32.mxu0 %v14786_v30 }
 0x5e6   : > { %10485 = vmatmul.mubr.f32.gmra.mrb[246].mxu0 %v14796_v48 }
 0x6b5   : > { %v10483_v3 = vpop.f32.mrb[244].mxu0 }
 0x6b6   : > { %v4621_v9 = vadd.f32 %v10483_v3, %v8390_v11  ;;  %v4590_v38 = vpop.f32.mrb[245].mxu0  ;;  %v11502_v3 = vpack.c.bf16 %v4859_v6, %v4858_v8  ;;  %v8446_v8 = vld [vmem:[%s17591_s8 + $0x1a8] sm:$0xff] }
 0x6b7   : > { %v4620_v28 = vadd.f32 %v8390_v11, %v4590_v38  ;;  %v4861_v38 = vld [vmem:[%s17591_s8 + $0x28] sm:$0xff] }
 0x6b8   : > { %v4625_v36 = vmax.f32 %v4621_v9, 0.0  ;;  %v4860_v9 = vld [vmem:[%s17591_s8 + $0x20] sm:$0xff] }
 0x6b9   : > { %v4624_v17 = vmax.f32 %v4620_v28, 0.0  ;;  %v10486_v30 = vpop.f32.mrb[246].mxu0 }
 0x6ba   : > { %v4623_v20 = vadd.f32 %v10486_v30, %v8390_v11  ;;  %v4600_v48 = vpop.f32.mrb[247].mxu0  ;;  %v4862_v30 = vld [vmem:[%s17591_s8 + $0x30] sm:$0xff] }
 0x6bb   : > { %v11458_v21 = vpack.c.bf16 %v4625_v36, %v4624_v17  ;;  %v4622_v58 = vadd.f32 %v8390_v11, %v4600_v48  ;;  %v11506_v36 = vpack.c.bf16 %v4861_v38, %v4860_v9  ;;  %v8449_v9 = vld [vmem:[%s17591_s8 + $0x1c0] sm:$0xff]  ;;  %v8450_v38 = vld [vmem:[%s17591_s8 + $0x1c8] sm:$0xff] }
 0x6bc   : > { %v4627_v42 = vmax.f32 %v4623_v20, 0.0  ;;  %v4863_v20 = vld [vmem:[%s17591_s8 + $0x38] sm:$0xff] }
 0x6bd   : > { %v4626_v56 = vmax.f32 %v4622_v58, 0.0  ;;  %11459 = vmatprep.subr.bf16.mxu1 %v11458_v21 }
 0x6be   : > { %11461 = vmatpush3.bf16.msra.mxu1 %v11458_v21  ;;  %v11510_v21 = vpack.c.bf16 %v4863_v20, %v4862_v30 }
 0x6bf   : > { %v11462_v16 = vpack.c.bf16 %v4627_v42, %v4626_v56  ;;  %v4864_v42 = vld [vmem:[%s17591_s8 + $0x40] sm:$0xff] }
 0x6c0   : > { %v11514_v56 = vpack.c.bf16 %v4865_v53, %v4864_v42  ;;  %v8454_v42 = vld [vmem:[%s17591_s8 + $0x1e8] sm:$0xff] }
 0x6c1   : > { %11463 = vmatprep.subr.bf16.mxu1 %v11462_v16 }
 0x6c2   : > { %11465 = vmatpush3.bf16.msra.mxu1 %v11462_v16 }
 0x6c3   : > { %11467 = vmatprep.subr.bf16.mxu1 %v11466_v24 }
 0x6c5   : > { %10496 = vmatmul.mubr.msk.f32.vlgmr.msra.gmra.mrb[46].mxu1 %vm4646_vm6, %v4629_v15  ;;  %v4868_v15 = vld [vmem:[%s17591_s8 + $0x60] sm:$0xff] }
 0x6c6   : > { %10498 = vmatprep.mubr.msk.f32.mxu1 %vm4646_vm6, %v4630_v23  ;;  %11469 = vmatpush3.bf16.msra.mxu1 %v11466_v24  ;;  %v4866_v24 = vld [vmem:[%s17591_s8 + $0x50] sm:$0xff]  ;;  %v4869_v23 = vld [vmem:[%s17591_s8 + $0x68] sm:$0xff] }
 0x6c7   : > { %11471 = vmatprep.subr.bf16.mxu1 %v11470_v47  ;;  %v11518_v22 = vpack.c.bf16 %v4867_v10, %v4866_v24  ;;  %v8455_v10 = vld [vmem:[%s17591_s8 + $0x1f0] sm:$0xff] }
 0x6c9   : > { %10499 = vmatmul.mubr.msk.f32.gmra.mrb[48].mxu1 %vm4646_vm6, %v4631_v40  ;;  %v11526_v40 = vpack.c.bf16 %v4871_v43, %v4870_v39  ;;  %v8459_v43 = vld [vmem:[%s17591_s8 + $0x210] sm:$0xff] }
 0x6ca   : > { %10501 = vmatprep.mubr.msk.f32.mxu1 %vm4646_vm6, %v4632_v13  ;;  %11473 = vmatpush3.bf16.msra.mxu1 %v11470_v47  ;;  %v11522_v47 = vpack.c.bf16 %v4869_v23, %v4868_v15  ;;  %v8425_v13 = vld [vmem:[%s17591_s8 + $0x100] sm:$0xff] }
 0x6cb   : > { %11475 = vmatprep.subr.bf16.mxu1 %v11474_v52  ;;  %v8457_v23 = vld [vmem:[%s17591_s8 + $0x200] sm:$0xff] }
 0x6cd   : > { %10502 = vmatmul.mubr.msk.f32.gmra.mrb[50].mxu1 %vm4646_vm6, %v4633_v60  ;;  %v8428_v60 = vld [vmem:[%s17591_s8 + $0x118] sm:$0xff] }
 0x6ce   : > { %10504 = vmatprep.mubr.msk.f32.mxu1 %vm4646_vm6, %v4634_v57  ;;  %11477 = vmatpush3.bf16.msra.mxu1 %v11474_v52  ;;  %v8426_v52 = vld [vmem:[%s17591_s8 + $0x108] sm:$0xff] }
 0x6cf   : > { %11479 = vmatprep.subr.bf16.mxu1 %v11478_v50  ;;  %v11530_v44 = vpack.c.bf16 %v8426_v52, %v8425_v13  ;;  %v8461_v52 = vld [vmem:[%s17591_s8 + $0x220] sm:$0xff] }
 0x6d1   : > { %10505 = vmatmul.mubr.msk.f32.gmra.mrb[52].mxu1 %vm4646_vm6, %v4635_v7  ;;  %v8430_v7 = vld [vmem:[%s17591_s8 + $0x128] sm:$0xff] }
 0x6d2   : > { %10507 = vmatprep.mubr.msk.f32.mxu1 %vm4646_vm6, %v4636_v5  ;;  %11481 = vmatpush3.bf16.msra.mxu1 %v11478_v50  ;;  %v11534_v50 = vpack.c.bf16 %v8428_v60, %v8427_v46  ;;  %v11538_v5 = vpack.c.bf16 %v8430_v7, %v8429_v33  ;;  %v8463_v60 = vld [vmem:[%s17591_s8 + $0x230] sm:$0xff] }
 0x6d3   : > { %11483 = vmatprep.subr.bf16.mxu1 %v11482_v37 }
 0x6d5   : > { %10508 = vmatmul.mubr.msk.f32.gmra.mrb[54].mxu1 %vm4646_vm6, %v4637_v19  ;;  %v8433_v19 = vld [vmem:[%s17591_s8 + $0x140] sm:$0xff] }
 0x6d6   : > { %10510 = vmatprep.mubr.msk.f32.mxu1 %vm4646_vm6, %v4638_v45  ;;  %11485 = vmatpush3.bf16.msra.mxu1 %v11482_v37  ;;  %v8431_v37 = vld [vmem:[%s17591_s8 + $0x130] sm:$0xff]  ;;  %v8434_v45 = vld [vmem:[%s17591_s8 + $0x148] sm:$0xff] }
 0x6d7   : > { %11487 = vmatprep.subr.bf16.mxu1 %v11486_v61  ;;  %v11542_v25 = vpack.c.bf16 %v8432_v59, %v8431_v37  ;;  %v8468_v37 = vld [vmem:[%s17591_s8 + $0x258] sm:$0xff] }
 0x6d9   : > { %10511 = vmatmul.mubr.msk.f32.gmra.mrb[56].mxu1 %vm4646_vm6, %v4639_v27  ;;  %v11550_v27 = vpack.c.bf16 %v8436_v1, %v8435_v14  ;;  %v8472_v14 = vld [vmem:[%s17591_s8 + $0x278] sm:$0xff] }
 0x6da   : > { %10513 = vmatprep.mubr.msk.f32.mxu1 %vm4646_vm6, %v4640_v54  ;;  %11489 = vmatpush3.bf16.msra.mxu1 %v11486_v61  ;;  %v11546_v61 = vpack.c.bf16 %v8434_v45, %v8433_v19  ;;  %v8437_v54 = vld [vmem:[%s17591_s8 + $0x160] sm:$0xff]  ;;  %v8470_v19 = vld [vmem:[%s17591_s8 + $0x268] sm:$0xff] }
 0x6db   : > { %11491 = vmatprep.subr.bf16.mxu1 %v11490_v41 }
 0x6dd   : > { %10514 = vmatmul.mubr.msk.f32.gmra.mrb[58].mxu1 %vm4646_vm6, %v4641_v31 }
 0x6de   : > { %10516 = vmatprep.mubr.msk.f32.mxu1 %vm4646_vm6, %v4642_v2  ;;  %11493 = vmatpush3.bf16.msra.mxu1 %v11490_v41  ;;  %v8438_v41 = vld [vmem:[%s17591_s8 + $0x168] sm:$0xff]  ;;  %v8439_v2 = vld [vmem:[%s17591_s8 + $0x170] sm:$0xff] }
 0x6df   : > { %11495 = vmatprep.subr.bf16.mxu1 %v11494_v29  ;;  %v11554_v31 = vpack.c.bf16 %v8438_v41, %v8437_v54  ;;  %v8474_v54 = vld [vmem:[%s17591_s8 + $0x288] sm:$0xff] }
 0x6e1   : > { %10517 = vmatmul.mubr.msk.f32.gmra.mrb[60].mxu1 %vm4646_vm6, %v4643_v18  ;;  %v8440_v18 = vld [vmem:[%s17591_s8 + $0x178] sm:$0xff] }
 0x6e2   : > { %10519 = vmatprep.mubr.msk.f32.mxu1 %vm4646_vm6, %v4644_v63  ;;  %11497 = vmatpush3.bf16.msra.mxu1 %v11494_v29  ;;  %v11558_v12 = vpack.c.bf16 %v8440_v18, %v8439_v2  ;;  %v8442_v63 = vld [vmem:[%s17591_s8 + $0x188] sm:$0xff]  ;;  %v8476_v2 = vld [vmem:[%s17591_s8 + $0x298] sm:$0xff] }
 0x6e3   : > { %11499 = vmatprep.subr.bf16.mxu1 %v11498_v55  ;;  %v11562_v29 = vpack.c.bf16 %v8442_v63, %v8441_v32  ;;  %v8478_v32 = vld [vmem:[%s17591_s8 + $0x2a8] sm:$0xff] }
 0x6e5   : > { %10520 = vmatmul.mubr.msk.f32.gmra.mrb[62].mxu1 %vm4646_vm6, %v4645_v35  ;;  %v8443_v35 = vld [vmem:[%s17591_s8 + $0x190] sm:$0xff] }
 0x798   : > { %v10497_v49 = vpop.f32.mrb[46].mxu1 }
 0x799   : > { %v4767_v0 = vpop.f32.mrb[47].mxu1 }
 0x79c   : > { %v10500_v34 = vpop.f32.mrb[48].mxu1 }
 0x79d   : > { %v4777_v11 = vpop.f32.mrb[49].mxu1 }
 0x79e   : > { %10554 = vmatprep.mubr.f32.mxu1 %v4777_v11  ;;  %v8448_v11 = vld [vmem:[%s17591_s8 + $0x1b8] sm:$0xff] }
 0x79f   : > { %10555 = vmatmul.mubr.f32.vlgmr.msra.gmra.mrb[64].mxu1 %v10500_v34  ;;  %v8447_v34 = vld [vmem:[%s17591_s8 + $0x1b0] sm:$0xff] }
 0x7a0   : > { %11501 = vmatpush3.bf16.msra.mxu1 %v11498_v55  ;;  %10589 = vmatprep.mubr.f32.mxu1 %v4767_v0  ;;  %v15130_v28 = vpop.f32.mrb[50].mxu1  ;;  %v11566_v55 = vpack.c.bf16 %v8444_v62, %v8443_v35  ;;  %v8445_v0 = vld [vmem:[%s17591_s8 + $0x1a0] sm:$0xff]  ;;  %v8480_v35 = vld [vmem:[%s17591_s8 + $0x2b8] sm:$0xff] }
 0x7a1   : > { %11503 = vmatprep.subr.bf16.mxu1 %v11502_v3  ;;  %v4787_v17 = vpop.f32.mrb[51].mxu1  ;;  %v11570_v6 = vpack.c.bf16 %v8446_v8, %v8445_v0  ;;  %v8483_v0 = vld [vmem:[%s17591_s8 + $0x2d0] sm:$0xff]  ;;  %v8484_v8 = vld [vmem:[%s17591_s8 + $0x2d8] sm:$0xff] }
 0x7a4   : > { %11505 = vmatpush3.bf16.msra.mxu1 %v11502_v3  ;;  %v15138_v48 = vpop.f32.mrb[52].mxu1  ;;  %v11574_v3 = vpack.c.bf16 %v8448_v11, %v8447_v34  ;;  %v8485_v34 = vld [vmem:[%s17591_s8 + $0x2e0] sm:$0xff]  ;;  %v8486_v11 = vld [vmem:[%s17591_s8 + $0x2e8] sm:$0xff] }
 0x7a5   : > { %11507 = vmatprep.subr.bf16.mxu1 %v11506_v36  ;;  %v15140_v58 = vpop.f32.mrb[53].mxu1 }
 0x7a8   : > { %11509 = vmatpush3.bf16.msra.mxu1 %v11506_v36  ;;  %v15148_v26 = vpop.f32.mrb[54].mxu1  ;;  %v8451_v36 = vld [vmem:[%s17591_s8 + $0x1d0] sm:$0xff] }
 0x7a9   : > { %11511 = vmatprep.subr.bf16.mxu1 %v11510_v21  ;;  %v15150_v16 = vpop.f32.mrb[55].mxu1 }
 0x7ac   : > { %11513 = vmatpush3.bf16.msra.mxu1 %v11510_v21  ;;  %v15182_v57 = vpop.f32.mrb[56].mxu1 }
 0x7ad   : > { %11515 = vmatprep.subr.bf16.mxu1 %v11514_v56  ;;  %v15184_v51 = vpop.f32.mrb[57].mxu1 }
 0x7b0   : > { %11517 = vmatpush3.bf16.msra.mxu1 %v11514_v56  ;;  %v15234_v4 = vpop.f32.mrb[58].mxu1 }
 0x7b1   : > { %11519 = vmatprep.subr.bf16.mxu1 %v11518_v22 }
 0x7b4   : > { %11521 = vmatpush3.bf16.msra.mxu1 %v11518_v22  ;;  %v8456_v22 = vld [vmem:[%s17591_s8 + $0x1f8] sm:$0xff] }
 0x7b5   : > { %11523 = vmatprep.subr.bf16.mxu1 %v11522_v47  ;;  %v11590_v15 = vpack.c.bf16 %v8456_v22, %v8455_v10  ;;  %v8493_v10 = vld [vmem:[%s17591_s8 + $0x320] sm:$0xff]  ;;  %v8494_v22 = vld [vmem:[%s17591_s8 + $0x328] sm:$0xff] }
 0x7b8   : > { %11525 = vmatpush3.bf16.msra.mxu1 %v11522_v47  ;;  %v8458_v47 = vld [vmem:[%s17591_s8 + $0x208] sm:$0xff] }
 0x7b9   : > { %11527 = vmatprep.subr.bf16.mxu1 %v11526_v40  ;;  %v11594_v39 = vpack.c.bf16 %v8458_v47, %v8457_v23  ;;  %v8495_v23 = vld [vmem:[%s17591_s8 + $0x330] sm:$0xff]  ;;  %v8496_v47 = vld [vmem:[%s17591_s8 + $0x338] sm:$0xff] }
 0x7bc   : > { %11529 = vmatpush3.bf16.msra.mxu1 %v11526_v40  ;;  %v8460_v40 = vld [vmem:[%s17591_s8 + $0x218] sm:$0xff] }
 0x7bd   : > { %11531 = vmatprep.subr.bf16.mxu1 %v11530_v44  ;;  %v11598_v13 = vpack.c.bf16 %v8460_v40, %v8459_v43  ;;  %v8499_v40 = vld [vmem:[%s17591_s8 + $0x350] sm:$0xff] }
 0x7bf   : > { %10590 = vmatmul.mubr.f32.vlgmr.msra.gmra.mrb[64].mxu1 %v10497_v49  ;;  %v15236_v49 = vpop.f32.mrb[59].mxu1 }
 0x7c0   : > { %11533 = vmatpush3.bf16.msra.mxu1 %v11530_v44  ;;  %10624 = vmatprep.mubr.f32.mxu1 %v4787_v17  ;;  %v8452_v17 = vld [vmem:[%s17591_s8 + $0x1d8] sm:$0xff]  ;;  %v15264_v30 = vpop.f32.mrb[60].mxu1  ;;  %v8462_v44 = vld [vmem:[%s17591_s8 + $0x228] sm:$0xff] }
 0x7c1   : > { %11535 = vmatprep.subr.bf16.mxu1 %v11534_v50  ;;  %v15266_v20 = vpop.f32.mrb[61].mxu1  ;;  %v11582_v21 = vpack.c.bf16 %v8452_v17, %v8451_v36  ;;  %v11602_v46 = vpack.c.bf16 %v8462_v44, %v8461_v52  ;;  %v8489_v36 = vld [vmem:[%s17591_s8 + $0x300] sm:$0xff]  ;;  %v8490_v17 = vld [vmem:[%s17591_s8 + $0x308] sm:$0xff] }
 0x7c2   : > { %v15274_v53 = vpop.f32.mrb[62].mxu1  ;;  %v8501_v44 = vld [vmem:[%s17591_s8 + $0x360] sm:$0xff] }
 0x7c3   : > { %v15276_v56 = vpop.f32.mrb[63].mxu1 }
 0x7c4   : > { %11537 = vmatpush3.bf16.msra.mxu1 %v11534_v50  ;;  %v8464_v50 = vld [vmem:[%s17591_s8 + $0x238] sm:$0xff] }
 0x7c5   : > { %11539 = vmatprep.subr.bf16.mxu1 %v11538_v5  ;;  %v11606_v33 = vpack.c.bf16 %v8464_v50, %v8463_v60  ;;  %v8503_v50 = vld [vmem:[%s17591_s8 + $0x370] sm:$0xff] }
 0x7c8   : > { %11541 = vmatpush3.bf16.msra.mxu1 %v11538_v5  ;;  %v8467_v5 = vld [vmem:[%s17591_s8 + $0x250] sm:$0xff] }
 0x7c9   : > { %11543 = vmatprep.subr.bf16.mxu1 %v11542_v25  ;;  %v11614_v59 = vpack.c.bf16 %v8468_v37, %v8467_v5  ;;  %v8507_v37 = vld [vmem:[%s17591_s8 + $0x390] sm:$0xff] }
 0x7cc   : > { %11545 = vmatpush3.bf16.msra.mxu1 %v11542_v25  ;;  %v8469_v25 = vld [vmem:[%s17591_s8 + $0x260] sm:$0xff] }
 0x7cd   : > { %11547 = vmatprep.subr.bf16.mxu1 %v11546_v61  ;;  %v11618_v45 = vpack.c.bf16 %v8470_v19, %v8469_v25  ;;  %v8509_v19 = vld [vmem:[%s17591_s8 + $0x3a0] sm:$0xff] }
 0x7d0   : > { %11549 = vmatpush3.bf16.msra.mxu1 %v11546_v61  ;;  %v8471_v61 = vld [vmem:[%s17591_s8 + $0x270] sm:$0xff] }
 0x7d1   : > { %11551 = vmatprep.subr.bf16.mxu1 %v11550_v27  ;;  %v11622_v1 = vpack.c.bf16 %v8472_v14, %v8471_v61  ;;  %v8511_v14 = vld [vmem:[%s17591_s8 + $0x3b0] sm:$0xff] }
 0x7d4   : > { %11553 = vmatpush3.bf16.msra.mxu1 %v11550_v27  ;;  %v8473_v27 = vld [vmem:[%s17591_s8 + $0x280] sm:$0xff] }
 0x7d5   : > { %11555 = vmatprep.subr.bf16.mxu1 %v11554_v31  ;;  %v11626_v41 = vpack.c.bf16 %v8474_v54, %v8473_v27 }
 0x7d8   : > { %11557 = vmatpush3.bf16.msra.mxu1 %v11554_v31  ;;  %v8475_v31 = vld [vmem:[%s17591_s8 + $0x290] sm:$0xff] }
 0x7d9   : > { %11559 = vmatprep.subr.bf16.mxu1 %v11558_v12  ;;  %v11630_v18 = vpack.c.bf16 %v8476_v2, %v8475_v31  ;;  %v8516_v31 = vld [vmem:[%s17591_s8 + $0x3d8] sm:$0xff] }
 0x7dc   : > { %11561 = vmatpush3.bf16.msra.mxu1 %v11558_v12  ;;  %v8477_v12 = vld [vmem:[%s17591_s8 + $0x2a0] sm:$0xff] }
 0x7dd   : > { %11563 = vmatprep.subr.bf16.mxu1 %v11562_v29  ;;  %v11634_v63 = vpack.c.bf16 %v8478_v32, %v8477_v12  ;;  %v8518_v12 = vld [vmem:[%s17591_s8 + $0x3e8] sm:$0xff] }
 0x7df   : > { %10625 = vmatmul.mubr.f32.vlgmr.msra.gmra.mrb[64].mxu1 %v15130_v28  ;;  %v11578_v28 = vpack.c.bf16 %v8450_v38, %v8449_v9  ;;  %v8487_v9 = vld [vmem:[%s17591_s8 + $0x2f0] sm:$0xff]  ;;  %v8488_v38 = vld [vmem:[%s17591_s8 + $0x2f8] sm:$0xff] }
 0x7e0   : > { %11565 = vmatpush3.bf16.msra.mxu1 %v11562_v29  ;;  %10659 = vmatprep.mubr.f32.mxu1 %v15140_v58  ;;  %v8453_v58 = vld [vmem:[%s17591_s8 + $0x1e0] sm:$0xff]  ;;  %v8479_v29 = vld [vmem:[%s17591_s8 + $0x2b0] sm:$0xff] }
 0x7e1   : > { %11567 = vmatprep.subr.bf16.mxu1 %v11566_v55  ;;  %v11586_v24 = vpack.c.bf16 %v8454_v42, %v8453_v58  ;;  %v11638_v62 = vpack.c.bf16 %v8480_v35, %v8479_v29  ;;  %v8491_v58 = vld [vmem:[%s17591_s8 + $0x310] sm:$0xff]  ;;  %v8492_v42 = vld [vmem:[%s17591_s8 + $0x318] sm:$0xff] }
 0x7e2   : > { %v8520_v29 = vld [vmem:[%s17591_s8 + $0x3f8] sm:$0xff] }
 0x7e4   : > { %11569 = vmatpush3.bf16.msra.mxu1 %v11566_v55 }
 0x7e5   : > { %11571 = vmatprep.subr.bf16.mxu1 %v11570_v6 }
 0x7e8   : > { %11573 = vmatpush3.bf16.msra.mxu1 %v11570_v6  ;;  %v11646_v6 = vpack.c.bf16 %v8484_v8, %v8483_v0  ;;  %v8524_v0 = vld [vmem:[%s17591_s8 + $0x418] sm:$0xff] }
 0x7e9   : > { %11575 = vmatprep.subr.bf16.mxu1 %v11574_v3 }
 0x7ec   : > { %11577 = vmatpush3.bf16.msra.mxu1 %v11574_v3  ;;  %v11650_v3 = vpack.c.bf16 %v8486_v11, %v8485_v34  ;;  %v8526_v34 = vld [vmem:[%s17591_s8 + $0x428] sm:$0xff] }
 0x7ed   : > { %11579 = vmatprep.subr.bf16.mxu1 %v11578_v28 }
 0x7f0   : > { %11581 = vmatpush3.bf16.msra.mxu1 %v11578_v28  ;;  %v11654_v28 = vpack.c.bf16 %v8488_v38, %v8487_v9  ;;  %v8528_v9 = vld [vmem:[%s17591_s8 + $0x438] sm:$0xff] }
 0x7f1   : > { %11583 = vmatprep.subr.bf16.mxu1 %v11582_v21 }
 0x7f4   : > { %11585 = vmatpush3.bf16.msra.mxu1 %v11582_v21  ;;  %v11658_v21 = vpack.c.bf16 %v8490_v17, %v8489_v36  ;;  %v8531_v36 = vld [vmem:[%s17591_s8 + $0x450] sm:$0xff]  ;;  %v8532_v17 = vld [vmem:[%s17591_s8 + $0x458] sm:$0xff] }
 0x7f5   : > { %11587 = vmatprep.subr.bf16.mxu1 %v11586_v24 }
 0x7f8   : > { %11589 = vmatpush3.bf16.msra.mxu1 %v11586_v24  ;;  %v11662_v24 = vpack.c.bf16 %v8492_v42, %v8491_v58  ;;  %v8533_v58 = vld [vmem:[%s17591_s8 + $0x460] sm:$0xff]  ;;  %v8534_v42 = vld [vmem:[%s17591_s8 + $0x468] sm:$0xff] }
 0x7f9   : > { %11591 = vmatprep.subr.bf16.mxu1 %v11590_v15 }
 0x7fc   : > { %11593 = vmatpush3.bf16.msra.mxu1 %v11590_v15  ;;  %v11666_v15 = vpack.c.bf16 %v8494_v22, %v8493_v10  ;;  %v8535_v10 = vld [vmem:[%s17591_s8 + $0x470] sm:$0xff]  ;;  %v8536_v22 = vld [vmem:[%s17591_s8 + $0x478] sm:$0xff] }
 0x7fd   : > { %11595 = vmatprep.subr.bf16.mxu1 %v11594_v39 }
 0x7ff   : > { %10660 = vmatmul.mubr.f32.vlgmr.msra.gmra.mrb[64].mxu1 %v15138_v48  ;;  %v8465_v48 = vld [vmem:[%s17591_s8 + $0x240] sm:$0xff] }
 0x800   : > { %11597 = vmatpush3.bf16.msra.mxu1 %v11594_v39  ;;  %10694 = vmatprep.mubr.f32.mxu1 %v15150_v16  ;;  %v8466_v16 = vld [vmem:[%s17591_s8 + $0x248] sm:$0xff]  ;;  %v11670_v39 = vpack.c.bf16 %v8496_v47, %v8495_v23 }
 0x801   : > { %11599 = vmatprep.subr.bf16.mxu1 %v11598_v13  ;;  %v11610_v7 = vpack.c.bf16 %v8466_v16, %v8465_v48  ;;  %v8505_v16 = vld [vmem:[%s17591_s8 + $0x380] sm:$0xff]  ;;  %v8539_v23 = vld [vmem:[%s17593_s10 + $0x208] sm:$0xff] }
 0x802   : > { %v8543_v47 = vld [vmem:[%s17593_s10 + $0x228] sm:$0xff] }
 0x804   : > { %11601 = vmatpush3.bf16.msra.mxu1 %v11598_v13  ;;  %v8500_v13 = vld [vmem:[%s17591_s8 + $0x358] sm:$0xff] }
 0x805   : > { %11603 = vmatprep.subr.bf16.mxu1 %v11602_v46  ;;  %v11678_v52 = vpack.c.bf16 %v8500_v13, %v8499_v40  ;;  %v8551_v40 = vld [vmem:[%s17593_s10 + $0x268] sm:$0xff] }
 0x808   : > { %11605 = vmatpush3.bf16.msra.mxu1 %v11602_v46  ;;  %v8502_v46 = vld [vmem:[%s17591_s8 + $0x368] sm:$0xff] }
 0x809   : > { %11607 = vmatprep.subr.bf16.mxu1 %v11606_v33  ;;  %v11682_v60 = vpack.c.bf16 %v8502_v46, %v8501_v44  ;;  %v8546_v44 = vld [vmem:[%s17593_s10 + $0x240] sm:$0xff] }
 0x80a   : > { %v8550_v46 = vld [vmem:[%s17593_s10 + $0x260] sm:$0xff] }
 0x80c   : > { %11609 = vmatpush3.bf16.msra.mxu1 %v11606_v33  ;;  %v8504_v33 = vld [vmem:[%s17591_s8 + $0x378] sm:$0xff] }
 0x80d   : > { %11611 = vmatprep.subr.bf16.mxu1 %v11610_v7  ;;  %v11686_v48 = vpack.c.bf16 %v8504_v33, %v8503_v50  ;;  %v8559_v50 = vld [vmem:[%s17593_s10 + $0x2a8] sm:$0xff]  ;;  %v11760_v33 = vpack.c.bf16 %v8550_v46, %v8546_v44  ;;  %v8565_v44 = vld [vmem:[%s17593_s10 + $0x2d8] sm:$0xff] }
 0x80e   : > { %v8569_v46 = vld [vmem:[%s17593_s10 + $0x2f8] sm:$0xff] }
 0x810   : > { %11613 = vmatpush3.bf16.msra.mxu1 %v11610_v7  ;;  %v8506_v7 = vld [vmem:[%s17591_s8 + $0x388] sm:$0xff] }
 0x811   : > { %11615 = vmatprep.subr.bf16.mxu1 %v11614_v59  ;;  %v11690_v5 = vpack.c.bf16 %v8506_v7, %v8505_v16  ;;  %v8554_v16 = vld [vmem:[%s17593_s10 + $0x280] sm:$0xff] }
 0x812   : > { %v8558_v7 = vld [vmem:[%s17593_s10 + $0x2a0] sm:$0xff] }
 0x814   : > { %11617 = vmatpush3.bf16.msra.mxu1 %v11614_v59  ;;  %v8508_v59 = vld [vmem:[%s17591_s8 + $0x398] sm:$0xff] }
 0x815   : > { %11619 = vmatprep.subr.bf16.mxu1 %v11618_v45  ;;  %v11694_v25 = vpack.c.bf16 %v8508_v59, %v8507_v37  ;;  %v11764_v37 = vpack.c.bf16 %v8558_v7, %v8554_v16  ;;  %v8573_v16 = vld [vmem:[%s17593_s10 + $0x318] sm:$0xff] }
 0x816   : > { %v8577_v7 = vld [vmem:[%s17593_s10 + $0x338] sm:$0xff] }
 0x818   : > { %11621 = vmatpush3.bf16.msra.mxu1 %v11618_v45  ;;  %v8510_v45 = vld [vmem:[%s17591_s8 + $0x3a8] sm:$0xff] }
 0x819   : > { %11623 = vmatprep.subr.bf16.mxu1 %v11622_v1  ;;  %v11698_v61 = vpack.c.bf16 %v8510_v45, %v8509_v19  ;;  %v8566_v19 = vld [vmem:[%s17593_s10 + $0x2e0] sm:$0xff]  ;;  %v8571_v45 = vld [vmem:[%s17593_s10 + $0x308] sm:$0xff] }
 0x81c   : > { %11625 = vmatpush3.bf16.msra.mxu1 %v11622_v1  ;;  %v8512_v1 = vld [vmem:[%s17591_s8 + $0x3b8] sm:$0xff] }
 0x81d   : > { %11627 = vmatprep.subr.bf16.mxu1 %v11626_v41  ;;  %v11702_v27 = vpack.c.bf16 %v8512_v1, %v8511_v14 }
 0x81f   : > { %10695 = vmatmul.mubr.f32.vlgmr.msra.gmra.mrb[64].mxu1 %v15148_v26  ;;  %v8481_v26 = vld [vmem:[%s17591_s8 + $0x2c0] sm:$0xff] }
 0x820   : > { %11629 = vmatpush3.bf16.msra.mxu1 %v11626_v41  ;;  %10729 = vmatprep.mubr.f32.mxu1 %v15184_v51  ;;  %v8482_v51 = vld [vmem:[%s17591_s8 + $0x2c8] sm:$0xff]  ;;  %v8515_v41 = vld [vmem:[%s17591_s8 + $0x3d0] sm:$0xff] }
 0x821   : > { %11631 = vmatprep.subr.bf16.mxu1 %v11630_v18  ;;  %v11642_v55 = vpack.c.bf16 %v8482_v51, %v8481_v26  ;;  %v11710_v2 = vpack.c.bf16 %v8516_v31, %v8515_v41  ;;  %v8522_v26 = vld [vmem:[%s17591_s8 + $0x408] sm:$0xff] }
 0x824   : > { %11633 = vmatpush3.bf16.msra.mxu1 %v11630_v18  ;;  %v8517_v18 = vld [vmem:[%s17591_s8 + $0x3e0] sm:$0xff] }
 0x825   : > { %11635 = vmatprep.subr.bf16.mxu1 %v11634_v63  ;;  %v11714_v32 = vpack.c.bf16 %v8518_v12, %v8517_v18  ;;  %v8582_v18 = vld [vmem:[%s17593_s10 + $0x360] sm:$0xff]  ;;  %v8587_v12 = vld [vmem:[%s17593_s10 + $0x388] sm:$0xff] }
 0x828   : > { %11637 = vmatpush3.bf16.msra.mxu1 %v11634_v63  ;;  %v8519_v63 = vld [vmem:[%s17591_s8 + $0x3f0] sm:$0xff] }
 0x829   : > { %11639 = vmatprep.subr.bf16.mxu1 %v11638_v62  ;;  %v11718_v35 = vpack.c.bf16 %v8520_v29, %v8519_v63 }
 0x82c   : > { %11641 = vmatpush3.bf16.msra.mxu1 %v11638_v62  ;;  %v8521_v62 = vld [vmem:[%s17591_s8 + $0x400] sm:$0xff] }
 0x82d   : > { %11643 = vmatprep.subr.bf16.mxu1 %v11642_v55  ;;  %v11722_v51 = vpack.c.bf16 %v8522_v26, %v8521_v62  ;;  %v8590_v62 = vld [vmem:[%s17593_s10 + $0x3a0] sm:$0xff] }
 0x830   : > { %11645 = vmatpush3.bf16.msra.mxu1 %v11642_v55  ;;  %v8523_v55 = vld [vmem:[%s17591_s8 + $0x410] sm:$0xff] }
 0x831   : > { %11647 = vmatprep.subr.bf16.mxu1 %v11646_v6  ;;  %v11726_v8 = vpack.c.bf16 %v8524_v0, %v8523_v55  ;;  %v8599_v55 = vld [vmem:[%s17593_s10 + $0x3e8] sm:$0xff] }
 0x834   : > { %11649 = vmatpush3.bf16.msra.mxu1 %v11646_v6  ;;  %v8525_v6 = vld [vmem:[%s17591_s8 + $0x420] sm:$0xff] }
 0x835   : > { %11651 = vmatprep.subr.bf16.mxu1 %v11650_v3  ;;  %v11730_v11 = vpack.c.bf16 %v8526_v34, %v8525_v6  ;;  %v8598_v6 = vld [vmem:[%s17593_s10 + $0x3e0] sm:$0xff] }
 0x838   : > { %11653 = vmatpush3.bf16.msra.mxu1 %v11650_v3  ;;  %v8527_v3 = vld [vmem:[%s17591_s8 + $0x430] sm:$0xff] }
 0x839   : > { %11655 = vmatprep.subr.bf16.mxu1 %v11654_v28  ;;  %v11734_v38 = vpack.c.bf16 %v8528_v9, %v8527_v3  ;;  %v8545_v3 = vld [vmem:[%s17593_s10 + $0x238] sm:$0xff]  ;;  %v12683_v9 = vmov 0.0  }
 0x83c   : > { %11657 = vmatpush3.bf16.msra.mxu1 %v11654_v28 }
 0x83d   : > { %11659 = vmatprep.subr.bf16.mxu1 %v11658_v21 }
 0x83f   : > { %10730 = vmatmul.mubr.f32.vlgmr.msra.gmra.mrb[64].mxu1 %v15182_v57  ;;  %v8497_v57 = vld [vmem:[%s17591_s8 + $0x340] sm:$0xff] }
 0x840   : > { %11661 = vmatpush3.bf16.msra.mxu1 %v11658_v21  ;;  %10764 = vmatprep.mubr.f32.mxu1 %v15236_v49  ;;  %v8498_v49 = vld [vmem:[%s17591_s8 + $0x348] sm:$0xff]  ;;  %v11742_v21 = vpack.c.bf16 %v8532_v17, %v8531_v36 }
 0x841   : > { %11663 = vmatprep.subr.bf16.mxu1 %v11662_v24  ;;  %v11674_v43 = vpack.c.bf16 %v8498_v49, %v8497_v57  ;;  %v8538_v57 = vld [vmem:[%s17593_s10 + $0x200] sm:$0xff] }
 0x842   : > { %v8542_v49 = vld [vmem:[%s17593_s10 + $0x220] sm:$0xff] }
 0x843   : > { %v11756_v13 = vpack.c.bf16 %v8542_v49, %v8538_v57  ;;  %v8557_v57 = vld [vmem:[%s17593_s10 + $0x298] sm:$0xff] }
 0x844   : > { %11665 = vmatpush3.bf16.msra.mxu1 %v11662_v24  ;;  %v11746_v24 = vpack.c.bf16 %v8534_v42, %v8533_v58  ;;  %v8544_v58 = vld [vmem:[%s17593_s10 + $0x230] sm:$0xff]  ;;  %v8549_v42 = vld [vmem:[%s17593_s10 + $0x258] sm:$0xff] }
 0x845   : > { %11667 = vmatprep.subr.bf16.mxu1 %v11666_v15  ;;  %v8561_v49 = vld [vmem:[%s17593_s10 + $0x2b8] sm:$0xff] }
 0x848   : > { %11669 = vmatpush3.bf16.msra.mxu1 %v11666_v15  ;;  %v11750_v15 = vpack.c.bf16 %v8536_v22, %v8535_v10 }
 0x849   : > { %11671 = vmatprep.subr.bf16.mxu1 %v11670_v39 }
 0x84c   : > { %11673 = vmatpush3.bf16.msra.mxu1 %v11670_v39  ;;  %v11754_v39 = vpack.c.bf16 %v8543_v47, %v8539_v23  ;;  %v8548_v47 = vld [vmem:[%s17593_s10 + $0x250] sm:$0xff] }
 0x84d   : > { %11675 = vmatprep.subr.bf16.mxu1 %v11674_v43 }
 0x850   : > { %11677 = vmatpush3.bf16.msra.mxu1 %v11674_v43  ;;  %v8547_v43 = vld [vmem:[%s17593_s10 + $0x248] sm:$0xff] }
 0x851   : > { %11679 = vmatprep.subr.bf16.mxu1 %v11678_v52 }
 0x854   : > { %11681 = vmatpush3.bf16.msra.mxu1 %v11678_v52  ;;  %v11758_v52 = vpack.c.bf16 %v8551_v40, %v8547_v43  ;;  %v11794_v40 = vpack.c.bf16 %v8561_v49, %v8557_v57  ;;  %v5745_v57 = vld [vmem:[%s17593_s10 + $0x128] sm:$0xff] }
 0x855   : > { %11683 = vmatprep.subr.bf16.mxu1 %v11682_v60 }
 0x858   : > { %11685 = vmatpush3.bf16.msra.mxu1 %v11682_v60  ;;  %v8555_v60 = vld [vmem:[%s17593_s10 + $0x288] sm:$0xff] }
 0x859   : > { %11687 = vmatprep.subr.bf16.mxu1 %v11686_v48 }
 0x85c   : > { %11689 = vmatpush3.bf16.msra.mxu1 %v11686_v48  ;;  %v11762_v48 = vpack.c.bf16 %v8559_v50, %v8555_v60  ;;  %v11798_v50 = vpack.c.bf16 %v8569_v46, %v8565_v44  ;;  %v5753_v44 = vld [vmem:[%s17593_s10 + $0x168] sm:$0xff] }
 0x85d   : > { %11691 = vmatprep.subr.bf16.mxu1 %v11690_v5 }
 0x85f   : > { %10765 = vmatmul.mubr.f32.vlgmr.msra.gmra.mrb[64].mxu1 %v15234_v4  ;;  %v8513_v4 = vld [vmem:[%s17591_s8 + $0x3c0] sm:$0xff] }
 0x860   : > { %11693 = vmatpush3.bf16.msra.mxu1 %v11690_v5  ;;  %10799 = vmatprep.mubr.f32.mxu1 %v15266_v20  ;;  %v8514_v20 = vld [vmem:[%s17591_s8 + $0x3c8] sm:$0xff] }
 0x861   : > { %11695 = vmatprep.subr.bf16.mxu1 %v11694_v25  ;;  %v11706_v54 = vpack.c.bf16 %v8514_v20, %v8513_v4  ;;  %v8563_v5 = vld [vmem:[%s17593_s10 + $0x2c8] sm:$0xff]  ;;  %v8574_v4 = vld [vmem:[%s17593_s10 + $0x320] sm:$0xff] }
 0x862   : > { %v8579_v20 = vld [vmem:[%s17593_s10 + $0x348] sm:$0xff] }
 0x864   : > { %11697 = vmatpush3.bf16.msra.mxu1 %v11694_v25  ;;  %v8562_v25 = vld [vmem:[%s17593_s10 + $0x2c0] sm:$0xff] }
 0x865   : > { %11699 = vmatprep.subr.bf16.mxu1 %v11698_v61  ;;  %v11768_v14 = vpack.c.bf16 %v8566_v19, %v8562_v25  ;;  %v8581_v25 = vld [vmem:[%s17593_s10 + $0x358] sm:$0xff] }
 0x866   : > { %v8585_v19 = vld [vmem:[%s17593_s10 + $0x378] sm:$0xff] }
 0x868   : > { %11701 = vmatpush3.bf16.msra.mxu1 %v11698_v61  ;;  %v8575_v61 = vld [vmem:[%s17593_s10 + $0x328] sm:$0xff] }
 0x869   : > { %11703 = vmatprep.subr.bf16.mxu1 %v11702_v27  ;;  %v11770_v1 = vpack.c.bf16 %v8575_v61, %v8571_v45  ;;  %v11806_v61 = vpack.c.bf16 %v8585_v19, %v8581_v25  ;;  %v5769_v25 = vld [vmem:[%s17593_s10 + $0x1e8] sm:$0xff] }
 0x86c   : > { %11705 = vmatpush3.bf16.msra.mxu1 %v11702_v27  ;;  %v8570_v27 = vld [vmem:[%s17593_s10 + $0x300] sm:$0xff] }
 0x86d   : > { %11707 = vmatprep.subr.bf16.mxu1 %v11706_v54  ;;  %v11772_v41 = vpack.c.bf16 %v8574_v4, %v8570_v27  ;;  %v8589_v27 = vld [vmem:[%s17593_s10 + $0x398] sm:$0xff] }
 0x86e   : > { %v8593_v4 = vld [vmem:[%s17593_s10 + $0x3b8] sm:$0xff] }
 0x870   : > { %11709 = vmatpush3.bf16.msra.mxu1 %v11706_v54  ;;  %v8583_v54 = vld [vmem:[%s17593_s10 + $0x368] sm:$0xff] }
 0x871   : > { %11711 = vmatprep.subr.bf16.mxu1 %v11710_v2  ;;  %v11774_v31 = vpack.c.bf16 %v8583_v54, %v8579_v20  ;;  %v11810_v54 = vpack.c.bf16 %v8593_v4, %v8589_v27  ;;  %v5715_v27 = vld [vmem:[%s17593_s10 + $0x38] sm:$0xff] }
 0x874   : > { %11713 = vmatpush3.bf16.msra.mxu1 %v11710_v2  ;;  %v8578_v2 = vld [vmem:[%s17593_s10 + $0x340] sm:$0xff] }
 0x875   : > { %11715 = vmatprep.subr.bf16.mxu1 %v11714_v32  ;;  %v11776_v63 = vpack.c.bf16 %v8582_v18, %v8578_v2  ;;  %v8597_v2 = vld [vmem:[%s17593_s10 + $0x3d8] sm:$0xff] }
 0x876   : > { %v8601_v18 = vld [vmem:[%s17593_s10 + $0x3f8] sm:$0xff] }
 0x878   : > { %11717 = vmatpush3.bf16.msra.mxu1 %v11714_v32  ;;  %v8591_v32 = vld [vmem:[%s17593_s10 + $0x3a8] sm:$0xff] }
 0x879   : > { %11719 = vmatprep.subr.bf16.mxu1 %v11718_v35  ;;  %v11778_v29 = vpack.c.bf16 %v8591_v32, %v8587_v12  ;;  %v11814_v32 = vpack.c.bf16 %v8601_v18, %v8597_v2  ;;  %v5723_v2 = vld [vmem:[%s17593_s10 + $0x78] sm:$0xff] }
 0x87c   : > { %11721 = vmatpush3.bf16.msra.mxu1 %v11718_v35  ;;  %v8586_v35 = vld [vmem:[%s17593_s10 + $0x380] sm:$0xff] }
 0x87d   : > { %11723 = vmatprep.subr.bf16.mxu1 %v11722_v51  ;;  %v11780_v26 = vpack.c.bf16 %v8590_v62, %v8586_v35  ;;  %v5709_v35 = vld [vmem:[%s17593_s10 + $0x8] sm:$0xff] }
 0x87e   : > { %v5713_v62 = vld [vmem:[%s17593_s10 + $0x28] sm:$0xff] }
 0x87f   : > { %10800 = vmatmul.mubr.f32.vlgmr.msra.gmra.mrb[64].mxu1 %v15264_v30  ;;  %v8529_v30 = vld [vmem:[%s17591_s8 + $0x440] sm:$0xff] }
 0x880   : > { %11725 = vmatpush3.bf16.msra.mxu1 %v11722_v51  ;;  %10834 = vmatprep.mubr.f32.mxu1 %v15276_v56  ;;  %v8530_v56 = vld [vmem:[%s17591_s8 + $0x448] sm:$0xff] }
 0x881   : > { %11727 = vmatprep.subr.bf16.mxu1 %v11726_v8  ;;  %v11738_v28 = vpack.c.bf16 %v8530_v56, %v8529_v30  ;;  %v8595_v51 = vld [vmem:[%s17593_s10 + $0x3c8] sm:$0xff]  ;;  %v8537_v30 = vld [vmem:[%s17592_s9] ss:$0 sm:$0xff] }
 0x882   : > { %v11782_v0 = vpack.c.bf16 %v8599_v55, %v8595_v51  ;;  %v11818_v51 = vpack.c.bf16 %v5713_v62, %v5709_v35  ;;  %v5708_v55 = vld [vmem:[%s17593_s10] sm:$0xff]  ;;  %v5731_v35 = vld [vmem:[%s17593_s10 + $0xb8] sm:$0xff] }
 0x884   : > { %11729 = vmatpush3.bf16.msra.mxu1 %v11726_v8  ;;  %v8594_v8 = vld [vmem:[%s17593_s10 + $0x3c0] sm:$0xff] }
 0x885   : > { %11731 = vmatprep.subr.bf16.mxu1 %v11730_v11  ;;  %v11784_v34 = vpack.c.bf16 %v8598_v6, %v8594_v8  ;;  %v5717_v8 = vld [vmem:[%s17593_s10 + $0x48] sm:$0xff] }
 0x886   : > { %v5721_v6 = vld [vmem:[%s17593_s10 + $0x68] sm:$0xff] }
 0x888   : > { %11733 = vmatpush3.bf16.msra.mxu1 %v11730_v11  ;;  %v8541_v11 = vld [vmem:[%s17593_s10 + $0x218] sm:$0xff] }
 0x889   : > { %11735 = vmatprep.subr.bf16.mxu1 %v11734_v38 }
 0x88c   : > { %11737 = vmatpush3.bf16.msra.mxu1 %v11734_v38  ;;  %v11786_v38 = vpack.c.bf16 %v8545_v3, %v8541_v11  ;;  %v11822_v11 = vpack.c.bf16 %v5721_v6, %v5717_v8  ;;  %v5716_v3 = vld [vmem:[%s17593_s10 + $0x40] sm:$0xff]  ;;  %v5739_v8 = vld [vmem:[%s17593_s10 + $0xf8] sm:$0xff] }
 0x88d   : > { %11739 = vmatprep.subr.bf16.mxu1 %v11738_v28 }
 0x890   : > { %11741 = vmatpush3.bf16.msra.mxu1 %v11738_v28 }
 0x891   : > { %11743 = vmatprep.subr.bf16.mxu1 %v11742_v21 }
 0x894   : > { %11745 = vmatpush3.bf16.msra.mxu1 %v11742_v21  ;;  %v8540_v21 = vld [vmem:[%s17593_s10 + $0x210] sm:$0xff] }
 0x895   : > { %11747 = vmatprep.subr.bf16.mxu1 %v11746_v24  ;;  %v11788_v22 = vpack.c.bf16 %v8544_v58, %v8540_v21  ;;  %v5724_v21 = vld [vmem:[%s17593_s10 + $0x80] sm:$0xff] }
 0x896   : > { %v5728_v58 = vld [vmem:[%s17593_s10 + $0xa0] sm:$0xff] }
 0x898   : > { %11749 = vmatpush3.bf16.msra.mxu1 %v11746_v24  ;;  %v8553_v24 = vld [vmem:[%s17593_s10 + $0x278] sm:$0xff] }
 0x899   : > { %11751 = vmatprep.subr.bf16.mxu1 %v11750_v15  ;;  %v11790_v23 = vpack.c.bf16 %v8553_v24, %v8549_v42  ;;  %v5733_v42 = vld [vmem:[%s17593_s10 + $0xc8] sm:$0xff] }
 0x89a   : > { %v5737_v24 = vld [vmem:[%s17593_s10 + $0xe8] sm:$0xff] }
 0x89c   : > { %11753 = vmatpush3.bf16.msra.mxu1 %v11750_v15 }
 0x89d   : > { %11755 = vmatprep.subr.bf16.mxu1 %v11754_v39  ;;  %v8552_v39 = vld [vmem:[%s17593_s10 + $0x270] sm:$0xff] }
 0x89e   : > { %v11792_v43 = vpack.c.bf16 %v8552_v39, %v8548_v47  ;;  %v5736_v47 = vld [vmem:[%s17593_s10 + $0xe0] sm:$0xff]  ;;  %v5741_v39 = vld [vmem:[%s17593_s10 + $0x108] sm:$0xff] }
 0x89f   : > { %10835 = vmatmul.mubr.f32.vlgmr.msra.gmra.mrb[64].mxu1 %v15274_v53  ;;  %v8567_v53 = vld [vmem:[%s17593_s10 + $0x2e8] sm:$0xff] }
 0x8a0   : > { %11757 = vmatpush1.bf16.msra.mxu1 %v11756_v13  ;;  %v11766_v59 = vpack.c.bf16 %v8567_v53, %v8563_v5  ;;  %5904 = vmatprep.mubr.f32.mxu1 %v12683_v9  ;;  %v8556_v13 = vld [vmem:[%s17593_s10 + $0x290] sm:$0xff]  ;;  %v11802_v53 = vpack.c.bf16 %v8577_v7, %v8573_v16  ;;  %v5761_v16 = vld [vmem:[%s17593_s10 + $0x1a8] sm:$0xff] }
 0x8a1   : > { %11759 = vmatprep.subr.bf16.mxu1 %v11758_v52  ;;  %v8560_v52 = vld [vmem:[%s17593_s10 + $0x2b0] sm:$0xff] }
 0x8a2   : > { %v11796_v60 = vpack.c.bf16 %v8560_v52, %v8556_v13  ;;  %v5744_v13 = vld [vmem:[%s17593_s10 + $0x120] sm:$0xff]  ;;  %v5749_v52 = vld [vmem:[%s17593_s10 + $0x148] sm:$0xff] }
 0x8a4   : > { %11761 = vmatpush1.bf16.msra.mxu1 %v11760_v33  ;;  %v8564_v33 = vld [vmem:[%s17593_s10 + $0x2d0] sm:$0xff] }
 0x8a5   : > { %11763 = vmatprep.subr.bf16.mxu1 %v11762_v48  ;;  %v8568_v48 = vld [vmem:[%s17593_s10 + $0x2f0] sm:$0xff] }
 0x8a6   : > { %v11800_v5 = vpack.c.bf16 %v8568_v48, %v8564_v33  ;;  %v5752_v33 = vld [vmem:[%s17593_s10 + $0x160] sm:$0xff]  ;;  %v5757_v48 = vld [vmem:[%s17593_s10 + $0x188] sm:$0xff] }
 0x8a8   : > { %11765 = vmatpush1.bf16.msra.mxu1 %v11764_v37  ;;  %v8572_v37 = vld [vmem:[%s17593_s10 + $0x310] sm:$0xff] }
 0x8a9   : > { %11767 = vmatprep.subr.bf16.mxu1 %v11766_v59  ;;  %v8576_v59 = vld [vmem:[%s17593_s10 + $0x330] sm:$0xff] }
 0x8aa   : > { %v11804_v45 = vpack.c.bf16 %v8576_v59, %v8572_v37  ;;  %v5760_v37 = vld [vmem:[%s17593_s10 + $0x1a0] sm:$0xff]  ;;  %v5765_v59 = vld [vmem:[%s17593_s10 + $0x1c8] sm:$0xff] }
 0x8ac   : > { %11769 = vmatpush1.bf16.msra.mxu1 %v11768_v14  ;;  %v8580_v14 = vld [vmem:[%s17593_s10 + $0x350] sm:$0xff] }
 0x8ad   : > { %11771 = vmatprep.subr.bf16.mxu1 %v11770_v1  ;;  %v8584_v1 = vld [vmem:[%s17593_s10 + $0x370] sm:$0xff] }
 0x8ae   : > { %v11808_v20 = vpack.c.bf16 %v8584_v1, %v8580_v14  ;;  %v5768_v14 = vld [vmem:[%s17593_s10 + $0x1e0] sm:$0xff]  ;;  %v5711_v1 = vld [vmem:[%s17593_s10 + $0x18] sm:$0xff] }
 0x8b0   : > { %11773 = vmatpush1.bf16.msra.mxu1 %v11772_v41  ;;  %v8588_v41 = vld [vmem:[%s17593_s10 + $0x390] sm:$0xff] }
 0x8b1   : > { %11775 = vmatprep.subr.bf16.mxu1 %v11774_v31  ;;  %v8592_v31 = vld [vmem:[%s17593_s10 + $0x3b0] sm:$0xff] }
 0x8b2   : > { %v11812_v12 = vpack.c.bf16 %v8592_v31, %v8588_v41  ;;  %v5714_v41 = vld [vmem:[%s17593_s10 + $0x30] sm:$0xff]  ;;  %v5719_v31 = vld [vmem:[%s17593_s10 + $0x58] sm:$0xff] }
 0x8b4   : > { %11777 = vmatpush1.bf16.msra.mxu1 %v11776_v63  ;;  %v8596_v63 = vld [vmem:[%s17593_s10 + $0x3d0] sm:$0xff] }
 0x8b5   : > { %11779 = vmatprep.subr.bf16.mxu1 %v11778_v29  ;;  %v8600_v29 = vld [vmem:[%s17593_s10 + $0x3f0] sm:$0xff] }
 0x8b8   : > { %11781 = vmatpush1.bf16.msra.mxu1 %v11780_v26  ;;  %v11816_v26 = vpack.c.bf16 %v8600_v29, %v8596_v63  ;;  %v5722_v63 = vld [vmem:[%s17593_s10 + $0x70] sm:$0xff]  ;;  %v5727_v29 = vld [vmem:[%s17593_s10 + $0x98] sm:$0xff] }
 0x8b9   : > { %11783 = vmatprep.subr.bf16.mxu1 %v11782_v0  ;;  %v5712_v0 = vld [vmem:[%s17593_s10 + $0x20] sm:$0xff] }
 0x8bc   : > { %11785 = vmatpush1.bf16.msra.mxu1 %v11784_v34  ;;  %v11820_v34 = vpack.c.bf16 %v5712_v0, %v5708_v55  ;;  %v5730_v55 = vld [vmem:[%s17593_s10 + $0xb0] sm:$0xff]  ;;  %v5735_v0 = vld [vmem:[%s17593_s10 + $0xd8] sm:$0xff] }
 0x8bd   : > { %11787 = vmatprep.subr.bf16.mxu1 %v11786_v38  ;;  %v5720_v38 = vld [vmem:[%s17593_s10 + $0x60] sm:$0xff] }
 0x972   : > { %v10836_v56 = vpop.f32.mrb[64].mxu1 }
 0x973   : > { %v15641_v28 = vadd.f32 %v10836_v56, %v8537_v30  ;;  %v5686_v36 = vpop.f32.mrb[65].mxu1  ;;  %v5729_v56 = vld [vmem:[%s17593_s10 + $0xa8] sm:$0xff] }
 0x974   : > { %v5704_v17 = vadd.f32 %v8537_v30, %v5686_v36  ;;  %v5725_v30 = vld [vmem:[%s17593_s10 + $0x88] sm:$0xff]  ;;  %v11824_v36 = vpack.c.bf16 %v5720_v38, %v5716_v3  ;;  %v5738_v3 = vld [vmem:[%s17593_s10 + $0xf0] sm:$0xff]  ;;  %v5743_v38 = vld [vmem:[%s17593_s10 + $0x118] sm:$0xff] }
 0x976   : > { %v15655_v10 = vmax.f32 %v5704_v17, 0.0  ;;  %v11826_v17 = vpack.c.bf16 %v5729_v56, %v5725_v30  ;;  %v5747_v30 = vld [vmem:[%s17593_s10 + $0x138] sm:$0xff] }
 0x978   : > { %v5838_v15 = vrot.slane %v15655_v10, 1 }
 0x97a   : > { %5905 = vmatmul.mubr.f32.vlgmr.msra.gmra.mrb[66].mxu1 %v5838_v15 }
 0x97b   : > { %11789 = vmatpush1.bf16.msra.mxu1 %v11788_v22  ;;  %5975 = vmatprep.mubr.f32.mxu1 %v12683_v9  ;;  %v11828_v22 = vpack.c.bf16 %v5728_v58, %v5724_v21  ;;  %v5746_v21 = vld [vmem:[%s17593_s10 + $0x130] sm:$0xff]  ;;  %v5751_v58 = vld [vmem:[%s17593_s10 + $0x158] sm:$0xff] }
 0x97c   : > { %11791 = vmatprep.subr.bf16.mxu1 %v11790_v23  ;;  %v5732_v23 = vld [vmem:[%s17593_s10 + $0xc0] sm:$0xff] }
 0x97d   : > { %v11832_v49 = vpack.c.bf16 %v5736_v47, %v5732_v23  ;;  %v5754_v23 = vld [vmem:[%s17593_s10 + $0x170] sm:$0xff]  ;;  %v5759_v47 = vld [vmem:[%s17593_s10 + $0x198] sm:$0xff] }
 0x97f   : > { %11793 = vmatpush1.bf16.msra.mxu1 %v11792_v43  ;;  %v11834_v43 = vpack.c.bf16 %v5745_v57, %v5741_v39  ;;  %v5763_v39 = vld [vmem:[%s17593_s10 + $0x1b8] sm:$0xff] }
 0x980   : > { %11795 = vmatprep.subr.bf16.mxu1 %v11794_v40  ;;  %v5740_v40 = vld [vmem:[%s17593_s10 + $0x100] sm:$0xff] }
 0x981   : > { %v11836_v46 = vpack.c.bf16 %v5744_v13, %v5740_v40  ;;  %v5762_v40 = vld [vmem:[%s17593_s10 + $0x1b0] sm:$0xff]  ;;  %v5767_v13 = vld [vmem:[%s17593_s10 + $0x1d8] sm:$0xff] }
 0x983   : > { %11797 = vmatpush1.bf16.msra.mxu1 %v11796_v60  ;;  %v11838_v60 = vpack.c.bf16 %v5753_v44, %v5749_v52  ;;  %v5771_v52 = vld [vmem:[%s17593_s10 + $0x1f8] sm:$0xff] }
 0x984   : > { %11799 = vmatprep.subr.bf16.mxu1 %v11798_v50  ;;  %v5748_v50 = vld [vmem:[%s17593_s10 + $0x140] sm:$0xff] }
 0x985   : > { %v11840_v7 = vpack.c.bf16 %v5752_v33, %v5748_v50  ;;  %v5770_v50 = vld [vmem:[%s17593_s10 + $0x1f0] sm:$0xff]  ;;  %v8603_v33 = vld [vmem:[%s17593_s10 + $0x408] sm:$0xff] }
 0x987   : > { %11801 = vmatpush1.bf16.msra.mxu1 %v11800_v5  ;;  %v11842_v5 = vpack.c.bf16 %v5761_v16, %v5757_v48  ;;  %v8607_v48 = vld [vmem:[%s17593_s10 + $0x428] sm:$0xff] }
 0x988   : > { %11803 = vmatprep.subr.bf16.mxu1 %v11802_v53  ;;  %v5756_v53 = vld [vmem:[%s17593_s10 + $0x180] sm:$0xff] }
 0x989   : > { %v11844_v19 = vpack.c.bf16 %v5760_v37, %v5756_v53  ;;  %v8606_v53 = vld [vmem:[%s17593_s10 + $0x420] sm:$0xff]  ;;  %v8611_v37 = vld [vmem:[%s17593_s10 + $0x448] sm:$0xff] }
 0x98b   : > { %11805 = vmatpush1.bf16.msra.mxu1 %v11804_v45  ;;  %v11846_v45 = vpack.c.bf16 %v5769_v25, %v5765_v59  ;;  %v8615_v59 = vld [vmem:[%s17593_s10 + $0x468] sm:$0xff] }
 0x98c   : > { %11807 = vmatprep.subr.bf16.mxu1 %v11806_v61  ;;  %v5764_v61 = vld [vmem:[%s17593_s10 + $0x1c0] sm:$0xff] }
 0x98d   : > { %v11848_v4 = vpack.c.bf16 %v5768_v14, %v5764_v61  ;;  %v8614_v61 = vld [vmem:[%s17593_s10 + $0x460] sm:$0xff]  ;;  %v8619_v14 = vld [vmem:[%s17593_s10 + $0x488] sm:$0xff] }
 0x98f   : > { %11809 = vmatpush1.bf16.msra.mxu1 %v11808_v20  ;;  %v11850_v20 = vpack.c.bf16 %v5715_v27, %v5711_v1  ;;  %v8623_v1 = vld [vmem:[%s17593_s10 + $0x4a8] sm:$0xff] }
 0x990   : > { %11811 = vmatprep.subr.bf16.mxu1 %v11810_v54  ;;  %v5710_v54 = vld [vmem:[%s17593_s10 + $0x10] sm:$0xff] }
 0x991   : > { %v11852_v18 = vpack.c.bf16 %v5714_v41, %v5710_v54  ;;  %v8622_v54 = vld [vmem:[%s17593_s10 + $0x4a0] sm:$0xff]  ;;  %v8627_v41 = vld [vmem:[%s17593_s10 + $0x4c8] sm:$0xff] }
 0x993   : > { %11813 = vmatpush1.bf16.msra.mxu1 %v11812_v12  ;;  %v11854_v12 = vpack.c.bf16 %v5723_v2, %v5719_v31  ;;  %v8631_v31 = vld [vmem:[%s17593_s10 + $0x4e8] sm:$0xff] }
 0x994   : > { %11815 = vmatprep.subr.bf16.mxu1 %v11814_v32  ;;  %v5718_v32 = vld [vmem:[%s17593_s10 + $0x50] sm:$0xff] }
 0x995   : > { %v11856_v62 = vpack.c.bf16 %v5722_v63, %v5718_v32  ;;  %v8630_v32 = vld [vmem:[%s17593_s10 + $0x4e0] sm:$0xff]  ;;  %v8635_v63 = vld [vmem:[%s17593_s10 + $0x508] sm:$0xff] }
 0x997   : > { %11817 = vmatpush1.bf16.msra.mxu1 %v11816_v26  ;;  %v11858_v26 = vpack.c.bf16 %v5731_v35, %v5727_v29  ;;  %v8639_v29 = vld [vmem:[%s17593_s10 + $0x528] sm:$0xff] }
 0x998   : > { %11819 = vmatprep.subr.bf16.mxu1 %v11818_v51  ;;  %v5726_v51 = vld [vmem:[%s17593_s10 + $0x90] sm:$0xff] }
 0x999   : > { %v11860_v6 = vpack.c.bf16 %v5730_v55, %v5726_v51  ;;  %v8638_v51 = vld [vmem:[%s17593_s10 + $0x520] sm:$0xff]  ;;  %v8643_v55 = vld [vmem:[%s17593_s10 + $0x548] sm:$0xff] }
 0x99a   : > { %5976 = vmatmul.mubr.f32.vlgmr.msra.gmra.mrb[68].mxu1 %v5838_v15  ;;  %v11830_v15 = vpack.c.bf16 %v5737_v24, %v5733_v42  ;;  %v5755_v42 = vld [vmem:[%s17593_s10 + $0x178] sm:$0xff] }
 0x99b   : > { %11821 = vmatpush1.bf16.msra.mxu1 %v11820_v34  ;;  %6046 = vmatprep.mubr.f32.mxu1 %v12683_v9  ;;  %v11862_v34 = vpack.c.bf16 %v5739_v8, %v5735_v0  ;;  %v8647_v0 = vld [vmem:[%s17593_s10 + $0x568] sm:$0xff] }
 0x99c   : > { %11823 = vmatprep.subr.bf16.mxu1 %v11822_v11  ;;  %v5734_v11 = vld [vmem:[%s17593_s10 + $0xd0] sm:$0xff] }
 0x99d   : > { %v11864_v56 = vpack.c.bf16 %v5738_v3, %v5734_v11  ;;  %v8646_v11 = vld [vmem:[%s17593_s10 + $0x560] sm:$0xff]  ;;  %v8651_v3 = vld [vmem:[%s17593_s10 + $0x588] sm:$0xff] }
 0x99f   : > { %11825 = vmatpush1.bf16.msra.mxu1 %v11824_v36  ;;  %v11866_v36 = vpack.c.bf16 %v5747_v30, %v5743_v38  ;;  %v8655_v38 = vld [vmem:[%s17593_s10 + $0x5a8] sm:$0xff] }
 0x9a0   : > { %11827 = vmatprep.subr.bf16.mxu1 %v11826_v17  ;;  %v5742_v17 = vld [vmem:[%s17593_s10 + $0x110] sm:$0xff] }
 0x9a1   : > { %v11868_v24 = vpack.c.bf16 %v5746_v21, %v5742_v17  ;;  %v8654_v17 = vld [vmem:[%s17593_s10 + $0x5a0] sm:$0xff]  ;;  %v8659_v21 = vld [vmem:[%s17593_s10 + $0x5c8] sm:$0xff] }
 0x9a3   : > { %11829 = vmatpush1.bf16.msra.mxu1 %v11828_v22  ;;  %v11870_v22 = vpack.c.bf16 %v5755_v42, %v5751_v58  ;;  %v8663_v58 = vld [vmem:[%s17593_s10 + $0x5e8] sm:$0xff] }
 0x9a4   : > { %11831 = vmatprep.subr.bf16.mxu1 %v11830_v15  ;;  %v5750_v15 = vld [vmem:[%s17593_s10 + $0x150] sm:$0xff] }
 0x9a5   : > { %v11872_v57 = vpack.c.bf16 %v5754_v23, %v5750_v15  ;;  %v8662_v15 = vld [vmem:[%s17593_s10 + $0x5e0] sm:$0xff]  ;;  %v8605_v23 = vld [vmem:[%s17593_s10 + $0x418] sm:$0xff] }
 0x9a7   : > { %11833 = vmatpush1.bf16.msra.mxu1 %v11832_v49  ;;  %v11874_v49 = vpack.c.bf16 %v5763_v39, %v5759_v47  ;;  %v8609_v47 = vld [vmem:[%s17593_s10 + $0x438] sm:$0xff] }
 0x9a8   : > { %11835 = vmatprep.subr.bf16.mxu1 %v11834_v43  ;;  %v5758_v43 = vld [vmem:[%s17593_s10 + $0x190] sm:$0xff] }
 0x9a9   : > { %v11876_v44 = vpack.c.bf16 %v5762_v40, %v5758_v43  ;;  %v8608_v43 = vld [vmem:[%s17593_s10 + $0x430] sm:$0xff]  ;;  %v8613_v40 = vld [vmem:[%s17593_s10 + $0x458] sm:$0xff] }
 0x9ab   : > { %11837 = vmatpush1.bf16.msra.mxu1 %v11836_v46  ;;  %v11878_v46 = vpack.c.bf16 %v5771_v52, %v5767_v13  ;;  %v8617_v13 = vld [vmem:[%s17593_s10 + $0x478] sm:$0xff] }
 0x9ac   : > { %11839 = vmatprep.subr.bf16.mxu1 %v11838_v60  ;;  %v5766_v60 = vld [vmem:[%s17593_s10 + $0x1d0] sm:$0xff] }
 0x9ad   : > { %v11880_v16 = vpack.c.bf16 %v5770_v50, %v5766_v60  ;;  %v8612_v60 = vld [vmem:[%s17593_s10 + $0x450] sm:$0xff] }
 0x9ae   : > { %v8616_v50 = vld [vmem:[%s17593_s10 + $0x470] sm:$0xff] }
 0x9af   : > { %11841 = vmatpush1.bf16.msra.mxu1 %v11840_v7  ;;  %v11882_v7 = vpack.c.bf16 %v8607_v48, %v8603_v33  ;;  %v8621_v33 = vld [vmem:[%s17593_s10 + $0x498] sm:$0xff] }
 0x9b0   : > { %11843 = vmatprep.subr.bf16.mxu1 %v11842_v5  ;;  %v8602_v5 = vld [vmem:[%s17593_s10 + $0x400] sm:$0xff]  ;;  %v8625_v48 = vld [vmem:[%s17593_s10 + $0x4b8] sm:$0xff] }
 0x9b1   : > { %v11884_v25 = vpack.c.bf16 %v8606_v53, %v8602_v5  ;;  %v8620_v5 = vld [vmem:[%s17593_s10 + $0x490] sm:$0xff] }
 0x9b2   : > { %v8624_v53 = vld [vmem:[%s17593_s10 + $0x4b0] sm:$0xff] }
 0x9b3   : > { %11845 = vmatpush1.bf16.msra.mxu1 %v11844_v19  ;;  %v11886_v19 = vpack.c.bf16 %v8615_v59, %v8611_v37  ;;  %v8629_v37 = vld [vmem:[%s17593_s10 + $0x4d8] sm:$0xff] }
 0x9b4   : > { %11847 = vmatprep.subr.bf16.mxu1 %v11846_v45  ;;  %v8610_v45 = vld [vmem:[%s17593_s10 + $0x440] sm:$0xff]  ;;  %v8633_v59 = vld [vmem:[%s17593_s10 + $0x4f8] sm:$0xff] }
 0x9b5   : > { %v11888_v27 = vpack.c.bf16 %v8614_v61, %v8610_v45  ;;  %v8628_v45 = vld [vmem:[%s17593_s10 + $0x4d0] sm:$0xff] }
 0x9b6   : > { %v8632_v61 = vld [vmem:[%s17593_s10 + $0x4f0] sm:$0xff] }
 0x9b7   : > { %11849 = vmatpush1.bf16.msra.mxu1 %v11848_v4  ;;  %v11890_v4 = vpack.c.bf16 %v8623_v1, %v8619_v14  ;;  %v8637_v14 = vld [vmem:[%s17593_s10 + $0x518] sm:$0xff] }
 0x9b8   : > { %11851 = vmatprep.subr.bf16.mxu1 %v11850_v20  ;;  %v8618_v20 = vld [vmem:[%s17593_s10 + $0x480] sm:$0xff]  ;;  %v8641_v1 = vld [vmem:[%s17593_s10 + $0x538] sm:$0xff] }
 0x9b9   : > { %v11892_v2 = vpack.c.bf16 %v8622_v54, %v8618_v20  ;;  %v8636_v20 = vld [vmem:[%s17593_s10 + $0x510] sm:$0xff] }
 0x9ba   : > { %6047 = vmatmul.mubr.f32.vlgmr.msra.gmra.mrb[66].mxu1 %v15655_v10  ;;  %v8640_v54 = vld [vmem:[%s17593_s10 + $0x530] sm:$0xff] }
 0x9bb   : > { %11853 = vmatpush1.bf16.msra.mxu1 %v11852_v18  ;;  %6117 = vmatprep.mubr.f32.mxu1 %v12683_v9  ;;  %v11894_v18 = vpack.c.bf16 %v8631_v31, %v8627_v41  ;;  %v8645_v41 = vld [vmem:[%s17593_s10 + $0x558] sm:$0xff] }
 0x9bc   : > { %11855 = vmatprep.subr.bf16.mxu1 %v11854_v12  ;;  %v8626_v12 = vld [vmem:[%s17593_s10 + $0x4c0] sm:$0xff]  ;;  %v8649_v31 = vld [vmem:[%s17593_s10 + $0x578] sm:$0xff] }
 0x9bd   : > { %v11896_v35 = vpack.c.bf16 %v8630_v32, %v8626_v12  ;;  %v8644_v12 = vld [vmem:[%s17593_s10 + $0x550] sm:$0xff] }
 0x9be   : > { %v8648_v32 = vld [vmem:[%s17593_s10 + $0x570] sm:$0xff] }
 0x9bf   : > { %11857 = vmatpush1.bf16.msra.mxu1 %v11856_v62  ;;  %v11898_v62 = vpack.c.bf16 %v8639_v29, %v8635_v63  ;;  %v8653_v63 = vld [vmem:[%s17593_s10 + $0x598] sm:$0xff] }
 0x9c0   : > { %11859 = vmatprep.subr.bf16.mxu1 %v11858_v26  ;;  %v8634_v26 = vld [vmem:[%s17593_s10 + $0x500] sm:$0xff]  ;;  %v8657_v29 = vld [vmem:[%s17593_s10 + $0x5b8] sm:$0xff] }
 0x9c1   : > { %v11900_v8 = vpack.c.bf16 %v8638_v51, %v8634_v26  ;;  %v8652_v26 = vld [vmem:[%s17593_s10 + $0x590] sm:$0xff] }
 0x9c2   : > { %v8656_v51 = vld [vmem:[%s17593_s10 + $0x5b0] sm:$0xff] }
 0x9c3   : > { %11861 = vmatpush1.bf16.msra.mxu1 %v11860_v6  ;;  %v11902_v6 = vpack.c.bf16 %v8647_v0, %v8643_v55  ;;  %v8661_v55 = vld [vmem:[%s17593_s10 + $0x5d8] sm:$0xff] }
 0x9c4   : > { %11863 = vmatprep.subr.bf16.mxu1 %v11862_v34  ;;  %v8642_v34 = vld [vmem:[%s17593_s10 + $0x540] sm:$0xff]  ;;  %v8665_v0 = vld [vmem:[%s17593_s10 + $0x5f8] sm:$0xff] }
 0x9c5   : > { %v11904_v30 = vpack.c.bf16 %v8646_v11, %v8642_v34  ;;  %v8660_v34 = vld [vmem:[%s17593_s10 + $0x5d0] sm:$0xff] }
 0x9c6   : > { %v8664_v11 = vld [vmem:[%s17593_s10 + $0x5f0] sm:$0xff] }
 0x9c7   : > { %11865 = vmatpush1.bf16.msra.mxu1 %v11864_v56  ;;  %v11906_v56 = vpack.c.bf16 %v8655_v38, %v8651_v3  ;;  %v8667_v3 = vld [vmem:[%s17593_s10 + $0x608] sm:$0xff] }
 0x9c8   : > { %11867 = vmatprep.subr.bf16.mxu1 %v11866_v36  ;;  %v8650_v36 = vld [vmem:[%s17593_s10 + $0x580] sm:$0xff]  ;;  %v8671_v38 = vld [vmem:[%s17593_s10 + $0x628] sm:$0xff] }
 0x9c9   : > { %v11908_v42 = vpack.c.bf16 %v8654_v17, %v8650_v36  ;;  %v8666_v36 = vld [vmem:[%s17593_s10 + $0x600] sm:$0xff] }
 0x9ca   : > { %v8670_v17 = vld [vmem:[%s17593_s10 + $0x620] sm:$0xff] }
 0x9cb   : > { %11869 = vmatpush1.bf16.msra.mxu1 %v11868_v24  ;;  %v11910_v24 = vpack.c.bf16 %v8663_v58, %v8659_v21  ;;  %v8675_v21 = vld [vmem:[%s17593_s10 + $0x648] sm:$0xff] }
 0x9cc   : > { %11871 = vmatprep.subr.bf16.mxu1 %v11870_v22  ;;  %v8658_v22 = vld [vmem:[%s17593_s10 + $0x5c0] sm:$0xff]  ;;  %v8679_v58 = vld [vmem:[%s17593_s10 + $0x668] sm:$0xff] }
 0x9cd   : > { %v11912_v39 = vpack.c.bf16 %v8662_v15, %v8658_v22  ;;  %v8674_v22 = vld [vmem:[%s17593_s10 + $0x640] sm:$0xff] }
 0x9ce   : > { %v8678_v15 = vld [vmem:[%s17593_s10 + $0x660] sm:$0xff] }
 0x9cf   : > { %11873 = vmatpush1.bf16.msra.mxu1 %v11872_v57  ;;  %v11914_v57 = vpack.c.bf16 %v8609_v47, %v8605_v23  ;;  %v8683_v23 = vld [vmem:[%s17593_s10 + $0x688] sm:$0xff] }
 0x9d0   : > { %11875 = vmatprep.subr.bf16.mxu1 %v11874_v49  ;;  %v8604_v49 = vld [vmem:[%s17593_s10 + $0x410] sm:$0xff]  ;;  %v8687_v47 = vld [vmem:[%s17593_s10 + $0x6a8] sm:$0xff] }
 0x9d1   : > { %v11916_v52 = vpack.c.bf16 %v8608_v43, %v8604_v49  ;;  %v8682_v49 = vld [vmem:[%s17593_s10 + $0x680] sm:$0xff] }
 0x9d2   : > { %v8686_v43 = vld [vmem:[%s17593_s10 + $0x6a0] sm:$0xff] }
 0x9d3   : > { %11877 = vmatpush1.bf16.msra.mxu1 %v11876_v44  ;;  %v6189_v44 = vrot.slane %v15655_v10, 2 }
 0x9d4   : > { %11879 = vmatprep.subr.bf16.mxu1 %v11878_v46  ;;  %v11918_v46 = vpack.c.bf16 %v8617_v13, %v8613_v40  ;;  %v8691_v40 = vld [vmem:[%s17593_s10 + $0x6c8] sm:$0xff] }
 0x9d5   : > { %v8695_v13 = vld [vmem:[%s17593_s10 + $0x6e8] sm:$0xff] }
 0x9d7   : > { %11881 = vmatpush1.bf16.msra.mxu1 %v11880_v16  ;;  %v11920_v16 = vpack.c.bf16 %v8616_v50, %v8612_v60  ;;  %v8694_v60 = vld [vmem:[%s17593_s10 + $0x6e0] sm:$0xff]  ;;  %v8699_v50 = vld [vmem:[%s17593_s10 + $0x708] sm:$0xff] }
 0x9d8   : > { %11883 = vmatprep.subr.bf16.mxu1 %v11882_v7  ;;  %v11922_v7 = vpack.c.bf16 %v8625_v48, %v8621_v33  ;;  %v8703_v33 = vld [vmem:[%s17593_s10 + $0x728] sm:$0xff] }
 0x9da   : > { %6118 = vmatmul.mubr.f32.vlgmr.msra.gmra.mrb[68].mxu1 %v15655_v10 }
 0x9db   : > { %11885 = vmatpush1.bf16.msra.mxu1 %v11884_v25  ;;  %6255 = vmatprep.mubr.f32.mxu1 %v12683_v9  ;;  %v11924_v25 = vpack.c.bf16 %v8624_v53, %v8620_v5  ;;  %v8702_v5 = vld [vmem:[%s17593_s10 + $0x720] sm:$0xff]  ;;  %v8707_v53 = vld [vmem:[%s17593_s10 + $0x748] sm:$0xff] }
 0x9dc   : > { %11887 = vmatprep.subr.bf16.mxu1 %v11886_v19  ;;  %v11926_v19 = vpack.c.bf16 %v8633_v59, %v8629_v37  ;;  %v8711_v37 = vld [vmem:[%s17593_s10 + $0x768] sm:$0xff] }
 0x9df   : > { %11889 = vmatpush1.bf16.msra.mxu1 %v11888_v27  ;;  %v11928_v27 = vpack.c.bf16 %v8632_v61, %v8628_v45  ;;  %v8710_v45 = vld [vmem:[%s17593_s10 + $0x760] sm:$0xff]  ;;  %v8715_v61 = vld [vmem:[%s17593_s10 + $0x788] sm:$0xff] }
 0x9e0   : > { %11891 = vmatprep.subr.bf16.mxu1 %v11890_v4  ;;  %v11930_v4 = vpack.c.bf16 %v8641_v1, %v8637_v14  ;;  %v8719_v14 = vld [vmem:[%s17593_s10 + $0x7a8] sm:$0xff] }
 0x9e3   : > { %11893 = vmatpush1.bf16.msra.mxu1 %v11892_v2  ;;  %v11932_v2 = vpack.c.bf16 %v8640_v54, %v8636_v20  ;;  %v8718_v20 = vld [vmem:[%s17593_s10 + $0x7a0] sm:$0xff]  ;;  %v8723_v54 = vld [vmem:[%s17593_s10 + $0x7c8] sm:$0xff] }
 0x9e4   : > { %11895 = vmatprep.subr.bf16.mxu1 %v11894_v18  ;;  %v11934_v18 = vpack.c.bf16 %v8649_v31, %v8645_v41  ;;  %v8727_v41 = vld [vmem:[%s17593_s10 + $0x7e8] sm:$0xff] }
 0x9e7   : > { %11897 = vmatpush1.bf16.msra.mxu1 %v11896_v35  ;;  %v11936_v35 = vpack.c.bf16 %v8648_v32, %v8644_v12  ;;  %v8726_v12 = vld [vmem:[%s17593_s10 + $0x7e0] sm:$0xff]  ;;  %v8669_v32 = vld [vmem:[%s17593_s10 + $0x618] sm:$0xff] }
 0x9e8   : > { %11899 = vmatprep.subr.bf16.mxu1 %v11898_v62  ;;  %v11938_v62 = vpack.c.bf16 %v8657_v29, %v8653_v63  ;;  %v8673_v63 = vld [vmem:[%s17593_s10 + $0x638] sm:$0xff] }
 0x9eb   : > { %11901 = vmatpush1.bf16.msra.mxu1 %v11900_v8  ;;  %v11940_v8 = vpack.c.bf16 %v8656_v51, %v8652_v26  ;;  %v8672_v26 = vld [vmem:[%s17593_s10 + $0x630] sm:$0xff]  ;;  %v8677_v51 = vld [vmem:[%s17593_s10 + $0x658] sm:$0xff] }
 0x9ec   : > { %11903 = vmatprep.subr.bf16.mxu1 %v11902_v6  ;;  %v11942_v6 = vpack.c.bf16 %v8665_v0, %v8661_v55  ;;  %v8681_v55 = vld [vmem:[%s17593_s10 + $0x678] sm:$0xff] }
 0x9ef   : > { %11905 = vmatpush1.bf16.msra.mxu1 %v11904_v30  ;;  %v11944_v30 = vpack.c.bf16 %v8664_v11, %v8660_v34  ;;  %v8676_v34 = vld [vmem:[%s17593_s10 + $0x650] sm:$0xff] }
 0x9f0   : > { %11907 = vmatprep.subr.bf16.mxu1 %v11906_v56  ;;  %v11946_v56 = vpack.c.bf16 %v8671_v38, %v8667_v3  ;;  %v8680_v11 = vld [vmem:[%s17593_s10 + $0x670] sm:$0xff]  ;;  %v8685_v3 = vld [vmem:[%s17593_s10 + $0x698] sm:$0xff] }
 0x9f1   : > { %v8689_v38 = vld [vmem:[%s17593_s10 + $0x6b8] sm:$0xff] }
 0x9f3   : > { %11909 = vmatpush1.bf16.msra.mxu1 %v11908_v42  ;;  %v11948_v42 = vpack.c.bf16 %v8670_v17, %v8666_v36  ;;  %v8684_v36 = vld [vmem:[%s17593_s10 + $0x690] sm:$0xff] }
 0x9f4   : > { %11911 = vmatprep.subr.bf16.mxu1 %v11910_v24  ;;  %v11950_v24 = vpack.c.bf16 %v8679_v58, %v8675_v21  ;;  %v8688_v17 = vld [vmem:[%s17593_s10 + $0x6b0] sm:$0xff]  ;;  %v8693_v21 = vld [vmem:[%s17593_s10 + $0x6d8] sm:$0xff] }
 0x9f5   : > { %v8697_v58 = vld [vmem:[%s17593_s10 + $0x6f8] sm:$0xff] }
 0x9f7   : > { %11913 = vmatpush1.bf16.msra.mxu1 %v11912_v39  ;;  %v11952_v39 = vpack.c.bf16 %v8678_v15, %v8674_v22  ;;  %v8692_v22 = vld [vmem:[%s17593_s10 + $0x6d0] sm:$0xff] }
 0x9f8   : > { %11915 = vmatprep.subr.bf16.mxu1 %v11914_v57  ;;  %v11954_v57 = vpack.c.bf16 %v8687_v47, %v8683_v23  ;;  %v8696_v15 = vld [vmem:[%s17593_s10 + $0x6f0] sm:$0xff]  ;;  %v8701_v23 = vld [vmem:[%s17593_s10 + $0x718] sm:$0xff] }
 0x9f9   : > { %v8705_v47 = vld [vmem:[%s17593_s10 + $0x738] sm:$0xff] }
 0x9fa   : > { %6256 = vmatmul.mubr.f32.vlgmr.msra.gmra.mrb[66].mxu1 %v6189_v44 }
 0x9fb   : > { %11917 = vmatpush1.bf16.msra.mxu1 %v11916_v52  ;;  %6326 = vmatprep.mubr.f32.mxu1 %v12683_v9  ;;  %v11956_v52 = vpack.c.bf16 %v8686_v43, %v8682_v49  ;;  %v8700_v49 = vld [vmem:[%s17593_s10 + $0x710] sm:$0xff] }
 0x9fc   : > { %11919 = vmatprep.subr.bf16.mxu1 %v11918_v46  ;;  %v8690_v46 = vld [vmem:[%s17593_s10 + $0x6c0] sm:$0xff]  ;;  %v8704_v43 = vld [vmem:[%s17593_s10 + $0x730] sm:$0xff] }
 0x9fd   : > { %v11960_v48 = vpack.c.bf16 %v8694_v60, %v8690_v46  ;;  %v8708_v46 = vld [vmem:[%s17593_s10 + $0x750] sm:$0xff] }
 0x9fe   : > { %v8712_v60 = vld [vmem:[%s17593_s10 + $0x770] sm:$0xff] }
 0x9ff   : > { %11921 = vmatpush1.bf16.msra.mxu1 %v11920_v16  ;;  %v11962_v16 = vpack.c.bf16 %v8703_v33, %v8699_v50  ;;  %v8717_v50 = vld [vmem:[%s17593_s10 + $0x798] sm:$0xff] }
 0xa00   : > { %11923 = vmatprep.subr.bf16.mxu1 %v11922_v7  ;;  %v8698_v7 = vld [vmem:[%s17593_s10 + $0x700] sm:$0xff]  ;;  %v8721_v33 = vld [vmem:[%s17593_s10 + $0x7b8] sm:$0xff] }
 0xa01   : > { %v11964_v59 = vpack.c.bf16 %v8702_v5, %v8698_v7  ;;  %v8716_v7 = vld [vmem:[%s17593_s10 + $0x790] sm:$0xff] }
 0xa02   : > { %v8720_v5 = vld [vmem:[%s17593_s10 + $0x7b0] sm:$0xff] }
 0xa03   : > { %11925 = vmatpush1.bf16.msra.mxu1 %v11924_v25  ;;  %v11966_v25 = vpack.c.bf16 %v8711_v37, %v8707_v53  ;;  %v8725_v53 = vld [vmem:[%s17593_s10 + $0x7d8] sm:$0xff] }
 0xa04   : > { %11927 = vmatprep.subr.bf16.mxu1 %v11926_v19  ;;  %v8706_v19 = vld [vmem:[%s17593_s10 + $0x740] sm:$0xff]  ;;  %v8729_v37 = vld [vmem:[%s17593_s10 + $0x7f8] sm:$0xff] }
 0xa05   : > { %v11968_v1 = vpack.c.bf16 %v8710_v45, %v8706_v19  ;;  %v8724_v19 = vld [vmem:[%s17593_s10 + $0x7d0] sm:$0xff] }
 0xa06   : > { %v8728_v45 = vld [vmem:[%s17593_s10 + $0x7f0] sm:$0xff] }
 0xa07   : > { %11929 = vmatpush1.bf16.msra.mxu1 %v11928_v27  ;;  %v11970_v27 = vpack.c.bf16 %v8719_v14, %v8715_v61  ;;  %v8731_v61 = vld [vmem:[%s17593_s10 + $0x808] sm:$0xff] }
 0xa08   : > { %11931 = vmatprep.subr.bf16.mxu1 %v11930_v4  ;;  %v8714_v4 = vld [vmem:[%s17593_s10 + $0x780] sm:$0xff]  ;;  %v8735_v14 = vld [vmem:[%s17593_s10 + $0x828] sm:$0xff] }
 0xa09   : > { %v11972_v31 = vpack.c.bf16 %v8718_v20, %v8714_v4  ;;  %v8730_v4 = vld [vmem:[%s17593_s10 + $0x800] sm:$0xff] }
 0xa0a   : > { %v8734_v20 = vld [vmem:[%s17593_s10 + $0x820] sm:$0xff] }
 0xa0b   : > { %11933 = vmatpush1.bf16.msra.mxu1 %v11932_v2  ;;  %v11974_v2 = vpack.c.bf16 %v8727_v41, %v8723_v54  ;;  %v8739_v54 = vld [vmem:[%s17593_s10 + $0x848] sm:$0xff] }
 0xa0c   : > { %11935 = vmatprep.subr.bf16.mxu1 %v11934_v18  ;;  %v8722_v18 = vld [vmem:[%s17593_s10 + $0x7c0] sm:$0xff]  ;;  %v8743_v41 = vld [vmem:[%s17593_s10 + $0x868] sm:$0xff] }
 0xa0d   : > { %v11976_v29 = vpack.c.bf16 %v8726_v12, %v8722_v18  ;;  %v8738_v18 = vld [vmem:[%s17593_s10 + $0x840] sm:$0xff] }
 0xa0e   : > { %v8742_v12 = vld [vmem:[%s17593_s10 + $0x860] sm:$0xff] }
 0xa0f   : > { %11937 = vmatpush1.bf16.msra.mxu1 %v11936_v35  ;;  %v11978_v35 = vpack.c.bf16 %v8673_v63, %v8669_v32  ;;  %v8747_v32 = vld [vmem:[%s17593_s10 + $0x888] sm:$0xff] }
 0xa10   : > { %11939 = vmatprep.subr.bf16.mxu1 %v11938_v62  ;;  %v8668_v62 = vld [vmem:[%s17593_s10 + $0x610] sm:$0xff]  ;;  %v8751_v63 = vld [vmem:[%s17593_s10 + $0x8a8] sm:$0xff] }
 0xa11   : > { %v11980_v0 = vpack.c.bf16 %v8672_v26, %v8668_v62  ;;  %v8746_v62 = vld [vmem:[%s17593_s10 + $0x880] sm:$0xff] }
 0xa12   : > { %v8750_v26 = vld [vmem:[%s17593_s10 + $0x8a0] sm:$0xff] }
 0xa13   : > { %11941 = vmatpush1.bf16.msra.mxu1 %v11940_v8  ;;  %v6402_v8 = vrot.slane %v15655_v10, 3 }
 0xa14   : > { %11943 = vmatprep.subr.bf16.mxu1 %v11942_v6  ;;  %v11982_v6 = vpack.c.bf16 %v8681_v55, %v8677_v51  ;;  %v8755_v51 = vld [vmem:[%s17593_s10 + $0x8c8] sm:$0xff] }
 0xa15   : > { %v8759_v55 = vld [vmem:[%s17593_s10 + $0x8e8] sm:$0xff] }
 0xa17   : > { %11945 = vmatpush1.bf16.msra.mxu1 %v11944_v30  ;;  %v11984_v30 = vpack.c.bf16 %v8680_v11, %v8676_v34  ;;  %v8758_v34 = vld [vmem:[%s17593_s10 + $0x8e0] sm:$0xff]  ;;  %v8763_v11 = vld [vmem:[%s17593_s10 + $0x908] sm:$0xff] }
 0xa18   : > { %11947 = vmatprep.subr.bf16.mxu1 %v11946_v56  ;;  %v11986_v56 = vpack.c.bf16 %v8689_v38, %v8685_v3  ;;  %v8767_v3 = vld [vmem:[%s17593_s10 + $0x928] sm:$0xff] }
 0xa1a   : > { %6327 = vmatmul.mubr.f32.vlgmr.msra.gmra.mrb[68].mxu1 %v6189_v44  ;;  %v11958_v44 = vpack.c.bf16 %v8695_v13, %v8691_v40  ;;  %v8709_v40 = vld [vmem:[%s17593_s10 + $0x758] sm:$0xff] }
 0xa1b   : > { %11949 = vmatpush1.bf16.msra.mxu1 %v11948_v42  ;;  %6468 = vmatprep.mubr.f32.mxu1 %v12683_v9  ;;  %v11988_v42 = vpack.c.bf16 %v8688_v17, %v8684_v36  ;;  %v8713_v13 = vld [vmem:[%s17593_s10 + $0x778] sm:$0xff]  ;;  %v8766_v36 = vld [vmem:[%s17593_s10 + $0x920] sm:$0xff]  ;;  %v8771_v17 = vld [vmem:[%s17593_s10 + $0x948] sm:$0xff] }
 0xa1c   : > { %11951 = vmatprep.subr.bf16.mxu1 %v11950_v24  ;;  %v11990_v24 = vpack.c.bf16 %v8697_v58, %v8693_v21  ;;  %v8775_v21 = vld [vmem:[%s17593_s10 + $0x968] sm:$0xff] }
 0xa1f   : > { %11953 = vmatpush1.bf16.msra.mxu1 %v11952_v39  ;;  %v11992_v39 = vpack.c.bf16 %v8696_v15, %v8692_v22  ;;  %v8774_v22 = vld [vmem:[%s17593_s10 + $0x960] sm:$0xff]  ;;  %v8779_v15 = vld [vmem:[%s17593_s10 + $0x988] sm:$0xff] }
 0xa20   : > { %11955 = vmatprep.subr.bf16.mxu1 %v11954_v57  ;;  %v11994_v57 = vpack.c.bf16 %v8705_v47, %v8701_v23  ;;  %v8783_v23 = vld [vmem:[%s17593_s10 + $0x9a8] sm:$0xff] }
 0xa23   : > { %11957 = vmatpush1.bf16.msra.mxu1 %v11956_v52  ;;  %v11996_v52 = vpack.c.bf16 %v8704_v43, %v8700_v49  ;;  %v8782_v49 = vld [vmem:[%s17593_s10 + $0x9a0] sm:$0xff]  ;;  %v8787_v43 = vld [vmem:[%s17593_s10 + $0x9c8] sm:$0xff] }
 0xa24   : > { %11959 = vmatprep.subr.bf16.mxu1 %v11958_v44  ;;  %v11998_v44 = vpack.c.bf16 %v8713_v13, %v8709_v40  ;;  %v8791_v40 = vld [vmem:[%s17593_s10 + $0x9e8] sm:$0xff] }
 0xa27   : > { %11961 = vmatpush1.bf16.msra.mxu1 %v11960_v48  ;;  %v12000_v48 = vpack.c.bf16 %v8712_v60, %v8708_v46  ;;  %v8790_v46 = vld [vmem:[%s17593_s10 + $0x9e0] sm:$0xff]  ;;  %v8733_v60 = vld [vmem:[%s17593_s10 + $0x818] sm:$0xff] }
 0xa28   : > { %11963 = vmatprep.subr.bf16.mxu1 %v11962_v16  ;;  %v12002_v16 = vpack.c.bf16 %v8721_v33, %v8717_v50  ;;  %v8737_v50 = vld [vmem:[%s17593_s10 + $0x838] sm:$0xff] }
 0xa2b   : > { %11965 = vmatpush1.bf16.msra.mxu1 %v11964_v59  ;;  %v12004_v59 = vpack.c.bf16 %v8720_v5, %v8716_v7  ;;  %v8736_v7 = vld [vmem:[%s17593_s10 + $0x830] sm:$0xff]  ;;  %v8741_v5 = vld [vmem:[%s17593_s10 + $0x858] sm:$0xff] }
 0xa2c   : > { %11967 = vmatprep.subr.bf16.mxu1 %v11966_v25  ;;  %v12006_v25 = vpack.c.bf16 %v8729_v37, %v8725_v53  ;;  %v8745_v53 = vld [vmem:[%s17593_s10 + $0x878] sm:$0xff] }
 0xa2f   : > { %11969 = vmatpush1.bf16.msra.mxu1 %v11968_v1  ;;  %v12008_v1 = vpack.c.bf16 %v8728_v45, %v8724_v19  ;;  %v8740_v19 = vld [vmem:[%s17593_s10 + $0x850] sm:$0xff] }
 0xa30   : > { %11971 = vmatprep.subr.bf16.mxu1 %v11970_v27  ;;  %v12010_v27 = vpack.c.bf16 %v8735_v14, %v8731_v61  ;;  %v8744_v45 = vld [vmem:[%s17593_s10 + $0x870] sm:$0xff]  ;;  %v8749_v61 = vld [vmem:[%s17593_s10 + $0x898] sm:$0xff] }
 0xa31   : > { %v8753_v14 = vld [vmem:[%s17593_s10 + $0x8b8] sm:$0xff] }
 0xa33   : > { %11973 = vmatpush1.bf16.msra.mxu1 %v11972_v31  ;;  %v12012_v31 = vpack.c.bf16 %v8734_v20, %v8730_v4  ;;  %v8748_v4 = vld [vmem:[%s17593_s10 + $0x890] sm:$0xff] }
 0xa34   : > { %11975 = vmatprep.subr.bf16.mxu1 %v11974_v2  ;;  %v12014_v2 = vpack.c.bf16 %v8743_v41, %v8739_v54  ;;  %v8752_v20 = vld [vmem:[%s17593_s10 + $0x8b0] sm:$0xff]  ;;  %v8757_v54 = vld [vmem:[%s17593_s10 + $0x8d8] sm:$0xff] }
 0xa35   : > { %v8761_v41 = vld [vmem:[%s17593_s10 + $0x8f8] sm:$0xff] }
 0xa37   : > { %11977 = vmatpush1.bf16.msra.mxu1 %v11976_v29  ;;  %v12016_v29 = vpack.c.bf16 %v8742_v12, %v8738_v18  ;;  %v8756_v18 = vld [vmem:[%s17593_s10 + $0x8d0] sm:$0xff] }
 0xa38   : > { %11979 = vmatprep.subr.bf16.mxu1 %v11978_v35  ;;  %v12018_v35 = vpack.c.bf16 %v8751_v63, %v8747_v32  ;;  %v8760_v12 = vld [vmem:[%s17593_s10 + $0x8f0] sm:$0xff]  ;;  %v8765_v32 = vld [vmem:[%s17593_s10 + $0x918] sm:$0xff] }
 0xa39   : > { %v8769_v63 = vld [vmem:[%s17593_s10 + $0x938] sm:$0xff] }
 0xa3a   : > { %6469 = vmatmul.mubr.f32.vlgmr.msra.gmra.mrb[66].mxu1 %v6402_v8 }
 0xa3b   : > { %11981 = vmatpush1.bf16.msra.mxu1 %v11980_v0  ;;  %6539 = vmatprep.mubr.f32.mxu1 %v12683_v9  ;;  %v12020_v0 = vpack.c.bf16 %v8750_v26, %v8746_v62  ;;  %v8764_v62 = vld [vmem:[%s17593_s10 + $0x910] sm:$0xff] }
 0xa3c   : > { %11983 = vmatprep.subr.bf16.mxu1 %v11982_v6  ;;  %v8754_v6 = vld [vmem:[%s17593_s10 + $0x8c0] sm:$0xff]  ;;  %v8768_v26 = vld [vmem:[%s17593_s10 + $0x930] sm:$0xff] }
 0xa3d   : > { %v12024_v38 = vpack.c.bf16 %v8758_v34, %v8754_v6  ;;  %v8772_v6 = vld [vmem:[%s17593_s10 + $0x950] sm:$0xff] }
 0xa3e   : > { %v8776_v34 = vld [vmem:[%s17593_s10 + $0x970] sm:$0xff] }
 0xa3f   : > { %11985 = vmatpush1.bf16.msra.mxu1 %v11984_v30  ;;  %v12026_v30 = vpack.c.bf16 %v8767_v3, %v8763_v11  ;;  %v8781_v11 = vld [vmem:[%s17593_s10 + $0x998] sm:$0xff] }
 0xa40   : > { %11987 = vmatprep.subr.bf16.mxu1 %v11986_v56  ;;  %v8762_v56 = vld [vmem:[%s17593_s10 + $0x900] sm:$0xff]  ;;  %v8785_v3 = vld [vmem:[%s17593_s10 + $0x9b8] sm:$0xff] }
 0xa41   : > { %v12028_v58 = vpack.c.bf16 %v8766_v36, %v8762_v56  ;;  %v8780_v56 = vld [vmem:[%s17593_s10 + $0x990] sm:$0xff] }
 0xa42   : > { %v8784_v36 = vld [vmem:[%s17593_s10 + $0x9b0] sm:$0xff] }
 0xa43   : > { %11989 = vmatpush1.bf16.msra.mxu1 %v11988_v42  ;;  %v12030_v42 = vpack.c.bf16 %v8775_v21, %v8771_v17  ;;  %v8789_v17 = vld [vmem:[%s17593_s10 + $0x9d8] sm:$0xff] }
 0xa44   : > { %11991 = vmatprep.subr.bf16.mxu1 %v11990_v24  ;;  %v8770_v24 = vld [vmem:[%s17593_s10 + $0x940] sm:$0xff]  ;;  %v8793_v21 = vld [vmem:[%s17593_s10 + $0x9f8] sm:$0xff] }
 0xa45   : > { %v12032_v47 = vpack.c.bf16 %v8774_v22, %v8770_v24  ;;  %v8788_v24 = vld [vmem:[%s17593_s10 + $0x9d0] sm:$0xff] }
 0xa46   : > { %v8792_v22 = vld [vmem:[%s17593_s10 + $0x9f0] sm:$0xff] }
 0xa47   : > { %11993 = vmatpush1.bf16.msra.mxu1 %v11992_v39  ;;  %v12034_v39 = vpack.c.bf16 %v8783_v23, %v8779_v15  ;;  %v8795_v15 = vld [vmem:[%s17593_s10 + $0xa08] sm:$0xff] }
 0xa48   : > { %11995 = vmatprep.subr.bf16.mxu1 %v11994_v57  ;;  %v8778_v57 = vld [vmem:[%s17593_s10 + $0x980] sm:$0xff]  ;;  %v8799_v23 = vld [vmem:[%s17593_s10 + $0xa28] sm:$0xff] }
 0xa49   : > { %v12036_v13 = vpack.c.bf16 %v8782_v49, %v8778_v57  ;;  %v8794_v57 = vld [vmem:[%s17593_s10 + $0xa00] sm:$0xff] }
 0xa4a   : > { %v8798_v49 = vld [vmem:[%s17593_s10 + $0xa20] sm:$0xff] }
 0xa4b   : > { %11997 = vmatpush1.bf16.msra.mxu1 %v11996_v52  ;;  %v12038_v52 = vpack.c.bf16 %v8791_v40, %v8787_v43  ;;  %v8803_v43 = vld [vmem:[%s17593_s10 + $0xa48] sm:$0xff] }
 0xa4c   : > { %11999 = vmatprep.subr.bf16.mxu1 %v11998_v44  ;;  %v8786_v44 = vld [vmem:[%s17593_s10 + $0x9c0] sm:$0xff]  ;;  %v8807_v40 = vld [vmem:[%s17593_s10 + $0xa68] sm:$0xff] }
 0xa4d   : > { %v12040_v33 = vpack.c.bf16 %v8790_v46, %v8786_v44  ;;  %v8802_v44 = vld [vmem:[%s17593_s10 + $0xa40] sm:$0xff] }
 0xa4e   : > { %v8806_v46 = vld [vmem:[%s17593_s10 + $0xa60] sm:$0xff] }
 0xa4f   : > { %12001 = vmatpush1.bf16.msra.mxu1 %v12000_v48  ;;  %v12042_v48 = vpack.c.bf16 %v8737_v50, %v8733_v60  ;;  %v8811_v60 = vld [vmem:[%s17593_s10 + $0xa88] sm:$0xff] }
 0xa50   : > { %12003 = vmatprep.subr.bf16.mxu1 %v12002_v16  ;;  %v8732_v16 = vld [vmem:[%s17593_s10 + $0x810] sm:$0xff]  ;;  %v8815_v50 = vld [vmem:[%s17593_s10 + $0xaa8] sm:$0xff] }
 0xa51   : > { %v12044_v37 = vpack.c.bf16 %v8736_v7, %v8732_v16  ;;  %v8810_v16 = vld [vmem:[%s17593_s10 + $0xa80] sm:$0xff] }
 0xa52   : > { %v8814_v7 = vld [vmem:[%s17593_s10 + $0xaa0] sm:$0xff] }
 0xa53   : > { %12005 = vmatpush1.bf16.msra.mxu1 %v12004_v59  ;;  %v6615_v59 = vrot.slane %v15655_v10, 4 }
 0xa54   : > { %12007 = vmatprep.subr.bf16.mxu1 %v12006_v25  ;;  %v12046_v25 = vpack.c.bf16 %v8745_v53, %v8741_v5  ;;  %v8819_v5 = vld [vmem:[%s17593_s10 + $0xac8] sm:$0xff] }
 0xa55   : > { %v8823_v53 = vld [vmem:[%s17593_s10 + $0xae8] sm:$0xff] }
 0xa57   : > { %12009 = vmatpush1.bf16.msra.mxu1 %v12008_v1  ;;  %v12048_v1 = vpack.c.bf16 %v8744_v45, %v8740_v19  ;;  %v8822_v19 = vld [vmem:[%s17593_s10 + $0xae0] sm:$0xff]  ;;  %v8827_v45 = vld [vmem:[%s17593_s10 + $0xb08] sm:$0xff] }
 0xa58   : > { %12011 = vmatprep.subr.bf16.mxu1 %v12010_v27  ;;  %v12050_v27 = vpack.c.bf16 %v8753_v14, %v8749_v61  ;;  %v8831_v61 = vld [vmem:[%s17593_s10 + $0xb28] sm:$0xff] }
 0xa5a   : > { %6540 = vmatmul.mubr.f32.vlgmr.msra.gmra.mrb[68].mxu1 %v6402_v8  ;;  %v12022_v8 = vpack.c.bf16 %v8759_v55, %v8755_v51  ;;  %v8773_v51 = vld [vmem:[%s17593_s10 + $0x958] sm:$0xff] }
 0xa5b   : > { %12013 = vmatpush1.bf16.msra.mxu1 %v12012_v31  ;;  %6681 = vmatprep.mubr.f32.mxu1 %v12683_v9  ;;  %v12052_v31 = vpack.c.bf16 %v8752_v20, %v8748_v4  ;;  %v8777_v55 = vld [vmem:[%s17593_s10 + $0x978] sm:$0xff]  ;;  %v8830_v4 = vld [vmem:[%s17593_s10 + $0xb20] sm:$0xff]  ;;  %v8835_v20 = vld [vmem:[%s17593_s10 + $0xb48] sm:$0xff] }
 0xa5c   : > { %12015 = vmatprep.subr.bf16.mxu1 %v12014_v2  ;;  %v12054_v2 = vpack.c.bf16 %v8761_v41, %v8757_v54  ;;  %v8839_v54 = vld [vmem:[%s17593_s10 + $0xb68] sm:$0xff] }
 0xa5f   : > { %12017 = vmatpush1.bf16.msra.mxu1 %v12016_v29  ;;  %v12056_v29 = vpack.c.bf16 %v8760_v12, %v8756_v18  ;;  %v8838_v18 = vld [vmem:[%s17593_s10 + $0xb60] sm:$0xff]  ;;  %v8843_v12 = vld [vmem:[%s17593_s10 + $0xb88] sm:$0xff] }
 0xa60   : > { %12019 = vmatprep.subr.bf16.mxu1 %v12018_v35  ;;  %v12058_v35 = vpack.c.bf16 %v8769_v63, %v8765_v32  ;;  %v8847_v32 = vld [vmem:[%s17593_s10 + $0xba8] sm:$0xff] }
 0xa63   : > { %12021 = vmatpush1.bf16.msra.mxu1 %v12020_v0  ;;  %v12060_v0 = vpack.c.bf16 %v8768_v26, %v8764_v62  ;;  %v8846_v62 = vld [vmem:[%s17593_s10 + $0xba0] sm:$0xff]  ;;  %v8851_v26 = vld [vmem:[%s17593_s10 + $0xbc8] sm:$0xff] }
 0xa64   : > { %12023 = vmatprep.subr.bf16.mxu1 %v12022_v8  ;;  %v12062_v8 = vpack.c.bf16 %v8777_v55, %v8773_v51  ;;  %v8855_v51 = vld [vmem:[%s17593_s10 + $0xbe8] sm:$0xff] }
 0xa67   : > { %12025 = vmatpush1.bf16.msra.mxu1 %v12024_v38  ;;  %v12064_v38 = vpack.c.bf16 %v8776_v34, %v8772_v6  ;;  %v8854_v6 = vld [vmem:[%s17593_s10 + $0xbe0] sm:$0xff]  ;;  %v8797_v34 = vld [vmem:[%s17593_s10 + $0xa18] sm:$0xff] }
 0xa68   : > { %12027 = vmatprep.subr.bf16.mxu1 %v12026_v30  ;;  %v12066_v30 = vpack.c.bf16 %v8785_v3, %v8781_v11  ;;  %v8801_v11 = vld [vmem:[%s17593_s10 + $0xa38] sm:$0xff] }
 0xa6b   : > { %12029 = vmatpush1.bf16.msra.mxu1 %v12028_v58  ;;  %v12068_v58 = vpack.c.bf16 %v8784_v36, %v8780_v56  ;;  %v8800_v56 = vld [vmem:[%s17593_s10 + $0xa30] sm:$0xff]  ;;  %v8805_v36 = vld [vmem:[%s17593_s10 + $0xa58] sm:$0xff] }
 0xa6c   : > { %12031 = vmatprep.subr.bf16.mxu1 %v12030_v42  ;;  %v12070_v42 = vpack.c.bf16 %v8793_v21, %v8789_v17  ;;  %v8809_v17 = vld [vmem:[%s17593_s10 + $0xa78] sm:$0xff] }
 0xa6f   : > { %12033 = vmatpush1.bf16.msra.mxu1 %v12032_v47  ;;  %v12072_v47 = vpack.c.bf16 %v8792_v22, %v8788_v24  ;;  %v8804_v24 = vld [vmem:[%s17593_s10 + $0xa50] sm:$0xff] }
 0xa70   : > { %12035 = vmatprep.subr.bf16.mxu1 %v12034_v39  ;;  %v12074_v39 = vpack.c.bf16 %v8799_v23, %v8795_v15  ;;  %v8808_v22 = vld [vmem:[%s17593_s10 + $0xa70] sm:$0xff]  ;;  %v8813_v15 = vld [vmem:[%s17593_s10 + $0xa98] sm:$0xff] }
 0xa71   : > { %v8817_v23 = vld [vmem:[%s17593_s10 + $0xab8] sm:$0xff] }
 0xa73   : > { %12037 = vmatpush1.bf16.msra.mxu1 %v12036_v13  ;;  %v12076_v13 = vpack.c.bf16 %v8798_v49, %v8794_v57  ;;  %v8812_v57 = vld [vmem:[%s17593_s10 + $0xa90] sm:$0xff] }
 0xa74   : > { %12039 = vmatprep.subr.bf16.mxu1 %v12038_v52  ;;  %v12078_v52 = vpack.c.bf16 %v8807_v40, %v8803_v43  ;;  %v8816_v49 = vld [vmem:[%s17593_s10 + $0xab0] sm:$0xff]  ;;  %v8821_v43 = vld [vmem:[%s17593_s10 + $0xad8] sm:$0xff] }
 0xa75   : > { %v8825_v40 = vld [vmem:[%s17593_s10 + $0xaf8] sm:$0xff] }
 0xa77   : > { %12041 = vmatpush1.bf16.msra.mxu1 %v12040_v33  ;;  %v12080_v33 = vpack.c.bf16 %v8806_v46, %v8802_v44  ;;  %v8820_v44 = vld [vmem:[%s17593_s10 + $0xad0] sm:$0xff] }
 0xa78   : > { %12043 = vmatprep.subr.bf16.mxu1 %v12042_v48  ;;  %v12082_v48 = vpack.c.bf16 %v8815_v50, %v8811_v60  ;;  %v8824_v46 = vld [vmem:[%s17593_s10 + $0xaf0] sm:$0xff]  ;;  %v8829_v60 = vld [vmem:[%s17593_s10 + $0xb18] sm:$0xff] }
 0xa79   : > { %v8833_v50 = vld [vmem:[%s17593_s10 + $0xb38] sm:$0xff] }
 0xa7a   : > { %6682 = vmatmul.mubr.f32.vlgmr.msra.gmra.mrb[66].mxu1 %v6615_v59 }
 0xa7b   : > { %12045 = vmatpush1.bf16.msra.mxu1 %v12044_v37  ;;  %6752 = vmatprep.mubr.f32.mxu1 %v12683_v9  ;;  %v12084_v37 = vpack.c.bf16 %v8814_v7, %v8810_v16  ;;  %v8828_v16 = vld [vmem:[%s17593_s10 + $0xb10] sm:$0xff] }
 0xa7c   : > { %12047 = vmatprep.subr.bf16.mxu1 %v12046_v25  ;;  %v8818_v25 = vld [vmem:[%s17593_s10 + $0xac0] sm:$0xff]  ;;  %v8832_v7 = vld [vmem:[%s17593_s10 + $0xb30] sm:$0xff] }
 0xa7d   : > { %v12088_v14 = vpack.c.bf16 %v8822_v19, %v8818_v25  ;;  %v8836_v25 = vld [vmem:[%s17593_s10 + $0xb50] sm:$0xff] }
 0xa7e   : > { %v8840_v19 = vld [vmem:[%s17593_s10 + $0xb70] sm:$0xff] }
 0xa7f   : > { %12049 = vmatpush1.bf16.msra.mxu1 %v12048_v1  ;;  %v12090_v1 = vpack.c.bf16 %v8831_v61, %v8827_v45  ;;  %v8845_v45 = vld [vmem:[%s17593_s10 + $0xb98] sm:$0xff] }
 0xa80   : > { %12051 = vmatprep.subr.bf16.mxu1 %v12050_v27  ;;  %v8826_v27 = vld [vmem:[%s17593_s10 + $0xb00] sm:$0xff]  ;;  %v8849_v61 = vld [vmem:[%s17593_s10 + $0xbb8] sm:$0xff] }
 0xa81   : > { %v12092_v41 = vpack.c.bf16 %v8830_v4, %v8826_v27  ;;  %v8844_v27 = vld [vmem:[%s17593_s10 + $0xb90] sm:$0xff] }
 0xa82   : > { %v8848_v4 = vld [vmem:[%s17593_s10 + $0xbb0] sm:$0xff] }
 0xa83   : > { %12053 = vmatpush1.bf16.msra.mxu1 %v12052_v31  ;;  %v12094_v31 = vpack.c.bf16 %v8839_v54, %v8835_v20  ;;  %v8853_v20 = vld [vmem:[%s17593_s10 + $0xbd8] sm:$0xff] }
 0xa84   : > { %12055 = vmatprep.subr.bf16.mxu1 %v12054_v2  ;;  %v8834_v2 = vld [vmem:[%s17593_s10 + $0xb40] sm:$0xff]  ;;  %v8857_v54 = vld [vmem:[%s17593_s10 + $0xbf8] sm:$0xff] }
 0xa85   : > { %v12096_v63 = vpack.c.bf16 %v8838_v18, %v8834_v2  ;;  %v8852_v2 = vld [vmem:[%s17593_s10 + $0xbd0] sm:$0xff] }
 0xa86   : > { %v8856_v18 = vld [vmem:[%s17593_s10 + $0xbf0] sm:$0xff] }
 0xa87   : > { %12057 = vmatpush1.bf16.msra.mxu1 %v12056_v29  ;;  %v12098_v29 = vpack.c.bf16 %v8847_v32, %v8843_v12  ;;  %v8859_v12 = vld [vmem:[%s17593_s10 + $0xc08] sm:$0xff] }
 0xa88   : > { %12059 = vmatprep.subr.bf16.mxu1 %v12058_v35  ;;  %v8842_v35 = vld [vmem:[%s17593_s10 + $0xb80] sm:$0xff]  ;;  %v8863_v32 = vld [vmem:[%s17593_s10 + $0xc28] sm:$0xff] }
 0xa89   : > { %v12100_v55 = vpack.c.bf16 %v8846_v62, %v8842_v35  ;;  %v8858_v35 = vld [vmem:[%s17593_s10 + $0xc00] sm:$0xff] }
 0xa8a   : > { %v8862_v62 = vld [vmem:[%s17593_s10 + $0xc20] sm:$0xff] }
 0xa8b   : > { %12061 = vmatpush1.bf16.msra.mxu1 %v12060_v0  ;;  %v12102_v0 = vpack.c.bf16 %v8855_v51, %v8851_v26  ;;  %v8867_v26 = vld [vmem:[%s17593_s10 + $0xc48] sm:$0xff] }
 0xa8c   : > { %12063 = vmatprep.subr.bf16.mxu1 %v12062_v8  ;;  %v8850_v8 = vld [vmem:[%s17593_s10 + $0xbc0] sm:$0xff]  ;;  %v8871_v51 = vld [vmem:[%s17593_s10 + $0xc68] sm:$0xff] }
 0xa8d   : > { %v12104_v3 = vpack.c.bf16 %v8854_v6, %v8850_v8  ;;  %v8866_v8 = vld [vmem:[%s17593_s10 + $0xc40] sm:$0xff] }
 0xa8e   : > { %v8870_v6 = vld [vmem:[%s17593_s10 + $0xc60] sm:$0xff] }
 0xa8f   : > { %12065 = vmatpush1.bf16.msra.mxu1 %v12064_v38  ;;  %v12106_v38 = vpack.c.bf16 %v8801_v11, %v8797_v34  ;;  %v8875_v34 = vld [vmem:[%s17593_s10 + $0xc88] sm:$0xff] }
 0xa90   : > { %12067 = vmatprep.subr.bf16.mxu1 %v12066_v30  ;;  %v8796_v30 = vld [vmem:[%s17593_s10 + $0xa10] sm:$0xff]  ;;  %v8879_v11 = vld [vmem:[%s17593_s10 + $0xca8] sm:$0xff] }
 0xa91   : > { %v12108_v21 = vpack.c.bf16 %v8800_v56, %v8796_v30  ;;  %v8874_v30 = vld [vmem:[%s17593_s10 + $0xc80] sm:$0xff] }
 0xa92   : > { %v8878_v56 = vld [vmem:[%s17593_s10 + $0xca0] sm:$0xff] }
 0xa93   : > { %12069 = vmatpush1.bf16.msra.mxu1 %v12068_v58  ;;  %v6828_v58 = vrot.slane %v15655_v10, 5 }
 0xa94   : > { %12071 = vmatprep.subr.bf16.mxu1 %v12070_v42  ;;  %v12110_v42 = vpack.c.bf16 %v8809_v17, %v8805_v36  ;;  %v8883_v36 = vld [vmem:[%s17593_s10 + $0xcc8] sm:$0xff] }
 0xa95   : > { %v8887_v17 = vld [vmem:[%s17593_s10 + $0xce8] sm:$0xff] }
 0xa97   : > { %12073 = vmatpush1.bf16.msra.mxu1 %v12072_v47  ;;  %v12112_v47 = vpack.c.bf16 %v8808_v22, %v8804_v24  ;;  %v8886_v24 = vld [vmem:[%s17593_s10 + $0xce0] sm:$0xff]  ;;  %v8891_v22 = vld [vmem:[%s17593_s10 + $0xd08] sm:$0xff] }
 0xa98   : > { %12075 = vmatprep.subr.bf16.mxu1 %v12074_v39  ;;  %v12114_v39 = vpack.c.bf16 %v8817_v23, %v8813_v15  ;;  %v8895_v15 = vld [vmem:[%s17593_s10 + $0xd28] sm:$0xff] }
 0xa9a   : > { %6753 = vmatmul.mubr.f32.vlgmr.msra.gmra.mrb[68].mxu1 %v6615_v59  ;;  %v12086_v59 = vpack.c.bf16 %v8823_v53, %v8819_v5  ;;  %v8837_v5 = vld [vmem:[%s17593_s10 + $0xb58] sm:$0xff] }
 0xa9b   : > { %12077 = vmatpush1.bf16.msra.mxu1 %v12076_v13  ;;  %6894 = vmatprep.mubr.f32.mxu1 %v12683_v9  ;;  %v12116_v13 = vpack.c.bf16 %v8816_v49, %v8812_v57  ;;  %v8841_v53 = vld [vmem:[%s17593_s10 + $0xb78] sm:$0xff]  ;;  %v8894_v57 = vld [vmem:[%s17593_s10 + $0xd20] sm:$0xff]  ;;  %v8899_v49 = vld [vmem:[%s17593_s10 + $0xd48] sm:$0xff] }
 0xa9c   : > { %12079 = vmatprep.subr.bf16.mxu1 %v12078_v52  ;;  %v12118_v52 = vpack.c.bf16 %v8825_v40, %v8821_v43  ;;  %v8903_v43 = vld [vmem:[%s17593_s10 + $0xd68] sm:$0xff] }
 0xa9f   : > { %12081 = vmatpush1.bf16.msra.mxu1 %v12080_v33  ;;  %v12120_v33 = vpack.c.bf16 %v8824_v46, %v8820_v44  ;;  %v8902_v44 = vld [vmem:[%s17593_s10 + $0xd60] sm:$0xff]  ;;  %v8907_v46 = vld [vmem:[%s17593_s10 + $0xd88] sm:$0xff] }
 0xaa0   : > { %12083 = vmatprep.subr.bf16.mxu1 %v12082_v48  ;;  %v12122_v48 = vpack.c.bf16 %v8833_v50, %v8829_v60  ;;  %v8911_v60 = vld [vmem:[%s17593_s10 + $0xda8] sm:$0xff] }
 0xaa3   : > { %12085 = vmatpush1.bf16.msra.mxu1 %v12084_v37  ;;  %v12124_v37 = vpack.c.bf16 %v8832_v7, %v8828_v16  ;;  %v8910_v16 = vld [vmem:[%s17593_s10 + $0xda0] sm:$0xff]  ;;  %v8915_v7 = vld [vmem:[%s17593_s10 + $0xdc8] sm:$0xff] }
 0xaa4   : > { %12087 = vmatprep.subr.bf16.mxu1 %v12086_v59  ;;  %v12126_v59 = vpack.c.bf16 %v8841_v53, %v8837_v5  ;;  %v8919_v5 = vld [vmem:[%s17593_s10 + $0xde8] sm:$0xff] }
 0xaa7   : > { %12089 = vmatpush1.bf16.msra.mxu1 %v12088_v14  ;;  %v12128_v14 = vpack.c.bf16 %v8840_v19, %v8836_v25  ;;  %v8918_v25 = vld [vmem:[%s17593_s10 + $0xde0] sm:$0xff]  ;;  %v8861_v19 = vld [vmem:[%s17593_s10 + $0xc18] sm:$0xff] }
 0xaa8   : > { %12091 = vmatprep.subr.bf16.mxu1 %v12090_v1  ;;  %v12130_v1 = vpack.c.bf16 %v8849_v61, %v8845_v45  ;;  %v8865_v45 = vld [vmem:[%s17593_s10 + $0xc38] sm:$0xff] }
 0xaab   : > { %12093 = vmatpush1.bf16.msra.mxu1 %v12092_v41  ;;  %v12132_v41 = vpack.c.bf16 %v8848_v4, %v8844_v27  ;;  %v8864_v27 = vld [vmem:[%s17593_s10 + $0xc30] sm:$0xff]  ;;  %v8869_v4 = vld [vmem:[%s17593_s10 + $0xc58] sm:$0xff] }
 0xaac   : > { %12095 = vmatprep.subr.bf16.mxu1 %v12094_v31  ;;  %v12134_v31 = vpack.c.bf16 %v8857_v54, %v8853_v20  ;;  %v8873_v20 = vld [vmem:[%s17593_s10 + $0xc78] sm:$0xff] }
 0xaaf   : > { %12097 = vmatpush1.bf16.msra.mxu1 %v12096_v63  ;;  %v12136_v63 = vpack.c.bf16 %v8856_v18, %v8852_v2  ;;  %v8868_v2 = vld [vmem:[%s17593_s10 + $0xc50] sm:$0xff] }
 0xab0   : > { %12099 = vmatprep.subr.bf16.mxu1 %v12098_v29  ;;  %v12138_v29 = vpack.c.bf16 %v8863_v32, %v8859_v12  ;;  %v8872_v18 = vld [vmem:[%s17593_s10 + $0xc70] sm:$0xff]  ;;  %v8877_v12 = vld [vmem:[%s17593_s10 + $0xc98] sm:$0xff] }
 0xab1   : > { %v8881_v32 = vld [vmem:[%s17593_s10 + $0xcb8] sm:$0xff] }
 0xab3   : > { %12101 = vmatpush1.bf16.msra.mxu1 %v12100_v55  ;;  %v12140_v55 = vpack.c.bf16 %v8862_v62, %v8858_v35  ;;  %v8876_v35 = vld [vmem:[%s17593_s10 + $0xc90] sm:$0xff] }
 0xab4   : > { %12103 = vmatprep.subr.bf16.mxu1 %v12102_v0  ;;  %v12142_v0 = vpack.c.bf16 %v8871_v51, %v8867_v26  ;;  %v8880_v62 = vld [vmem:[%s17593_s10 + $0xcb0] sm:$0xff]  ;;  %v8885_v26 = vld [vmem:[%s17593_s10 + $0xcd8] sm:$0xff] }
 0xab5   : > { %v8889_v51 = vld [vmem:[%s17593_s10 + $0xcf8] sm:$0xff] }
 0xab7   : > { %12105 = vmatpush1.bf16.msra.mxu1 %v12104_v3  ;;  %v12144_v3 = vpack.c.bf16 %v8870_v6, %v8866_v8  ;;  %v8884_v8 = vld [vmem:[%s17593_s10 + $0xcd0] sm:$0xff] }
 0xab8   : > { %12107 = vmatprep.subr.bf16.mxu1 %v12106_v38  ;;  %v12146_v38 = vpack.c.bf16 %v8879_v11, %v8875_v34  ;;  %v8888_v6 = vld [vmem:[%s17593_s10 + $0xcf0] sm:$0xff]  ;;  %v8893_v34 = vld [vmem:[%s17593_s10 + $0xd18] sm:$0xff] }
 0xab9   : > { %v8897_v11 = vld [vmem:[%s17593_s10 + $0xd38] sm:$0xff] }
 0xaba   : > { %6895 = vmatmul.mubr.f32.vlgmr.msra.gmra.mrb[66].mxu1 %v6828_v58 }
 0xabb   : > { %12109 = vmatpush1.bf16.msra.mxu1 %v12108_v21  ;;  %6965 = vmatprep.mubr.f32.mxu1 %v12683_v9  ;;  %v12148_v21 = vpack.c.bf16 %v8878_v56, %v8874_v30  ;;  %v8892_v30 = vld [vmem:[%s17593_s10 + $0xd10] sm:$0xff] }
 0xabc   : > { %12111 = vmatprep.subr.bf16.mxu1 %v12110_v42  ;;  %v8882_v42 = vld [vmem:[%s17593_s10 + $0xcc0] sm:$0xff]  ;;  %v8896_v56 = vld [vmem:[%s17593_s10 + $0xd30] sm:$0xff] }
 0xabd   : > { %v12152_v23 = vpack.c.bf16 %v8886_v24, %v8882_v42  ;;  %v8900_v42 = vld [vmem:[%s17593_s10 + $0xd50] sm:$0xff] }
 0xabe   : > { %v8904_v24 = vld [vmem:[%s17593_s10 + $0xd70] sm:$0xff] }
 0xabf   : > { %12113 = vmatpush1.bf16.msra.mxu1 %v12112_v47  ;;  %v12154_v47 = vpack.c.bf16 %v8895_v15, %v8891_v22  ;;  %v8909_v22 = vld [vmem:[%s17593_s10 + $0xd98] sm:$0xff] }
 0xac0   : > { %12115 = vmatprep.subr.bf16.mxu1 %v12114_v39  ;;  %v8890_v39 = vld [vmem:[%s17593_s10 + $0xd00] sm:$0xff]  ;;  %v8913_v15 = vld [vmem:[%s17593_s10 + $0xdb8] sm:$0xff] }
 0xac1   : > { %v12156_v40 = vpack.c.bf16 %v8894_v57, %v8890_v39  ;;  %v8908_v39 = vld [vmem:[%s17593_s10 + $0xd90] sm:$0xff] }
 0xac2   : > { %v8912_v57 = vld [vmem:[%s17593_s10 + $0xdb0] sm:$0xff] }
 0xac3   : > { %12117 = vmatpush1.bf16.msra.mxu1 %v12116_v13  ;;  %v12158_v13 = vpack.c.bf16 %v8903_v43, %v8899_v49  ;;  %v8917_v49 = vld [vmem:[%s17593_s10 + $0xdd8] sm:$0xff] }
 0xac4   : > { %12119 = vmatprep.subr.bf16.mxu1 %v12118_v52  ;;  %v8898_v52 = vld [vmem:[%s17593_s10 + $0xd40] sm:$0xff]  ;;  %v8921_v43 = vld [vmem:[%s17593_s10 + $0xdf8] sm:$0xff] }
 0xac5   : > { %v12160_v50 = vpack.c.bf16 %v8902_v44, %v8898_v52  ;;  %v8916_v52 = vld [vmem:[%s17593_s10 + $0xdd0] sm:$0xff] }
 0xac6   : > { %v8920_v44 = vld [vmem:[%s17593_s10 + $0xdf0] sm:$0xff] }
 0xac7   : > { %12121 = vmatpush1.bf16.msra.mxu1 %v12120_v33  ;;  %v12162_v33 = vpack.c.bf16 %v8911_v60, %v8907_v46  ;;  %v8923_v46 = vld [vmem:[%s17593_s10 + $0xe08] sm:$0xff] }
 0xac8   : > { %12123 = vmatprep.subr.bf16.mxu1 %v12122_v48  ;;  %v8906_v48 = vld [vmem:[%s17593_s10 + $0xd80] sm:$0xff]  ;;  %v8927_v60 = vld [vmem:[%s17593_s10 + $0xe28] sm:$0xff] }
 0xac9   : > { %v12164_v53 = vpack.c.bf16 %v8910_v16, %v8906_v48  ;;  %v8922_v48 = vld [vmem:[%s17593_s10 + $0xe00] sm:$0xff] }
 0xaca   : > { %v8926_v16 = vld [vmem:[%s17593_s10 + $0xe20] sm:$0xff] }
 0xacb   : > { %12125 = vmatpush1.bf16.msra.mxu1 %v12124_v37  ;;  %v12166_v37 = vpack.c.bf16 %v8919_v5, %v8915_v7  ;;  %v8931_v7 = vld [vmem:[%s17593_s10 + $0xe48] sm:$0xff] }
 0xacc   : > { %12127 = vmatprep.subr.bf16.mxu1 %v12126_v59  ;;  %v8914_v59 = vld [vmem:[%s17593_s10 + $0xdc0] sm:$0xff]  ;;  %v8935_v5 = vld [vmem:[%s17593_s10 + $0xe68] sm:$0xff] }
 0xacd   : > { %v12168_v61 = vpack.c.bf16 %v8918_v25, %v8914_v59  ;;  %v8930_v59 = vld [vmem:[%s17593_s10 + $0xe40] sm:$0xff] }
 0xace   : > { %v8934_v25 = vld [vmem:[%s17593_s10 + $0xe60] sm:$0xff] }
 0xacf   : > { %12129 = vmatpush1.bf16.msra.mxu1 %v12128_v14  ;;  %v12170_v14 = vpack.c.bf16 %v8865_v45, %v8861_v19  ;;  %v8939_v19 = vld [vmem:[%s17593_s10 + $0xe88] sm:$0xff] }
 0xad0   : > { %12131 = vmatprep.subr.bf16.mxu1 %v12130_v1  ;;  %v8860_v1 = vld [vmem:[%s17593_s10 + $0xc10] sm:$0xff]  ;;  %v8943_v45 = vld [vmem:[%s17593_s10 + $0xea8] sm:$0xff] }
 0xad1   : > { %v12172_v54 = vpack.c.bf16 %v8864_v27, %v8860_v1  ;;  %v7659_v1 = vld [vmem:[%s17595_s12 + $0x80] sm:$0xff]  ;;  %v7660_v27 = vld [vmem:[%s17595_s12 + $0x88] sm:$0xff] }
 0xad3   : > { %12133 = vmatpush1.bf16.msra.mxu1 %v12132_v41  ;;  %v7041_v41 = vrot.slane %v15655_v10, 6 }
 0xad4   : > { %12135 = vmatprep.subr.bf16.mxu1 %v12134_v31  ;;  %v12174_v31 = vpack.c.bf16 %v8873_v20, %v8869_v4  ;;  %v7643_v4 = vld [vmem:[%s17595_s12] sm:$0xff]  ;;  %v12208_v20 = vpack.c.bf16 %v8934_v25, %v8930_v59 }
 0xad5   : > { %v8970_v59 = vld [vmem:[%s17593_s10 + $0xf80] sm:$0xff] }
 0xad7   : > { %12137 = vmatpush1.bf16.msra.mxu1 %v12136_v63  ;;  %v12176_v63 = vpack.c.bf16 %v8872_v18, %v8868_v2  ;;  %v7662_v2 = vld [vmem:[%s17595_s12 + $0x98] sm:$0xff]  ;;  %v12210_v18 = vpack.c.bf16 %v8943_v45, %v8939_v19  ;;  %v7653_v19 = vld [vmem:[%s17595_s12 + $0x50] sm:$0xff] }
 0xad8   : > { %12139 = vmatprep.subr.bf16.mxu1 %v12138_v29  ;;  %v12178_v29 = vpack.c.bf16 %v8881_v32, %v8877_v12  ;;  %v7654_v45 = vld [vmem:[%s17595_s12 + $0x58] sm:$0xff] }
 0xada   : > { %6966 = vmatmul.mubr.f32.vlgmr.msra.gmra.mrb[68].mxu1 %v6828_v58  ;;  %v12150_v58 = vpack.c.bf16 %v8887_v17, %v8883_v36  ;;  %v8901_v36 = vld [vmem:[%s17593_s10 + $0xd58] sm:$0xff] }
 0xadb   : > { %12141 = vmatpush1.bf16.msra.mxu1 %v12140_v55  ;;  %7107 = vmatprep.mubr.f32.mxu1 %v12683_v9  ;;  %v12180_v55 = vpack.c.bf16 %v8880_v62, %v8876_v35  ;;  %v8905_v17 = vld [vmem:[%s17593_s10 + $0xd78] sm:$0xff]  ;;  %v7663_v35 = vld [vmem:[%s17595_s12 + $0xa0] sm:$0xff]  ;;  %v8947_v62 = vld [vmem:[%s17593_s10 + $0xec8] sm:$0xff] }
 0xadc   : > { %12143 = vmatprep.subr.bf16.mxu1 %v12142_v0  ;;  %v12182_v0 = vpack.c.bf16 %v8889_v51, %v8885_v26  ;;  %v8951_v26 = vld [vmem:[%s17593_s10 + $0xee8] sm:$0xff] }
 0xadd   : > { %v7664_v51 = vld [vmem:[%s17595_s12 + $0xa8] sm:$0xff] }
 0xadf   : > { %12145 = vmatpush1.bf16.msra.mxu1 %v12144_v3  ;;  %v12184_v3 = vpack.c.bf16 %v8888_v6, %v8884_v8  ;;  %v8946_v8 = vld [vmem:[%s17593_s10 + $0xec0] sm:$0xff]  ;;  %v12338_v6 = vpack.c.bf16 %v7664_v51, %v7663_v35  ;;  %v8933_v51 = vld [vmem:[%s17593_s10 + $0xe58] sm:$0xff] }
 0xae0   : > { %12147 = vmatprep.subr.bf16.mxu1 %v12146_v38  ;;  %v12186_v38 = vpack.c.bf16 %v8897_v11, %v8893_v34  ;;  %v7647_v34 = vld [vmem:[%s17595_s12 + $0x20] sm:$0xff]  ;;  %v7648_v11 = vld [vmem:[%s17595_s12 + $0x28] sm:$0xff] }
 0xae3   : > { %12149 = vmatpush1.bf16.msra.mxu1 %v12148_v21  ;;  %v12188_v21 = vpack.c.bf16 %v8896_v56, %v8892_v30  ;;  %v7665_v30 = vld [vmem:[%s17595_s12 + $0xb0] sm:$0xff]  ;;  %v7666_v56 = vld [vmem:[%s17595_s12 + $0xb8] sm:$0xff] }
 0xae4   : > { %12151 = vmatprep.subr.bf16.mxu1 %v12150_v58  ;;  %v12190_v58 = vpack.c.bf16 %v8905_v17, %v8901_v36  ;;  %v8955_v36 = vld [vmem:[%s17593_s10 + $0xf08] sm:$0xff] }
 0xae5   : > { %v8959_v17 = vld [vmem:[%s17593_s10 + $0xf28] sm:$0xff] }
 0xae7   : > { %12153 = vmatpush1.bf16.msra.mxu1 %v12152_v23  ;;  %v12192_v23 = vpack.c.bf16 %v8904_v24, %v8900_v42  ;;  %v8954_v42 = vld [vmem:[%s17593_s10 + $0xf00] sm:$0xff]  ;;  %v12342_v24 = vpack.c.bf16 %v7666_v56, %v7665_v30 }
 0xae8   : > { %12155 = vmatprep.subr.bf16.mxu1 %v12154_v47  ;;  %v12194_v47 = vpack.c.bf16 %v8913_v15, %v8909_v22  ;;  %v7649_v22 = vld [vmem:[%s17595_s12 + $0x30] sm:$0xff]  ;;  %v7650_v15 = vld [vmem:[%s17595_s12 + $0x38] sm:$0xff] }
 0xaeb   : > { %12157 = vmatpush1.bf16.msra.mxu1 %v12156_v40  ;;  %v12196_v40 = vpack.c.bf16 %v8912_v57, %v8908_v39  ;;  %v7667_v39 = vld [vmem:[%s17595_s12 + $0xc0] sm:$0xff]  ;;  %v7668_v57 = vld [vmem:[%s17595_s12 + $0xc8] sm:$0xff] }
 0xaec   : > { %12159 = vmatprep.subr.bf16.mxu1 %v12158_v13  ;;  %v12198_v13 = vpack.c.bf16 %v8921_v43, %v8917_v49  ;;  %v8963_v49 = vld [vmem:[%s17593_s10 + $0xf48] sm:$0xff] }
 0xaed   : > { %v8967_v43 = vld [vmem:[%s17593_s10 + $0xf68] sm:$0xff] }
 0xaef   : > { %12161 = vmatpush1.bf16.msra.mxu1 %v12160_v50  ;;  %v12200_v50 = vpack.c.bf16 %v8920_v44, %v8916_v52  ;;  %v8962_v52 = vld [vmem:[%s17593_s10 + $0xf40] sm:$0xff]  ;;  %v12346_v44 = vpack.c.bf16 %v7668_v57, %v7667_v39 }
 0xaf0   : > { %12163 = vmatprep.subr.bf16.mxu1 %v12162_v33  ;;  %v12202_v33 = vpack.c.bf16 %v8927_v60, %v8923_v46  ;;  %v7651_v46 = vld [vmem:[%s17595_s12 + $0x40] sm:$0xff]  ;;  %v7652_v60 = vld [vmem:[%s17595_s12 + $0x48] sm:$0xff] }
 0xaf3   : > { %12165 = vmatpush1.bf16.msra.mxu1 %v12164_v53  ;;  %v12204_v53 = vpack.c.bf16 %v8926_v16, %v8922_v48  ;;  %v7669_v48 = vld [vmem:[%s17595_s12 + $0xd0] sm:$0xff]  ;;  %v7670_v16 = vld [vmem:[%s17595_s12 + $0xd8] sm:$0xff] }
 0xaf4   : > { %12167 = vmatprep.subr.bf16.mxu1 %v12166_v37  ;;  %v12206_v37 = vpack.c.bf16 %v8935_v5, %v8931_v7  ;;  %v8971_v7 = vld [vmem:[%s17593_s10 + $0xf88] sm:$0xff]  ;;  %v12350_v25 = vpack.c.bf16 %v7670_v16, %v7669_v48 }
 0xaf5   : > { %v8975_v5 = vld [vmem:[%s17593_s10 + $0xfa8] sm:$0xff] }
 0xaf7   : > { %12169 = vmatpush1.bf16.msra.mxu1 %v12168_v61  ;;  %v8938_v61 = vld [vmem:[%s17593_s10 + $0xe80] sm:$0xff] }
 0xaf8   : > { %12171 = vmatprep.subr.bf16.mxu1 %v12170_v14  ;;  %v8942_v14 = vld [vmem:[%s17593_s10 + $0xea0] sm:$0xff] }
 0xafa   : > { %7108 = vmatmul.mubr.f32.vlgmr.msra.gmra.mrb[66].mxu1 %v7041_v41 }
 0xafb   : > { %12173 = vmatpush1.bf16.msra.mxu1 %v12172_v54  ;;  %7178 = vmatprep.mubr.f32.mxu1 %v12683_v9  ;;  %v12330_v54 = vpack.c.bf16 %v7660_v27, %v7659_v1  ;;  %v7671_v1 = vld [vmem:[%s17595_s12 + $0xe0] sm:$0xff]  ;;  %v7672_v27 = vld [vmem:[%s17595_s12 + $0xe8] sm:$0xff] }
 0xafc   : > { %12175 = vmatprep.subr.bf16.mxu1 %v12174_v31  ;;  %v7661_v31 = vld [vmem:[%s17595_s12 + $0x90] sm:$0xff] }
 0xafd   : > { %v12334_v32 = vpack.c.bf16 %v7662_v2, %v7661_v31  ;;  %12331 = vmatprep.subr.bf16.mxu0 %v12330_v54  ;;  %v12352_v54 = vpack.c.bf16 %v7654_v45, %v7653_v19  ;;  %v12354_v31 = vpack.c.bf16 %v7672_v27, %v7671_v1  ;;  %v8980_v19 = vld [vmem:[%s17593_s10 + $0xfd0] sm:$0xff] }
 0xafe   : > { %v8984_v45 = vld [vmem:[%s17593_s10 + $0xff0] sm:$0xff] }
 0xaff   : > { %12177 = vmatpush1.bf16.msra.mxu1 %v12176_v63  ;;  %v7645_v63 = vld [vmem:[%s17595_s12 + $0x10] sm:$0xff]  ;;  %v12264_v1 = vpack.c.bf16 %v8984_v45, %v8980_v19  ;;  %v9005_v45 = vld [vmem:[%s17593_s10 + $0x1098] sm:$0xff] }
 0xb00   : > { %12179 = vmatprep.subr.bf16.mxu1 %v12178_v29  ;;  %v7646_v29 = vld [vmem:[%s17595_s12 + $0x18] sm:$0xff]  ;;  %v9000_v19 = vld [vmem:[%s17593_s10 + $0x1070] sm:$0xff] }
 0xb03   : > { %12181 = vmatpush1.bf16.msra.mxu1 %v12180_v55  ;;  %v12336_v55 = vpack.c.bf16 %v7646_v29, %v7645_v63  ;;  %v8929_v63 = vld [vmem:[%s17593_s10 + $0xe38] sm:$0xff] }
 0xb04   : > { %12183 = vmatprep.subr.bf16.mxu1 %v12182_v0  ;;  %v12212_v0 = vpack.c.bf16 %v8942_v14, %v8938_v61  ;;  %v12226_v61 = vpack.c.bf16 %v8975_v5, %v8971_v7  ;;  %v8974_v14 = vld [vmem:[%s17593_s10 + $0xfa0] sm:$0xff]  ;;  %v8972_v7 = vld [vmem:[%s17593_s10 + $0xf90] sm:$0xff] }
 0xb05   : > { %v8976_v5 = vld [vmem:[%s17593_s10 + $0xfb0] sm:$0xff] }
 0xb07   : > { %12185 = vmatpush1.bf16.msra.mxu1 %v12184_v3  ;;  %v12214_v3 = vpack.c.bf16 %v8951_v26, %v8947_v62  ;;  %v8924_v62 = vld [vmem:[%s17593_s10 + $0xe10] sm:$0xff] }
 0xb08   : > { %12187 = vmatprep.subr.bf16.mxu1 %v12186_v38  ;;  %v8950_v38 = vld [vmem:[%s17593_s10 + $0xee0] sm:$0xff]  ;;  %v8928_v26 = vld [vmem:[%s17593_s10 + $0xe30] sm:$0xff] }
 0xb0b   : > { %12189 = vmatpush1.bf16.msra.mxu1 %v12188_v21  ;;  %v12340_v21 = vpack.c.bf16 %v7648_v11, %v7647_v34  ;;  %v8932_v34 = vld [vmem:[%s17593_s10 + $0xe50] sm:$0xff] }
 0xb0c   : > { %12191 = vmatprep.subr.bf16.mxu1 %v12190_v58  ;;  %v12216_v58 = vpack.c.bf16 %v8950_v38, %v8946_v8  ;;  %v7254_v8 = vrot.slane %v15655_v10, 7  ;;  %v8936_v11 = vld [vmem:[%s17593_s10 + $0xe70] sm:$0xff]  ;;  %v8945_v38 = vld [vmem:[%s17593_s10 + $0xeb8] sm:$0xff]  ;;  %v9015_v10 = vld [vmem:[%s17593_s10 + $0x10e8] sm:$0xff] }
 0xb0d   : > { %v12240_v30 = vpack.c.bf16 %v8936_v11, %v8932_v34  ;;  %v9019_v34 = vld [vmem:[%s17593_s10 + $0x1108] sm:$0xff] }
 0xb0e   : > { %v9023_v11 = vld [vmem:[%s17593_s10 + $0x1128] sm:$0xff] }
 0xb0f   : > { %12193 = vmatpush1.bf16.msra.mxu1 %v12192_v23  ;;  %v12218_v23 = vpack.c.bf16 %v8959_v17, %v8955_v36  ;;  %v8940_v36 = vld [vmem:[%s17593_s10 + $0xe90] sm:$0xff] }
 0xb10   : > { %12195 = vmatprep.subr.bf16.mxu1 %v12194_v47  ;;  %v8958_v47 = vld [vmem:[%s17593_s10 + $0xf20] sm:$0xff]  ;;  %v8944_v17 = vld [vmem:[%s17593_s10 + $0xeb0] sm:$0xff] }
 0xb13   : > { %12197 = vmatpush1.bf16.msra.mxu1 %v12196_v40  ;;  %v12344_v40 = vpack.c.bf16 %v7650_v15, %v7649_v22  ;;  %v8948_v22 = vld [vmem:[%s17593_s10 + $0xed0] sm:$0xff] }
 0xb14   : > { %12199 = vmatprep.subr.bf16.mxu1 %v12198_v13  ;;  %v12220_v13 = vpack.c.bf16 %v8958_v47, %v8954_v42  ;;  %v12244_v42 = vpack.c.bf16 %v8944_v17, %v8940_v36  ;;  %v8952_v15 = vld [vmem:[%s17593_s10 + $0xef0] sm:$0xff]  ;;  %v8961_v47 = vld [vmem:[%s17593_s10 + $0xf38] sm:$0xff]  ;;  %v9027_v36 = vld [vmem:[%s17593_s10 + $0x1148] sm:$0xff] }
 0xb15   : > { %v12248_v39 = vpack.c.bf16 %v8952_v15, %v8948_v22  ;;  %v9031_v17 = vld [vmem:[%s17593_s10 + $0x1168] sm:$0xff] }
 0xb16   : > { %v9035_v22 = vld [vmem:[%s17593_s10 + $0x1188] sm:$0xff] }
 0xb17   : > { %12201 = vmatpush1.bf16.msra.mxu1 %v12200_v50  ;;  %v12222_v50 = vpack.c.bf16 %v8967_v43, %v8963_v49  ;;  %v8956_v49 = vld [vmem:[%s17593_s10 + $0xf10] sm:$0xff]  ;;  %v9039_v15 = vld [vmem:[%s17593_s10 + $0x11a8] sm:$0xff] }
 0xb18   : > { %12203 = vmatprep.subr.bf16.mxu1 %v12202_v33  ;;  %v8966_v33 = vld [vmem:[%s17593_s10 + $0xf60] sm:$0xff]  ;;  %v8960_v43 = vld [vmem:[%s17593_s10 + $0xf30] sm:$0xff] }
 0xb1a   : > { %7179 = vmatmul.mubr.f32.vlgmr.msra.gmra.mrb[68].mxu1 %v7041_v41  ;;  %v7644_v41 = vld [vmem:[%s17595_s12 + $0x8] sm:$0xff] }
 0xb1b   : > { %12205 = vmatpush1.bf16.msra.mxu1 %v12204_v53  ;;  %7320 = vmatprep.mubr.f32.mxu1 %v12683_v9  ;;  %v12332_v12 = vpack.c.bf16 %v7644_v41, %v7643_v4  ;;  %v12348_v53 = vpack.c.bf16 %v7652_v60, %v7651_v46  ;;  %v8979_v4 = vld [vmem:[%s17593_s10 + $0xfc8] sm:$0xff]  ;;  %v12228_v41 = vpack.c.bf16 %v8974_v14, %v8970_v59  ;;  %v8964_v46 = vld [vmem:[%s17593_s10 + $0xf50] sm:$0xff] }
 0xb1c   : > { %12207 = vmatprep.subr.bf16.mxu1 %v12206_v37  ;;  %v12224_v37 = vpack.c.bf16 %v8966_v33, %v8962_v52  ;;  %v12252_v52 = vpack.c.bf16 %v8960_v43, %v8956_v49  ;;  %v8968_v60 = vld [vmem:[%s17593_s10 + $0xf70] sm:$0xff]  ;;  %v8977_v33 = vld [vmem:[%s17593_s10 + $0xfb8] sm:$0xff]  ;;  %v12260_v59 = vpack.c.bf16 %v8976_v5, %v8972_v7  ;;  %v8991_v14 = vld [vmem:[%s17593_s10 + $0x1028] sm:$0xff] }
 0xb1d   : > { %12333 = vmatpush3.bf16.msra.mxu0 %v12332_v12  ;;  %v8982_v12 = vld [vmem:[%s17593_s10 + $0xfe0] sm:$0xff]  ;;  %v12256_v48 = vpack.c.bf16 %v8968_v60, %v8964_v46  ;;  %v9043_v49 = vld [vmem:[%s17593_s10 + $0x11c8] sm:$0xff]  ;;  %v8989_v46 = vld [vmem:[%s17593_s10 + $0x1018] sm:$0xff] }
 0xb1e   : > { %12335 = vmatprep.subr.bf16.mxu0 %v12334_v32  ;;  %v8925_v32 = vld [vmem:[%s17593_s10 + $0xe18] sm:$0xff]  ;;  %v9047_v43 = vld [vmem:[%s17593_s10 + $0x11e8] sm:$0xff] }
 0xb1f   : > { %12209 = vmatpush1.bf16.msra.mxu1 %v12208_v20  ;;  %v8983_v20 = vld [vmem:[%s17593_s10 + $0xfe8] sm:$0xff]  ;;  %v12234_v35 = vpack.c.bf16 %v8929_v63, %v8925_v32  ;;  %v8993_v60 = vld [vmem:[%s17593_s10 + $0x1038] sm:$0xff] }
 0xb20   : > { %12211 = vmatprep.subr.bf16.mxu1 %v12210_v18  ;;  %v12230_v2 = vpack.c.bf16 %v8983_v20, %v8979_v4  ;;  %v8978_v18 = vld [vmem:[%s17593_s10 + $0xfc0] sm:$0xff]  ;;  %v9003_v32 = vld [vmem:[%s17593_s10 + $0x1088] sm:$0xff]  ;;  %v8997_v7 = vld [vmem:[%s17593_s10 + $0x1058] sm:$0xff] }
 0xb21   : > { %12337 = vmatpush3.bf16.msra.mxu0 %v12336_v55  ;;  %v12232_v29 = vpack.c.bf16 %v8982_v12, %v8978_v18  ;;  %v8937_v55 = vld [vmem:[%s17593_s10 + $0xe78] sm:$0xff]  ;;  %v8986_v4 = vld [vmem:[%s17593_s10 + $0x1000] sm:$0xff]  ;;  %v9007_v63 = vld [vmem:[%s17593_s10 + $0x10a8] sm:$0xff] }
 0xb22   : > { %12339 = vmatprep.subr.bf16.mxu0 %v12338_v6  ;;  %v12238_v6 = vpack.c.bf16 %v8937_v55, %v8933_v51  ;;  %v8990_v20 = vld [vmem:[%s17593_s10 + $0x1020] sm:$0xff]  ;;  %v9011_v51 = vld [vmem:[%s17593_s10 + $0x10c8] sm:$0xff]  ;;  %v9001_v5 = vld [vmem:[%s17593_s10 + $0x1078] sm:$0xff] }
 0xb23   : > { %12213 = vmatpush1.bf16.msra.mxu1 %v12212_v0  ;;  %v12236_v0 = vpack.c.bf16 %v8928_v26, %v8924_v62  ;;  %v8994_v18 = vld [vmem:[%s17593_s10 + $0x1040] sm:$0xff] }
 0xb24   : > { %12215 = vmatprep.subr.bf16.mxu1 %v12214_v3  ;;  %v8941_v3 = vld [vmem:[%s17593_s10 + $0xe98] sm:$0xff]  ;;  %v8998_v12 = vld [vmem:[%s17593_s10 + $0x1060] sm:$0xff] }
 0xb25   : > { %12341 = vmatpush3.bf16.msra.mxu0 %v12340_v21  ;;  %v12242_v56 = vpack.c.bf16 %v8945_v38, %v8941_v3  ;;  %v8949_v21 = vld [vmem:[%s17593_s10 + $0xed8] sm:$0xff]  ;;  %v9002_v62 = vld [vmem:[%s17593_s10 + $0x1080] sm:$0xff]  ;;  %v12282_v38 = vpack.c.bf16 %v9023_v11, %v9019_v34  ;;  %v9036_v11 = vld [vmem:[%s17593_s10 + $0x1190] sm:$0xff] }
 0xb26   : > { %12343 = vmatprep.subr.bf16.mxu0 %v12342_v24  ;;  %v9006_v26 = vld [vmem:[%s17593_s10 + $0x10a0] sm:$0xff] }
 0xb27   : > { %12217 = vmatpush1.bf16.msra.mxu1 %v12216_v58  ;;  %v8953_v58 = vld [vmem:[%s17593_s10 + $0xef8] sm:$0xff]  ;;  %v12276_v55 = vpack.c.bf16 %v9006_v26, %v9002_v62 }
 0xb28   : > { %12219 = vmatprep.subr.bf16.mxu1 %v12218_v23  ;;  %v12246_v24 = vpack.c.bf16 %v8953_v58, %v8949_v21  ;;  %v8957_v23 = vld [vmem:[%s17593_s10 + $0xf18] sm:$0xff]  ;;  %v12286_v58 = vpack.c.bf16 %v9031_v17, %v9027_v36  ;;  %v9044_v17 = vld [vmem:[%s17593_s10 + $0x11d0] sm:$0xff] }
 0xb29   : > { %12345 = vmatpush3.bf16.msra.mxu0 %v12344_v40  ;;  %v12250_v57 = vpack.c.bf16 %v8961_v47, %v8957_v23  ;;  %v8965_v40 = vld [vmem:[%s17593_s10 + $0xf58] sm:$0xff]  ;;  %v12290_v47 = vpack.c.bf16 %v9039_v15, %v9035_v22  ;;  %v7673_v15 = vld [vmem:[%s17595_s12 + $0xf0] sm:$0xff] }
 0xb2a   : > { %12347 = vmatprep.subr.bf16.mxu0 %v12346_v44  ;;  %v9033_v62 = vld [vmem:[%s17593_s10 + $0x1178] sm:$0xff] }
 0xb2b   : > { %12221 = vmatpush1.bf16.msra.mxu1 %v12220_v13  ;;  %v8969_v13 = vld [vmem:[%s17593_s10 + $0xf78] sm:$0xff] }
 0xb2c   : > { %12223 = vmatprep.subr.bf16.mxu1 %v12222_v50  ;;  %v12254_v44 = vpack.c.bf16 %v8969_v13, %v8965_v40  ;;  %v8973_v50 = vld [vmem:[%s17593_s10 + $0xf98] sm:$0xff]  ;;  %v12294_v13 = vpack.c.bf16 %v9047_v43, %v9043_v49  ;;  %v7691_v43 = vld [vmem:[%s17595_s12 + $0x180] sm:$0xff] }
 0xb2d   : > { %12349 = vmatpush3.bf16.msra.mxu0 %v12348_v53  ;;  %v12258_v16 = vpack.c.bf16 %v8977_v33, %v8973_v50  ;;  %v8981_v53 = vld [vmem:[%s17593_s10 + $0xfd8] sm:$0xff]  ;;  %v12298_v33 = vpack.c.bf16 %v8993_v60, %v8989_v46  ;;  %v17434_v60 = vld [vmem:[%s17594_s11] sm:$0xf] }
 0xb2e   : > { %12351 = vmatprep.subr.bf16.mxu0 %v12350_v25 }
 0xb2f   : > { %12225 = vmatpush1.bf16.msra.mxu1 %v12224_v37  ;;  %v8985_v37 = vld [vmem:[%s17593_s10 + $0xff8] sm:$0xff] }
 0xb30   : > { %12227 = vmatprep.subr.bf16.mxu1 %v12226_v61  ;;  %v12262_v25 = vpack.c.bf16 %v8985_v37, %v8981_v53  ;;  %v8987_v61 = vld [vmem:[%s17593_s10 + $0x1008] sm:$0xff]  ;;  %v5707_v37 = vmax.f32 %v15641_v28, 0.0 }
 0xb31   : > { %12353 = vmatpush3.bf16.msra.mxu0 %v12352_v54  ;;  %v12266_v27 = vpack.c.bf16 %v8991_v14, %v8987_v61  ;;  %v8995_v54 = vld [vmem:[%s17593_s10 + $0x1048] sm:$0xff]  ;;  %v9009_v61 = vld [vmem:[%s17593_s10 + $0x10b8] sm:$0xff] }
 0xb32   : > { %12355 = vmatprep.subr.bf16.mxu0 %v12354_v31  ;;  %v12268_v31 = vpack.c.bf16 %v8990_v20, %v8986_v4  ;;  %v12306_v14 = vpack.c.bf16 %v9009_v61, %v9005_v45  ;;  %v9013_v4 = vld [vmem:[%s17593_s10 + $0x10d8] sm:$0xff] }
 0xb33   : > { %12229 = vmatpush1.bf16.msra.mxu1 %v12228_v41  ;;  %v8999_v41 = vld [vmem:[%s17593_s10 + $0x1068] sm:$0xff]  ;;  %v9017_v20 = vld [vmem:[%s17593_s10 + $0x10f8] sm:$0xff] }
 0xb34   : > { %12231 = vmatprep.subr.bf16.mxu1 %v12230_v2  ;;  %v12270_v2 = vpack.c.bf16 %v8999_v41, %v8995_v54  ;;  %v12310_v54 = vpack.c.bf16 %v9017_v20, %v9013_v4  ;;  %v9012_v41 = vld [vmem:[%s17593_s10 + $0x10d0] sm:$0xff]  ;;  %v7695_v4 = vld [vmem:[%s17595_s12 + $0x1a0] sm:$0xff]  ;;  %v7696_v20 = vld [vmem:[%s17595_s12 + $0x1a8] sm:$0xff] }
 0xb37   : > { %12233 = vmatpush1.bf16.msra.mxu1 %v12232_v29  ;;  %v12272_v29 = vpack.c.bf16 %v8998_v12, %v8994_v18  ;;  %v9025_v18 = vld [vmem:[%s17593_s10 + $0x1138] sm:$0xff] }
 0xb38   : > { %12235 = vmatprep.subr.bf16.mxu1 %v12234_v35  ;;  %v12274_v35 = vpack.c.bf16 %v9007_v63, %v9003_v32  ;;  %v9020_v63 = vld [vmem:[%s17593_s10 + $0x1110] sm:$0xff] }
 0xb3a   : > { %7321 = vmatmul.mubr.f32.vlgmr.msra.gmra.mrb[66].mxu1 %v7254_v8 }
 0xb3b   : > { %12237 = vmatpush1.bf16.msra.mxu1 %v12236_v0  ;;  %7391 = vmatprep.mubr.f32.mxu1 %v12683_v9  ;;  %v12278_v0 = vpack.c.bf16 %v9015_v10, %v9011_v51  ;;  %v9028_v10 = vld [vmem:[%s17593_s10 + $0x1150] sm:$0xff] }
 0xb3c   : > { %12239 = vmatprep.subr.bf16.mxu1 %v12238_v6  ;;  %v9014_v6 = vld [vmem:[%s17593_s10 + $0x10e0] sm:$0xff] }
 0xb3f   : > { %12241 = vmatpush1.bf16.msra.mxu1 %v12240_v30  ;;  %v9018_v30 = vld [vmem:[%s17593_s10 + $0x1100] sm:$0xff] }
 0xb40   : > { %12243 = vmatprep.subr.bf16.mxu1 %v12242_v56  ;;  %v9022_v56 = vld [vmem:[%s17593_s10 + $0x1120] sm:$0xff] }
 0xb41   : > { %v12284_v21 = vpack.c.bf16 %v9022_v56, %v9018_v30  ;;  %v9049_v30 = vld [vmem:[%s17593_s10 + $0x11f8] sm:$0xff] }
 0xb43   : > { %12245 = vmatpush1.bf16.msra.mxu1 %v12244_v42  ;;  %v9026_v42 = vld [vmem:[%s17593_s10 + $0x1140] sm:$0xff] }
 0xb44   : > { %12247 = vmatprep.subr.bf16.mxu1 %v12246_v24  ;;  %v9030_v24 = vld [vmem:[%s17593_s10 + $0x1160] sm:$0xff] }
 0xb45   : > { %v12288_v23 = vpack.c.bf16 %v9030_v24, %v9026_v42  ;;  %v7655_v42 = vld [vmem:[%s17595_s12 + $0x60] sm:$0xff]  ;;  %v7656_v24 = vld [vmem:[%s17595_s12 + $0x68] sm:$0xff] }
 0xb46   : > { %v12356_v22 = vpack.c.bf16 %v7656_v24, %v7655_v42  ;;  %v7705_v24 = vld [vmem:[%s17595_s12 + $0x1f0] sm:$0xff] }
 0xb47   : > { %12249 = vmatpush1.bf16.msra.mxu1 %v12248_v39  ;;  %v9034_v39 = vld [vmem:[%s17593_s10 + $0x1180] sm:$0xff] }
 0xb48   : > { %12251 = vmatprep.subr.bf16.mxu1 %v12250_v57  ;;  %v9038_v57 = vld [vmem:[%s17593_s10 + $0x11a0] sm:$0xff]  ;;  %12357 = vmatpush3.bf16.msra.mxu0 %v12356_v22  ;;  %v7706_v22 = vld [vmem:[%s17595_s12 + $0x1f8] sm:$0xff] }
 0xb49   : > { %v12292_v40 = vpack.c.bf16 %v9038_v57, %v9034_v39  ;;  %v7657_v39 = vld [vmem:[%s17595_s12 + $0x70] sm:$0xff]  ;;  %v7658_v57 = vld [vmem:[%s17595_s12 + $0x78] sm:$0xff] }
 0xb4a   : > { %v12360_v49 = vpack.c.bf16 %v7658_v57, %v7657_v39  ;;  %v7689_v39 = vld [vmem:[%s17595_s12 + $0x170] sm:$0xff]  ;;  %v7690_v57 = vld [vmem:[%s17595_s12 + $0x178] sm:$0xff] }
 0xb4b   : > { %12253 = vmatpush1.bf16.msra.mxu1 %v12252_v52  ;;  %v9042_v52 = vld [vmem:[%s17593_s10 + $0x11c0] sm:$0xff] }
 0xb4c   : > { %12255 = vmatprep.subr.bf16.mxu1 %v12254_v44  ;;  %v9046_v44 = vld [vmem:[%s17593_s10 + $0x11e0] sm:$0xff] }
 0xb4d   : > { %v12296_v50 = vpack.c.bf16 %v9046_v44, %v9042_v52  ;;  %v7615_v52 = vlaneseq }
 0xb4f   : > { %12257 = vmatpush1.bf16.msra.mxu1 %v12256_v48  ;;  %v8988_v48 = vld [vmem:[%s17593_s10 + $0x1010] sm:$0xff]  ;;  %v17428_v44 = vshrl.u32 %v7615_v52, 7 }
 0xb50   : > { %12259 = vmatprep.subr.bf16.mxu1 %v12258_v16  ;;  %v8992_v16 = vld [vmem:[%s17593_s10 + $0x1030] sm:$0xff] }
 0xb51   : > { %v12300_v53 = vpack.c.bf16 %v8992_v16, %v8988_v48  ;;  %v7617_v46 = vsub.s32 0, %v17428_v44  ;;  %v7629_v42 = vsub.s32 3, %v17428_v44 }
 0xb53   : > { %12261 = vmatpush1.bf16.msra.mxu1 %v12260_v59  ;;  %v12302_v59 = vpack.c.bf16 %v9001_v5, %v8997_v7 }
 0xb54   : > { %12263 = vmatprep.subr.bf16.mxu1 %v12262_v25  ;;  %v8996_v25 = vld [vmem:[%s17593_s10 + $0x1050] sm:$0xff] }
 0xb55   : > { %v12304_v28 = vpack.c.bf16 %v9000_v19, %v8996_v25  ;;  %v7693_v25 = vld [vmem:[%s17595_s12 + $0x190] sm:$0xff]  ;;  %v7694_v19 = vld [vmem:[%s17595_s12 + $0x198] sm:$0xff] }
 0xb57   : > { %12265 = vmatpush1.bf16.msra.mxu1 %v12264_v1  ;;  %v9004_v1 = vld [vmem:[%s17593_s10 + $0x1090] sm:$0xff] }
 0xb58   : > { %12267 = vmatprep.subr.bf16.mxu1 %v12266_v27  ;;  %v9008_v27 = vld [vmem:[%s17593_s10 + $0x10b0] sm:$0xff] }
 0xb5a   : > { %7392 = vmatmul.mubr.f32.vlgmr.msra.gmra.mrb[68].mxu1 %v7254_v8  ;;  %v9010_v8 = vld [vmem:[%s17593_s10 + $0x10c0] sm:$0xff] }
 0xb5b   : > { %12269 = vmatpush1.bf16.msra.mxu1 %v12268_v31  ;;  %7531 = vmatprep.mubr.f32.mxu1 %v12683_v9  ;;  %v12280_v3 = vpack.c.bf16 %v9014_v6, %v9010_v8  ;;  %v9016_v31 = vld [vmem:[%s17593_s10 + $0x10f0] sm:$0xff]  ;;  %v9041_v8 = vld [vmem:[%s17593_s10 + $0x11b8] sm:$0xff] }
 0xb5c   : > { %12271 = vmatprep.subr.bf16.mxu1 %v12270_v2  ;;  %v9021_v2 = vld [vmem:[%s17593_s10 + $0x1118] sm:$0xff]  ;;  %v12312_v12 = vpack.c.bf16 %v9016_v31, %v9012_v41  ;;  %v7679_v41 = vld [vmem:[%s17595_s12 + $0x120] sm:$0xff]  ;;  %v7680_v31 = vld [vmem:[%s17595_s12 + $0x128] sm:$0xff] }
 0xb5d   : > { %v12314_v32 = vpack.c.bf16 %v9025_v18, %v9021_v2  ;;  %v7697_v2 = vld [vmem:[%s17595_s12 + $0x1b0] sm:$0xff]  ;;  %v7698_v18 = vld [vmem:[%s17595_s12 + $0x1b8] sm:$0xff] }
 0xb5f   : > { %12273 = vmatpush1.bf16.msra.mxu1 %v12272_v29  ;;  %v9024_v29 = vld [vmem:[%s17593_s10 + $0x1130] sm:$0xff] }
 0xb60   : > { %12275 = vmatprep.subr.bf16.mxu1 %v12274_v35  ;;  %v9029_v35 = vld [vmem:[%s17593_s10 + $0x1158] sm:$0xff]  ;;  %v12316_v26 = vpack.c.bf16 %v9024_v29, %v9020_v63  ;;  %v7681_v63 = vld [vmem:[%s17595_s12 + $0x130] sm:$0xff] }
 0xb61   : > { %v12318_v51 = vpack.c.bf16 %v9033_v62, %v9029_v35  ;;  %v7682_v29 = vld [vmem:[%s17595_s12 + $0x138] sm:$0xff]  ;;  %v7699_v35 = vld [vmem:[%s17595_s12 + $0x1c0] sm:$0xff]  ;;  %v7700_v62 = vld [vmem:[%s17595_s12 + $0x1c8] sm:$0xff] }
 0xb63   : > { %12277 = vmatpush1.bf16.msra.mxu1 %v12276_v55  ;;  %v9032_v55 = vld [vmem:[%s17593_s10 + $0x1170] sm:$0xff] }
 0xb64   : > { %12279 = vmatprep.subr.bf16.mxu1 %v12278_v0  ;;  %v9037_v0 = vld [vmem:[%s17593_s10 + $0x1198] sm:$0xff]  ;;  %v12320_v6 = vpack.c.bf16 %v9032_v55, %v9028_v10  ;;  %v7683_v10 = vld [vmem:[%s17595_s12 + $0x140] sm:$0xff]  ;;  %v7684_v55 = vld [vmem:[%s17595_s12 + $0x148] sm:$0xff] }
 0xb65   : > { %v12322_v34 = vpack.c.bf16 %v9041_v8, %v9037_v0  ;;  %v7701_v0 = vld [vmem:[%s17595_s12 + $0x1d0] sm:$0xff]  ;;  %v7702_v8 = vld [vmem:[%s17595_s12 + $0x1d8] sm:$0xff] }
 0xb67   : > { %12281 = vmatpush1.bf16.msra.mxu1 %v12280_v3  ;;  %v9040_v3 = vld [vmem:[%s17593_s10 + $0x11b0] sm:$0xff] }
 0xb68   : > { %12283 = vmatprep.subr.bf16.mxu1 %v12282_v38  ;;  %v9045_v38 = vld [vmem:[%s17593_s10 + $0x11d8] sm:$0xff]  ;;  %v12324_v56 = vpack.c.bf16 %v9040_v3, %v9036_v11  ;;  %v7685_v11 = vld [vmem:[%s17595_s12 + $0x150] sm:$0xff] }
 0xb69   : > { %v12326_v36 = vpack.c.bf16 %v9049_v30, %v9045_v38  ;;  %v7686_v3 = vld [vmem:[%s17595_s12 + $0x158] sm:$0xff]  ;;  %v7703_v38 = vld [vmem:[%s17595_s12 + $0x1e0] sm:$0xff]  ;;  %v7704_v30 = vld [vmem:[%s17595_s12 + $0x1e8] sm:$0xff] }
 0xb6b   : > { %12285 = vmatpush1.bf16.msra.mxu1 %v12284_v21  ;;  %v9048_v21 = vld [vmem:[%s17593_s10 + $0x11f0] sm:$0xff] }
 0xb6c   : > { %12287 = vmatprep.subr.bf16.mxu1 %v12286_v58  ;;  %v12328_v58 = vpack.c.bf16 %v9048_v21, %v9044_v17  ;;  %v7625_v17 = vsub.s32 2, %v17428_v44  ;;  %v7687_v21 = vld [vmem:[%s17595_s12 + $0x160] sm:$0xff] }
 0xb6f   : > { %12289 = vmatpush1.bf16.msra.mxu1 %v12288_v23  ;;  %v7674_v23 = vld [vmem:[%s17595_s12 + $0xf8] sm:$0xff] }
 0xb70   : > { %12291 = vmatprep.subr.bf16.mxu1 %v12290_v47  ;;  %v12358_v47 = vpack.c.bf16 %v7674_v23, %v7673_v15  ;;  %v7626_v23 = vrot.slane %v17434_v60, %v7625_v17 }
 0xb72   : > { %12359 = vmatprep.subr.bf16.mxu0 %v12358_v47  ;;  %v12390_v47 = vpack.c.bf16 %v7706_v22, %v7705_v24 }
 0xb73   : > { %12293 = vmatpush1.bf16.msra.mxu1 %v12292_v40  ;;  %12361 = vmatpush3.bf16.msra.mxu0 %v12360_v49  ;;  %v7692_v40 = vld [vmem:[%s17595_s12 + $0x188] sm:$0xff]  ;;  %v7630_v49 = vrot.slane %v17434_v60, %v7629_v42 }
 0xb74   : > { %12295 = vmatprep.subr.bf16.mxu1 %v12294_v13  ;;  %v12362_v13 = vpack.c.bf16 %v7692_v40, %v7691_v43  ;;  %v12392_v40 = vpack.c.bf16 %v7690_v57, %v7689_v39 }
 0xb76   : > { %12363 = vmatprep.subr.bf16.mxu0 %v12362_v13 }
 0xb77   : > { %12297 = vmatpush1.bf16.msra.mxu1 %v12296_v50  ;;  %v7621_v50 = vsub.s32 1, %v17428_v44 }
 0xb78   : > { %12299 = vmatprep.subr.bf16.mxu1 %v12298_v33  ;;  %v7618_v33 = vrot.slane %v17434_v60, %v7617_v46 }
 0xb79   : > { %v7622_v48 = vrot.slane %v17434_v60, %v7621_v50  ;;  %v7707_v60 = vld [vmem:[%s17596_s13] sm:$0x1] }
 0xb7a   : > { %7532 = vmatmul.mubr.f32.vlgmr.msra.gmra.mrb[66].mxu1 %v5707_v37 }
 0xb7b   : > { %12301 = vmatpush1.bf16.msra.mxu1 %v12300_v53  ;;  %7602 = vmatprep.mubr.f32.mxu1 %v12683_v9  ;;  %v12308_v9 = vpack.c.bf16 %v9008_v27, %v9004_v1  ;;  %v7675_v53 = vld [vmem:[%s17595_s12 + $0x100] sm:$0xff]  ;;  %v7677_v1 = vld [vmem:[%s17595_s12 + $0x110] sm:$0xff]  ;;  %v7678_v27 = vld [vmem:[%s17595_s12 + $0x118] sm:$0xff] }
 0xb7c   : > { %12303 = vmatprep.subr.bf16.mxu1 %v12302_v59 }
 0xb7f   : > { %12305 = vmatpush1.bf16.msra.mxu1 %v12304_v28 }
 0xb80   : > { %12307 = vmatprep.subr.bf16.mxu1 %v12306_v14  ;;  %v12366_v14 = vpack.c.bf16 %v7694_v19, %v7693_v25 }
 0xb83   : > { %12309 = vmatpush1.bf16.msra.mxu1 %v12308_v9  ;;  %v12368_v9 = vpack.c.bf16 %v7678_v27, %v7677_v1 }
 0xb84   : > { %12311 = vmatprep.subr.bf16.mxu1 %v12310_v54  ;;  %v12370_v54 = vpack.c.bf16 %v7696_v20, %v7695_v4 }
 0xb87   : > { %12313 = vmatpush1.bf16.msra.mxu1 %v12312_v12  ;;  %v12372_v12 = vpack.c.bf16 %v7680_v31, %v7679_v41 }
 0xb88   : > { %12315 = vmatprep.subr.bf16.mxu1 %v12314_v32  ;;  %v12374_v32 = vpack.c.bf16 %v7698_v18, %v7697_v2 }
 0xb8b   : > { %12317 = vmatpush1.bf16.msra.mxu1 %v12316_v26  ;;  %v12376_v26 = vpack.c.bf16 %v7682_v29, %v7681_v63 }
 0xb8c   : > { %12319 = vmatprep.subr.bf16.mxu1 %v12318_v51  ;;  %v12378_v51 = vpack.c.bf16 %v7700_v62, %v7699_v35 }
 0xb8f   : > { %12321 = vmatpush1.bf16.msra.mxu1 %v12320_v6  ;;  %v12380_v6 = vpack.c.bf16 %v7684_v55, %v7683_v10 }
 0xb90   : > { %12323 = vmatprep.subr.bf16.mxu1 %v12322_v34  ;;  %v12382_v34 = vpack.c.bf16 %v7702_v8, %v7701_v0 }
 0xb93   : > { %12325 = vmatpush1.bf16.msra.mxu1 %v12324_v56  ;;  %v12384_v56 = vpack.c.bf16 %v7686_v3, %v7685_v11 }
 0xb94   : > { %12327 = vmatprep.subr.bf16.mxu1 %v12326_v36  ;;  %v12386_v36 = vpack.c.bf16 %v7704_v30, %v7703_v38 }
 0xb97   : > { %12329 = vmatpush1.bf16.msra.mxu1 %v12328_v58  ;;  %v7688_v58 = vld [vmem:[%s17595_s12 + $0x168] sm:$0xff] }
 0xb98   : > { %v12388_v15 = vpack.c.bf16 %v7688_v58, %v7687_v21 }
 0xb9a   : > { %7603 = vmatmul.mubr.f32.vlgmr.msra.gmra.mrb[68].mxu1 %v5707_v37  ;;  %v7676_v37 = vld [vmem:[%s17595_s12 + $0x108] sm:$0xff] }
 0xb9b   : > { %v12364_v61 = vpack.c.bf16 %v7676_v37, %v7675_v53 }
 0xc4d   : > { %v7533_v16 = vpop.f32.mrb[66].mxu1 }
 0xc4e   : > { %v7635_v7 = vadd.f32 %v7618_v33, %v7533_v16  ;;  %v7535_v5 = vpop.f32.mrb[67].mxu1 }
 0xc4f   : > { %v7636_v59 = vadd.f32 %v7622_v48, %v7535_v5 }
 0xc50   : > { %v7639_v28 = vmax.f32 %v7635_v7, 0.0 }
 0xc51   : > { %v7640_v45 = vmax.f32 %v7636_v59, 0.0 }
 0xc53   : > { %7772 = vmatprep.mubr.f32.mxu0 %v7640_v45 }
 0xc54   : > { %7773 = vmatmul.mubr.f32.vlgmr.msra.gmra.mrb[248].mxu0 %v7639_v28 }
 0xc55   : > { %12365 = vmatpush3.bf16.msra.mxu0 %v12364_v61 }
 0xc56   : > { %12367 = vmatprep.subr.bf16.mxu0 %v12366_v14 }
 0xc59   : > { %12369 = vmatpush3.bf16.msra.mxu0 %v12368_v9 }
 0xc5a   : > { %12371 = vmatprep.subr.bf16.mxu0 %v12370_v54 }
 0xc5d   : > { %12373 = vmatpush3.bf16.msra.mxu0 %v12372_v12 }
 0xc5e   : > { %12375 = vmatprep.subr.bf16.mxu0 %v12374_v32 }
 0xc61   : > { %12377 = vmatpush3.bf16.msra.mxu0 %v12376_v26 }
 0xc62   : > { %12379 = vmatprep.subr.bf16.mxu0 %v12378_v51 }
 0xc65   : > { %12381 = vmatpush3.bf16.msra.mxu0 %v12380_v6 }
 0xc66   : > { %12383 = vmatprep.subr.bf16.mxu0 %v12382_v34 }
 0xc69   : > { %12385 = vmatpush3.bf16.msra.mxu0 %v12384_v56 }
 0xc6a   : > { %12387 = vmatprep.subr.bf16.mxu0 %v12386_v36 }
 0xc6d   : > { %v7604_v43 = vpop.f32.mrb[68].mxu1  ;;  %12389 = vmatpush3.bf16.msra.mxu0 %v12388_v15 }
 0xc6e   : > { %v7637_v13 = vadd.f32 %v7626_v23, %v7604_v43  ;;  %v7606_v52 = vpop.f32.mrb[69].mxu1  ;;  %12391 = vmatprep.subr.bf16.mxu0 %v12390_v47 }
 0xc6f   : > { %v7638_v44 = vadd.f32 %v7630_v49, %v7606_v52 }
 0xc70   : > { %v7641_v50 = vmax.f32 %v7637_v13, 0.0 }
 0xc71   : > { %v7642_v46 = vmax.f32 %v7638_v44, 0.0  ;;  %12393 = vmatpush3.bf16.msra.mxu0 %v12392_v40 }
 0xc73   : > { %7842 = vmatprep.mubr.f32.mxu0 %v7642_v46 }
 0xc74   : > { %7843 = vmatmul.mubr.f32.vlgmr.msra.gmra.mrb[250].mxu0 %v7641_v50 }
 0xd27   : > { %v9685_v33 = vpop.f32.mrb[248].mxu0 }
 0xd28   : > { %v9686_v48 = vpop.f32.mrb[249].mxu0 }
 0xd29   : > { %v9687_v16 = vadd.f32 %v9686_v48, %v9685_v33 }
 0xd2b   : > { %v7775_v53 = vadd.f32 %v9687_v16, %v7707_v60 }
 0xd47   : > { %v9720_v7 = vpop.f32.mrb[250].mxu0 }
 0xd48   : > { %v9721_v5 = vpop.f32.mrb[251].mxu0 }
 0xd49   : > { %v9722_v37 = vadd.f32 %v9721_v5, %v9720_v7 }
 0xd4b   : > { %v7845_v59 = vadd.f32 %v9722_v37, %v7775_v53 }
 0xd4d   : > { %7848 = vst [vmem:[%s459_s27] sm:$0x1] %v7845_v59 }
 0xd4e   : > { %12630 = shalt.err (!%p12627_p3)
}
 0xd4f   : > { %s12631_s0 = scalar_lea.hbm %s17541_s15, 16  ;;  %s12635_s18 = scalar_lea.hbm %s17597_s14, 32 }
 0xd50   : > { %p12632_p4 = scmp.ne.s32.totalorder %s17541_s15, %s12631_s0  ;;  %p12636_p9 = scmp.lt.u32.totalorder %s17541_s15, %s17597_s14 }
 0xd51   : > { %p12637_p10 = scmp.lt.u32.totalorder %s12635_s18, %s12631_s0  ;;  %p12639_p12 = scmp.lt.u32.totalorder %s12631_s0, %s17541_s15 }
 0xd52   : > { %p12633_p7 = pnand %p12632_p4, %p12798_p5 }
 0xd53   : > { %p12638_p11 = por %p12637_p10, %p12636_p9 }
 0xd54   : > { %p12634_p8 = pneg %p12633_p7 }
 0xd55   : > { %p12640_p13 = por %p12639_p12, %p12638_p11 }
 0xd57   : > { %p12641_p0 = pnand %p12640_p13, %p12634_p8 }
 0xd59   : > { %12644 = shalt.err (!%p12641_p0)
}
 0xd5a   : > { %12575 = dma.vmem_to_hbm [thread:$0]  (%p12798_p5), %s17543_s28, 16, %s17541_s15, %s7850_s1  }
 0xd5b PF: > { %p12581_p1 = scmp.ge.s32.totalorder %s12679_s16, 2  ;;  %s7874_s22 = sand.u32 1, %s12667_s29  }
 0xd5c   : > { %s7875_s21 = scalar_lea.sflag [#allocation3], %s7874_s22 }
 0xd5d   : > { %p12578_p2 = pnand %p12581_p1, %p12802_p6 }
 0xd5f   : > { %12662 = dma.done.wait (!%p12578_p2), %s7875_s21, 16  }
 0xd60   : > { %12664 = vsyncadd (!%p12578_p2), %s7875_s21, 4294967280  ;;  %s17607_s25 = sld [smem:[#allocation5_spill]]  ;;  %s17608_s15 = sld [smem:[#allocation6_spill]] }
 0xd61   : > { %p24_p3 = scmp.ge.s32.totalorder %s12785_s19, 4   ;;  %s17609_s29 = smov %s12671_s30 }
 0xd62   : > { %s17611_s16 = smov %s12785_s19 }
 0xd63   :  { %26 = sbr.rel (!%p24_p3) target bundleno = 6 (0x6), region = 145 }
 0xd66   : > { %s17610_s30 = smov %s17607_s25 }
 0xd6a   :  { %7879 = vsyncpa [#allocation3], 1 }
 0xd6b   :  { %7881 = vsyncpa [#allocation3 + $0x1], 1 }

</bundles_post_ra>
